<compile_context>
chip_gen: v5e
topology: v5e:2x2
jax: 0.10.0
libtpu: 0.0.40
codegen_flags: <defaults>
</compile_context>

<pallas_src>
import functools

import jax
import jax.numpy as jnp
from jax.experimental import pallas as pl
from jax.experimental.pallas import tpu as pltpu

EPS = 1e-5   # nn.BatchNorm2d default eps
KS = 5       # conv kernel size


def _ceil8(x):
    return ((x + 7) // 8) * 8


# --------------------------------------------------------------------------
# Fused kernel (closure over static shape constants)
# --------------------------------------------------------------------------
def make_fused_kernel(N, W, S, Q, V, C):
    Q1, Q2, Q3 = Q            # rows computed per sample per layer
    V1, V2, V3 = V            # valid spatial extent per layer
    C1, C2, C3 = C            # 32, 64, 128

    def row_mask(q, v):
        # validity of flat row r = h*W + w  (h < v and w < v); float-only math
        r = jax.lax.broadcasted_iota(jnp.int32, (q, 1), 0).astype(jnp.float32)
        h = jnp.floor(r * (1.0 / W) + 1e-4)
        w = r - h * W
        return jnp.where((h < v) & (w < v), 1.0, 0.0)

    def kernel(x_ref, onehot_ref, w1_ref, w2_ref, w3_ref,
               e1_ref, e2w_ref, e2b_ref, e3w_ref, e3b_ref,
               f1w_ref, f1b_ref, f2w_ref, f2b_ref,
               out_ref,
               a1_ref, a2_ref, a3_ref,
               c1_ref, c2_ref, c3_ref, pooled_ref):

        # ---------- class-conditioning chain (tiny, f32) ----------
        c1 = jnp.dot(onehot_ref[...], e1_ref[...],
                     preferred_element_type=jnp.float32)                 # (N, 32)
        c2 = jnp.dot(c1, e2w_ref[...],
                     preferred_element_type=jnp.float32) + e2b_ref[...]  # (N, 64)
        c3 = jnp.dot(c2, e3w_ref[...],
                     preferred_element_type=jnp.float32) + e3b_ref[...]  # (N, 128)
        c1_ref[...] = c1
        c2_ref[...] = c2
        c3_ref[...] = c3

        def bn_stats(s, ss, v, cout):
            # single-pass (f32) biased variance; pre-BN activations here have
            # |mu| ~ sigma, so cancellation is negligible at f32.
            cnt = 1.0 / float(N * v * v)
            mu = s * cnt
            var = ss * cnt - mu * mu
            return mu, jax.lax.rsqrt(var + EPS)

        # ---------- layer 1: 5x5 conv (Cin=1) as lane-dense VPU FMAs ----------
        w1 = w1_ref[...]                                   # (25, 32), hoisted
        def l1_pass1(n, carry):
            s, ss = carry
            base = pl.multiple_of(n * S, 8)
            acc = jnp.zeros((Q1, C1), jnp.float32)
            for kh in range(KS):
                for kw in range(KS):
                    t = kh * KS + kw
                    acc = acc + (x_ref[pl.ds(base + kh * W + kw, Q1), :]
                                 * w1[t:t + 1, :])
            m = row_mask(Q1, V1)
            ym = acc * m
            s = s + jnp.sum(ym, axis=0, keepdims=True)
            ss = ss + jnp.sum(ym * acc, axis=0, keepdims=True)
            a1_ref[pl.ds(base, Q1), :] = acc               # raw conv (bias dropped)
            return s, ss

        z1 = jnp.zeros((1, C1), jnp.float32)
        s, ss = jax.lax.fori_loop(0, N, l1_pass1, (z1, z1))
        mu1, inv1 = bn_stats(s, ss, V1, C1)

        # pass 2: BN + class-emb + ReLU, one whole-slab sweep per sample
        def bn_emb_relu(act_ref, c_ref, mu, inv, q):
            def body(n, carry):
                base = pl.multiple_of(n * S, 8)
                y = act_ref[pl.ds(base, q), :]
                z = (y - mu) * inv + c_ref[pl.ds(n, 1), :]
                act_ref[pl.ds(base, q), :] = jnp.maximum(z, 0.0)
                return carry
            jax.lax.fori_loop(0, N, body, 0)

        bn_emb_relu(a1_ref, c1_ref, mu1, inv1, Q1)

        # ---------- conv2 / conv3: per-kh tap concat along K, bf16 MXU dots ----------
        def conv_pass1(in_ref, act_ref, w_ref, q, v, cin, cout):
            kwc = KS * cin
            def body(n, carry):
                s, ss = carry
                base = pl.multiple_of(n * S, 8)
                acc = jnp.zeros((q, cout), jnp.float32)
                for kh in range(KS):
                    grp = jnp.concatenate(
                        [in_ref[pl.ds(base + kh * W + kw, q), :] for kw in range(KS)],
                        axis=1).astype(jnp.bfloat16)                 # (q, 5*cin)
                    acc = acc + jnp.dot(grp, w_ref[kh * kwc:(kh + 1) * kwc, :],
                                        preferred_element_type=jnp.float32)
                m = row_mask(q, v)
                ym = acc * m
                s = s + jnp.sum(ym, axis=0, keepdims=True)
                ss = ss + jnp.sum(ym * acc, axis=0, keepdims=True)
                act_ref[pl.ds(base, q), :] = acc
                return s, ss
            z = jnp.zeros((1, cout), jnp.float32)
            return jax.lax.fori_loop(0, N, body, (z, z))

        s, ss = conv_pass1(a1_ref, a2_ref, w2_ref, Q2, V2, C1, C2)
        mu2, inv2 = bn_stats(s, ss, V2, C2)
        bn_emb_relu(a2_ref, c2_ref, mu2, inv2, Q2)

        s, ss = conv_pass1(a2_ref, a3_ref, w3_ref, Q3, V3, C2, C3)
        mu3, inv3 = bn_stats(s, ss, V3, C3)

        # ---------- layer-3 BN + emb + ReLU fused with the average pool ----------
        inv_pool = 1.0 / float(V3 * V3)
        def l3_finish(n, carry):
            base = pl.multiple_of(n * S, 8)
            y = a3_ref[pl.ds(base, Q3), :]
            z = jnp.maximum((y - mu3) * inv3 + c3_ref[pl.ds(n, 1), :], 0.0)
            m = row_mask(Q3, V3)
            pooled_ref[pl.ds(n, 1), :] = (jnp.sum(z * m, axis=0, keepdims=True)
                                          * inv_pool)
            return carry
        jax.lax.fori_loop(0, N, l3_finish, 0)

        # ---------- FC head (tiny; f32 -- negligible work) ----------
        h = jnp.maximum(
            jnp.dot(pooled_ref[...], f1w_ref[...],
                    preferred_element_type=jnp.float32) + f1b_ref[...], 0.0)
        out_ref[...] = (jnp.dot(h, f2w_ref[...],
                                preferred_element_type=jnp.float32) + f2b_ref[...])

    return kernel


# --------------------------------------------------------------------------
# Wrapper: parameter prep + single pallas_call
# --------------------------------------------------------------------------
def domain_classifier_forward(raw, x_nchw, c_idx, num_classes):
    x = x_nchw.astype(jnp.float32)
    N, cin, H, W = x.shape
    assert cin == 1 and H == W and H >= 3 * (KS - 1) + 1
    S = H * W
    C1, C2, C3 = 32, 64, 128
    V1, V2, V3 = H - 4, H - 8, H - 12
    reach = (KS - 1) * W + (KS - 1)

    # rows computed per sample per layer: every layer covers all of its valid
    # rows PLUS the next layer's conv reach, so downstream window reads only
    # ever touch rows this layer has written (always finite).
    Q3 = _ceil8((V3 - 1) * W + V3)
    Q2 = _ceil8(max((V2 - 1) * W + V2, Q3 + reach))
    Q1 = _ceil8(max((V1 - 1) * W + V1, Q2 + reach))
    # explicit containment asserts (review correctness concern #2)
    assert Q1 <= S, "computed rows must fit within the per-sample stride"
    assert Q2 + reach <= Q1 and Q3 + reach <= Q2

    x_rows = _ceil8((N - 1) * S + Q1 + reach)
    assert x_rows >= N * S
    # lane-dense input: broadcast the single channel to C1 lanes on the host so
    # conv1 tap loads are dense (rows, 32) vectors; zero-pad tail rows.
    x_flat = jnp.broadcast_to(x.reshape(N * S, 1), (N * S, C1))
    x_flat = jnp.pad(x_flat, ((0, x_rows - N * S), (0, 0)))

    onehot = jax.nn.one_hot(c_idx, num_classes, dtype=jnp.float32)

    def conv_w(w):   # torch (Cout, Cin, kh, kw) -> (kh*kw*Cin, Cout), (kh,kw,cin) rows
        co, ci, kh, kw = w.shape
        return jnp.transpose(w, (2, 3, 1, 0)).reshape(kh * kw * ci, co)

    row = lambda b: b.reshape(1, -1)
    w1 = conv_w(raw["conv1_w"])                           # (25, 32) f32 (Cin == 1)
    w2 = conv_w(raw["conv2_w"]).astype(jnp.bfloat16)      # (800, 64)
    w3 = conv_w(raw["conv3_w"]).astype(jnp.bfloat16)      # (1600, 128)
    # conv biases intentionally NOT passed: train-mode BatchNorm cancels them.

    num_domains = raw["fc2_w"].shape[0]
    kernel = make_fused_kernel(N, W, S, (Q1, Q2, Q3), (V1, V2, V3), (C1, C2, C3))

    vmem = lambda: pl.BlockSpec(memory_space=pltpu.MemorySpace.VMEM)
    return pl.pallas_call(
        kernel,
        out_shape=jax.ShapeDtypeStruct((N, num_domains), jnp.float32),
        in_specs=[vmem() for _ in range(14)],
        out_specs=vmem(),
        scratch_shapes=[
            pltpu.VMEM(((N - 1) * S + Q1, C1), jnp.float32),   # layer-1 activations
            pltpu.VMEM(((N - 1) * S + Q2, C2), jnp.float32),   # layer-2 activations
            pltpu.VMEM(((N - 1) * S + Q3, C3), jnp.float32),   # layer-3 raw conv
            pltpu.VMEM((N, C1), jnp.float32),                  # emb1(c)
            pltpu.VMEM((N, C2), jnp.float32),                  # emb2 chain
            pltpu.VMEM((N, C3), jnp.float32),                  # emb3 chain
            pltpu.VMEM((N, C3), jnp.float32),                  # pooled features
        ],
        compiler_params=pltpu.CompilerParams(vmem_limit_bytes=32 * 1024 * 1024),
    )(x_flat, onehot, w1, w2, w3,
      raw["emb1_w"], raw["emb2_w"].T, row(raw["emb2_b"]),
      raw["emb3_w"].T, row(raw["emb3_b"]),
      raw["fc1_w"].T, row(raw["fc1_b"]), raw["fc2_w"].T, row(raw["fc2_b"]))


# --------------------------------------------------------------------------
# Parameter init + pure-JAX reference (correctness check)
# --------------------------------------------------------------------------
def init_raw_params(key, num_classes, num_domains):
    ks = jax.random.split(key, 16)
    n = lambda k, shape, s=0.1: jax.random.normal(k, shape, jnp.float32) * s
    return {
        "conv1_w": n(ks[0], (32, 1, 5, 5)),   "conv1_b": n(ks[1], (32,), 0.01),
        "conv2_w": n(ks[2], (64, 32, 5, 5)),  "conv2_b": n(ks[3], (64,), 0.01),
        "conv3_w": n(ks[4], (128, 64, 5, 5)), "conv3_b": n(ks[5], (128,), 0.01),
        "emb1_w":  n(ks[6], (num_classes, 32)),
        "emb2_w":  n(ks[7], (64, 32)),        "emb2_b": n(ks[8], (64,), 0.01),
        "emb3_w":  n(ks[9], (128, 64)),       "emb3_b": n(ks[10], (128,), 0.01),
        "fc1_w":   n(ks[11], (32, 128)),      "fc1_b":  n(ks[12], (32,), 0.01),
        "fc2_w":   n(ks[13], (num_domains, 32)),
        "fc2_b":   n(ks[14], (num_domains,), 0.01),
    }


def reference_forward(raw, x, c_idx):
    def conv(x, w, b):
        y = jax.lax.conv_general_dilated(
            x, w, (1, 1), "VALID", dimension_numbers=("NCHW", "OIHW", "NCHW"))
        return y + b[None, :, None, None]

    def bn(x):  # train-mode BatchNorm2d(affine=False): biased batch statistics
        mu = jnp.mean(x, axis=(0, 2, 3), keepdims=True)
        var = jnp.mean((x - mu) ** 2, axis=(0, 2, 3), keepdims=True)
        return (x - mu) / jnp.sqrt(var + EPS)

    c = raw["emb1_w"][c_idx]
    x = conv(x, raw["conv1_w"], raw["conv1_b"])
    x = jax.nn.relu(bn(x) + c[:, :, None, None])
    c = c @ raw["emb2_w"].T + raw["emb2_b"]
    x = conv(x, raw["conv2_w"], raw["conv2_b"])
    x = jax.nn.relu(bn(x) + c[:, :, None, None])
    c = c @ raw["emb3_w"].T + raw["emb3_b"]
    x = conv(x, raw["conv3_w"], raw["conv3_b"])
    x = jax.nn.relu(bn(x) + c[:, :, None, None])
    x = jnp.mean(x, axis=(2, 3))
    h = jax.nn.relu(x @ raw["fc1_w"].T + raw["fc1_b"])
    return h @ raw["fc2_w"].T + raw["fc2_b"]


# --------------------------------------------------------------------------
if __name__ == "__main__":
    num_classes, num_domains = 10, 4
    key = jax.random.PRNGKey(0)
    k_param, k_x, k_c = jax.random.split(key, 3)

    raw = init_raw_params(k_param, num_classes, num_domains)
    x = jax.random.normal(k_x, (2, 1, 16, 16), jnp.float32)   # NCHW, 1 channel
    c = jax.random.randint(k_c, (2,), 0, num_classes, dtype=jnp.int32)

    fwd = jax.jit(functools.partial(domain_classifier_forward, num_classes=num_classes))
    logits = jax.block_until_ready(fwd(raw, x, c))

    ref = reference_forward(raw, x, c)
    assert logits.shape == (2, num_domains)
    # tolerance loosened slightly vs pure-f32 because conv2/conv3 MXU operands
    # are bf16 (f32 accumulation); elementwise / BN math is f32.
    assert jnp.allclose(logits, ref, atol=2e-2, rtol=2e-2), (logits, ref)
    print("KERNEL_OK")
</pallas_src>

<mosaic_0001>
module attributes {stable_mosaic.version = 11 : i64} {
  func.func @kernel(%arg0: memref<528x32xf32, #tpu.memory_space<vmem>>, %arg1: memref<2x10xf32, #tpu.memory_space<vmem>>, %arg2: memref<25x32xf32, #tpu.memory_space<vmem>>, %arg3: memref<800x64xbf16, #tpu.memory_space<vmem>>, %arg4: memref<1600x128xbf16, #tpu.memory_space<vmem>>, %arg5: memref<10x32xf32, #tpu.memory_space<vmem>>, %arg6: memref<32x64xf32, #tpu.memory_space<vmem>>, %arg7: memref<1x64xf32, #tpu.memory_space<vmem>>, %arg8: memref<64x128xf32, #tpu.memory_space<vmem>>, %arg9: memref<1x128xf32, #tpu.memory_space<vmem>>, %arg10: memref<128x32xf32, #tpu.memory_space<vmem>>, %arg11: memref<1x32xf32, #tpu.memory_space<vmem>>, %arg12: memref<32x4xf32, #tpu.memory_space<vmem>>, %arg13: memref<1x4xf32, #tpu.memory_space<vmem>>, %arg14: memref<2x4xf32, #tpu.memory_space<vmem>>, %arg15: memref<456x32xf32, #tpu.memory_space<vmem>>, %arg16: memref<384x64xf32, #tpu.memory_space<vmem>>, %arg17: memref<312x128xf32, #tpu.memory_space<vmem>>, %arg18: memref<2x32xf32, #tpu.memory_space<vmem>>, %arg19: memref<2x64xf32, #tpu.memory_space<vmem>>, %arg20: memref<2x128xf32, #tpu.memory_space<vmem>>, %arg21: memref<2x128xf32, #tpu.memory_space<vmem>>) attributes {dimension_semantics = [], scalar_prefetch = 0 : i64, scratch_operands = 7 : i64, tpu.core_type = #tpu.core_type<tc>} {
    %c0 = arith.constant 0 : index
    %c0_0 = arith.constant 0 : index
    %0 = vector.load %arg1[%c0, %c0_0] : memref<2x10xf32, #tpu.memory_space<vmem>>, vector<2x10xf32>
    %c0_1 = arith.constant 0 : index
    %c0_2 = arith.constant 0 : index
    %1 = vector.load %arg5[%c0_1, %c0_2] : memref<10x32xf32, #tpu.memory_space<vmem>>, vector<10x32xf32>
    %cst = arith.constant dense<0.000000e+00> : vector<2x32xf32>
    %2 = tpu.matmul %0, %1, %cst {dimension_numbers = #tpu.dot_dimension_numbers<[1], [0], [0], [1], [0, 0, 1, 1], [], []>} : vector<2x10xf32>, vector<10x32xf32>, vector<2x32xf32> -> vector<2x32xf32>
    %c0_3 = arith.constant 0 : index
    %c0_4 = arith.constant 0 : index
    %3 = vector.load %arg6[%c0_3, %c0_4] : memref<32x64xf32, #tpu.memory_space<vmem>>, vector<32x64xf32>
    %cst_5 = arith.constant dense<0.000000e+00> : vector<2x64xf32>
    %4 = tpu.matmul %2, %3, %cst_5 {dimension_numbers = #tpu.dot_dimension_numbers<[1], [0], [0], [1], [0, 0, 1, 1], [], []>} : vector<2x32xf32>, vector<32x64xf32>, vector<2x64xf32> -> vector<2x64xf32>
    %c0_6 = arith.constant 0 : index
    %c0_7 = arith.constant 0 : index
    %5 = vector.load %arg7[%c0_6, %c0_7] : memref<1x64xf32, #tpu.memory_space<vmem>>, vector<1x64xf32>
    %6 = vector.broadcast %5 : vector<1x64xf32> to vector<2x64xf32>
    %7 = arith.addf %4, %6 : vector<2x64xf32>
    %c0_8 = arith.constant 0 : index
    %c0_9 = arith.constant 0 : index
    %8 = vector.load %arg8[%c0_8, %c0_9] : memref<64x128xf32, #tpu.memory_space<vmem>>, vector<64x128xf32>
    %cst_10 = arith.constant dense<0.000000e+00> : vector<2x128xf32>
    %9 = tpu.matmul %7, %8, %cst_10 {dimension_numbers = #tpu.dot_dimension_numbers<[1], [0], [0], [1], [0, 0, 1, 1], [], []>} : vector<2x64xf32>, vector<64x128xf32>, vector<2x128xf32> -> vector<2x128xf32>
    %c0_11 = arith.constant 0 : index
    %c0_12 = arith.constant 0 : index
    %10 = vector.load %arg9[%c0_11, %c0_12] : memref<1x128xf32, #tpu.memory_space<vmem>>, vector<1x128xf32>
    %11 = vector.broadcast %10 : vector<1x128xf32> to vector<2x128xf32>
    %12 = arith.addf %9, %11 : vector<2x128xf32>
    %c0_13 = arith.constant 0 : index
    %c0_14 = arith.constant 0 : index
    %13 = vector.load %arg18[%c0_13, %c0_14] : memref<2x32xf32, #tpu.memory_space<vmem>>, vector<2x32xf32>
    tpu.vector_store %arg18[%c0_13, %c0_14], %2 {strides = array<i32>} : memref<2x32xf32, #tpu.memory_space<vmem>>, vector<2x32xf32>,
    %c0_15 = arith.constant 0 : index
    %c0_16 = arith.constant 0 : index
    %14 = vector.load %arg19[%c0_15, %c0_16] : memref<2x64xf32, #tpu.memory_space<vmem>>, vector<2x64xf32>
    tpu.vector_store %arg19[%c0_15, %c0_16], %7 {strides = array<i32>} : memref<2x64xf32, #tpu.memory_space<vmem>>, vector<2x64xf32>,
    %c0_17 = arith.constant 0 : index
    %c0_18 = arith.constant 0 : index
    %15 = vector.load %arg20[%c0_17, %c0_18] : memref<2x128xf32, #tpu.memory_space<vmem>>, vector<2x128xf32>
    tpu.vector_store %arg20[%c0_17, %c0_18], %12 {strides = array<i32>} : memref<2x128xf32, #tpu.memory_space<vmem>>, vector<2x128xf32>,
    %c0_19 = arith.constant 0 : index
    %c0_20 = arith.constant 0 : index
    %16 = vector.load %arg2[%c0_19, %c0_20] : memref<25x32xf32, #tpu.memory_space<vmem>>, vector<25x32xf32>
    %cst_21 = arith.constant 0.000000e+00 : f32
    %17 = vector.broadcast %cst_21 : f32 to vector<1x32xf32>
    %c0_i32 = arith.constant 0 : i32
    %c2_i32 = arith.constant 2 : i32
    %18 = arith.addi %c0_i32, %c2_i32 : i32
    %c1_i32 = arith.constant 1 : i32
    %19:2 = scf.for %arg22 = %c0_i32 to %18 step %c1_i32 iter_args(%arg23 = %17, %arg24 = %17) -> (vector<1x32xf32>, vector<1x32xf32>)  : i32 {
      %c256_i32 = arith.constant 256 : i32
      %70 = arith.muli %arg22, %c256_i32 : i32
      %71 = tpu.assume_multiple %70, 8 : i32
      %cst_69 = arith.constant 0.000000e+00 : f32
      %72 = vector.broadcast %cst_69 : f32 to vector<200x32xf32>
      %c0_i32_70 = arith.constant 0 : i32
      %73 = arith.addi %71, %c0_i32_70 : i32
      %c0_i32_71 = arith.constant 0 : i32
      %74 = arith.addi %73, %c0_i32_71 : i32
      %75 = arith.index_cast %74 : i32 to index
      %c0_72 = arith.constant 0 : index
      %76 = vector.load %arg0[%75, %c0_72] : memref<528x32xf32, #tpu.memory_space<vmem>>, vector<200x32xf32>
      %77 = vector.extract_strided_slice %16 {offsets = [0, 0], sizes = [1, 32], strides = [1, 1]} : vector<25x32xf32> to vector<1x32xf32>
      %78 = vector.broadcast %77 : vector<1x32xf32> to vector<200x32xf32>
      %79 = arith.mulf %76, %78 : vector<200x32xf32>
      %80 = arith.addf %72, %79 : vector<200x32xf32>
      %c0_i32_73 = arith.constant 0 : i32
      %81 = arith.addi %71, %c0_i32_73 : i32
      %c1_i32_74 = arith.constant 1 : i32
      %82 = arith.addi %81, %c1_i32_74 : i32
      %83 = arith.index_cast %82 : i32 to index
      %c0_75 = arith.constant 0 : index
      %84 = vector.load %arg0[%83, %c0_75] : memref<528x32xf32, #tpu.memory_space<vmem>>, vector<200x32xf32>
      %85 = vector.extract_strided_slice %16 {offsets = [1, 0], sizes = [1, 32], strides = [1, 1]} : vector<25x32xf32> to vector<1x32xf32>
      %86 = vector.broadcast %85 : vector<1x32xf32> to vector<200x32xf32>
      %87 = arith.mulf %84, %86 : vector<200x32xf32>
      %88 = arith.addf %80, %87 : vector<200x32xf32>
      %c0_i32_76 = arith.constant 0 : i32
      %89 = arith.addi %71, %c0_i32_76 : i32
      %c2_i32_77 = arith.constant 2 : i32
      %90 = arith.addi %89, %c2_i32_77 : i32
      %91 = arith.index_cast %90 : i32 to index
      %c0_78 = arith.constant 0 : index
      %92 = vector.load %arg0[%91, %c0_78] : memref<528x32xf32, #tpu.memory_space<vmem>>, vector<200x32xf32>
      %93 = vector.extract_strided_slice %16 {offsets = [2, 0], sizes = [1, 32], strides = [1, 1]} : vector<25x32xf32> to vector<1x32xf32>
      %94 = vector.broadcast %93 : vector<1x32xf32> to vector<200x32xf32>
      %95 = arith.mulf %92, %94 : vector<200x32xf32>
      %96 = arith.addf %88, %95 : vector<200x32xf32>
      %c0_i32_79 = arith.constant 0 : i32
      %97 = arith.addi %71, %c0_i32_79 : i32
      %c3_i32 = arith.constant 3 : i32
      %98 = arith.addi %97, %c3_i32 : i32
      %99 = arith.index_cast %98 : i32 to index
      %c0_80 = arith.constant 0 : index
      %100 = vector.load %arg0[%99, %c0_80] : memref<528x32xf32, #tpu.memory_space<vmem>>, vector<200x32xf32>
      %101 = vector.extract_strided_slice %16 {offsets = [3, 0], sizes = [1, 32], strides = [1, 1]} : vector<25x32xf32> to vector<1x32xf32>
      %102 = vector.broadcast %101 : vector<1x32xf32> to vector<200x32xf32>
      %103 = arith.mulf %100, %102 : vector<200x32xf32>
      %104 = arith.addf %96, %103 : vector<200x32xf32>
      %c0_i32_81 = arith.constant 0 : i32
      %105 = arith.addi %71, %c0_i32_81 : i32
      %c4_i32 = arith.constant 4 : i32
      %106 = arith.addi %105, %c4_i32 : i32
      %107 = arith.index_cast %106 : i32 to index
      %c0_82 = arith.constant 0 : index
      %108 = vector.load %arg0[%107, %c0_82] : memref<528x32xf32, #tpu.memory_space<vmem>>, vector<200x32xf32>
      %109 = vector.extract_strided_slice %16 {offsets = [4, 0], sizes = [1, 32], strides = [1, 1]} : vector<25x32xf32> to vector<1x32xf32>
      %110 = vector.broadcast %109 : vector<1x32xf32> to vector<200x32xf32>
      %111 = arith.mulf %108, %110 : vector<200x32xf32>
      %112 = arith.addf %104, %111 : vector<200x32xf32>
      %c16_i32 = arith.constant 16 : i32
      %113 = arith.addi %71, %c16_i32 : i32
      %c0_i32_83 = arith.constant 0 : i32
      %114 = arith.addi %113, %c0_i32_83 : i32
      %115 = arith.index_cast %114 : i32 to index
      %c0_84 = arith.constant 0 : index
      %116 = vector.load %arg0[%115, %c0_84] : memref<528x32xf32, #tpu.memory_space<vmem>>, vector<200x32xf32>
      %117 = vector.extract_strided_slice %16 {offsets = [5, 0], sizes = [1, 32], strides = [1, 1]} : vector<25x32xf32> to vector<1x32xf32>
      %118 = vector.broadcast %117 : vector<1x32xf32> to vector<200x32xf32>
      %119 = arith.mulf %116, %118 : vector<200x32xf32>
      %120 = arith.addf %112, %119 : vector<200x32xf32>
      %c16_i32_85 = arith.constant 16 : i32
      %121 = arith.addi %71, %c16_i32_85 : i32
      %c1_i32_86 = arith.constant 1 : i32
      %122 = arith.addi %121, %c1_i32_86 : i32
      %123 = arith.index_cast %122 : i32 to index
      %c0_87 = arith.constant 0 : index
      %124 = vector.load %arg0[%123, %c0_87] : memref<528x32xf32, #tpu.memory_space<vmem>>, vector<200x32xf32>
      %125 = vector.extract_strided_slice %16 {offsets = [6, 0], sizes = [1, 32], strides = [1, 1]} : vector<25x32xf32> to vector<1x32xf32>
      %126 = vector.broadcast %125 : vector<1x32xf32> to vector<200x32xf32>
      %127 = arith.mulf %124, %126 : vector<200x32xf32>
      %128 = arith.addf %120, %127 : vector<200x32xf32>
      %c16_i32_88 = arith.constant 16 : i32
      %129 = arith.addi %71, %c16_i32_88 : i32
      %c2_i32_89 = arith.constant 2 : i32
      %130 = arith.addi %129, %c2_i32_89 : i32
      %131 = arith.index_cast %130 : i32 to index
      %c0_90 = arith.constant 0 : index
      %132 = vector.load %arg0[%131, %c0_90] : memref<528x32xf32, #tpu.memory_space<vmem>>, vector<200x32xf32>
      %133 = vector.extract_strided_slice %16 {offsets = [7, 0], sizes = [1, 32], strides = [1, 1]} : vector<25x32xf32> to vector<1x32xf32>
      %134 = vector.broadcast %133 : vector<1x32xf32> to vector<200x32xf32>
      %135 = arith.mulf %132, %134 : vector<200x32xf32>
      %136 = arith.addf %128, %135 : vector<200x32xf32>
      %c16_i32_91 = arith.constant 16 : i32
      %137 = arith.addi %71, %c16_i32_91 : i32
      %c3_i32_92 = arith.constant 3 : i32
      %138 = arith.addi %137, %c3_i32_92 : i32
      %139 = arith.index_cast %138 : i32 to index
      %c0_93 = arith.constant 0 : index
      %140 = vector.load %arg0[%139, %c0_93] : memref<528x32xf32, #tpu.memory_space<vmem>>, vector<200x32xf32>
      %141 = vector.extract_strided_slice %16 {offsets = [8, 0], sizes = [1, 32], strides = [1, 1]} : vector<25x32xf32> to vector<1x32xf32>
      %142 = vector.broadcast %141 : vector<1x32xf32> to vector<200x32xf32>
      %143 = arith.mulf %140, %142 : vector<200x32xf32>
      %144 = arith.addf %136, %143 : vector<200x32xf32>
      %c16_i32_94 = arith.constant 16 : i32
      %145 = arith.addi %71, %c16_i32_94 : i32
      %c4_i32_95 = arith.constant 4 : i32
      %146 = arith.addi %145, %c4_i32_95 : i32
      %147 = arith.index_cast %146 : i32 to index
      %c0_96 = arith.constant 0 : index
      %148 = vector.load %arg0[%147, %c0_96] : memref<528x32xf32, #tpu.memory_space<vmem>>, vector<200x32xf32>
      %149 = vector.extract_strided_slice %16 {offsets = [9, 0], sizes = [1, 32], strides = [1, 1]} : vector<25x32xf32> to vector<1x32xf32>
      %150 = vector.broadcast %149 : vector<1x32xf32> to vector<200x32xf32>
      %151 = arith.mulf %148, %150 : vector<200x32xf32>
      %152 = arith.addf %144, %151 : vector<200x32xf32>
      %c32_i32 = arith.constant 32 : i32
      %153 = arith.addi %71, %c32_i32 : i32
      %c0_i32_97 = arith.constant 0 : i32
      %154 = arith.addi %153, %c0_i32_97 : i32
      %155 = arith.index_cast %154 : i32 to index
      %c0_98 = arith.constant 0 : index
      %156 = vector.load %arg0[%155, %c0_98] : memref<528x32xf32, #tpu.memory_space<vmem>>, vector<200x32xf32>
      %157 = vector.extract_strided_slice %16 {offsets = [10, 0], sizes = [1, 32], strides = [1, 1]} : vector<25x32xf32> to vector<1x32xf32>
      %158 = vector.broadcast %157 : vector<1x32xf32> to vector<200x32xf32>
      %159 = arith.mulf %156, %158 : vector<200x32xf32>
      %160 = arith.addf %152, %159 : vector<200x32xf32>
      %c32_i32_99 = arith.constant 32 : i32
      %161 = arith.addi %71, %c32_i32_99 : i32
      %c1_i32_100 = arith.constant 1 : i32
      %162 = arith.addi %161, %c1_i32_100 : i32
      %163 = arith.index_cast %162 : i32 to index
      %c0_101 = arith.constant 0 : index
      %164 = vector.load %arg0[%163, %c0_101] : memref<528x32xf32, #tpu.memory_space<vmem>>, vector<200x32xf32>
      %165 = vector.extract_strided_slice %16 {offsets = [11, 0], sizes = [1, 32], strides = [1, 1]} : vector<25x32xf32> to vector<1x32xf32>
      %166 = vector.broadcast %165 : vector<1x32xf32> to vector<200x32xf32>
      %167 = arith.mulf %164, %166 : vector<200x32xf32>
      %168 = arith.addf %160, %167 : vector<200x32xf32>
      %c32_i32_102 = arith.constant 32 : i32
      %169 = arith.addi %71, %c32_i32_102 : i32
      %c2_i32_103 = arith.constant 2 : i32
      %170 = arith.addi %169, %c2_i32_103 : i32
      %171 = arith.index_cast %170 : i32 to index
      %c0_104 = arith.constant 0 : index
      %172 = vector.load %arg0[%171, %c0_104] : memref<528x32xf32, #tpu.memory_space<vmem>>, vector<200x32xf32>
      %173 = vector.extract_strided_slice %16 {offsets = [12, 0], sizes = [1, 32], strides = [1, 1]} : vector<25x32xf32> to vector<1x32xf32>
      %174 = vector.broadcast %173 : vector<1x32xf32> to vector<200x32xf32>
      %175 = arith.mulf %172, %174 : vector<200x32xf32>
      %176 = arith.addf %168, %175 : vector<200x32xf32>
      %c32_i32_105 = arith.constant 32 : i32
      %177 = arith.addi %71, %c32_i32_105 : i32
      %c3_i32_106 = arith.constant 3 : i32
      %178 = arith.addi %177, %c3_i32_106 : i32
      %179 = arith.index_cast %178 : i32 to index
      %c0_107 = arith.constant 0 : index
      %180 = vector.load %arg0[%179, %c0_107] : memref<528x32xf32, #tpu.memory_space<vmem>>, vector<200x32xf32>
      %181 = vector.extract_strided_slice %16 {offsets = [13, 0], sizes = [1, 32], strides = [1, 1]} : vector<25x32xf32> to vector<1x32xf32>
      %182 = vector.broadcast %181 : vector<1x32xf32> to vector<200x32xf32>
      %183 = arith.mulf %180, %182 : vector<200x32xf32>
      %184 = arith.addf %176, %183 : vector<200x32xf32>
      %c32_i32_108 = arith.constant 32 : i32
      %185 = arith.addi %71, %c32_i32_108 : i32
      %c4_i32_109 = arith.constant 4 : i32
      %186 = arith.addi %185, %c4_i32_109 : i32
      %187 = arith.index_cast %186 : i32 to index
      %c0_110 = arith.constant 0 : index
      %188 = vector.load %arg0[%187, %c0_110] : memref<528x32xf32, #tpu.memory_space<vmem>>, vector<200x32xf32>
      %189 = vector.extract_strided_slice %16 {offsets = [14, 0], sizes = [1, 32], strides = [1, 1]} : vector<25x32xf32> to vector<1x32xf32>
      %190 = vector.broadcast %189 : vector<1x32xf32> to vector<200x32xf32>
      %191 = arith.mulf %188, %190 : vector<200x32xf32>
      %192 = arith.addf %184, %191 : vector<200x32xf32>
      %c48_i32 = arith.constant 48 : i32
      %193 = arith.addi %71, %c48_i32 : i32
      %c0_i32_111 = arith.constant 0 : i32
      %194 = arith.addi %193, %c0_i32_111 : i32
      %195 = arith.index_cast %194 : i32 to index
      %c0_112 = arith.constant 0 : index
      %196 = vector.load %arg0[%195, %c0_112] : memref<528x32xf32, #tpu.memory_space<vmem>>, vector<200x32xf32>
      %197 = vector.extract_strided_slice %16 {offsets = [15, 0], sizes = [1, 32], strides = [1, 1]} : vector<25x32xf32> to vector<1x32xf32>
      %198 = vector.broadcast %197 : vector<1x32xf32> to vector<200x32xf32>
      %199 = arith.mulf %196, %198 : vector<200x32xf32>
      %200 = arith.addf %192, %199 : vector<200x32xf32>
      %c48_i32_113 = arith.constant 48 : i32
      %201 = arith.addi %71, %c48_i32_113 : i32
      %c1_i32_114 = arith.constant 1 : i32
      %202 = arith.addi %201, %c1_i32_114 : i32
      %203 = arith.index_cast %202 : i32 to index
      %c0_115 = arith.constant 0 : index
      %204 = vector.load %arg0[%203, %c0_115] : memref<528x32xf32, #tpu.memory_space<vmem>>, vector<200x32xf32>
      %205 = vector.extract_strided_slice %16 {offsets = [16, 0], sizes = [1, 32], strides = [1, 1]} : vector<25x32xf32> to vector<1x32xf32>
      %206 = vector.broadcast %205 : vector<1x32xf32> to vector<200x32xf32>
      %207 = arith.mulf %204, %206 : vector<200x32xf32>
      %208 = arith.addf %200, %207 : vector<200x32xf32>
      %c48_i32_116 = arith.constant 48 : i32
      %209 = arith.addi %71, %c48_i32_116 : i32
      %c2_i32_117 = arith.constant 2 : i32
      %210 = arith.addi %209, %c2_i32_117 : i32
      %211 = arith.index_cast %210 : i32 to index
      %c0_118 = arith.constant 0 : index
      %212 = vector.load %arg0[%211, %c0_118] : memref<528x32xf32, #tpu.memory_space<vmem>>, vector<200x32xf32>
      %213 = vector.extract_strided_slice %16 {offsets = [17, 0], sizes = [1, 32], strides = [1, 1]} : vector<25x32xf32> to vector<1x32xf32>
      %214 = vector.broadcast %213 : vector<1x32xf32> to vector<200x32xf32>
      %215 = arith.mulf %212, %214 : vector<200x32xf32>
      %216 = arith.addf %208, %215 : vector<200x32xf32>
      %c48_i32_119 = arith.constant 48 : i32
      %217 = arith.addi %71, %c48_i32_119 : i32
      %c3_i32_120 = arith.constant 3 : i32
      %218 = arith.addi %217, %c3_i32_120 : i32
      %219 = arith.index_cast %218 : i32 to index
      %c0_121 = arith.constant 0 : index
      %220 = vector.load %arg0[%219, %c0_121] : memref<528x32xf32, #tpu.memory_space<vmem>>, vector<200x32xf32>
      %221 = vector.extract_strided_slice %16 {offsets = [18, 0], sizes = [1, 32], strides = [1, 1]} : vector<25x32xf32> to vector<1x32xf32>
      %222 = vector.broadcast %221 : vector<1x32xf32> to vector<200x32xf32>
      %223 = arith.mulf %220, %222 : vector<200x32xf32>
      %224 = arith.addf %216, %223 : vector<200x32xf32>
      %c48_i32_122 = arith.constant 48 : i32
      %225 = arith.addi %71, %c48_i32_122 : i32
      %c4_i32_123 = arith.constant 4 : i32
      %226 = arith.addi %225, %c4_i32_123 : i32
      %227 = arith.index_cast %226 : i32 to index
      %c0_124 = arith.constant 0 : index
      %228 = vector.load %arg0[%227, %c0_124] : memref<528x32xf32, #tpu.memory_space<vmem>>, vector<200x32xf32>
      %229 = vector.extract_strided_slice %16 {offsets = [19, 0], sizes = [1, 32], strides = [1, 1]} : vector<25x32xf32> to vector<1x32xf32>
      %230 = vector.broadcast %229 : vector<1x32xf32> to vector<200x32xf32>
      %231 = arith.mulf %228, %230 : vector<200x32xf32>
      %232 = arith.addf %224, %231 : vector<200x32xf32>
      %c64_i32 = arith.constant 64 : i32
      %233 = arith.addi %71, %c64_i32 : i32
      %c0_i32_125 = arith.constant 0 : i32
      %234 = arith.addi %233, %c0_i32_125 : i32
      %235 = arith.index_cast %234 : i32 to index
      %c0_126 = arith.constant 0 : index
      %236 = vector.load %arg0[%235, %c0_126] : memref<528x32xf32, #tpu.memory_space<vmem>>, vector<200x32xf32>
      %237 = vector.extract_strided_slice %16 {offsets = [20, 0], sizes = [1, 32], strides = [1, 1]} : vector<25x32xf32> to vector<1x32xf32>
      %238 = vector.broadcast %237 : vector<1x32xf32> to vector<200x32xf32>
      %239 = arith.mulf %236, %238 : vector<200x32xf32>
      %240 = arith.addf %232, %239 : vector<200x32xf32>
      %c64_i32_127 = arith.constant 64 : i32
      %241 = arith.addi %71, %c64_i32_127 : i32
      %c1_i32_128 = arith.constant 1 : i32
      %242 = arith.addi %241, %c1_i32_128 : i32
      %243 = arith.index_cast %242 : i32 to index
      %c0_129 = arith.constant 0 : index
      %244 = vector.load %arg0[%243, %c0_129] : memref<528x32xf32, #tpu.memory_space<vmem>>, vector<200x32xf32>
      %245 = vector.extract_strided_slice %16 {offsets = [21, 0], sizes = [1, 32], strides = [1, 1]} : vector<25x32xf32> to vector<1x32xf32>
      %246 = vector.broadcast %245 : vector<1x32xf32> to vector<200x32xf32>
      %247 = arith.mulf %244, %246 : vector<200x32xf32>
      %248 = arith.addf %240, %247 : vector<200x32xf32>
      %c64_i32_130 = arith.constant 64 : i32
      %249 = arith.addi %71, %c64_i32_130 : i32
      %c2_i32_131 = arith.constant 2 : i32
      %250 = arith.addi %249, %c2_i32_131 : i32
      %251 = arith.index_cast %250 : i32 to index
      %c0_132 = arith.constant 0 : index
      %252 = vector.load %arg0[%251, %c0_132] : memref<528x32xf32, #tpu.memory_space<vmem>>, vector<200x32xf32>
      %253 = vector.extract_strided_slice %16 {offsets = [22, 0], sizes = [1, 32], strides = [1, 1]} : vector<25x32xf32> to vector<1x32xf32>
      %254 = vector.broadcast %253 : vector<1x32xf32> to vector<200x32xf32>
      %255 = arith.mulf %252, %254 : vector<200x32xf32>
      %256 = arith.addf %248, %255 : vector<200x32xf32>
      %c64_i32_133 = arith.constant 64 : i32
      %257 = arith.addi %71, %c64_i32_133 : i32
      %c3_i32_134 = arith.constant 3 : i32
      %258 = arith.addi %257, %c3_i32_134 : i32
      %259 = arith.index_cast %258 : i32 to index
      %c0_135 = arith.constant 0 : index
      %260 = vector.load %arg0[%259, %c0_135] : memref<528x32xf32, #tpu.memory_space<vmem>>, vector<200x32xf32>
      %261 = vector.extract_strided_slice %16 {offsets = [23, 0], sizes = [1, 32], strides = [1, 1]} : vector<25x32xf32> to vector<1x32xf32>
      %262 = vector.broadcast %261 : vector<1x32xf32> to vector<200x32xf32>
      %263 = arith.mulf %260, %262 : vector<200x32xf32>
      %264 = arith.addf %256, %263 : vector<200x32xf32>
      %c64_i32_136 = arith.constant 64 : i32
      %265 = arith.addi %71, %c64_i32_136 : i32
      %c4_i32_137 = arith.constant 4 : i32
      %266 = arith.addi %265, %c4_i32_137 : i32
      %267 = arith.index_cast %266 : i32 to index
      %c0_138 = arith.constant 0 : index
      %268 = vector.load %arg0[%267, %c0_138] : memref<528x32xf32, #tpu.memory_space<vmem>>, vector<200x32xf32>
      %269 = vector.extract_strided_slice %16 {offsets = [24, 0], sizes = [1, 32], strides = [1, 1]} : vector<25x32xf32> to vector<1x32xf32>
      %270 = vector.broadcast %269 : vector<1x32xf32> to vector<200x32xf32>
      %271 = arith.mulf %268, %270 : vector<200x32xf32>
      %272 = arith.addf %264, %271 : vector<200x32xf32>
      %273 = tpu.iota {dimensions = array<i32: 0>} : vector<200x1xi32>
      %274 = arith.sitofp %273 : vector<200x1xi32> to vector<200x1xf32>
      %cst_139 = arith.constant 6.250000e-02 : f32
      %275 = vector.broadcast %cst_139 : f32 to vector<200x1xf32>
      %276 = arith.mulf %274, %275 : vector<200x1xf32>
      %cst_140 = arith.constant 9.99999974E-5 : f32
      %277 = vector.broadcast %cst_140 : f32 to vector<200x1xf32>
      %278 = arith.addf %276, %277 : vector<200x1xf32>
      %279 = math.floor %278 : vector<200x1xf32>
      %cst_141 = arith.constant 1.600000e+01 : f32
      %280 = vector.broadcast %cst_141 : f32 to vector<200x1xf32>
      %281 = arith.mulf %279, %280 : vector<200x1xf32>
      %282 = arith.subf %274, %281 : vector<200x1xf32>
      %cst_142 = arith.constant 1.200000e+01 : f32
      %283 = vector.broadcast %cst_142 : f32 to vector<200x1xf32>
      %284 = arith.cmpf olt, %279, %283 : vector<200x1xf32>
      %cst_143 = arith.constant 1.200000e+01 : f32
      %285 = vector.broadcast %cst_143 : f32 to vector<200x1xf32>
      %286 = arith.cmpf olt, %282, %285 : vector<200x1xf32>
      %287 = arith.andi %284, %286 : vector<200x1xi1>
      %cst_144 = arith.constant 1.000000e+00 : f32
      %cst_145 = arith.constant 0.000000e+00 : f32
      %288 = vector.broadcast %cst_144 : f32 to vector<200x1xf32>
      %289 = vector.broadcast %cst_145 : f32 to vector<200x1xf32>
      %290 = arith.select %287, %288, %289 : vector<200x1xi1>, vector<200x1xf32>
      %291 = vector.broadcast %290 : vector<200x1xf32> to vector<200x32xf32>
      %292 = arith.mulf %272, %291 : vector<200x32xf32>
      %cst_146 = arith.constant dense<0.000000e+00> : vector<32xf32>
      %293 = vector.multi_reduction <add>, %292, %cst_146 [0] : vector<200x32xf32> to vector<32xf32>
      %294 = vector.shape_cast %293 : vector<32xf32> to vector<1x32xf32>
      %295 = arith.addf %arg23, %294 : vector<1x32xf32>
      %296 = arith.mulf %292, %272 : vector<200x32xf32>
      %cst_147 = arith.constant dense<0.000000e+00> : vector<32xf32>
      %297 = vector.multi_reduction <add>, %296, %cst_147 [0] : vector<200x32xf32> to vector<32xf32>
      %298 = vector.shape_cast %297 : vector<32xf32> to vector<1x32xf32>
      %299 = arith.addf %arg24, %298 : vector<1x32xf32>
      %300 = arith.index_cast %71 : i32 to index
      %c0_148 = arith.constant 0 : index
      %301 = vector.load %arg15[%300, %c0_148] : memref<456x32xf32, #tpu.memory_space<vmem>>, vector<200x32xf32>
      tpu.vector_store %arg15[%300, %c0_148], %272 {strides = array<i32>} : memref<456x32xf32, #tpu.memory_space<vmem>>, vector<200x32xf32>,
      scf.yield %295, %299 : vector<1x32xf32>, vector<1x32xf32>
    }
    %c2_i32_22 = arith.constant 2 : i32
    %cst_23 = arith.constant 0.00347222225 : f32
    %20 = vector.broadcast %cst_23 : f32 to vector<1x32xf32>
    %21 = arith.mulf %19#0, %20 : vector<1x32xf32>
    %cst_24 = arith.constant 0.00347222225 : f32
    %22 = vector.broadcast %cst_24 : f32 to vector<1x32xf32>
    %23 = arith.mulf %19#1, %22 : vector<1x32xf32>
    %24 = arith.mulf %21, %21 : vector<1x32xf32>
    %25 = arith.subf %23, %24 : vector<1x32xf32>
    %cst_25 = arith.constant 9.99999974E-6 : f32
    %26 = vector.broadcast %cst_25 : f32 to vector<1x32xf32>
    %27 = arith.addf %25, %26 : vector<1x32xf32>
    %28 = math.rsqrt %27 : vector<1x32xf32>
    %c0_i32_26 = arith.constant 0 : i32
    %c2_i32_27 = arith.constant 2 : i32
    %29 = arith.addi %c0_i32_26, %c2_i32_27 : i32
    %c1_i32_28 = arith.constant 1 : i32
    scf.for %arg22 = %c0_i32_26 to %29 step %c1_i32_28  : i32 {
      %c256_i32 = arith.constant 256 : i32
      %70 = arith.muli %arg22, %c256_i32 : i32
      %71 = tpu.assume_multiple %70, 8 : i32
      %72 = arith.index_cast %71 : i32 to index
      %c0_69 = arith.constant 0 : index
      %73 = vector.load %arg15[%72, %c0_69] : memref<456x32xf32, #tpu.memory_space<vmem>>, vector<200x32xf32>
      %74 = vector.broadcast %21 : vector<1x32xf32> to vector<200x32xf32>
      %75 = arith.subf %73, %74 : vector<200x32xf32>
      %76 = vector.broadcast %28 : vector<1x32xf32> to vector<200x32xf32>
      %77 = arith.mulf %75, %76 : vector<200x32xf32>
      %78 = arith.index_cast %arg22 : i32 to index
      %c0_70 = arith.constant 0 : index
      %79 = vector.load %arg18[%78, %c0_70] : memref<2x32xf32, #tpu.memory_space<vmem>>, vector<1x32xf32>
      %80 = vector.broadcast %79 : vector<1x32xf32> to vector<200x32xf32>
      %81 = arith.addf %77, %80 : vector<200x32xf32>
      %cst_71 = arith.constant 0.000000e+00 : f32
      %82 = vector.broadcast %cst_71 : f32 to vector<200x32xf32>
      %83 = arith.maximumf %81, %82 : vector<200x32xf32>
      %84 = arith.index_cast %71 : i32 to index
      %c0_72 = arith.constant 0 : index
      %85 = vector.load %arg15[%84, %c0_72] : memref<456x32xf32, #tpu.memory_space<vmem>>, vector<200x32xf32>
      tpu.vector_store %arg15[%84, %c0_72], %83 {strides = array<i32>} : memref<456x32xf32, #tpu.memory_space<vmem>>, vector<200x32xf32>,
    }
    %c2_i32_29 = arith.constant 2 : i32
    %cst_30 = arith.constant 0.000000e+00 : f32
    %30 = vector.broadcast %cst_30 : f32 to vector<1x64xf32>
    %c0_i32_31 = arith.constant 0 : i32
    %c2_i32_32 = arith.constant 2 : i32
    %31 = arith.addi %c0_i32_31, %c2_i32_32 : i32
    %c1_i32_33 = arith.constant 1 : i32
    %32:2 = scf.for %arg22 = %c0_i32_31 to %31 step %c1_i32_33 iter_args(%arg23 = %30, %arg24 = %30) -> (vector<1x64xf32>, vector<1x64xf32>)  : i32 {
      %c256_i32 = arith.constant 256 : i32
      %70 = arith.muli %arg22, %c256_i32 : i32
      %71 = tpu.assume_multiple %70, 8 : i32
      %cst_69 = arith.constant 0.000000e+00 : f32
      %72 = vector.broadcast %cst_69 : f32 to vector<128x64xf32>
      %c0_i32_70 = arith.constant 0 : i32
      %73 = arith.addi %71, %c0_i32_70 : i32
      %c0_i32_71 = arith.constant 0 : i32
      %74 = arith.addi %73, %c0_i32_71 : i32
      %75 = arith.index_cast %74 : i32 to index
      %c0_72 = arith.constant 0 : index
      %76 = vector.load %arg15[%75, %c0_72] : memref<456x32xf32, #tpu.memory_space<vmem>>, vector<128x32xf32>
      %c0_i32_73 = arith.constant 0 : i32
      %77 = arith.addi %71, %c0_i32_73 : i32
      %c1_i32_74 = arith.constant 1 : i32
      %78 = arith.addi %77, %c1_i32_74 : i32
      %79 = arith.index_cast %78 : i32 to index
      %c0_75 = arith.constant 0 : index
      %80 = vector.load %arg15[%79, %c0_75] : memref<456x32xf32, #tpu.memory_space<vmem>>, vector<128x32xf32>
      %c0_i32_76 = arith.constant 0 : i32
      %81 = arith.addi %71, %c0_i32_76 : i32
      %c2_i32_77 = arith.constant 2 : i32
      %82 = arith.addi %81, %c2_i32_77 : i32
      %83 = arith.index_cast %82 : i32 to index
      %c0_78 = arith.constant 0 : index
      %84 = vector.load %arg15[%83, %c0_78] : memref<456x32xf32, #tpu.memory_space<vmem>>, vector<128x32xf32>
      %c0_i32_79 = arith.constant 0 : i32
      %85 = arith.addi %71, %c0_i32_79 : i32
      %c3_i32 = arith.constant 3 : i32
      %86 = arith.addi %85, %c3_i32 : i32
      %87 = arith.index_cast %86 : i32 to index
      %c0_80 = arith.constant 0 : index
      %88 = vector.load %arg15[%87, %c0_80] : memref<456x32xf32, #tpu.memory_space<vmem>>, vector<128x32xf32>
      %c0_i32_81 = arith.constant 0 : i32
      %89 = arith.addi %71, %c0_i32_81 : i32
      %c4_i32 = arith.constant 4 : i32
      %90 = arith.addi %89, %c4_i32 : i32
      %91 = arith.index_cast %90 : i32 to index
      %c0_82 = arith.constant 0 : index
      %92 = vector.load %arg15[%91, %c0_82] : memref<456x32xf32, #tpu.memory_space<vmem>>, vector<128x32xf32>
      %93 = tpu.concatenate %76, %80, %84, %88, %92 in 1 : vector<128x32xf32>, vector<128x32xf32>, vector<128x32xf32>, vector<128x32xf32>, vector<128x32xf32> -> vector<128x160xf32>
      %94 = arith.truncf %93 : vector<128x160xf32> to vector<128x160xbf16>
      %c0_83 = arith.constant 0 : index
      %c0_84 = arith.constant 0 : index
      %95 = vector.load %arg3[%c0_83, %c0_84] : memref<800x64xbf16, #tpu.memory_space<vmem>>, vector<160x64xbf16>
      %cst_85 = arith.constant dense<0.000000e+00> : vector<128x64xf32>
      %96 = tpu.matmul %94, %95, %cst_85 {dimension_numbers = #tpu.dot_dimension_numbers<[1], [0], [0], [1], [0, 0, 1, 1], [], []>} : vector<128x160xbf16>, vector<160x64xbf16>, vector<128x64xf32> -> vector<128x64xf32>
      %97 = arith.addf %72, %96 : vector<128x64xf32>
      %c16_i32 = arith.constant 16 : i32
      %98 = arith.addi %71, %c16_i32 : i32
      %c0_i32_86 = arith.constant 0 : i32
      %99 = arith.addi %98, %c0_i32_86 : i32
      %100 = arith.index_cast %99 : i32 to index
      %c0_87 = arith.constant 0 : index
      %101 = vector.load %arg15[%100, %c0_87] : memref<456x32xf32, #tpu.memory_space<vmem>>, vector<128x32xf32>
      %c16_i32_88 = arith.constant 16 : i32
      %102 = arith.addi %71, %c16_i32_88 : i32
      %c1_i32_89 = arith.constant 1 : i32
      %103 = arith.addi %102, %c1_i32_89 : i32
      %104 = arith.index_cast %103 : i32 to index
      %c0_90 = arith.constant 0 : index
      %105 = vector.load %arg15[%104, %c0_90] : memref<456x32xf32, #tpu.memory_space<vmem>>, vector<128x32xf32>
      %c16_i32_91 = arith.constant 16 : i32
      %106 = arith.addi %71, %c16_i32_91 : i32
      %c2_i32_92 = arith.constant 2 : i32
      %107 = arith.addi %106, %c2_i32_92 : i32
      %108 = arith.index_cast %107 : i32 to index
      %c0_93 = arith.constant 0 : index
      %109 = vector.load %arg15[%108, %c0_93] : memref<456x32xf32, #tpu.memory_space<vmem>>, vector<128x32xf32>
      %c16_i32_94 = arith.constant 16 : i32
      %110 = arith.addi %71, %c16_i32_94 : i32
      %c3_i32_95 = arith.constant 3 : i32
      %111 = arith.addi %110, %c3_i32_95 : i32
      %112 = arith.index_cast %111 : i32 to index
      %c0_96 = arith.constant 0 : index
      %113 = vector.load %arg15[%112, %c0_96] : memref<456x32xf32, #tpu.memory_space<vmem>>, vector<128x32xf32>
      %c16_i32_97 = arith.constant 16 : i32
      %114 = arith.addi %71, %c16_i32_97 : i32
      %c4_i32_98 = arith.constant 4 : i32
      %115 = arith.addi %114, %c4_i32_98 : i32
      %116 = arith.index_cast %115 : i32 to index
      %c0_99 = arith.constant 0 : index
      %117 = vector.load %arg15[%116, %c0_99] : memref<456x32xf32, #tpu.memory_space<vmem>>, vector<128x32xf32>
      %118 = tpu.concatenate %101, %105, %109, %113, %117 in 1 : vector<128x32xf32>, vector<128x32xf32>, vector<128x32xf32>, vector<128x32xf32>, vector<128x32xf32> -> vector<128x160xf32>
      %119 = arith.truncf %118 : vector<128x160xf32> to vector<128x160xbf16>
      %c160 = arith.constant 160 : index
      %c0_100 = arith.constant 0 : index
      %120 = vector.load %arg3[%c160, %c0_100] : memref<800x64xbf16, #tpu.memory_space<vmem>>, vector<160x64xbf16>
      %cst_101 = arith.constant dense<0.000000e+00> : vector<128x64xf32>
      %121 = tpu.matmul %119, %120, %cst_101 {dimension_numbers = #tpu.dot_dimension_numbers<[1], [0], [0], [1], [0, 0, 1, 1], [], []>} : vector<128x160xbf16>, vector<160x64xbf16>, vector<128x64xf32> -> vector<128x64xf32>
      %122 = arith.addf %97, %121 : vector<128x64xf32>
      %c32_i32 = arith.constant 32 : i32
      %123 = arith.addi %71, %c32_i32 : i32
      %c0_i32_102 = arith.constant 0 : i32
      %124 = arith.addi %123, %c0_i32_102 : i32
      %125 = arith.index_cast %124 : i32 to index
      %c0_103 = arith.constant 0 : index
      %126 = vector.load %arg15[%125, %c0_103] : memref<456x32xf32, #tpu.memory_space<vmem>>, vector<128x32xf32>
      %c32_i32_104 = arith.constant 32 : i32
      %127 = arith.addi %71, %c32_i32_104 : i32
      %c1_i32_105 = arith.constant 1 : i32
      %128 = arith.addi %127, %c1_i32_105 : i32
      %129 = arith.index_cast %128 : i32 to index
      %c0_106 = arith.constant 0 : index
      %130 = vector.load %arg15[%129, %c0_106] : memref<456x32xf32, #tpu.memory_space<vmem>>, vector<128x32xf32>
      %c32_i32_107 = arith.constant 32 : i32
      %131 = arith.addi %71, %c32_i32_107 : i32
      %c2_i32_108 = arith.constant 2 : i32
      %132 = arith.addi %131, %c2_i32_108 : i32
      %133 = arith.index_cast %132 : i32 to index
      %c0_109 = arith.constant 0 : index
      %134 = vector.load %arg15[%133, %c0_109] : memref<456x32xf32, #tpu.memory_space<vmem>>, vector<128x32xf32>
      %c32_i32_110 = arith.constant 32 : i32
      %135 = arith.addi %71, %c32_i32_110 : i32
      %c3_i32_111 = arith.constant 3 : i32
      %136 = arith.addi %135, %c3_i32_111 : i32
      %137 = arith.index_cast %136 : i32 to index
      %c0_112 = arith.constant 0 : index
      %138 = vector.load %arg15[%137, %c0_112] : memref<456x32xf32, #tpu.memory_space<vmem>>, vector<128x32xf32>
      %c32_i32_113 = arith.constant 32 : i32
      %139 = arith.addi %71, %c32_i32_113 : i32
      %c4_i32_114 = arith.constant 4 : i32
      %140 = arith.addi %139, %c4_i32_114 : i32
      %141 = arith.index_cast %140 : i32 to index
      %c0_115 = arith.constant 0 : index
      %142 = vector.load %arg15[%141, %c0_115] : memref<456x32xf32, #tpu.memory_space<vmem>>, vector<128x32xf32>
      %143 = tpu.concatenate %126, %130, %134, %138, %142 in 1 : vector<128x32xf32>, vector<128x32xf32>, vector<128x32xf32>, vector<128x32xf32>, vector<128x32xf32> -> vector<128x160xf32>
      %144 = arith.truncf %143 : vector<128x160xf32> to vector<128x160xbf16>
      %c320 = arith.constant 320 : index
      %c0_116 = arith.constant 0 : index
      %145 = vector.load %arg3[%c320, %c0_116] : memref<800x64xbf16, #tpu.memory_space<vmem>>, vector<160x64xbf16>
      %cst_117 = arith.constant dense<0.000000e+00> : vector<128x64xf32>
      %146 = tpu.matmul %144, %145, %cst_117 {dimension_numbers = #tpu.dot_dimension_numbers<[1], [0], [0], [1], [0, 0, 1, 1], [], []>} : vector<128x160xbf16>, vector<160x64xbf16>, vector<128x64xf32> -> vector<128x64xf32>
      %147 = arith.addf %122, %146 : vector<128x64xf32>
      %c48_i32 = arith.constant 48 : i32
      %148 = arith.addi %71, %c48_i32 : i32
      %c0_i32_118 = arith.constant 0 : i32
      %149 = arith.addi %148, %c0_i32_118 : i32
      %150 = arith.index_cast %149 : i32 to index
      %c0_119 = arith.constant 0 : index
      %151 = vector.load %arg15[%150, %c0_119] : memref<456x32xf32, #tpu.memory_space<vmem>>, vector<128x32xf32>
      %c48_i32_120 = arith.constant 48 : i32
      %152 = arith.addi %71, %c48_i32_120 : i32
      %c1_i32_121 = arith.constant 1 : i32
      %153 = arith.addi %152, %c1_i32_121 : i32
      %154 = arith.index_cast %153 : i32 to index
      %c0_122 = arith.constant 0 : index
      %155 = vector.load %arg15[%154, %c0_122] : memref<456x32xf32, #tpu.memory_space<vmem>>, vector<128x32xf32>
      %c48_i32_123 = arith.constant 48 : i32
      %156 = arith.addi %71, %c48_i32_123 : i32
      %c2_i32_124 = arith.constant 2 : i32
      %157 = arith.addi %156, %c2_i32_124 : i32
      %158 = arith.index_cast %157 : i32 to index
      %c0_125 = arith.constant 0 : index
      %159 = vector.load %arg15[%158, %c0_125] : memref<456x32xf32, #tpu.memory_space<vmem>>, vector<128x32xf32>
      %c48_i32_126 = arith.constant 48 : i32
      %160 = arith.addi %71, %c48_i32_126 : i32
      %c3_i32_127 = arith.constant 3 : i32
      %161 = arith.addi %160, %c3_i32_127 : i32
      %162 = arith.index_cast %161 : i32 to index
      %c0_128 = arith.constant 0 : index
      %163 = vector.load %arg15[%162, %c0_128] : memref<456x32xf32, #tpu.memory_space<vmem>>, vector<128x32xf32>
      %c48_i32_129 = arith.constant 48 : i32
      %164 = arith.addi %71, %c48_i32_129 : i32
      %c4_i32_130 = arith.constant 4 : i32
      %165 = arith.addi %164, %c4_i32_130 : i32
      %166 = arith.index_cast %165 : i32 to index
      %c0_131 = arith.constant 0 : index
      %167 = vector.load %arg15[%166, %c0_131] : memref<456x32xf32, #tpu.memory_space<vmem>>, vector<128x32xf32>
      %168 = tpu.concatenate %151, %155, %159, %163, %167 in 1 : vector<128x32xf32>, vector<128x32xf32>, vector<128x32xf32>, vector<128x32xf32>, vector<128x32xf32> -> vector<128x160xf32>
      %169 = arith.truncf %168 : vector<128x160xf32> to vector<128x160xbf16>
      %c480 = arith.constant 480 : index
      %c0_132 = arith.constant 0 : index
      %170 = vector.load %arg3[%c480, %c0_132] : memref<800x64xbf16, #tpu.memory_space<vmem>>, vector<160x64xbf16>
      %cst_133 = arith.constant dense<0.000000e+00> : vector<128x64xf32>
      %171 = tpu.matmul %169, %170, %cst_133 {dimension_numbers = #tpu.dot_dimension_numbers<[1], [0], [0], [1], [0, 0, 1, 1], [], []>} : vector<128x160xbf16>, vector<160x64xbf16>, vector<128x64xf32> -> vector<128x64xf32>
      %172 = arith.addf %147, %171 : vector<128x64xf32>
      %c64_i32 = arith.constant 64 : i32
      %173 = arith.addi %71, %c64_i32 : i32
      %c0_i32_134 = arith.constant 0 : i32
      %174 = arith.addi %173, %c0_i32_134 : i32
      %175 = arith.index_cast %174 : i32 to index
      %c0_135 = arith.constant 0 : index
      %176 = vector.load %arg15[%175, %c0_135] : memref<456x32xf32, #tpu.memory_space<vmem>>, vector<128x32xf32>
      %c64_i32_136 = arith.constant 64 : i32
      %177 = arith.addi %71, %c64_i32_136 : i32
      %c1_i32_137 = arith.constant 1 : i32
      %178 = arith.addi %177, %c1_i32_137 : i32
      %179 = arith.index_cast %178 : i32 to index
      %c0_138 = arith.constant 0 : index
      %180 = vector.load %arg15[%179, %c0_138] : memref<456x32xf32, #tpu.memory_space<vmem>>, vector<128x32xf32>
      %c64_i32_139 = arith.constant 64 : i32
      %181 = arith.addi %71, %c64_i32_139 : i32
      %c2_i32_140 = arith.constant 2 : i32
      %182 = arith.addi %181, %c2_i32_140 : i32
      %183 = arith.index_cast %182 : i32 to index
      %c0_141 = arith.constant 0 : index
      %184 = vector.load %arg15[%183, %c0_141] : memref<456x32xf32, #tpu.memory_space<vmem>>, vector<128x32xf32>
      %c64_i32_142 = arith.constant 64 : i32
      %185 = arith.addi %71, %c64_i32_142 : i32
      %c3_i32_143 = arith.constant 3 : i32
      %186 = arith.addi %185, %c3_i32_143 : i32
      %187 = arith.index_cast %186 : i32 to index
      %c0_144 = arith.constant 0 : index
      %188 = vector.load %arg15[%187, %c0_144] : memref<456x32xf32, #tpu.memory_space<vmem>>, vector<128x32xf32>
      %c64_i32_145 = arith.constant 64 : i32
      %189 = arith.addi %71, %c64_i32_145 : i32
      %c4_i32_146 = arith.constant 4 : i32
      %190 = arith.addi %189, %c4_i32_146 : i32
      %191 = arith.index_cast %190 : i32 to index
      %c0_147 = arith.constant 0 : index
      %192 = vector.load %arg15[%191, %c0_147] : memref<456x32xf32, #tpu.memory_space<vmem>>, vector<128x32xf32>
      %193 = tpu.concatenate %176, %180, %184, %188, %192 in 1 : vector<128x32xf32>, vector<128x32xf32>, vector<128x32xf32>, vector<128x32xf32>, vector<128x32xf32> -> vector<128x160xf32>
      %194 = arith.truncf %193 : vector<128x160xf32> to vector<128x160xbf16>
      %c640 = arith.constant 640 : index
      %c0_148 = arith.constant 0 : index
      %195 = vector.load %arg3[%c640, %c0_148] : memref<800x64xbf16, #tpu.memory_space<vmem>>, vector<160x64xbf16>
      %cst_149 = arith.constant dense<0.000000e+00> : vector<128x64xf32>
      %196 = tpu.matmul %194, %195, %cst_149 {dimension_numbers = #tpu.dot_dimension_numbers<[1], [0], [0], [1], [0, 0, 1, 1], [], []>} : vector<128x160xbf16>, vector<160x64xbf16>, vector<128x64xf32> -> vector<128x64xf32>
      %197 = arith.addf %172, %196 : vector<128x64xf32>
      %198 = tpu.iota {dimensions = array<i32: 0>} : vector<128x1xi32>
      %199 = arith.sitofp %198 : vector<128x1xi32> to vector<128x1xf32>
      %cst_150 = arith.constant 6.250000e-02 : f32
      %200 = vector.broadcast %cst_150 : f32 to vector<128x1xf32>
      %201 = arith.mulf %199, %200 : vector<128x1xf32>
      %cst_151 = arith.constant 9.99999974E-5 : f32
      %202 = vector.broadcast %cst_151 : f32 to vector<128x1xf32>
      %203 = arith.addf %201, %202 : vector<128x1xf32>
      %204 = math.floor %203 : vector<128x1xf32>
      %cst_152 = arith.constant 1.600000e+01 : f32
      %205 = vector.broadcast %cst_152 : f32 to vector<128x1xf32>
      %206 = arith.mulf %204, %205 : vector<128x1xf32>
      %207 = arith.subf %199, %206 : vector<128x1xf32>
      %cst_153 = arith.constant 8.000000e+00 : f32
      %208 = vector.broadcast %cst_153 : f32 to vector<128x1xf32>
      %209 = arith.cmpf olt, %204, %208 : vector<128x1xf32>
      %cst_154 = arith.constant 8.000000e+00 : f32
      %210 = vector.broadcast %cst_154 : f32 to vector<128x1xf32>
      %211 = arith.cmpf olt, %207, %210 : vector<128x1xf32>
      %212 = arith.andi %209, %211 : vector<128x1xi1>
      %cst_155 = arith.constant 1.000000e+00 : f32
      %cst_156 = arith.constant 0.000000e+00 : f32
      %213 = vector.broadcast %cst_155 : f32 to vector<128x1xf32>
      %214 = vector.broadcast %cst_156 : f32 to vector<128x1xf32>
      %215 = arith.select %212, %213, %214 : vector<128x1xi1>, vector<128x1xf32>
      %216 = vector.broadcast %215 : vector<128x1xf32> to vector<128x64xf32>
      %217 = arith.mulf %197, %216 : vector<128x64xf32>
      %cst_157 = arith.constant dense<0.000000e+00> : vector<64xf32>
      %218 = vector.multi_reduction <add>, %217, %cst_157 [0] : vector<128x64xf32> to vector<64xf32>
      %219 = vector.shape_cast %218 : vector<64xf32> to vector<1x64xf32>
      %220 = arith.addf %arg23, %219 : vector<1x64xf32>
      %221 = arith.mulf %217, %197 : vector<128x64xf32>
      %cst_158 = arith.constant dense<0.000000e+00> : vector<64xf32>
      %222 = vector.multi_reduction <add>, %221, %cst_158 [0] : vector<128x64xf32> to vector<64xf32>
      %223 = vector.shape_cast %222 : vector<64xf32> to vector<1x64xf32>
      %224 = arith.addf %arg24, %223 : vector<1x64xf32>
      %225 = arith.index_cast %71 : i32 to index
      %c0_159 = arith.constant 0 : index
      %226 = vector.load %arg16[%225, %c0_159] : memref<384x64xf32, #tpu.memory_space<vmem>>, vector<128x64xf32>
      tpu.vector_store %arg16[%225, %c0_159], %197 {strides = array<i32>} : memref<384x64xf32, #tpu.memory_space<vmem>>, vector<128x64xf32>,
      scf.yield %220, %224 : vector<1x64xf32>, vector<1x64xf32>
    }
    %c2_i32_34 = arith.constant 2 : i32
    %cst_35 = arith.constant 7.812500e-03 : f32
    %33 = vector.broadcast %cst_35 : f32 to vector<1x64xf32>
    %34 = arith.mulf %32#0, %33 : vector<1x64xf32>
    %cst_36 = arith.constant 7.812500e-03 : f32
    %35 = vector.broadcast %cst_36 : f32 to vector<1x64xf32>
    %36 = arith.mulf %32#1, %35 : vector<1x64xf32>
    %37 = arith.mulf %34, %34 : vector<1x64xf32>
    %38 = arith.subf %36, %37 : vector<1x64xf32>
    %cst_37 = arith.constant 9.99999974E-6 : f32
    %39 = vector.broadcast %cst_37 : f32 to vector<1x64xf32>
    %40 = arith.addf %38, %39 : vector<1x64xf32>
    %41 = math.rsqrt %40 : vector<1x64xf32>
    %c0_i32_38 = arith.constant 0 : i32
    %c2_i32_39 = arith.constant 2 : i32
    %42 = arith.addi %c0_i32_38, %c2_i32_39 : i32
    %c1_i32_40 = arith.constant 1 : i32
    scf.for %arg22 = %c0_i32_38 to %42 step %c1_i32_40  : i32 {
      %c256_i32 = arith.constant 256 : i32
      %70 = arith.muli %arg22, %c256_i32 : i32
      %71 = tpu.assume_multiple %70, 8 : i32
      %72 = arith.index_cast %71 : i32 to index
      %c0_69 = arith.constant 0 : index
      %73 = vector.load %arg16[%72, %c0_69] : memref<384x64xf32, #tpu.memory_space<vmem>>, vector<128x64xf32>
      %74 = vector.broadcast %34 : vector<1x64xf32> to vector<128x64xf32>
      %75 = arith.subf %73, %74 : vector<128x64xf32>
      %76 = vector.broadcast %41 : vector<1x64xf32> to vector<128x64xf32>
      %77 = arith.mulf %75, %76 : vector<128x64xf32>
      %78 = arith.index_cast %arg22 : i32 to index
      %c0_70 = arith.constant 0 : index
      %79 = vector.load %arg19[%78, %c0_70] : memref<2x64xf32, #tpu.memory_space<vmem>>, vector<1x64xf32>
      %80 = vector.broadcast %79 : vector<1x64xf32> to vector<128x64xf32>
      %81 = arith.addf %77, %80 : vector<128x64xf32>
      %cst_71 = arith.constant 0.000000e+00 : f32
      %82 = vector.broadcast %cst_71 : f32 to vector<128x64xf32>
      %83 = arith.maximumf %81, %82 : vector<128x64xf32>
      %84 = arith.index_cast %71 : i32 to index
      %c0_72 = arith.constant 0 : index
      %85 = vector.load %arg16[%84, %c0_72] : memref<384x64xf32, #tpu.memory_space<vmem>>, vector<128x64xf32>
      tpu.vector_store %arg16[%84, %c0_72], %83 {strides = array<i32>} : memref<384x64xf32, #tpu.memory_space<vmem>>, vector<128x64xf32>,
    }
    %c2_i32_41 = arith.constant 2 : i32
    %cst_42 = arith.constant 0.000000e+00 : f32
    %43 = vector.broadcast %cst_42 : f32 to vector<1x128xf32>
    %c0_i32_43 = arith.constant 0 : i32
    %c2_i32_44 = arith.constant 2 : i32
    %44 = arith.addi %c0_i32_43, %c2_i32_44 : i32
    %c1_i32_45 = arith.constant 1 : i32
    %45:2 = scf.for %arg22 = %c0_i32_43 to %44 step %c1_i32_45 iter_args(%arg23 = %43, %arg24 = %43) -> (vector<1x128xf32>, vector<1x128xf32>)  : i32 {
      %c256_i32 = arith.constant 256 : i32
      %70 = arith.muli %arg22, %c256_i32 : i32
      %71 = tpu.assume_multiple %70, 8 : i32
      %cst_69 = arith.constant 0.000000e+00 : f32
      %72 = vector.broadcast %cst_69 : f32 to vector<56x128xf32>
      %c0_i32_70 = arith.constant 0 : i32
      %73 = arith.addi %71, %c0_i32_70 : i32
      %c0_i32_71 = arith.constant 0 : i32
      %74 = arith.addi %73, %c0_i32_71 : i32
      %75 = arith.index_cast %74 : i32 to index
      %c0_72 = arith.constant 0 : index
      %76 = vector.load %arg16[%75, %c0_72] : memref<384x64xf32, #tpu.memory_space<vmem>>, vector<56x64xf32>
      %c0_i32_73 = arith.constant 0 : i32
      %77 = arith.addi %71, %c0_i32_73 : i32
      %c1_i32_74 = arith.constant 1 : i32
      %78 = arith.addi %77, %c1_i32_74 : i32
      %79 = arith.index_cast %78 : i32 to index
      %c0_75 = arith.constant 0 : index
      %80 = vector.load %arg16[%79, %c0_75] : memref<384x64xf32, #tpu.memory_space<vmem>>, vector<56x64xf32>
      %c0_i32_76 = arith.constant 0 : i32
      %81 = arith.addi %71, %c0_i32_76 : i32
      %c2_i32_77 = arith.constant 2 : i32
      %82 = arith.addi %81, %c2_i32_77 : i32
      %83 = arith.index_cast %82 : i32 to index
      %c0_78 = arith.constant 0 : index
      %84 = vector.load %arg16[%83, %c0_78] : memref<384x64xf32, #tpu.memory_space<vmem>>, vector<56x64xf32>
      %c0_i32_79 = arith.constant 0 : i32
      %85 = arith.addi %71, %c0_i32_79 : i32
      %c3_i32 = arith.constant 3 : i32
      %86 = arith.addi %85, %c3_i32 : i32
      %87 = arith.index_cast %86 : i32 to index
      %c0_80 = arith.constant 0 : index
      %88 = vector.load %arg16[%87, %c0_80] : memref<384x64xf32, #tpu.memory_space<vmem>>, vector<56x64xf32>
      %c0_i32_81 = arith.constant 0 : i32
      %89 = arith.addi %71, %c0_i32_81 : i32
      %c4_i32 = arith.constant 4 : i32
      %90 = arith.addi %89, %c4_i32 : i32
      %91 = arith.index_cast %90 : i32 to index
      %c0_82 = arith.constant 0 : index
      %92 = vector.load %arg16[%91, %c0_82] : memref<384x64xf32, #tpu.memory_space<vmem>>, vector<56x64xf32>
      %93 = tpu.concatenate %76, %80, %84, %88, %92 in 1 : vector<56x64xf32>, vector<56x64xf32>, vector<56x64xf32>, vector<56x64xf32>, vector<56x64xf32> -> vector<56x320xf32>
      %94 = arith.truncf %93 : vector<56x320xf32> to vector<56x320xbf16>
      %c0_83 = arith.constant 0 : index
      %c0_84 = arith.constant 0 : index
      %95 = vector.load %arg4[%c0_83, %c0_84] : memref<1600x128xbf16, #tpu.memory_space<vmem>>, vector<320x128xbf16>
      %cst_85 = arith.constant dense<0.000000e+00> : vector<56x128xf32>
      %96 = tpu.matmul %94, %95, %cst_85 {dimension_numbers = #tpu.dot_dimension_numbers<[1], [0], [0], [1], [0, 0, 1, 1], [], []>} : vector<56x320xbf16>, vector<320x128xbf16>, vector<56x128xf32> -> vector<56x128xf32>
      %97 = arith.addf %72, %96 : vector<56x128xf32>
      %c16_i32 = arith.constant 16 : i32
      %98 = arith.addi %71, %c16_i32 : i32
      %c0_i32_86 = arith.constant 0 : i32
      %99 = arith.addi %98, %c0_i32_86 : i32
      %100 = arith.index_cast %99 : i32 to index
      %c0_87 = arith.constant 0 : index
      %101 = vector.load %arg16[%100, %c0_87] : memref<384x64xf32, #tpu.memory_space<vmem>>, vector<56x64xf32>
      %c16_i32_88 = arith.constant 16 : i32
      %102 = arith.addi %71, %c16_i32_88 : i32
      %c1_i32_89 = arith.constant 1 : i32
      %103 = arith.addi %102, %c1_i32_89 : i32
      %104 = arith.index_cast %103 : i32 to index
      %c0_90 = arith.constant 0 : index
      %105 = vector.load %arg16[%104, %c0_90] : memref<384x64xf32, #tpu.memory_space<vmem>>, vector<56x64xf32>
      %c16_i32_91 = arith.constant 16 : i32
      %106 = arith.addi %71, %c16_i32_91 : i32
      %c2_i32_92 = arith.constant 2 : i32
      %107 = arith.addi %106, %c2_i32_92 : i32
      %108 = arith.index_cast %107 : i32 to index
      %c0_93 = arith.constant 0 : index
      %109 = vector.load %arg16[%108, %c0_93] : memref<384x64xf32, #tpu.memory_space<vmem>>, vector<56x64xf32>
      %c16_i32_94 = arith.constant 16 : i32
      %110 = arith.addi %71, %c16_i32_94 : i32
      %c3_i32_95 = arith.constant 3 : i32
      %111 = arith.addi %110, %c3_i32_95 : i32
      %112 = arith.index_cast %111 : i32 to index
      %c0_96 = arith.constant 0 : index
      %113 = vector.load %arg16[%112, %c0_96] : memref<384x64xf32, #tpu.memory_space<vmem>>, vector<56x64xf32>
      %c16_i32_97 = arith.constant 16 : i32
      %114 = arith.addi %71, %c16_i32_97 : i32
      %c4_i32_98 = arith.constant 4 : i32
      %115 = arith.addi %114, %c4_i32_98 : i32
      %116 = arith.index_cast %115 : i32 to index
      %c0_99 = arith.constant 0 : index
      %117 = vector.load %arg16[%116, %c0_99] : memref<384x64xf32, #tpu.memory_space<vmem>>, vector<56x64xf32>
      %118 = tpu.concatenate %101, %105, %109, %113, %117 in 1 : vector<56x64xf32>, vector<56x64xf32>, vector<56x64xf32>, vector<56x64xf32>, vector<56x64xf32> -> vector<56x320xf32>
      %119 = arith.truncf %118 : vector<56x320xf32> to vector<56x320xbf16>
      %c320 = arith.constant 320 : index
      %c0_100 = arith.constant 0 : index
      %120 = vector.load %arg4[%c320, %c0_100] : memref<1600x128xbf16, #tpu.memory_space<vmem>>, vector<320x128xbf16>
      %cst_101 = arith.constant dense<0.000000e+00> : vector<56x128xf32>
      %121 = tpu.matmul %119, %120, %cst_101 {dimension_numbers = #tpu.dot_dimension_numbers<[1], [0], [0], [1], [0, 0, 1, 1], [], []>} : vector<56x320xbf16>, vector<320x128xbf16>, vector<56x128xf32> -> vector<56x128xf32>
      %122 = arith.addf %97, %121 : vector<56x128xf32>
      %c32_i32 = arith.constant 32 : i32
      %123 = arith.addi %71, %c32_i32 : i32
      %c0_i32_102 = arith.constant 0 : i32
      %124 = arith.addi %123, %c0_i32_102 : i32
      %125 = arith.index_cast %124 : i32 to index
      %c0_103 = arith.constant 0 : index
      %126 = vector.load %arg16[%125, %c0_103] : memref<384x64xf32, #tpu.memory_space<vmem>>, vector<56x64xf32>
      %c32_i32_104 = arith.constant 32 : i32
      %127 = arith.addi %71, %c32_i32_104 : i32
      %c1_i32_105 = arith.constant 1 : i32
      %128 = arith.addi %127, %c1_i32_105 : i32
      %129 = arith.index_cast %128 : i32 to index
      %c0_106 = arith.constant 0 : index
      %130 = vector.load %arg16[%129, %c0_106] : memref<384x64xf32, #tpu.memory_space<vmem>>, vector<56x64xf32>
      %c32_i32_107 = arith.constant 32 : i32
      %131 = arith.addi %71, %c32_i32_107 : i32
      %c2_i32_108 = arith.constant 2 : i32
      %132 = arith.addi %131, %c2_i32_108 : i32
      %133 = arith.index_cast %132 : i32 to index
      %c0_109 = arith.constant 0 : index
      %134 = vector.load %arg16[%133, %c0_109] : memref<384x64xf32, #tpu.memory_space<vmem>>, vector<56x64xf32>
      %c32_i32_110 = arith.constant 32 : i32
      %135 = arith.addi %71, %c32_i32_110 : i32
      %c3_i32_111 = arith.constant 3 : i32
      %136 = arith.addi %135, %c3_i32_111 : i32
      %137 = arith.index_cast %136 : i32 to index
      %c0_112 = arith.constant 0 : index
      %138 = vector.load %arg16[%137, %c0_112] : memref<384x64xf32, #tpu.memory_space<vmem>>, vector<56x64xf32>
      %c32_i32_113 = arith.constant 32 : i32
      %139 = arith.addi %71, %c32_i32_113 : i32
      %c4_i32_114 = arith.constant 4 : i32
      %140 = arith.addi %139, %c4_i32_114 : i32
      %141 = arith.index_cast %140 : i32 to index
      %c0_115 = arith.constant 0 : index
      %142 = vector.load %arg16[%141, %c0_115] : memref<384x64xf32, #tpu.memory_space<vmem>>, vector<56x64xf32>
      %143 = tpu.concatenate %126, %130, %134, %138, %142 in 1 : vector<56x64xf32>, vector<56x64xf32>, vector<56x64xf32>, vector<56x64xf32>, vector<56x64xf32> -> vector<56x320xf32>
      %144 = arith.truncf %143 : vector<56x320xf32> to vector<56x320xbf16>
      %c640 = arith.constant 640 : index
      %c0_116 = arith.constant 0 : index
      %145 = vector.load %arg4[%c640, %c0_116] : memref<1600x128xbf16, #tpu.memory_space<vmem>>, vector<320x128xbf16>
      %cst_117 = arith.constant dense<0.000000e+00> : vector<56x128xf32>
      %146 = tpu.matmul %144, %145, %cst_117 {dimension_numbers = #tpu.dot_dimension_numbers<[1], [0], [0], [1], [0, 0, 1, 1], [], []>} : vector<56x320xbf16>, vector<320x128xbf16>, vector<56x128xf32> -> vector<56x128xf32>
      %147 = arith.addf %122, %146 : vector<56x128xf32>
      %c48_i32 = arith.constant 48 : i32
      %148 = arith.addi %71, %c48_i32 : i32
      %c0_i32_118 = arith.constant 0 : i32
      %149 = arith.addi %148, %c0_i32_118 : i32
      %150 = arith.index_cast %149 : i32 to index
      %c0_119 = arith.constant 0 : index
      %151 = vector.load %arg16[%150, %c0_119] : memref<384x64xf32, #tpu.memory_space<vmem>>, vector<56x64xf32>
      %c48_i32_120 = arith.constant 48 : i32
      %152 = arith.addi %71, %c48_i32_120 : i32
      %c1_i32_121 = arith.constant 1 : i32
      %153 = arith.addi %152, %c1_i32_121 : i32
      %154 = arith.index_cast %153 : i32 to index
      %c0_122 = arith.constant 0 : index
      %155 = vector.load %arg16[%154, %c0_122] : memref<384x64xf32, #tpu.memory_space<vmem>>, vector<56x64xf32>
      %c48_i32_123 = arith.constant 48 : i32
      %156 = arith.addi %71, %c48_i32_123 : i32
      %c2_i32_124 = arith.constant 2 : i32
      %157 = arith.addi %156, %c2_i32_124 : i32
      %158 = arith.index_cast %157 : i32 to index
      %c0_125 = arith.constant 0 : index
      %159 = vector.load %arg16[%158, %c0_125] : memref<384x64xf32, #tpu.memory_space<vmem>>, vector<56x64xf32>
      %c48_i32_126 = arith.constant 48 : i32
      %160 = arith.addi %71, %c48_i32_126 : i32
      %c3_i32_127 = arith.constant 3 : i32
      %161 = arith.addi %160, %c3_i32_127 : i32
      %162 = arith.index_cast %161 : i32 to index
      %c0_128 = arith.constant 0 : index
      %163 = vector.load %arg16[%162, %c0_128] : memref<384x64xf32, #tpu.memory_space<vmem>>, vector<56x64xf32>
      %c48_i32_129 = arith.constant 48 : i32
      %164 = arith.addi %71, %c48_i32_129 : i32
      %c4_i32_130 = arith.constant 4 : i32
      %165 = arith.addi %164, %c4_i32_130 : i32
      %166 = arith.index_cast %165 : i32 to index
      %c0_131 = arith.constant 0 : index
      %167 = vector.load %arg16[%166, %c0_131] : memref<384x64xf32, #tpu.memory_space<vmem>>, vector<56x64xf32>
      %168 = tpu.concatenate %151, %155, %159, %163, %167 in 1 : vector<56x64xf32>, vector<56x64xf32>, vector<56x64xf32>, vector<56x64xf32>, vector<56x64xf32> -> vector<56x320xf32>
      %169 = arith.truncf %168 : vector<56x320xf32> to vector<56x320xbf16>
      %c960 = arith.constant 960 : index
      %c0_132 = arith.constant 0 : index
      %170 = vector.load %arg4[%c960, %c0_132] : memref<1600x128xbf16, #tpu.memory_space<vmem>>, vector<320x128xbf16>
      %cst_133 = arith.constant dense<0.000000e+00> : vector<56x128xf32>
      %171 = tpu.matmul %169, %170, %cst_133 {dimension_numbers = #tpu.dot_dimension_numbers<[1], [0], [0], [1], [0, 0, 1, 1], [], []>} : vector<56x320xbf16>, vector<320x128xbf16>, vector<56x128xf32> -> vector<56x128xf32>
      %172 = arith.addf %147, %171 : vector<56x128xf32>
      %c64_i32 = arith.constant 64 : i32
      %173 = arith.addi %71, %c64_i32 : i32
      %c0_i32_134 = arith.constant 0 : i32
      %174 = arith.addi %173, %c0_i32_134 : i32
      %175 = arith.index_cast %174 : i32 to index
      %c0_135 = arith.constant 0 : index
      %176 = vector.load %arg16[%175, %c0_135] : memref<384x64xf32, #tpu.memory_space<vmem>>, vector<56x64xf32>
      %c64_i32_136 = arith.constant 64 : i32
      %177 = arith.addi %71, %c64_i32_136 : i32
      %c1_i32_137 = arith.constant 1 : i32
      %178 = arith.addi %177, %c1_i32_137 : i32
      %179 = arith.index_cast %178 : i32 to index
      %c0_138 = arith.constant 0 : index
      %180 = vector.load %arg16[%179, %c0_138] : memref<384x64xf32, #tpu.memory_space<vmem>>, vector<56x64xf32>
      %c64_i32_139 = arith.constant 64 : i32
      %181 = arith.addi %71, %c64_i32_139 : i32
      %c2_i32_140 = arith.constant 2 : i32
      %182 = arith.addi %181, %c2_i32_140 : i32
      %183 = arith.index_cast %182 : i32 to index
      %c0_141 = arith.constant 0 : index
      %184 = vector.load %arg16[%183, %c0_141] : memref<384x64xf32, #tpu.memory_space<vmem>>, vector<56x64xf32>
      %c64_i32_142 = arith.constant 64 : i32
      %185 = arith.addi %71, %c64_i32_142 : i32
      %c3_i32_143 = arith.constant 3 : i32
      %186 = arith.addi %185, %c3_i32_143 : i32
      %187 = arith.index_cast %186 : i32 to index
      %c0_144 = arith.constant 0 : index
      %188 = vector.load %arg16[%187, %c0_144] : memref<384x64xf32, #tpu.memory_space<vmem>>, vector<56x64xf32>
      %c64_i32_145 = arith.constant 64 : i32
      %189 = arith.addi %71, %c64_i32_145 : i32
      %c4_i32_146 = arith.constant 4 : i32
      %190 = arith.addi %189, %c4_i32_146 : i32
      %191 = arith.index_cast %190 : i32 to index
      %c0_147 = arith.constant 0 : index
      %192 = vector.load %arg16[%191, %c0_147] : memref<384x64xf32, #tpu.memory_space<vmem>>, vector<56x64xf32>
      %193 = tpu.concatenate %176, %180, %184, %188, %192 in 1 : vector<56x64xf32>, vector<56x64xf32>, vector<56x64xf32>, vector<56x64xf32>, vector<56x64xf32> -> vector<56x320xf32>
      %194 = arith.truncf %193 : vector<56x320xf32> to vector<56x320xbf16>
      %c1280 = arith.constant 1280 : index
      %c0_148 = arith.constant 0 : index
      %195 = vector.load %arg4[%c1280, %c0_148] : memref<1600x128xbf16, #tpu.memory_space<vmem>>, vector<320x128xbf16>
      %cst_149 = arith.constant dense<0.000000e+00> : vector<56x128xf32>
      %196 = tpu.matmul %194, %195, %cst_149 {dimension_numbers = #tpu.dot_dimension_numbers<[1], [0], [0], [1], [0, 0, 1, 1], [], []>} : vector<56x320xbf16>, vector<320x128xbf16>, vector<56x128xf32> -> vector<56x128xf32>
      %197 = arith.addf %172, %196 : vector<56x128xf32>
      %198 = tpu.iota {dimensions = array<i32: 0>} : vector<56x1xi32>
      %199 = arith.sitofp %198 : vector<56x1xi32> to vector<56x1xf32>
      %cst_150 = arith.constant 6.250000e-02 : f32
      %200 = vector.broadcast %cst_150 : f32 to vector<56x1xf32>
      %201 = arith.mulf %199, %200 : vector<56x1xf32>
      %cst_151 = arith.constant 9.99999974E-5 : f32
      %202 = vector.broadcast %cst_151 : f32 to vector<56x1xf32>
      %203 = arith.addf %201, %202 : vector<56x1xf32>
      %204 = math.floor %203 : vector<56x1xf32>
      %cst_152 = arith.constant 1.600000e+01 : f32
      %205 = vector.broadcast %cst_152 : f32 to vector<56x1xf32>
      %206 = arith.mulf %204, %205 : vector<56x1xf32>
      %207 = arith.subf %199, %206 : vector<56x1xf32>
      %cst_153 = arith.constant 4.000000e+00 : f32
      %208 = vector.broadcast %cst_153 : f32 to vector<56x1xf32>
      %209 = arith.cmpf olt, %204, %208 : vector<56x1xf32>
      %cst_154 = arith.constant 4.000000e+00 : f32
      %210 = vector.broadcast %cst_154 : f32 to vector<56x1xf32>
      %211 = arith.cmpf olt, %207, %210 : vector<56x1xf32>
      %212 = arith.andi %209, %211 : vector<56x1xi1>
      %cst_155 = arith.constant 1.000000e+00 : f32
      %cst_156 = arith.constant 0.000000e+00 : f32
      %213 = vector.broadcast %cst_155 : f32 to vector<56x1xf32>
      %214 = vector.broadcast %cst_156 : f32 to vector<56x1xf32>
      %215 = arith.select %212, %213, %214 : vector<56x1xi1>, vector<56x1xf32>
      %216 = vector.broadcast %215 : vector<56x1xf32> to vector<56x128xf32>
      %217 = arith.mulf %197, %216 : vector<56x128xf32>
      %cst_157 = arith.constant dense<0.000000e+00> : vector<128xf32>
      %218 = vector.multi_reduction <add>, %217, %cst_157 [0] : vector<56x128xf32> to vector<128xf32>
      %219 = vector.shape_cast %218 : vector<128xf32> to vector<1x128xf32>
      %220 = arith.addf %arg23, %219 : vector<1x128xf32>
      %221 = arith.mulf %217, %197 : vector<56x128xf32>
      %cst_158 = arith.constant dense<0.000000e+00> : vector<128xf32>
      %222 = vector.multi_reduction <add>, %221, %cst_158 [0] : vector<56x128xf32> to vector<128xf32>
      %223 = vector.shape_cast %222 : vector<128xf32> to vector<1x128xf32>
      %224 = arith.addf %arg24, %223 : vector<1x128xf32>
      %225 = arith.index_cast %71 : i32 to index
      %c0_159 = arith.constant 0 : index
      %226 = vector.load %arg17[%225, %c0_159] : memref<312x128xf32, #tpu.memory_space<vmem>>, vector<56x128xf32>
      tpu.vector_store %arg17[%225, %c0_159], %197 {strides = array<i32>} : memref<312x128xf32, #tpu.memory_space<vmem>>, vector<56x128xf32>,
      scf.yield %220, %224 : vector<1x128xf32>, vector<1x128xf32>
    }
    %c2_i32_46 = arith.constant 2 : i32
    %cst_47 = arith.constant 3.125000e-02 : f32
    %46 = vector.broadcast %cst_47 : f32 to vector<1x128xf32>
    %47 = arith.mulf %45#0, %46 : vector<1x128xf32>
    %cst_48 = arith.constant 3.125000e-02 : f32
    %48 = vector.broadcast %cst_48 : f32 to vector<1x128xf32>
    %49 = arith.mulf %45#1, %48 : vector<1x128xf32>
    %50 = arith.mulf %47, %47 : vector<1x128xf32>
    %51 = arith.subf %49, %50 : vector<1x128xf32>
    %cst_49 = arith.constant 9.99999974E-6 : f32
    %52 = vector.broadcast %cst_49 : f32 to vector<1x128xf32>
    %53 = arith.addf %51, %52 : vector<1x128xf32>
    %54 = math.rsqrt %53 : vector<1x128xf32>
    %c0_i32_50 = arith.constant 0 : i32
    %c2_i32_51 = arith.constant 2 : i32
    %55 = arith.addi %c0_i32_50, %c2_i32_51 : i32
    %c1_i32_52 = arith.constant 1 : i32
    scf.for %arg22 = %c0_i32_50 to %55 step %c1_i32_52  : i32 {
      %c256_i32 = arith.constant 256 : i32
      %70 = arith.muli %arg22, %c256_i32 : i32
      %71 = tpu.assume_multiple %70, 8 : i32
      %72 = arith.index_cast %71 : i32 to index
      %c0_69 = arith.constant 0 : index
      %73 = vector.load %arg17[%72, %c0_69] : memref<312x128xf32, #tpu.memory_space<vmem>>, vector<56x128xf32>
      %74 = vector.broadcast %47 : vector<1x128xf32> to vector<56x128xf32>
      %75 = arith.subf %73, %74 : vector<56x128xf32>
      %76 = vector.broadcast %54 : vector<1x128xf32> to vector<56x128xf32>
      %77 = arith.mulf %75, %76 : vector<56x128xf32>
      %78 = arith.index_cast %arg22 : i32 to index
      %c0_70 = arith.constant 0 : index
      %79 = vector.load %arg20[%78, %c0_70] : memref<2x128xf32, #tpu.memory_space<vmem>>, vector<1x128xf32>
      %80 = vector.broadcast %79 : vector<1x128xf32> to vector<56x128xf32>
      %81 = arith.addf %77, %80 : vector<56x128xf32>
      %cst_71 = arith.constant 0.000000e+00 : f32
      %82 = vector.broadcast %cst_71 : f32 to vector<56x128xf32>
      %83 = arith.maximumf %81, %82 : vector<56x128xf32>
      %84 = tpu.iota {dimensions = array<i32: 0>} : vector<56x1xi32>
      %85 = arith.sitofp %84 : vector<56x1xi32> to vector<56x1xf32>
      %cst_72 = arith.constant 6.250000e-02 : f32
      %86 = vector.broadcast %cst_72 : f32 to vector<56x1xf32>
      %87 = arith.mulf %85, %86 : vector<56x1xf32>
      %cst_73 = arith.constant 9.99999974E-5 : f32
      %88 = vector.broadcast %cst_73 : f32 to vector<56x1xf32>
      %89 = arith.addf %87, %88 : vector<56x1xf32>
      %90 = math.floor %89 : vector<56x1xf32>
      %cst_74 = arith.constant 1.600000e+01 : f32
      %91 = vector.broadcast %cst_74 : f32 to vector<56x1xf32>
      %92 = arith.mulf %90, %91 : vector<56x1xf32>
      %93 = arith.subf %85, %92 : vector<56x1xf32>
      %cst_75 = arith.constant 4.000000e+00 : f32
      %94 = vector.broadcast %cst_75 : f32 to vector<56x1xf32>
      %95 = arith.cmpf olt, %90, %94 : vector<56x1xf32>
      %cst_76 = arith.constant 4.000000e+00 : f32
      %96 = vector.broadcast %cst_76 : f32 to vector<56x1xf32>
      %97 = arith.cmpf olt, %93, %96 : vector<56x1xf32>
      %98 = arith.andi %95, %97 : vector<56x1xi1>
      %cst_77 = arith.constant 1.000000e+00 : f32
      %cst_78 = arith.constant 0.000000e+00 : f32
      %99 = vector.broadcast %cst_77 : f32 to vector<56x1xf32>
      %100 = vector.broadcast %cst_78 : f32 to vector<56x1xf32>
      %101 = arith.select %98, %99, %100 : vector<56x1xi1>, vector<56x1xf32>
      %102 = vector.broadcast %101 : vector<56x1xf32> to vector<56x128xf32>
      %103 = arith.mulf %83, %102 : vector<56x128xf32>
      %cst_79 = arith.constant dense<0.000000e+00> : vector<128xf32>
      %104 = vector.multi_reduction <add>, %103, %cst_79 [0] : vector<56x128xf32> to vector<128xf32>
      %105 = vector.shape_cast %104 : vector<128xf32> to vector<1x128xf32>
      %cst_80 = arith.constant 6.250000e-02 : f32
      %106 = vector.broadcast %cst_80 : f32 to vector<1x128xf32>
      %107 = arith.mulf %105, %106 : vector<1x128xf32>
      %108 = arith.index_cast %arg22 : i32 to index
      %c0_81 = arith.constant 0 : index
      %109 = vector.load %arg21[%108, %c0_81] : memref<2x128xf32, #tpu.memory_space<vmem>>, vector<1x128xf32>
      tpu.vector_store %arg21[%108, %c0_81], %107 {strides = array<i32>} : memref<2x128xf32, #tpu.memory_space<vmem>>, vector<1x128xf32>,
    }
    %c2_i32_53 = arith.constant 2 : i32
    %c0_54 = arith.constant 0 : index
    %c0_55 = arith.constant 0 : index
    %56 = vector.load %arg21[%c0_54, %c0_55] : memref<2x128xf32, #tpu.memory_space<vmem>>, vector<2x128xf32>
    %c0_56 = arith.constant 0 : index
    %c0_57 = arith.constant 0 : index
    %57 = vector.load %arg10[%c0_56, %c0_57] : memref<128x32xf32, #tpu.memory_space<vmem>>, vector<128x32xf32>
    %cst_58 = arith.constant dense<0.000000e+00> : vector<2x32xf32>
    %58 = tpu.matmul %56, %57, %cst_58 {dimension_numbers = #tpu.dot_dimension_numbers<[1], [0], [0], [1], [0, 0, 1, 1], [], []>} : vector<2x128xf32>, vector<128x32xf32>, vector<2x32xf32> -> vector<2x32xf32>
    %c0_59 = arith.constant 0 : index
    %c0_60 = arith.constant 0 : index
    %59 = vector.load %arg11[%c0_59, %c0_60] : memref<1x32xf32, #tpu.memory_space<vmem>>, vector<1x32xf32>
    %60 = vector.broadcast %59 : vector<1x32xf32> to vector<2x32xf32>
    %61 = arith.addf %58, %60 : vector<2x32xf32>
    %cst_61 = arith.constant 0.000000e+00 : f32
    %62 = vector.broadcast %cst_61 : f32 to vector<2x32xf32>
    %63 = arith.maximumf %61, %62 : vector<2x32xf32>
    %c0_62 = arith.constant 0 : index
    %c0_63 = arith.constant 0 : index
    %64 = vector.load %arg12[%c0_62, %c0_63] : memref<32x4xf32, #tpu.memory_space<vmem>>, vector<32x4xf32>
    %cst_64 = arith.constant dense<0.000000e+00> : vector<2x4xf32>
    %65 = tpu.matmul %63, %64, %cst_64 {dimension_numbers = #tpu.dot_dimension_numbers<[1], [0], [0], [1], [0, 0, 1, 1], [], []>} : vector<2x32xf32>, vector<32x4xf32>, vector<2x4xf32> -> vector<2x4xf32>
    %c0_65 = arith.constant 0 : index
    %c0_66 = arith.constant 0 : index
    %66 = vector.load %arg13[%c0_65, %c0_66] : memref<1x4xf32, #tpu.memory_space<vmem>>, vector<1x4xf32>
    %67 = vector.broadcast %66 : vector<1x4xf32> to vector<2x4xf32>
    %68 = arith.addf %65, %67 : vector<2x4xf32>
    %c0_67 = arith.constant 0 : index
    %c0_68 = arith.constant 0 : index
    %69 = vector.load %arg14[%c0_67, %c0_68] : memref<2x4xf32, #tpu.memory_space<vmem>>, vector<2x4xf32>
    tpu.vector_store %arg14[%c0_67, %c0_68], %68 {strides = array<i32>} : memref<2x4xf32, #tpu.memory_space<vmem>>, vector<2x4xf32>,
    return
  }
}

</mosaic_0001>

<bundles_post_ra>
// kernel: domain_classifier_forward.1
= control target key start
LH: loop header
LB: loop body
LE: loop exit
PB: predicated region body
PF: predicated region fallthrough
CT: control target
= control target key end

     0   :  { %19 = vsyncpa [#allocation10], 0  ;;  %vm56_vm0 = vcmask 1041408   ;;  %vm52_vm1 = vcmask 80896   ;;  %vm148_vm2 = vcmask 254976   ;;  %vm88_vm3 = vcmask 261120   ;;  %s18818_s0 = inlined_call_operand.vmem [shape: f32[528,32], index: 0, kind: input, shape index: {}]   ;;  %s18819_s1 = inlined_call_operand.vmem [shape: f32[2,10], index: 1, kind: input, shape index: {}]   ;;  %s18820_s2 = inlined_call_operand.vmem [shape: f32[25,32], index: 2, kind: input, shape index: {}]   ;;  %s18821_s3 = inlined_call_operand.vmem [shape: bf16[800,64], index: 3, kind: input, shape index: {}]   ;;  %s18822_s4 = inlined_call_operand.vmem [shape: bf16[1600,128], index: 4, kind: input, shape index: {}]   ;;  %s18823_s5 = inlined_call_operand.vmem [shape: f32[10,32], index: 5, kind: input, shape index: {}]   ;;  %s18824_s6 = inlined_call_operand.vmem [shape: f32[32,64], index: 6, kind: input, shape index: {}]   ;;  %s18825_s7 = inlined_call_operand.vmem [shape: f32[1,64], index: 7, kind: input, shape index: {}]   ;;  %s18826_s8 = inlined_call_operand.vmem [shape: f32[64,128], index: 8, kind: input, shape index: {}]   ;;  %s18827_s9 = inlined_call_operand.vmem [shape: f32[1,128], index: 9, kind: input, shape index: {}]   ;;  %s18828_s10 = inlined_call_operand.vmem [shape: f32[128,32], index: 10, kind: input, shape index: {}]   ;;  %s18829_s11 = inlined_call_operand.vmem [shape: f32[1,32], index: 11, kind: input, shape index: {}]   ;;  %s18830_s12 = inlined_call_operand.vmem [shape: f32[32,4], index: 12, kind: input, shape index: {}]   ;;  %s18831_s13 = inlined_call_operand.vmem [shape: f32[1,4], index: 13, kind: input, shape index: {}]   ;;  %s18832_s14 = inlined_call_operand.hbm [shape: f32[2,4], index: 14, kind: output, shape index: {}]  }
   0x1   :  { %v51_v0 = vld [vmem:[%s18823_s5 + $0x8] sm:$0x3]  ;;  %v50_v1 = vld [vmem:[%s18823_s5] sm:$0xff]  ;;  %v83_v3 = vld [vmem:[%s18824_s6 + $0x18] sm:$0xff]  ;;  %vm150_vm4 = vcmask 517120   ;;  %vm124_vm5 = vcmask 523264  }
   0x2   :  { %8584 = vmatpush.msk.msra.mxu0 %vm56_vm0, %v51_v0  ;;  %v49_v2 = vld [vmem:[%s18819_s1] sm:$0x3]  ;;  %v82_v4 = vld [vmem:[%s18824_s6 + $0x10] sm:$0xff]  ;;  %104 = vmatpush.msra.mxu1 %v83_v3  ;;  %v81_v5 = vld [vmem:[%s18824_s6 + $0x8] sm:$0xff]  ;;  %v11805_v26 = vmov 0.0   ;;  %v11807_v27 = vmov 0.0  }
   0x3   :  { %v80_v6 = vld [vmem:[%s18824_s6] sm:$0xff]  ;;  %v119_v7 = vld [vmem:[%s18826_s8 + $0x38] sm:$0xff]  ;;  %v118_v8 = vld [vmem:[%s18826_s8 + $0x30] sm:$0xff]  ;;  %s11809_s16 = smov 0  }
   0x4   :  { %75 = vmatpush.msra.mxu0 %v50_v1  ;;  %105 = vmatpush.msra.mxu1 %v82_v4  ;;  %v117_v9 = vld [vmem:[%s18826_s8 + $0x28] sm:$0xff]  ;;  %v116_v10 = vld [vmem:[%s18826_s8 + $0x20] sm:$0xff]  ;;  %v115_v11 = vld [vmem:[%s18826_s8 + $0x18] sm:$0xff] }
   0x5   :  { %8585 = vmatmul.msk.f32.vlgmr.msra.gmra.mxu0 %vm52_vm1, %v49_v2  ;;  %136 = vmatpush.msra.mxu2 %v119_v7  ;;  %v114_v12 = vld [vmem:[%s18826_s8 + $0x10] sm:$0xff]  ;;  %v113_v14 = vld [vmem:[%s18826_s8 + $0x8] sm:$0xff]  ;;  %v112_v15 = vld [vmem:[%s18826_s8] sm:$0xff] }
   0x6   :  { %106 = vmatpush.msra.mxu1 %v81_v5  ;;  %v10749_v16 = vld [vmem:[%s18825_s7] ss:$0 sm:$0xff]  ;;  %v11790_v20 = vld [vmem:[%s18820_s2 + $0x8] sm:$0xff]  ;;  %v11795_v21 = vld [vmem:[%s18820_s2 + $0x10] sm:$0xff] }
   0x7   :  { %137 = vmatpush.msra.mxu2 %v118_v8  ;;  %v11785_v19 = vld [vmem:[%s18820_s2] sm:$0xff]  ;;  %19188 = vst [vmem:[#allocation13_spill] sm:$0xff] %v11790_v20  ;;  %v11800_v22 = vld [vmem:[%s18820_s2 + $0x18] sm:$0x1] }
   0x8   :  { %107 = vmatpush.msra.mxu1 %v80_v6  ;;  %19187 = vst [vmem:[#allocation12_spill] sm:$0xff] %v11785_v19  ;;  %v10750_v23 = vld [vmem:[%s18827_s9] ss:$0 sm:$0xff] }
   0x9   :  { %138 = vmatpush.msra.mxu2 %v117_v9  ;;  %19189 = vst [vmem:[#allocation14_spill] sm:$0xff] %v11795_v21 }
   0xa   :  { %19190 = vst [vmem:[#allocation15_spill] sm:$0xff] %v11800_v22 }
   0xb   :  { %139 = vmatpush.msra.mxu2 %v116_v10 }
   0xd   :  { %140 = vmatpush.msra.mxu2 %v115_v11 }
   0xf   :  { %141 = vmatpush.msra.mxu2 %v114_v12 }
  0x11   :  { %142 = vmatpush.msra.mxu2 %v113_v14 }
  0x13   :  { %143 = vmatpush.msra.mxu2 %v112_v15 }
  0x82   :  { %v77_v13 = vpop.f32.mrf.mxu0 }
  0x83   :  { %149 = vst.msk [vmem:[#allocation5] sm:$0x3] %vm148_vm2, %v77_v13  ;;  %8586 = vmatmul.msk.f32.vlgmr.msra.gmra.mxu1 %vm88_vm3, %v77_v13 }
 0x100   :  { %v109_v17 = vpop.f32.mrf.mxu1 }
 0x101   :  { %v110_v18 = vadd.f32 %v10749_v16, %v109_v17 }
 0x103   :  { %151 = vst.msk [vmem:[#allocation6] sm:$0x3] %vm150_vm4, %v110_v18  ;;  %8587 = vmatmul.msk.f32.vlgmr.msra.gmra.mxu2 %vm124_vm5, %v110_v18 }
 0x186   :  { %v145_v24 = vpop.f32.mrf.mxu2 }
 0x187   :  { %v146_v25 = vadd.f32 %v10750_v23, %v145_v24 }
 0x189   :  { %152 = vst [vmem:[#allocation7] sm:$0x3] %v146_v25 }
 0x18a LB: > { %v19191_v19 = vld [vmem:[#allocation12_spill] sm:$0xff]  ;;  %19192 = vst [vmem:[#allocation16_spill] sm:$0xff] %v11603_v26  ;;  %s8588_s2 = sshll.u32 %s11611_s16, 8  ;;  %s162_s16 = sadd.s32 1, %s11611_s16   ;;  %v11603_v26 = vphi %v11805_v26, %v19931_v26   ;;  %s11611_s16 = sphi %s11809_s16, %s162_s16   ;;  %v11607_v27 = vphi %v11807_v27, %v19932_v27  }
 0x18b   : > { %19193 = vst [vmem:[#allocation17_spill] sm:$0xff] %v11607_v27  ;;  %s11826_s17 = scalar_lea.vmem %s18818_s0, %s8588_s2  ;;  %v192_v35 = vperm.slane %v19191_v19, 0  ;;  %v11874_v45 = vperm.slane %v19191_v19, 1  ;;  %v11877_v46 = vperm.slane %v19191_v19, 2  ;;  %v11880_v47 = vperm.slane %v19191_v19, 3  ;;  %s14911_s18 = scalar_lea.vmem [#allocation2], %s8588_s2 }
 0x18c   : > { %v167_v28 = vld [vmem:[%s11826_s17] sm:$0xff]  ;;  %v168_v29 = vld [vmem:[%s11826_s17 + $0x8] sm:$0xff]  ;;  %v11831_v30 = vld [vmem:[%s11826_s17 + $0x10] sm:$0xff]  ;;  %p159_p0 = scmp.ge.s32.totalorder %s162_s16, 2  }
 0x18d   : > { %v11834_v31 = vld [vmem:[%s11826_s17 + $0x18] sm:$0xff]  ;;  %v11837_v32 = vld [vmem:[%s11826_s17 + $0x20] sm:$0xff]  ;;  %v11840_v33 = vld [vmem:[%s11826_s17 + $0x28] sm:$0xff]  ;;  %v193_v51 = vmul.f32 %v192_v35, %v167_v28  ;;  %v11891_v52 = vmul.f32 %v192_v35, %v168_v29  ;;  %v11894_v53 = vmul.f32 %v192_v35, %v11831_v30  ;;  %s15720_s0 = smov (%p159_p0), 0  }
 0x18e   : > { %19194 = vst [vmem:[#allocation18_spill] sm:$0xff] %v11837_v32  ;;  %v11843_v34 = vld [vmem:[%s11826_s17 + $0x30] sm:$0xff]  ;;  %v11847_v36 = vld [vmem:[%s11826_s17 + $0x38] sm:$0xff]  ;;  %v11850_v37 = vld [vmem:[%s11826_s17 + $0x40] sm:$0xff]  ;;  %v11897_v54 = vmul.f32 %v192_v35, %v11834_v31  ;;  %v11906_v57 = vmul.f32 %v192_v35, %v11837_v32  ;;  %v11909_v58 = vmul.f32 %v192_v35, %v11840_v33 }
 0x18f   : > { %19195 = vst [vmem:[#allocation19_spill] sm:$0xff] %v11840_v33  ;;  %v11853_v38 = vld [vmem:[%s11826_s17 + $0x48] sm:$0xff]  ;;  %v11856_v39 = vld [vmem:[%s11826_s17 + $0x50] sm:$0xff]  ;;  %v11859_v40 = vld [vmem:[%s11826_s17 + $0x58] sm:$0xff]  ;;  %v11912_v59 = vmul.f32 %v192_v35, %v11843_v34  ;;  %v11915_v60 = vmul.f32 %v192_v35, %v11847_v36  ;;  %v11925_v0 = vmul.f32 %v192_v35, %v11850_v37 }
 0x190   : > { %19196 = vst [vmem:[#allocation20_spill] sm:$0xff] %v11843_v34  ;;  %v11862_v41 = vld [vmem:[%s11826_s17 + $0x60] sm:$0xff]  ;;  %v11865_v42 = vld [vmem:[%s11826_s17 + $0x68] sm:$0xff]  ;;  %v11868_v43 = vld [vmem:[%s11826_s17 + $0x70] sm:$0xff]  ;;  %v11928_v1 = vmul.f32 %v192_v35, %v11853_v38  ;;  %v11931_v2 = vmul.f32 %v192_v35, %v11856_v39  ;;  %v11934_v3 = vmul.f32 %v192_v35, %v11859_v40 }
 0x191   : > { %19197 = vst [vmem:[#allocation21_spill] sm:$0xff] %v11847_v36  ;;  %v11871_v44 = vld [vmem:[%s11826_s17 + $0x78] sm:$0xff]  ;;  %v11883_v48 = vld [vmem:[%s11826_s17 + $0x80] sm:$0xff]  ;;  %v11886_v49 = vld [vmem:[%s11826_s17 + $0x88] sm:$0xff]  ;;  %v11944_v7 = vmul.f32 %v192_v35, %v11862_v41  ;;  %v11947_v8 = vmul.f32 %v192_v35, %v11865_v42  ;;  %v11950_v9 = vmul.f32 %v192_v35, %v11868_v43 }
 0x192   : > { %19198 = vst [vmem:[#allocation22_spill] sm:$0xff] %v11850_v37  ;;  %v11889_v50 = vld [vmem:[%s11826_s17 + $0x90] sm:$0xff]  ;;  %v11900_v55 = vld [vmem:[%s11826_s17 + $0x98] sm:$0xff]  ;;  %v11903_v56 = vld [vmem:[%s11826_s17 + $0xa0] sm:$0xff]  ;;  %v11953_v10 = vmul.f32 %v192_v35, %v11871_v44  ;;  %v11959_v12 = vmul.f32 %v192_v35, %v11883_v48  ;;  %v11962_v13 = vmul.f32 %v192_v35, %v11886_v49 }
 0x193   : > { %19199 = vst [vmem:[#allocation23_spill] sm:$0xff] %v11853_v38  ;;  %v8590_v61 = vld [vmem:[%s11826_s17 + $0x1] sm:$0xff]  ;;  %v11922_v63 = vld [vmem:[%s11826_s17 + $0xb0] sm:$0xff]  ;;  %v11938_v5 = vld [vmem:[%s11826_s17 + $0xb8] sm:$0xff]  ;;  %v11965_v14 = vmul.f32 %v192_v35, %v11889_v50  ;;  %v11978_v23 = vmul.f32 %v192_v35, %v11900_v55  ;;  %v11981_v24 = vmul.f32 %v192_v35, %v11903_v56 }
 0x194   : > { %19200 = vst [vmem:[#allocation24_spill] sm:$0xff] %v11856_v39  ;;  %v11919_v62 = vld [vmem:[%s11826_s17 + $0xa8] sm:$0xff]  ;;  %v11941_v6 = vld [vmem:[%s11826_s17 + $0xc0] sm:$0xff]  ;;  %v11956_v11 = vld [vmem:[%s11826_s17 + $0x11] sm:$0xff]  ;;  %v271_v18 = vmul.f32 %v8590_v61, %v11874_v45  ;;  %v11994_v61 = vperm.slane %v19191_v19, 4  ;;  %v12000_v22 = vmul.f32 %v192_v35, %v11922_v63  ;;  %v12003_v21 = vmul.f32 %v192_v35, %v11938_v5 }
 0x195   : > { %19201 = vst [vmem:[#allocation25_spill] sm:$0xff] %v11859_v40  ;;  %v8591_v4 = vld [vmem:[%s11826_s17 + $0x9] sm:$0xff]  ;;  %v11968_v15 = vld [vmem:[%s11826_s17 + $0x19] sm:$0xff]  ;;  %v11971_v16 = vld [vmem:[%s11826_s17 + $0x21] sm:$0xff]  ;;  %v11997_v27 = vmul.f32 %v192_v35, %v11919_v62 }
 0x196   : > { %19202 = vst [vmem:[#allocation26_spill] sm:$0xff] %v11862_v41  ;;  %v11974_v17 = vld [vmem:[%s11826_s17 + $0x29] sm:$0xff]  ;;  %v11984_v25 = vld [vmem:[%s11826_s17 + $0x31] sm:$0xff]  ;;  %v11987_v28 = vld [vmem:[%s11826_s17 + $0x39] sm:$0xff]  ;;  %v272_v26 = vmul.f32 %v8591_v4, %v11874_v45  ;;  %v12049_v41 = vadd.f32 %v271_v18, %v193_v51 }
 0x197   : > { %19203 = vst [vmem:[#allocation27_spill] sm:$0xff] %v11865_v42  ;;  %v11990_v29 = vld [vmem:[%s11826_s17 + $0x41] sm:$0xff]  ;;  %v12012_v4 = vld [vmem:[%s11826_s17 + $0x59] sm:$0xff]  ;;  %v277_v42 = vmul.f32 %v11984_v25, %v11874_v45  ;;  %v12070_v51 = vld [vmem:[%s11826_s17 + $0xa9] sm:$0xff] }
 0x198   : > { %19204 = vst [vmem:[#allocation28_spill] sm:$0xff] %v11868_v43  ;;  %v12041_v43 = vld [vmem:[%s11826_s17 + $0x89] sm:$0xff]  ;;  %v12055_v40 = vld [vmem:[%s11826_s17 + $0x99] sm:$0xff]  ;;  %v12058_v39 = vld [vmem:[%s11826_s17 + $0xa1] sm:$0xff] }
 0x199   : > { %19205 = vst [vmem:[#allocation29_spill] sm:$0xff] %v11871_v44  ;;  %v275_v44 = vmul.f32 %v11971_v16, %v11874_v45  ;;  %v12073_v18 = vld [vmem:[%s11826_s17 + $0xb1] sm:$0xff]  ;;  %v12076_v37 = vld [vmem:[%s11826_s17 + $0xb9] sm:$0xff] }
 0x19a   : > { %19206 = vst [vmem:[#allocation30_spill] sm:$0xff] %v11883_v48  ;;  %v274_v48 = vmul.f32 %v11968_v15, %v11874_v45 }
 0x19b   : > { %19207 = vst [vmem:[#allocation31_spill] sm:$0xff] %v11886_v49  ;;  %v12023_v49 = vld [vmem:[%s11826_s17 + $0x69] sm:$0xff] }
 0x19c   : > { %19208 = vst [vmem:[#allocation32_spill] sm:$0xff] %v11889_v50  ;;  %v273_v50 = vmul.f32 %v11956_v11, %v11874_v45 }
 0x19d   : > { %19209 = vst [vmem:[#allocation33_spill] sm:$0xff] %v11900_v55  ;;  %v12009_v55 = vld [vmem:[%s11826_s17 + $0x51] sm:$0xff] }
 0x19e   : > { %19210 = vst [vmem:[#allocation34_spill] sm:$0xff] %v11903_v56  ;;  %v12006_v56 = vld [vmem:[%s11826_s17 + $0x49] sm:$0xff] }
 0x19f   : > { %19211 = vst [vmem:[#allocation35_spill] sm:$0xff] %v11919_v62  ;;  %v12017_v62 = vmul.f32 %v192_v35, %v11941_v6  ;;  %v12035_v35 = vld [vmem:[%s11826_s17 + $0x79] sm:$0xff]  ;;  %v280_v38 = vmul.f32 %v12006_v56, %v11874_v45 }
 0x1a0   : > { %19212 = vst [vmem:[#allocation36_spill] sm:$0xff] %v11922_v63  ;;  %v12020_v63 = vld [vmem:[%s11826_s17 + $0x61] sm:$0xff] }
 0x1a1   : > { %19213 = vst [vmem:[#allocation37_spill] sm:$0xff] %v11938_v5  ;;  %v12026_v5 = vld [vmem:[%s11826_s17 + $0x71] sm:$0xff]  ;;  %v283_v36 = vmul.f32 %v12020_v63, %v11874_v45 }
 0x1a2   : > { %19214 = vst [vmem:[#allocation38_spill] sm:$0xff] %v11941_v6  ;;  %v12038_v6 = vld [vmem:[%s11826_s17 + $0x81] sm:$0xff] }
 0x1a3   : > { %19215 = vst [vmem:[#allocation39_spill] sm:$0xff] %v11956_v11  ;;  %v276_v11 = vmul.f32 %v11974_v17, %v11874_v45  ;;  %v287_v34 = vmul.f32 %v12038_v6, %v11874_v45 }
 0x1a4   : > { %19216 = vst [vmem:[#allocation40_spill] sm:$0xff] %v11968_v15  ;;  %v278_v15 = vmul.f32 %v11987_v28, %v11874_v45 }
 0x1a5   : > { %19217 = vst [vmem:[#allocation41_spill] sm:$0xff] %v11971_v16  ;;  %v279_v16 = vmul.f32 %v11990_v29, %v11874_v45 }
 0x1a6   : > { %19218 = vst [vmem:[#allocation42_spill] sm:$0xff] %v11974_v17  ;;  %v12052_v17 = vld [vmem:[%s11826_s17 + $0x91] sm:$0xff] }
 0x1a7   : > { %19219 = vst [vmem:[#allocation43_spill] sm:$0xff] %v11984_v25  ;;  %v281_v25 = vmul.f32 %v12009_v55, %v11874_v45 }
 0x1a8   : > { %19220 = vst [vmem:[#allocation44_spill] sm:$0xff] %v11987_v28  ;;  %v282_v28 = vmul.f32 %v12012_v4, %v11874_v45 }
 0x1a9   : > { %19221 = vst [vmem:[#allocation45_spill] sm:$0xff] %v11990_v29  ;;  %v12067_v29 = vadd.f32 %v272_v26, %v11891_v52  ;;  %v12088_v26 = vld [vmem:[%s11826_s17 + $0xc1] sm:$0xff]  ;;  %v286_v52 = vmul.f32 %v12035_v35, %v11874_v45 }
 0x1aa   : > { %19222 = vst [vmem:[#allocation46_spill] sm:$0xff] %v12006_v56  ;;  %v284_v56 = vmul.f32 %v12023_v49, %v11874_v45 }
 0x1ab   : > { %19223 = vst [vmem:[#allocation47_spill] sm:$0xff] %v12009_v55  ;;  %v285_v55 = vmul.f32 %v12026_v5, %v11874_v45 }
 0x1ac   : > { %19224 = vst [vmem:[#allocation48_spill] sm:$0xff] %v12012_v4  ;;  %v12085_v4 = vadd.f32 %v273_v50, %v11894_v53  ;;  %v289_v50 = vmul.f32 %v12052_v17, %v11874_v45  ;;  %v290_v53 = vmul.f32 %v12055_v40, %v11874_v45 }
 0x1ad   : > { %19225 = vst [vmem:[#allocation49_spill] sm:$0xff] %v12020_v63  ;;  %v288_v63 = vmul.f32 %v12041_v43, %v11874_v45 }
 0x1ae   : > { %19226 = vst [vmem:[#allocation50_spill] sm:$0xff] %v12023_v49  ;;  %v12097_v49 = vadd.f32 %v274_v48, %v11897_v54  ;;  %v293_v48 = vmul.f32 %v12073_v18, %v11874_v45  ;;  %v294_v54 = vmul.f32 %v12076_v37, %v11874_v45 }
 0x1af   : > { %19227 = vst [vmem:[#allocation51_spill] sm:$0xff] %v12026_v5  ;;  %v12106_v5 = vadd.f32 %v275_v44, %v11906_v57  ;;  %v12120_v44 = vadd.f32 %v277_v42, %v11912_v59  ;;  %v12123_v57 = vadd.f32 %v278_v15, %v11915_v60  ;;  %v12140_v42 = vadd.f32 %v282_v28, %v11934_v3  ;;  %v12146_v60 = vld [vmem:[%s11826_s17 + $0x1a] sm:$0xff]  ;;  %v12167_v3 = vld [vmem:[%s11826_s17 + $0x32] sm:$0xff]  ;;  %v12173_v15 = vld [vmem:[%s11826_s17 + $0x42] sm:$0xff] }
 0x1b0   : > { %19228 = vst [vmem:[#allocation52_spill] sm:$0xff] %v12035_v35  ;;  %v291_v35 = vmul.f32 %v12058_v39, %v11874_v45  ;;  %v12143_v59 = vadd.f32 %v283_v36, %v11944_v7  ;;  %v12164_v36 = vadd.f32 %v287_v34, %v11959_v12  ;;  %v12170_v7 = vld [vmem:[%s11826_s17 + $0x3a] sm:$0xff]  ;;  %v12182_v34 = vadd.f32 %v290_v53, %v11978_v23  ;;  %v12209_v23 = vld [vmem:[%s11826_s17 + $0x62] sm:$0xff] }
 0x1b1   : > { %19229 = vst [vmem:[#allocation53_spill] sm:$0xff] %v12038_v6  ;;  %v12194_v12 = vld [vmem:[%s11826_s17 + $0x5a] sm:$0xff]  ;;  %v352_v28 = vmul.f32 %v12146_v60, %v11877_v46  ;;  %v12267_v6 = vld [vmem:[%s11826_s17 + $0xc2] sm:$0xff] }
 0x1b2   : > { %19230 = vst [vmem:[#allocation54_spill] sm:$0xff] %v12041_v43  ;;  %v292_v43 = vmul.f32 %v12070_v51, %v11874_v45 }
 0x1b3   : > { %19231 = vst [vmem:[#allocation55_spill] sm:$0xff] %v12052_v17  ;;  %v12131_v17 = vld [vmem:[%s11826_s17 + $0x12] sm:$0xff] }
 0x1b4   : > { %19232 = vst [vmem:[#allocation56_spill] sm:$0xff] %v12055_v40  ;;  %v12115_v40 = vadd.f32 %v276_v11, %v11909_v58  ;;  %v12134_v58 = vadd.f32 %v280_v38, %v11928_v1  ;;  %v12152_v11 = vld [vmem:[%s11826_s17 + $0x2a] sm:$0xff]  ;;  %v12155_v38 = vadd.f32 %v284_v56, %v11947_v8  ;;  %v12158_v1 = vadd.f32 %v285_v55, %v11950_v9 }
 0x1b5   : > { %19233 = vst [vmem:[#allocation57_spill] sm:$0xff] %v12058_v39  ;;  %v295_v39 = vmul.f32 %v12088_v26, %v11874_v45  ;;  %v12137_v45 = vadd.f32 %v281_v25, %v11931_v2  ;;  %v12161_v2 = vadd.f32 %v286_v52, %v11953_v10  ;;  %v12176_v55 = vadd.f32 %v288_v63, %v11962_v13  ;;  %v12188_v9 = vld [vmem:[%s11826_s17 + $0x4a] sm:$0xff]  ;;  %v12191_v10 = vld [vmem:[%s11826_s17 + $0x52] sm:$0xff]  ;;  %v12236_v52 = vld [vmem:[%s11826_s17 + $0x9a] sm:$0xff] }
 0x1b6   : > { %19234 = vst [vmem:[#allocation58_spill] sm:$0xff] %v12070_v51  ;;  %v12126_v51 = vadd.f32 %v279_v16, %v11925_v0  ;;  %v12149_v0 = vld [vmem:[%s11826_s17 + $0x22] sm:$0xff]  ;;  %v12179_v56 = vadd.f32 %v289_v50, %v11965_v14  ;;  %v12185_v8 = vadd.f32 %v291_v35, %v11981_v24  ;;  %v12197_v63 = vadd.f32 %v292_v43, %v11997_v27  ;;  %v12212_v24 = vld [vmem:[%s11826_s17 + $0x6a] sm:$0xff]  ;;  %v12215_v25 = vld [vmem:[%s11826_s17 + $0x72] sm:$0xff] }
 0x1b7   : > { %19235 = vst [vmem:[#allocation59_spill] sm:$0xff] %v12073_v18  ;;  %v8616_v18 = vld [vmem:[%s11826_s17 + $0x2] sm:$0xff]  ;;  %v12200_v13 = vadd.f32 %v293_v48, %v12000_v22  ;;  %v12203_v14 = vadd.f32 %v294_v54, %v12003_v21  ;;  %v12206_v16 = vadd.f32 %v295_v39, %v12017_v62  ;;  %v12218_v27 = vld [vmem:[%s11826_s17 + $0x7a] sm:$0xff]  ;;  %v12224_v22 = vld [vmem:[%s11826_s17 + $0x8a] sm:$0xff]  ;;  %v351_v62 = vmul.f32 %v12131_v17, %v11877_v46 }
 0x1b8   : > { %19236 = vst [vmem:[#allocation60_spill] sm:$0xff] %v12076_v37  ;;  %v8617_v37 = vld [vmem:[%s11826_s17 + $0xa] sm:$0xff]  ;;  %v12221_v43 = vld [vmem:[%s11826_s17 + $0x82] sm:$0xff]  ;;  %v349_v21 = vmul.f32 %v8616_v18, %v11877_v46  ;;  %v12233_v35 = vld [vmem:[%s11826_s17 + $0x92] sm:$0xff]  ;;  %v353_v53 = vmul.f32 %v12149_v0, %v11877_v46  ;;  %v354_v18 = vmul.f32 %v12152_v11, %v11877_v46  ;;  %v356_v48 = vmul.f32 %v12170_v7, %v11877_v46 }
 0x1b9   : > { %19237 = vst [vmem:[#allocation61_spill] sm:$0xff] %v12088_v26  ;;  %v350_v39 = vmul.f32 %v8617_v37, %v11877_v46  ;;  %v12239_v50 = vld [vmem:[%s11826_s17 + $0xa2] sm:$0xff]  ;;  %v355_v37 = vmul.f32 %v12167_v3, %v11877_v46  ;;  %v12250_v54 = vld [vmem:[%s11826_s17 + $0xaa] sm:$0xff]  ;;  %v357_v26 = vmul.f32 %v12173_v15, %v11877_v46  ;;  %v362_v33 = vmul.f32 %v12212_v24, %v11877_v46 }
 0x1ba   : > { %19238 = vst [vmem:[#allocation62_spill] sm:$0xff] %v12131_v17  ;;  %v12256_v17 = vld [vmem:[%s11826_s17 + $0xba] sm:$0xff]  ;;  %v367_v32 = vmul.f32 %v12233_v35, %v11877_v46 }
 0x1bb   : > { %19239 = vst [vmem:[#allocation63_spill] sm:$0xff] %v12146_v60  ;;  %v12253_v60 = vld [vmem:[%s11826_s17 + $0xb2] sm:$0xff] }
 0x1bc   : > { %19240 = vst [vmem:[#allocation64_spill] sm:$0xff] %v12149_v0  ;;  %v358_v0 = vmul.f32 %v12188_v9, %v11877_v46 }
 0x1bd   : > { %19241 = vst [vmem:[#allocation65_spill] sm:$0xff] %v12152_v11  ;;  %v359_v11 = vmul.f32 %v12191_v10, %v11877_v46 }
 0x1be   : > { %19242 = vst [vmem:[#allocation66_spill] sm:$0xff] %v12167_v3  ;;  %v360_v3 = vmul.f32 %v12194_v12, %v11877_v46 }
 0x1bf   : > { %19243 = vst [vmem:[#allocation67_spill] sm:$0xff] %v12170_v7  ;;  %v361_v7 = vmul.f32 %v12209_v23, %v11877_v46 }
 0x1c0   : > { %19244 = vst [vmem:[#allocation68_spill] sm:$0xff] %v12173_v15  ;;  %v363_v15 = vmul.f32 %v12215_v25, %v11877_v46 }
 0x1c1   : > { %19245 = vst [vmem:[#allocation69_spill] sm:$0xff] %v12188_v9  ;;  %v364_v9 = vmul.f32 %v12218_v27, %v11877_v46 }
 0x1c2   : > { %19246 = vst [vmem:[#allocation70_spill] sm:$0xff] %v12191_v10  ;;  %v365_v10 = vmul.f32 %v12221_v43, %v11877_v46 }
 0x1c3   : > { %19247 = vst [vmem:[#allocation71_spill] sm:$0xff] %v12194_v12  ;;  %v366_v12 = vmul.f32 %v12224_v22, %v11877_v46 }
 0x1c4   : > { %19248 = vst [vmem:[#allocation72_spill] sm:$0xff] %v12209_v23  ;;  %v368_v23 = vmul.f32 %v12236_v52, %v11877_v46 }
 0x1c5   : > { %19249 = vst [vmem:[#allocation73_spill] sm:$0xff] %v12212_v24  ;;  %v369_v24 = vmul.f32 %v12239_v50, %v11877_v46 }
 0x1c6   : > { %19250 = vst [vmem:[#allocation74_spill] sm:$0xff] %v12215_v25  ;;  %v370_v25 = vmul.f32 %v12250_v54, %v11877_v46 }
 0x1c7   : > { %19251 = vst [vmem:[#allocation75_spill] sm:$0xff] %v12218_v27  ;;  %v12305_v27 = vadd.f32 %v352_v28, %v12097_v49  ;;  %v12324_v49 = vadd.f32 %v358_v0, %v12134_v58  ;;  %v12346_v58 = vadd.f32 %v363_v15, %v12158_v1  ;;  %v12352_v0 = vld [vmem:[%s11826_s17 + $0x2b] sm:$0xff]  ;;  %v12370_v1 = vld [vmem:[%s11826_s17 + $0x3b] sm:$0xff]  ;;  %v12437_v28 = vld [vmem:[%s11826_s17 + $0xa3] sm:$0xff] }
 0x1c8   : > { %19252 = vst [vmem:[#allocation76_spill] sm:$0xff] %v12221_v43  ;;  %v371_v43 = vmul.f32 %v12253_v60, %v11877_v46  ;;  %v12385_v15 = vadd.f32 %v370_v25, %v12197_v63  ;;  %v12412_v63 = vld [vmem:[%s11826_s17 + $0x7b] sm:$0xff]  ;;  %v12423_v25 = vld [vmem:[%s11826_s17 + $0x93] sm:$0xff] }
 0x1c9   : > { %19253 = vst [vmem:[#allocation77_spill] sm:$0xff] %v12224_v22  ;;  %v372_v22 = vmul.f32 %v12256_v17, %v11877_v46 }
 0x1ca   : > { %19254 = vst [vmem:[#allocation78_spill] sm:$0xff] %v12233_v35  ;;  %v373_v35 = vmul.f32 %v12267_v6, %v11877_v46  ;;  %v8642_v46 = vld [vmem:[%s11826_s17 + $0x3] sm:$0xff] }
 0x1cb   : > { %19255 = vst [vmem:[#allocation79_spill] sm:$0xff] %v12236_v52  ;;  %v12296_v52 = vadd.f32 %v349_v21, %v12049_v41  ;;  %v12314_v41 = vadd.f32 %v355_v37, %v12120_v44  ;;  %v12331_v21 = vld [vmem:[%s11826_s17 + $0x13] sm:$0xff]  ;;  %v12334_v44 = vld [vmem:[%s11826_s17 + $0x1b] sm:$0xff] }
 0x1cc   : > { %19256 = vst [vmem:[#allocation80_spill] sm:$0xff] %v12239_v50  ;;  %v12299_v50 = vadd.f32 %v350_v39, %v12067_v29  ;;  %v12318_v29 = vadd.f32 %v356_v48, %v12123_v57  ;;  %v12337_v57 = vadd.f32 %v360_v3, %v12140_v42  ;;  %v12358_v42 = vadd.f32 %v364_v9, %v12161_v2  ;;  %v12373_v3 = vld [vmem:[%s11826_s17 + $0x43] sm:$0xff] }
 0x1cd   : > { %19257 = vst [vmem:[#allocation81_spill] sm:$0xff] %v12250_v54  ;;  %v12302_v54 = vadd.f32 %v351_v62, %v12085_v4  ;;  %v12321_v4 = vadd.f32 %v357_v26, %v12126_v51  ;;  %v12340_v51 = vadd.f32 %v361_v7, %v12143_v59  ;;  %v12343_v26 = vadd.f32 %v362_v33, %v12155_v38  ;;  %v12376_v7 = vld [vmem:[%s11826_s17 + $0x4b] sm:$0xff]  ;;  %v12397_v9 = vld [vmem:[%s11826_s17 + $0x63] sm:$0xff]  ;;  %v12434_v62 = vld [vmem:[%s11826_s17 + $0x9b] sm:$0xff] }
 0x1ce   : > { %19258 = vst [vmem:[#allocation82_spill] sm:$0xff] %v12253_v60  ;;  %v12308_v60 = vadd.f32 %v353_v53, %v12106_v5  ;;  %v12327_v5 = vadd.f32 %v359_v11, %v12137_v45  ;;  %v12349_v45 = vld [vmem:[%s11826_s17 + $0x23] sm:$0xff]  ;;  %v12355_v11 = vld [vmem:[%s11826_s17 + $0x33] sm:$0xff]  ;;  %v12361_v59 = vadd.f32 %v365_v10, %v12164_v36  ;;  %v12364_v33 = vadd.f32 %v366_v12, %v12176_v55  ;;  %v12406_v10 = vld [vmem:[%s11826_s17 + $0x6b] sm:$0xff] }
 0x1cf   : > { %19259 = vst [vmem:[#allocation83_spill] sm:$0xff] %v12256_v17  ;;  %v12311_v17 = vadd.f32 %v354_v18, %v12115_v40  ;;  %v8643_v40 = vld [vmem:[%s11826_s17 + $0xb] sm:$0xff]  ;;  %v12367_v38 = vadd.f32 %v367_v32, %v12179_v56  ;;  %v12379_v2 = vadd.f32 %v368_v23, %v12182_v34  ;;  %v12382_v36 = vadd.f32 %v369_v24, %v12185_v8  ;;  %v12391_v55 = vld [vmem:[%s11826_s17 + $0x53] sm:$0xff]  ;;  %v12394_v56 = vld [vmem:[%s11826_s17 + $0x5b] sm:$0xff] }
 0x1d0   : > { %19260 = vst [vmem:[#allocation84_spill] sm:$0xff] %v12267_v6  ;;  %v12388_v32 = vadd.f32 %v371_v43, %v12200_v13  ;;  %v12400_v34 = vadd.f32 %v372_v22, %v12203_v14  ;;  %v12403_v8 = vadd.f32 %v373_v35, %v12206_v16  ;;  %v12409_v12 = vld [vmem:[%s11826_s17 + $0x73] sm:$0xff]  ;;  %v427_v13 = vmul.f32 %v8642_v46, %v11880_v47  ;;  %v12417_v24 = vld [vmem:[%s11826_s17 + $0x83] sm:$0xff]  ;;  %v12420_v14 = vld [vmem:[%s11826_s17 + $0x8b] sm:$0xff] }
 0x1d1   : > { %19261 = vst [vmem:[#allocation85_spill] sm:$0xff] %v12331_v21  ;;  %v428_v23 = vmul.f32 %v8643_v40, %v11880_v47  ;;  %v429_v16 = vmul.f32 %v12331_v21, %v11880_v47  ;;  %v430_v43 = vmul.f32 %v12334_v44, %v11880_v47  ;;  %v431_v22 = vmul.f32 %v12349_v45, %v11880_v47  ;;  %v12440_v35 = vld [vmem:[%s11826_s17 + $0xab] sm:$0xff]  ;;  %v12451_v46 = vld [vmem:[%s11826_s17 + $0xb3] sm:$0xff]  ;;  %v12454_v40 = vld [vmem:[%s11826_s17 + $0xbb] sm:$0xff] }
 0x1d2   : > { %19262 = vst [vmem:[#allocation86_spill] sm:$0xff] %v12334_v44  ;;  %v432_v39 = vmul.f32 %v12352_v0, %v11880_v47  ;;  %v433_v53 = vmul.f32 %v12355_v11, %v11880_v47  ;;  %v434_v18 = vmul.f32 %v12370_v1, %v11880_v47  ;;  %v435_v37 = vmul.f32 %v12373_v3, %v11880_v47 }
 0x1d3   : > { %19263 = vst [vmem:[#allocation87_spill] sm:$0xff] %v12349_v45  ;;  %v436_v48 = vmul.f32 %v12376_v7, %v11880_v47  ;;  %v437_v45 = vmul.f32 %v12391_v55, %v11880_v47  ;;  %v442_v44 = vmul.f32 %v12412_v63, %v11880_v47  ;;  %v443_v21 = vmul.f32 %v12417_v24, %v11880_v47 }
 0x1d4   : > { %19264 = vst [vmem:[#allocation88_spill] sm:$0xff] %v12352_v0  ;;  %v12457_v0 = vld [vmem:[%s11826_s17 + $0xc3] sm:$0xff] }
 0x1d5   : > { %19265 = vst [vmem:[#allocation89_spill] sm:$0xff] %v12355_v11  ;;  %v438_v11 = vmul.f32 %v12394_v56, %v11880_v47 }
 0x1d6   : > { %19266 = vst [vmem:[#allocation90_spill] sm:$0xff] %v12370_v1  ;;  %v439_v1 = vmul.f32 %v12397_v9, %v11880_v47 }
 0x1d7   : > { %19267 = vst [vmem:[#allocation91_spill] sm:$0xff] %v12373_v3  ;;  %v440_v3 = vmul.f32 %v12406_v10, %v11880_v47 }
 0x1d8   : > { %19268 = vst [vmem:[#allocation92_spill] sm:$0xff] %v12376_v7  ;;  %v441_v7 = vmul.f32 %v12409_v12, %v11880_v47 }
 0x1d9   : > { %19269 = vst [vmem:[#allocation93_spill] sm:$0xff] %v12391_v55  ;;  %v444_v55 = vmul.f32 %v12420_v14, %v11880_v47 }
 0x1da   : > { %19270 = vst [vmem:[#allocation94_spill] sm:$0xff] %v12394_v56  ;;  %v445_v56 = vmul.f32 %v12423_v25, %v11880_v47 }
 0x1db   : > { %19271 = vst [vmem:[#allocation95_spill] sm:$0xff] %v12397_v9  ;;  %v446_v9 = vmul.f32 %v12434_v62, %v11880_v47 }
 0x1dc   : > { %19272 = vst [vmem:[#allocation96_spill] sm:$0xff] %v12406_v10  ;;  %v12490_v10 = vadd.f32 %v427_v13, %v12296_v52  ;;  %v12508_v52 = vadd.f32 %v433_v53, %v12314_v41  ;;  %v8668_v13 = vld [vmem:[%s11826_s17 + $0x4] sm:$0xff]  ;;  %v12528_v41 = vadd.f32 %v438_v11, %v12337_v57  ;;  %v12549_v57 = vadd.f32 %v442_v44, %v12358_v42  ;;  %v12558_v11 = vld [vmem:[%s11826_s17 + $0x3c] sm:$0xff]  ;;  %v12576_v42 = vld [vmem:[%s11826_s17 + $0x4c] sm:$0xff] }
 0x1dd   : > { %19273 = vst [vmem:[#allocation97_spill] sm:$0xff] %v12409_v12  ;;  %v447_v12 = vmul.f32 %v12437_v28, %v11880_v47  ;;  %v12567_v44 = vadd.f32 %v445_v56, %v12367_v38  ;;  %v12603_v56 = vld [vmem:[%s11826_s17 + $0x74] sm:$0xff] }
 0x1de   : > { %19274 = vst [vmem:[#allocation98_spill] sm:$0xff] %v12412_v63  ;;  %v448_v63 = vmul.f32 %v12440_v35, %v11880_v47 }
 0x1df   : > { %19275 = vst [vmem:[#allocation99_spill] sm:$0xff] %v12417_v24  ;;  %v449_v24 = vmul.f32 %v12451_v46, %v11880_v47 }
 0x1e0   : > { %19276 = vst [vmem:[#allocation100_spill] sm:$0xff] %v12420_v14  ;;  %v450_v14 = vmul.f32 %v12454_v40, %v11880_v47 }
 0x1e1   : > { %19277 = vst [vmem:[#allocation101_spill] sm:$0xff] %v12423_v25  ;;  %v451_v25 = vmul.f32 %v12457_v0, %v11880_v47  ;;  %v12505_v47 = vadd.f32 %v432_v39, %v12311_v17  ;;  %v12525_v17 = vadd.f32 %v437_v45, %v12327_v5  ;;  %v12546_v5 = vadd.f32 %v441_v7, %v12346_v58  ;;  %v12555_v45 = vld [vmem:[%s11826_s17 + $0x34] sm:$0xff] }
 0x1e2   : > { %19278 = vst [vmem:[#allocation102_spill] sm:$0xff] %v12434_v62  ;;  %v12493_v62 = vadd.f32 %v428_v23, %v12299_v50  ;;  %v12511_v50 = vadd.f32 %v434_v18, %v12318_v29  ;;  %v12519_v23 = vld [vmem:[%s11826_s17 + $0x14] sm:$0xff]  ;;  %v12531_v29 = vadd.f32 %v439_v1, %v12340_v51  ;;  %v12552_v51 = vadd.f32 %v443_v21, %v12361_v59  ;;  %v12561_v1 = vld [vmem:[%s11826_s17 + $0x44] sm:$0xff] }
 0x1e3   : > { %19279 = vst [vmem:[#allocation103_spill] sm:$0xff] %v12437_v28  ;;  %v12496_v28 = vadd.f32 %v429_v16, %v12302_v54  ;;  %v12514_v54 = vadd.f32 %v435_v37, %v12321_v4  ;;  %v12534_v4 = vld [vmem:[%s11826_s17 + $0x1c] sm:$0xff]  ;;  %v12537_v16 = vld [vmem:[%s11826_s17 + $0x24] sm:$0xff]  ;;  %v12570_v21 = vadd.f32 %v446_v9, %v12379_v2  ;;  %v12573_v58 = vadd.f32 %v447_v12, %v12382_v36  ;;  %v12579_v59 = vld [vmem:[%s11826_s17 + $0x54] sm:$0xff] }
 0x1e4   : > { %19280 = vst [vmem:[#allocation104_spill] sm:$0xff] %v12440_v35  ;;  %v12588_v38 = vadd.f32 %v449_v24, %v12388_v32  ;;  %v12591_v7 = vadd.f32 %v450_v14, %v12400_v34  ;;  %v12594_v2 = vadd.f32 %v451_v25, %v12403_v8  ;;  %v12597_v36 = vld [vmem:[%s11826_s17 + $0x64] sm:$0xff]  ;;  %v12612_v32 = vld [vmem:[%s11826_s17 + $0x8c] sm:$0xff]  ;;  %v505_v34 = vmul.f32 %v8668_v13, %v11994_v61  ;;  %v12621_v24 = vld [vmem:[%s11826_s17 + $0x94] sm:$0xff] }
 0x1e5   : > { %19281 = vst [vmem:[#allocation105_spill] sm:$0xff] %v12451_v46  ;;  %v12499_v46 = vadd.f32 %v430_v43, %v12305_v27  ;;  %v8669_v27 = vld [vmem:[%s11826_s17 + $0xc] sm:$0xff]  ;;  %v12609_v9 = vld [vmem:[%s11826_s17 + $0x84] sm:$0xff]  ;;  %v507_v12 = vmul.f32 %v12519_v23, %v11994_v61  ;;  %v12624_v14 = vld [vmem:[%s11826_s17 + $0x9c] sm:$0xff]  ;;  %v511_v53 = vmul.f32 %v12555_v45, %v11994_v61  ;;  %v512_v18 = vmul.f32 %v12558_v11, %v11994_v61 }
 0x1e6   : > { %19282 = vst [vmem:[#allocation106_spill] sm:$0xff] %v12454_v40  ;;  %v12502_v40 = vadd.f32 %v431_v22, %v12308_v60  ;;  %v12522_v60 = vadd.f32 %v436_v48, %v12324_v49  ;;  %v12540_v43 = vld [vmem:[%s11826_s17 + $0x2c] sm:$0xff]  ;;  %v12543_v49 = vadd.f32 %v440_v3, %v12343_v26  ;;  %v12564_v26 = vadd.f32 %v444_v55, %v12364_v33  ;;  %v12582_v3 = vld [vmem:[%s11826_s17 + $0x5c] sm:$0xff]  ;;  %v12627_v25 = vld [vmem:[%s11826_s17 + $0xa4] sm:$0xff] }
 0x1e7   : > { %19283 = vst [vmem:[#allocation107_spill] sm:$0xff] %v12457_v0  ;;  %v12585_v33 = vadd.f32 %v448_v63, %v12385_v15  ;;  %v12600_v55 = vld [vmem:[%s11826_s17 + $0x6c] sm:$0xff]  ;;  %v12606_v15 = vld [vmem:[%s11826_s17 + $0x7c] sm:$0xff]  ;;  %v506_v8 = vmul.f32 %v8669_v27, %v11994_v61  ;;  %v508_v63 = vmul.f32 %v12534_v4, %v11994_v61  ;;  %v509_v22 = vmul.f32 %v12537_v16, %v11994_v61  ;;  %v12641_v48 = vld [vmem:[%s11826_s17 + $0xb4] sm:$0xff] }
 0x1e8   : > { %19284 = vst [vmem:[#allocation108_spill] sm:$0xff] %v12519_v23  ;;  %v510_v39 = vmul.f32 %v12540_v43, %v11994_v61  ;;  %v12638_v37 = vld [vmem:[%s11826_s17 + $0xac] sm:$0xff]  ;;  %v12644_v13 = vld [vmem:[%s11826_s17 + $0xbc] sm:$0xff]  ;;  %v513_v27 = vmul.f32 %v12561_v1, %v11994_v61  ;;  %v518_v23 = vmul.f32 %v12600_v55, %v11994_v61  ;;  %v523_v0 = vmul.f32 %v12621_v24, %v11994_v61 }
 0x1e9   : > { %19285 = vst [vmem:[#allocation109_spill] sm:$0xff] %v12534_v4  ;;  %v12655_v4 = vld [vmem:[%s11826_s17 + $0xc4] sm:$0xff]  ;;  %v531_v35 = vadd.f32 %v506_v8, %v12493_v62  ;;  %v534_v6 = vadd.f32 %v509_v22, %v12502_v40  ;;  %v537_v20 = vadd.f32 %v512_v18, %v12511_v50  ;;  %v582_v40 = vperm.slane %v19191_v19, 5 }
 0x1ea   : > { %19286 = vst [vmem:[#allocation110_spill] sm:$0xff] %v12537_v16  ;;  %v514_v16 = vmul.f32 %v12576_v42, %v11994_v61  ;;  %v19323_v8 = vld [vmem:[#allocation28_spill] sm:$0xff]  ;;  %v19326_v18 = vld [vmem:[#allocation31_spill] sm:$0xff] }
 0x1eb   : > { %19287 = vst [vmem:[#allocation111_spill] sm:$0xff] %v12540_v43  ;;  %v515_v43 = vmul.f32 %v12579_v59, %v11994_v61 }
 0x1ec   : > { %19288 = vst [vmem:[#allocation112_spill] sm:$0xff] %v12555_v45  ;;  %v516_v45 = vmul.f32 %v12582_v3, %v11994_v61 }
 0x1ed   : > { %19289 = vst [vmem:[#allocation113_spill] sm:$0xff] %v12558_v11  ;;  %v517_v11 = vmul.f32 %v12597_v36, %v11994_v61 }
 0x1ee   : > { %19290 = vst [vmem:[#allocation114_spill] sm:$0xff] %v12561_v1  ;;  %v519_v1 = vmul.f32 %v12603_v56, %v11994_v61  ;;  %v541_v62 = vadd.f32 %v516_v45, %v12528_v41 }
 0x1ef   : > { %19291 = vst [vmem:[#allocation115_spill] sm:$0xff] %v12576_v42  ;;  %v520_v42 = vmul.f32 %v12606_v15, %v11994_v61 }
 0x1f0   : > { %19292 = vst [vmem:[#allocation116_spill] sm:$0xff] %v12579_v59  ;;  %v521_v59 = vmul.f32 %v12609_v9, %v11994_v61 }
 0x1f1   : > { %19293 = vst [vmem:[#allocation117_spill] sm:$0xff] %v12582_v3  ;;  %v522_v3 = vmul.f32 %v12612_v32, %v11994_v61 }
 0x1f2   : > { %19294 = vst [vmem:[#allocation118_spill] sm:$0xff] %v12597_v36  ;;  %v524_v36 = vmul.f32 %v12624_v14, %v11994_v61  ;;  %v546_v50 = vadd.f32 %v521_v59, %v12552_v51  ;;  %v19309_v51 = vld [vmem:[#allocation13_spill] sm:$0xff] }
 0x1f3   : > { %19295 = vst [vmem:[#allocation119_spill] sm:$0xff] %v12600_v55  ;;  %v525_v55 = vmul.f32 %v12627_v25, %v11994_v61  ;;  %v12718_v45 = vperm.slane %v19309_v51, 0  ;;  %v19333_v51 = vld [vmem:[#allocation38_spill] sm:$0xff] }
 0x1f4   : > { %19296 = vst [vmem:[#allocation120_spill] sm:$0xff] %v12603_v56  ;;  %v526_v56 = vmul.f32 %v12638_v37, %v11994_v61 }
 0x1f5   : > { %19297 = vst [vmem:[#allocation121_spill] sm:$0xff] %v12606_v15  ;;  %v527_v15 = vmul.f32 %v12641_v48, %v11994_v61  ;;  %v550_v41 = vadd.f32 %v525_v55, %v12573_v58  ;;  %v12729_v55 = vld [vmem:[%s11826_s17 + $0xc8] sm:$0xff] }
 0x1f6   : > { %19298 = vst [vmem:[#allocation122_spill] sm:$0xff] %v12609_v9  ;;  %v528_v9 = vmul.f32 %v12644_v13, %v11994_v61 }
 0x1f7   : > { %19299 = vst [vmem:[#allocation123_spill] sm:$0xff] %v12612_v32  ;;  %v529_v32 = vmul.f32 %v12655_v4, %v11994_v61  ;;  %v539_v61 = vadd.f32 %v514_v16, %v12522_v60  ;;  %v548_v60 = vadd.f32 %v523_v0, %v12567_v44  ;;  %v584_v0 = vmul.f32 %v582_v40, %v11834_v31 }
 0x1f8   : > { %19300 = vst [vmem:[#allocation124_spill] sm:$0xff] %v12621_v24  ;;  %v530_v24 = vadd.f32 %v505_v34, %v12490_v10  ;;  %v540_v10 = vadd.f32 %v515_v43, %v12525_v17  ;;  %v549_v17 = vadd.f32 %v524_v36, %v12570_v21  ;;  %v553_v16 = vadd.f32 %v528_v9, %v12591_v7  ;;  %v19313_v21 = vld [vmem:[#allocation20_spill] sm:$0xff] }
 0x1f9   : > { %19301 = vst [vmem:[#allocation125_spill] sm:$0xff] %v12624_v14  ;;  %v532_v14 = vadd.f32 %v507_v12, %v12496_v28  ;;  %v542_v28 = vadd.f32 %v517_v11, %v12531_v29  ;;  %v551_v29 = vadd.f32 %v526_v56, %v12585_v33  ;;  %v554_v43 = vadd.f32 %v529_v32, %v12594_v2  ;;  %v19311_v11 = vld [vmem:[#allocation18_spill] sm:$0xff]  ;;  %v19317_v7 = vld [vmem:[#allocation24_spill] sm:$0xff]  ;;  %v19318_v2 = vld [vmem:[#allocation25_spill] sm:$0xff] }
 0x1fa   : > { %19302 = vst [vmem:[#allocation126_spill] sm:$0xff] %v12627_v25  ;;  %v533_v25 = vadd.f32 %v508_v63, %v12499_v46  ;;  %v543_v46 = vadd.f32 %v518_v23, %v12543_v49  ;;  %v552_v23 = vadd.f32 %v527_v15, %v12588_v38  ;;  %v12710_v49 = vperm.slane %v19191_v19, 6  ;;  %v19316_v38 = vld [vmem:[#allocation23_spill] sm:$0xff]  ;;  %v12732_v56 = vld [vmem:[%s11826_s17 + $0xd0] sm:$0xff]  ;;  %v19321_v15 = vld [vmem:[#allocation26_spill] sm:$0xff] }
 0x1fb   : > { %19303 = vst [vmem:[#allocation127_spill] sm:$0xff] %v12638_v37  ;;  %v535_v37 = vadd.f32 %v510_v39, %v12505_v47  ;;  %v544_v47 = vadd.f32 %v519_v1, %v12546_v5  ;;  %v583_v5 = vmul.f32 %v582_v40, %v11831_v30  ;;  %v585_v1 = vmul.f32 %v582_v40, %v19311_v11  ;;  %v19322_v32 = vld [vmem:[#allocation27_spill] sm:$0xff]  ;;  %v19324_v63 = vld [vmem:[#allocation29_spill] sm:$0xff]  ;;  %v19325_v39 = vld [vmem:[#allocation30_spill] sm:$0xff] }
 0x1fc   : > { %19304 = vst [vmem:[#allocation128_spill] sm:$0xff] %v12641_v48  ;;  %v536_v48 = vadd.f32 %v511_v53, %v12508_v52  ;;  %v545_v52 = vadd.f32 %v520_v42, %v12549_v57  ;;  %v12715_v57 = vperm.slane %v19191_v19, 7  ;;  %v587_v58 = vmul.f32 %v582_v40, %v19313_v21  ;;  %v19314_v42 = vld [vmem:[#allocation21_spill] sm:$0xff]  ;;  %v19327_v11 = vld [vmem:[#allocation32_spill] sm:$0xff] }
 0x1fd   : > { %19305 = vst [vmem:[#allocation129_spill] sm:$0xff] %v12644_v13  ;;  %v538_v13 = vadd.f32 %v513_v27, %v12514_v54  ;;  %v547_v54 = vadd.f32 %v522_v3, %v12564_v26  ;;  %v19312_v26 = vld [vmem:[#allocation19_spill] sm:$0xff]  ;;  %v588_v59 = vmul.f32 %v582_v40, %v19314_v42  ;;  %v19315_v3 = vld [vmem:[#allocation22_spill] sm:$0xff]  ;;  %v590_v30 = vmul.f32 %v582_v40, %v19316_v38  ;;  %v19328_v21 = vld [vmem:[#allocation33_spill] sm:$0xff] }
 0x1fe   : > { %19306 = vst [vmem:[#allocation130_spill] sm:$0xff] %v12655_v4  ;;  %v586_v44 = vmul.f32 %v582_v40, %v19312_v26  ;;  %v589_v33 = vmul.f32 %v582_v40, %v19315_v3  ;;  %v591_v31 = vmul.f32 %v582_v40, %v19317_v7  ;;  %v592_v36 = vmul.f32 %v582_v40, %v19318_v2  ;;  %v19329_v3 = vld [vmem:[#allocation34_spill] sm:$0xff]  ;;  %v19330_v7 = vld [vmem:[#allocation35_spill] sm:$0xff]  ;;  %v19331_v19 = vld [vmem:[#allocation36_spill] sm:$0xff] }
 0x1ff   : > { %19307 = vst [vmem:[#allocation131_spill] sm:$0xff] %v12710_v49  ;;  %v593_v9 = vmul.f32 %v582_v40, %v19321_v15  ;;  %v594_v34 = vmul.f32 %v582_v40, %v19322_v32  ;;  %v595_v12 = vmul.f32 %v582_v40, %v19323_v8  ;;  %v596_v22 = vmul.f32 %v582_v40, %v19324_v63  ;;  %v19332_v4 = vld [vmem:[#allocation37_spill] sm:$0xff] }
 0x200   : > { %19308 = vst [vmem:[#allocation132_spill] sm:$0xff] %v12715_v57  ;;  %v597_v53 = vmul.f32 %v582_v40, %v19325_v39  ;;  %v598_v27 = vmul.f32 %v582_v40, %v19326_v18  ;;  %v599_v26 = vmul.f32 %v582_v40, %v19327_v11  ;;  %v600_v42 = vmul.f32 %v582_v40, %v19328_v21 }
 0x201   : > { %19310 = vst [vmem:[#allocation133_spill] sm:$0xff] %v12718_v45  ;;  %v601_v38 = vmul.f32 %v582_v40, %v19329_v3  ;;  %v602_v2 = vmul.f32 %v582_v40, %v19330_v7  ;;  %v603_v15 = vmul.f32 %v582_v40, %v19331_v19  ;;  %v604_v32 = vmul.f32 %v582_v40, %v19332_v4 }
 0x202   : > { %19319 = vst [vmem:[#allocation18_spill] sm:$0xff] %v12729_v55  ;;  %v605_v8 = vmul.f32 %v582_v40, %v19333_v51  ;;  %v606_v63 = vmul.f32 %v12729_v55, %v582_v40  ;;  %v607_v39 = vmul.f32 %v12732_v56, %v582_v40  ;;  %v608_v45 = vadd.f32 %v583_v5, %v530_v24 }
 0x203   : > { %19320 = vst [vmem:[#allocation19_spill] sm:$0xff] %v12732_v56  ;;  %v609_v18 = vadd.f32 %v584_v0, %v531_v35  ;;  %v610_v57 = vadd.f32 %v585_v1, %v532_v14  ;;  %v611_v11 = vadd.f32 %v586_v44, %v533_v25  ;;  %v612_v49 = vadd.f32 %v587_v58, %v534_v6  ;;  %v19344_v58 = vld [vmem:[#allocation47_spill] sm:$0xff] }
 0x204   : > { %v613_v21 = vadd.f32 %v588_v59, %v535_v37  ;;  %v614_v3 = vadd.f32 %v589_v33, %v536_v48  ;;  %v615_v7 = vadd.f32 %v590_v30, %v537_v20  ;;  %v616_v19 = vadd.f32 %v591_v31, %v538_v13  ;;  %v19335_v13 = vld [vmem:[#allocation39_spill] sm:$0xff]  ;;  %v19345_v33 = vld [vmem:[#allocation48_spill] sm:$0xff]  ;;  %v19346_v31 = vld [vmem:[#allocation49_spill] sm:$0xff] }
 0x205   : > { %v617_v4 = vadd.f32 %v592_v36, %v539_v61  ;;  %v618_v51 = vadd.f32 %v593_v9, %v540_v10  ;;  %v619_v55 = vadd.f32 %v594_v34, %v541_v62  ;;  %v620_v40 = vadd.f32 %v595_v12, %v542_v28  ;;  %v19336_v10 = vld [vmem:[#allocation40_spill] sm:$0xff]  ;;  %v19337_v28 = vld [vmem:[#allocation41_spill] sm:$0xff]  ;;  %v19347_v9 = vld [vmem:[#allocation50_spill] sm:$0xff] }
 0x206   : > { %v621_v56 = vadd.f32 %v596_v22, %v543_v46  ;;  %v622_v5 = vadd.f32 %v597_v53, %v544_v47  ;;  %v623_v24 = vadd.f32 %v598_v27, %v545_v52  ;;  %v624_v0 = vadd.f32 %v599_v26, %v546_v50  ;;  %v19334_v20 = vld [vmem:[#allocation131_spill] sm:$0xff]  ;;  %v19338_v47 = vld [vmem:[#allocation42_spill] sm:$0xff]  ;;  %v12777_v12 = vld [vmem:[%s11826_s17 + $0xd1] sm:$0xff] }
 0x207   : > { %v625_v35 = vadd.f32 %v600_v42, %v547_v54  ;;  %v626_v1 = vadd.f32 %v601_v38, %v548_v60  ;;  %v627_v14 = vadd.f32 %v602_v2, %v549_v17  ;;  %v628_v25 = vadd.f32 %v603_v15, %v550_v41  ;;  %v19339_v50 = vld [vmem:[#allocation43_spill] sm:$0xff]  ;;  %v19340_v60 = vld [vmem:[#allocation44_spill] sm:$0xff]  ;;  %v19341_v41 = vld [vmem:[#allocation45_spill] sm:$0xff]  ;;  %19348 = vst [vmem:[#allocation21_spill] sm:$0xff] %v12777_v12 }
 0x208   : > { %v629_v44 = vadd.f32 %v604_v32, %v551_v29  ;;  %v630_v6 = vadd.f32 %v605_v8, %v552_v23  ;;  %v631_v37 = vadd.f32 %v606_v63, %v553_v16  ;;  %v632_v48 = vadd.f32 %v607_v39, %v554_v43  ;;  %v19342_v23 = vld [vmem:[#allocation46_spill] sm:$0xff]  ;;  %v12766_v43 = vld [vmem:[%s11826_s17 + $0xc9] sm:$0xff]  ;;  %v19351_v42 = vld [vmem:[#allocation53_spill] sm:$0xff] }
 0x209   : > { %v661_v61 = vmul.f32 %v19335_v13, %v19334_v20  ;;  %v662_v62 = vmul.f32 %v19336_v10, %v19334_v20  ;;  %v663_v46 = vmul.f32 %v19337_v28, %v19334_v20  ;;  %v664_v52 = vmul.f32 %v19338_v47, %v19334_v20  ;;  %19343 = vst [vmem:[#allocation20_spill] sm:$0xff] %v12766_v43  ;;  %v19349_v22 = vld [vmem:[#allocation51_spill] sm:$0xff]  ;;  %v19350_v27 = vld [vmem:[#allocation52_spill] sm:$0xff]  ;;  %v19352_v2 = vld [vmem:[#allocation54_spill] sm:$0xff] }
 0x20a   : > { %v665_v54 = vmul.f32 %v19339_v50, %v19334_v20  ;;  %v666_v17 = vmul.f32 %v19340_v60, %v19334_v20  ;;  %v667_v29 = vmul.f32 %v19341_v41, %v19334_v20  ;;  %v668_v16 = vmul.f32 %v19342_v23, %v19334_v20  ;;  %v19353_v32 = vld [vmem:[#allocation55_spill] sm:$0xff]  ;;  %v19354_v63 = vld [vmem:[#allocation56_spill] sm:$0xff]  ;;  %v19355_v13 = vld [vmem:[#allocation57_spill] sm:$0xff] }
 0x20b   : > { %v669_v59 = vmul.f32 %v19344_v58, %v19334_v20  ;;  %v670_v30 = vmul.f32 %v19345_v33, %v19334_v20  ;;  %v671_v36 = vmul.f32 %v19346_v31, %v19334_v20  ;;  %v672_v34 = vmul.f32 %v19347_v9, %v19334_v20  ;;  %v19356_v28 = vld [vmem:[#allocation58_spill] sm:$0xff]  ;;  %v19357_v50 = vld [vmem:[#allocation59_spill] sm:$0xff]  ;;  %v19358_v41 = vld [vmem:[#allocation60_spill] sm:$0xff] }
 0x20c   : > { %v673_v53 = vmul.f32 %v19349_v22, %v19334_v20  ;;  %v674_v26 = vmul.f32 %v19350_v27, %v19334_v20  ;;  %v675_v38 = vmul.f32 %v19351_v42, %v19334_v20  ;;  %v676_v15 = vmul.f32 %v19352_v2, %v19334_v20  ;;  %v19359_v58 = vld [vmem:[#allocation61_spill] sm:$0xff] }
 0x20d   : > { %v677_v8 = vmul.f32 %v19353_v32, %v19334_v20  ;;  %v678_v39 = vmul.f32 %v19354_v63, %v19334_v20  ;;  %v679_v10 = vmul.f32 %v19355_v13, %v19334_v20  ;;  %v680_v47 = vmul.f32 %v19356_v28, %v19334_v20 }
 0x20e   : > { %v681_v60 = vmul.f32 %v19357_v50, %v19334_v20  ;;  %v682_v23 = vmul.f32 %v19358_v41, %v19334_v20  ;;  %v683_v33 = vmul.f32 %v19359_v58, %v19334_v20  ;;  %v684_v31 = vmul.f32 %v12766_v43, %v19334_v20 }
 0x20f   : > { %v685_v9 = vmul.f32 %v12777_v12, %v19334_v20  ;;  %v686_v22 = vadd.f32 %v661_v61, %v608_v45  ;;  %v687_v27 = vadd.f32 %v662_v62, %v609_v18  ;;  %v688_v42 = vadd.f32 %v663_v46, %v610_v57 }
 0x210   : > { %v689_v2 = vadd.f32 %v664_v52, %v611_v11  ;;  %v690_v32 = vadd.f32 %v665_v54, %v612_v49  ;;  %v691_v63 = vadd.f32 %v666_v17, %v613_v21  ;;  %v692_v13 = vadd.f32 %v667_v29, %v614_v3  ;;  %v19370_v17 = vld [vmem:[#allocation71_spill] sm:$0xff] }
 0x211   : > { %v693_v28 = vadd.f32 %v668_v16, %v615_v7  ;;  %v694_v50 = vadd.f32 %v669_v59, %v616_v19  ;;  %v695_v41 = vadd.f32 %v670_v30, %v617_v4  ;;  %v696_v58 = vadd.f32 %v671_v36, %v618_v51  ;;  %v19360_v7 = vld [vmem:[#allocation132_spill] sm:$0xff]  ;;  %v19361_v19 = vld [vmem:[#allocation62_spill] sm:$0xff]  ;;  %v12829_v59 = vld [vmem:[%s11826_s17 + $0xd2] sm:$0xff] }
 0x212   : > { %v697_v43 = vadd.f32 %v672_v34, %v619_v55  ;;  %v698_v12 = vadd.f32 %v673_v53, %v620_v40  ;;  %v699_v20 = vadd.f32 %v674_v26, %v621_v56  ;;  %v700_v45 = vadd.f32 %v675_v38, %v622_v5  ;;  %v19362_v55 = vld [vmem:[#allocation63_spill] sm:$0xff]  ;;  %v19363_v56 = vld [vmem:[#allocation64_spill] sm:$0xff]  ;;  %v19364_v5 = vld [vmem:[#allocation65_spill] sm:$0xff]  ;;  %19372 = vst [vmem:[#allocation23_spill] sm:$0xff] %v12829_v59 }
 0x213   : > { %v701_v61 = vadd.f32 %v676_v15, %v623_v24  ;;  %v702_v18 = vadd.f32 %v677_v8, %v624_v0  ;;  %v703_v62 = vadd.f32 %v678_v39, %v625_v35  ;;  %v704_v46 = vadd.f32 %v679_v10, %v626_v1  ;;  %v19365_v0 = vld [vmem:[#allocation66_spill] sm:$0xff]  ;;  %v19366_v1 = vld [vmem:[#allocation67_spill] sm:$0xff]  ;;  %v12826_v16 = vld [vmem:[%s11826_s17 + $0xca] sm:$0xff] }
 0x214   : > { %v705_v57 = vadd.f32 %v680_v47, %v627_v14  ;;  %v706_v11 = vadd.f32 %v681_v60, %v628_v25  ;;  %v707_v52 = vadd.f32 %v682_v23, %v629_v44  ;;  %v708_v49 = vadd.f32 %v683_v33, %v630_v6  ;;  %v19367_v25 = vld [vmem:[#allocation68_spill] sm:$0xff]  ;;  %v19368_v6 = vld [vmem:[#allocation69_spill] sm:$0xff]  ;;  %19371 = vst [vmem:[#allocation22_spill] sm:$0xff] %v12826_v16  ;;  %v19375_v26 = vld [vmem:[#allocation74_spill] sm:$0xff] }
 0x215   : > { %v709_v21 = vadd.f32 %v684_v31, %v631_v37  ;;  %v710_v3 = vadd.f32 %v685_v9, %v632_v48  ;;  %v739_v4 = vmul.f32 %v19361_v19, %v19360_v7  ;;  %v740_v51 = vmul.f32 %v19362_v55, %v19360_v7  ;;  %v19369_v48 = vld [vmem:[#allocation70_spill] sm:$0xff]  ;;  %v19373_v30 = vld [vmem:[#allocation72_spill] sm:$0xff]  ;;  %v19374_v34 = vld [vmem:[#allocation73_spill] sm:$0xff] }
 0x216   : > { %v741_v40 = vmul.f32 %v19363_v56, %v19360_v7  ;;  %v742_v24 = vmul.f32 %v19364_v5, %v19360_v7  ;;  %v743_v35 = vmul.f32 %v19365_v0, %v19360_v7  ;;  %v744_v14 = vmul.f32 %v19366_v1, %v19360_v7  ;;  %v19376_v15 = vld [vmem:[#allocation75_spill] sm:$0xff]  ;;  %v19377_v39 = vld [vmem:[#allocation76_spill] sm:$0xff]  ;;  %v19378_v47 = vld [vmem:[#allocation77_spill] sm:$0xff] }
 0x217   : > { %v745_v44 = vmul.f32 %v19367_v25, %v19360_v7  ;;  %v746_v37 = vmul.f32 %v19368_v6, %v19360_v7  ;;  %v747_v54 = vmul.f32 %v19369_v48, %v19360_v7  ;;  %v748_v29 = vmul.f32 %v19370_v17, %v19360_v7  ;;  %v19379_v23 = vld [vmem:[#allocation78_spill] sm:$0xff]  ;;  %v19380_v31 = vld [vmem:[#allocation79_spill] sm:$0xff]  ;;  %v19381_v19 = vld [vmem:[#allocation80_spill] sm:$0xff] }
 0x218   : > { %v749_v36 = vmul.f32 %v19373_v30, %v19360_v7  ;;  %v750_v53 = vmul.f32 %v19374_v34, %v19360_v7  ;;  %v751_v38 = vmul.f32 %v19375_v26, %v19360_v7  ;;  %v752_v8 = vmul.f32 %v19376_v15, %v19360_v7  ;;  %v19382_v56 = vld [vmem:[#allocation81_spill] sm:$0xff]  ;;  %v19383_v0 = vld [vmem:[#allocation82_spill] sm:$0xff]  ;;  %v19384_v25 = vld [vmem:[#allocation83_spill] sm:$0xff] }
 0x219   : > { %v753_v10 = vmul.f32 %v19377_v39, %v19360_v7  ;;  %v754_v60 = vmul.f32 %v19378_v47, %v19360_v7  ;;  %v755_v33 = vmul.f32 %v19379_v23, %v19360_v7  ;;  %v756_v9 = vmul.f32 %v19380_v31, %v19360_v7  ;;  %v19385_v48 = vld [vmem:[#allocation84_spill] sm:$0xff] }
 0x21a   : > { %v757_v55 = vmul.f32 %v19381_v19, %v19360_v7  ;;  %v758_v5 = vmul.f32 %v19382_v56, %v19360_v7  ;;  %v759_v1 = vmul.f32 %v19383_v0, %v19360_v7  ;;  %v760_v6 = vmul.f32 %v19384_v25, %v19360_v7 }
 0x21b   : > { %v761_v17 = vmul.f32 %v19385_v48, %v19360_v7  ;;  %v762_v30 = vmul.f32 %v12826_v16, %v19360_v7  ;;  %v763_v34 = vmul.f32 %v12829_v59, %v19360_v7  ;;  %v764_v26 = vadd.f32 %v739_v4, %v686_v22 }
 0x21c   : > { %v765_v15 = vadd.f32 %v740_v51, %v687_v27  ;;  %v766_v39 = vadd.f32 %v741_v40, %v688_v42  ;;  %v767_v47 = vadd.f32 %v742_v24, %v689_v2  ;;  %v768_v23 = vadd.f32 %v743_v35, %v690_v32  ;;  %v19396_v35 = vld [vmem:[#allocation93_spill] sm:$0xff] }
 0x21d   : > { %v769_v31 = vadd.f32 %v744_v14, %v691_v63  ;;  %v770_v19 = vadd.f32 %v745_v44, %v692_v13  ;;  %v771_v56 = vadd.f32 %v746_v37, %v693_v28  ;;  %v772_v0 = vadd.f32 %v747_v54, %v694_v50  ;;  %v19386_v28 = vld [vmem:[#allocation133_spill] sm:$0xff]  ;;  %v19397_v44 = vld [vmem:[#allocation94_spill] sm:$0xff]  ;;  %v19398_v54 = vld [vmem:[#allocation95_spill] sm:$0xff] }
 0x21e   : > { %v773_v25 = vadd.f32 %v748_v29, %v695_v41  ;;  %v774_v48 = vadd.f32 %v749_v36, %v696_v58  ;;  %v775_v16 = vadd.f32 %v750_v53, %v697_v43  ;;  %v776_v7 = vadd.f32 %v751_v38, %v698_v12  ;;  %v19387_v50 = vld [vmem:[#allocation85_spill] sm:$0xff]  ;;  %v19388_v43 = vld [vmem:[#allocation86_spill] sm:$0xff]  ;;  %v19389_v58 = vld [vmem:[#allocation87_spill] sm:$0xff] }
 0x21f   : > { %v777_v59 = vadd.f32 %v752_v8, %v699_v20  ;;  %v778_v4 = vadd.f32 %v753_v10, %v700_v45  ;;  %v779_v22 = vadd.f32 %v754_v60, %v701_v61  ;;  %v780_v27 = vadd.f32 %v755_v33, %v702_v18  ;;  %v19390_v45 = vld [vmem:[#allocation88_spill] sm:$0xff]  ;;  %v19391_v18 = vld [vmem:[#allocation89_spill] sm:$0xff]  ;;  %v19402_v60 = vld [vmem:[#allocation98_spill] sm:$0xff] }
 0x220   : > { %v781_v51 = vadd.f32 %v756_v9, %v703_v62  ;;  %v782_v40 = vadd.f32 %v757_v55, %v704_v46  ;;  %v783_v42 = vadd.f32 %v758_v5, %v705_v57  ;;  %v784_v2 = vadd.f32 %v759_v1, %v706_v11  ;;  %v19392_v46 = vld [vmem:[#allocation90_spill] sm:$0xff]  ;;  %v19393_v11 = vld [vmem:[#allocation91_spill] sm:$0xff]  ;;  %v19399_v36 = vld [vmem:[#allocation96_spill] sm:$0xff] }
 0x221   : > { %v785_v24 = vadd.f32 %v760_v6, %v707_v52  ;;  %v786_v32 = vadd.f32 %v761_v17, %v708_v49  ;;  %v787_v63 = vadd.f32 %v762_v30, %v709_v21  ;;  %v788_v13 = vadd.f32 %v763_v34, %v710_v3  ;;  %v19394_v49 = vld [vmem:[#allocation92_spill] sm:$0xff]  ;;  %v12889_v38 = vld [vmem:[%s11826_s17 + $0xd3] sm:$0xff]  ;;  %v19403_v9 = vld [vmem:[#allocation99_spill] sm:$0xff] }
 0x222   : > { %v817_v41 = vmul.f32 %v19387_v50, %v19386_v28  ;;  %v818_v12 = vmul.f32 %v19388_v43, %v19386_v28  ;;  %v819_v20 = vmul.f32 %v19389_v58, %v19386_v28  ;;  %v820_v61 = vmul.f32 %v19390_v45, %v19386_v28  ;;  %v12878_v3 = vld [vmem:[%s11826_s17 + $0xcb] sm:$0xff]  ;;  %19400 = vst [vmem:[#allocation25_spill] sm:$0xff] %v12889_v38  ;;  %v19406_v30 = vld [vmem:[#allocation102_spill] sm:$0xff]  ;;  %v19407_v50 = vld [vmem:[#allocation103_spill] sm:$0xff] }
 0x223   : > { %v821_v62 = vmul.f32 %v19391_v18, %v19386_v28  ;;  %v822_v57 = vmul.f32 %v19392_v46, %v19386_v28  ;;  %v823_v52 = vmul.f32 %v19393_v11, %v19386_v28  ;;  %v824_v21 = vmul.f32 %v19394_v49, %v19386_v28  ;;  %19395 = vst [vmem:[#allocation24_spill] sm:$0xff] %v12878_v3  ;;  %v19401_v8 = vld [vmem:[#allocation97_spill] sm:$0xff]  ;;  %v19404_v5 = vld [vmem:[#allocation100_spill] sm:$0xff]  ;;  %v19410_v11 = vld [vmem:[#allocation106_spill] sm:$0xff] }
 0x224   : > { %v825_v14 = vmul.f32 %v19396_v35, %v19386_v28  ;;  %v826_v37 = vmul.f32 %v19397_v44, %v19386_v28  ;;  %v827_v29 = vmul.f32 %v19398_v54, %v19386_v28  ;;  %v828_v53 = vmul.f32 %v19399_v36, %v19386_v28  ;;  %v19405_v6 = vld [vmem:[#allocation101_spill] sm:$0xff]  ;;  %v19408_v58 = vld [vmem:[#allocation104_spill] sm:$0xff]  ;;  %v19411_v35 = vld [vmem:[#allocation107_spill] sm:$0xff] }
 0x225   : > { %v829_v10 = vmul.f32 %v19401_v8, %v19386_v28  ;;  %v830_v33 = vmul.f32 %v19402_v60, %v19386_v28  ;;  %v831_v55 = vmul.f32 %v19403_v9, %v19386_v28  ;;  %v832_v1 = vmul.f32 %v19404_v5, %v19386_v28  ;;  %v19409_v18 = vld [vmem:[#allocation105_spill] sm:$0xff] }
 0x226   : > { %v833_v17 = vmul.f32 %v19405_v6, %v19386_v28  ;;  %v834_v34 = vmul.f32 %v19406_v30, %v19386_v28  ;;  %v835_v43 = vmul.f32 %v19407_v50, %v19386_v28  ;;  %v836_v45 = vmul.f32 %v19408_v58, %v19386_v28 }
 0x227   : > { %v837_v46 = vmul.f32 %v19409_v18, %v19386_v28  ;;  %v838_v49 = vmul.f32 %v19410_v11, %v19386_v28  ;;  %v839_v44 = vmul.f32 %v19411_v35, %v19386_v28  ;;  %v840_v54 = vmul.f32 %v12878_v3, %v19386_v28 }
 0x228   : > { %v841_v36 = vmul.f32 %v12889_v38, %v19386_v28  ;;  %v842_v8 = vadd.f32 %v817_v41, %v764_v26  ;;  %v843_v60 = vadd.f32 %v818_v12, %v765_v15  ;;  %v844_v9 = vadd.f32 %v819_v20, %v766_v39  ;;  %v19412_v26 = vld [vmem:[#allocation13_spill] sm:$0xff] }
 0x229   : > { %v845_v5 = vadd.f32 %v820_v61, %v767_v47  ;;  %v846_v6 = vadd.f32 %v821_v62, %v768_v23  ;;  %v847_v30 = vadd.f32 %v822_v57, %v769_v31  ;;  %v848_v50 = vadd.f32 %v823_v52, %v770_v19  ;;  %v19420_v62 = vld [vmem:[#allocation114_spill] sm:$0xff]  ;;  %v19421_v52 = vld [vmem:[#allocation115_spill] sm:$0xff] }
 0x22a   : > { %v849_v58 = vadd.f32 %v824_v21, %v771_v56  ;;  %v850_v18 = vadd.f32 %v825_v14, %v772_v0  ;;  %v851_v11 = vadd.f32 %v826_v37, %v773_v25  ;;  %v852_v35 = vadd.f32 %v827_v29, %v774_v48  ;;  %v19414_v25 = vld [vmem:[#allocation108_spill] sm:$0xff]  ;;  %v19423_v29 = vld [vmem:[#allocation117_spill] sm:$0xff] }
 0x22b   : > { %v853_v3 = vadd.f32 %v828_v53, %v775_v16  ;;  %v854_v28 = vadd.f32 %v829_v10, %v776_v7  ;;  %v855_v38 = vadd.f32 %v830_v33, %v777_v59  ;;  %v19413_v41 = vmov %v19412_v26  ;;  %v19415_v7 = vld [vmem:[#allocation109_spill] sm:$0xff]  ;;  %v19422_v14 = vld [vmem:[#allocation116_spill] sm:$0xff] }
 0x22c   : > { %v894_v12 = vperm.slane %v19412_v26, 1  ;;  %v856_v15 = vadd.f32 %v831_v55, %v778_v4  ;;  %v857_v20 = vadd.f32 %v832_v1, %v779_v22  ;;  %v858_v39 = vadd.f32 %v833_v17, %v780_v27  ;;  %v12954_v10 = vld [vmem:[%s11826_s17 + $0xcc] sm:$0xff]  ;;  %v12957_v33 = vld [vmem:[%s11826_s17 + $0xd4] sm:$0xff]  ;;  %v19426_v17 = vld [vmem:[#allocation119_spill] sm:$0xff] }
 0x22d   : > { %v12918_v47 = vadd.f32 %v834_v34, %v781_v51  ;;  %v12920_v61 = vadd.f32 %v835_v43, %v782_v40  ;;  %v12922_v23 = vadd.f32 %v836_v45, %v783_v42  ;;  %v12924_v31 = vadd.f32 %v837_v46, %v784_v2  ;;  %v19416_v51 = vld [vmem:[#allocation110_spill] sm:$0xff]  ;;  %v19417_v42 = vld [vmem:[#allocation111_spill] sm:$0xff]  ;;  %19424 = vst [vmem:[#allocation26_spill] sm:$0xff] %v12954_v10  ;;  %v19427_v43 = vld [vmem:[#allocation120_spill] sm:$0xff] }
 0x22e   : > { %v12926_v19 = vadd.f32 %v838_v49, %v785_v24  ;;  %v12928_v56 = vadd.f32 %v839_v44, %v786_v32  ;;  %v12930_v16 = vadd.f32 %v840_v54, %v787_v63  ;;  %v12932_v59 = vadd.f32 %v841_v36, %v788_v13  ;;  %v19418_v24 = vld [vmem:[#allocation112_spill] sm:$0xff]  ;;  %v19419_v63 = vld [vmem:[#allocation113_spill] sm:$0xff]  ;;  %v19425_v55 = vld [vmem:[#allocation118_spill] sm:$0xff] }
 0x22f   : > { %v12935_v0 = vperm.slane %v19413_v41, 2  ;;  %v895_v48 = vmul.f32 %v19414_v25, %v894_v12  ;;  %v896_v4 = vmul.f32 %v19415_v7, %v894_v12  ;;  %v12940_v22 = vperm.slane %v19413_v41, 3  ;;  %v19428_v46 = vld [vmem:[#allocation121_spill] sm:$0xff]  ;;  %v19429_v44 = vld [vmem:[#allocation122_spill] sm:$0xff]  ;;  %v19430_v36 = vld [vmem:[#allocation123_spill] sm:$0xff] }
 0x230   : > { %v12943_v27 = vperm.slane %v19413_v41, 4  ;;  %v897_v40 = vmul.f32 %v19416_v51, %v894_v12  ;;  %v898_v2 = vmul.f32 %v19417_v42, %v894_v12  ;;  %v899_v32 = vmul.f32 %v19418_v24, %v894_v12  ;;  %v19431_v25 = vld [vmem:[#allocation124_spill] sm:$0xff]  ;;  %v19432_v51 = vld [vmem:[#allocation125_spill] sm:$0xff]  ;;  %v19433_v24 = vld [vmem:[#allocation126_spill] sm:$0xff] }
 0x231   : > { %v900_v13 = vmul.f32 %v19419_v63, %v894_v12  ;;  %v901_v57 = vmul.f32 %v19420_v62, %v894_v12  ;;  %v902_v21 = vmul.f32 %v19421_v52, %v894_v12  ;;  %v903_v37 = vmul.f32 %v19422_v14, %v894_v12  ;;  %v19434_v62 = vld [vmem:[#allocation127_spill] sm:$0xff]  ;;  %v19435_v14 = vld [vmem:[#allocation128_spill] sm:$0xff] }
 0x232   : > { %v904_v53 = vmul.f32 %v19423_v29, %v894_v12  ;;  %v905_v1 = vmul.f32 %v19425_v55, %v894_v12  ;;  %v906_v34 = vmul.f32 %v19426_v17, %v894_v12  ;;  %v907_v45 = vmul.f32 %v19427_v43, %v894_v12  ;;  %v19436_v55 = vld [vmem:[#allocation129_spill] sm:$0xff]  ;;  %v19437_v43 = vld [vmem:[#allocation130_spill] sm:$0xff] }
 0x233   : > { %v908_v49 = vmul.f32 %v19428_v46, %v894_v12  ;;  %v909_v54 = vmul.f32 %v19429_v44, %v894_v12  ;;  %v910_v26 = vmul.f32 %v19430_v36, %v894_v12  ;;  %v911_v7 = vmul.f32 %v19431_v25, %v894_v12 }
 0x234   : > { %v912_v42 = vmul.f32 %v19432_v51, %v894_v12  ;;  %v913_v63 = vmul.f32 %v19433_v24, %v894_v12  ;;  %v914_v52 = vmul.f32 %v19434_v62, %v894_v12  ;;  %v915_v29 = vmul.f32 %v19435_v14, %v894_v12 }
 0x235   : > { %v916_v17 = vmul.f32 %v19436_v55, %v894_v12  ;;  %v917_v46 = vmul.f32 %v19437_v43, %v894_v12  ;;  %v918_v44 = vmul.f32 %v12954_v10, %v894_v12  ;;  %v919_v36 = vmul.f32 %v12957_v33, %v894_v12  ;;  %v8825_v12 = vld [vmem:[%s11826_s17 + $0x28] sm:$0xff] }
 0x236   : > { %v12974_v25 = vadd.f32 %v895_v48, %v842_v8  ;;  %v12976_v51 = vadd.f32 %v896_v4, %v843_v60  ;;  %v12978_v24 = vadd.f32 %v897_v40, %v844_v9  ;;  %v12980_v62 = vadd.f32 %v898_v2, %v845_v5  ;;  %v8824_v60 = vld [vmem:[%s11826_s17 + $0x20] sm:$0xff]  ;;  %v13026_v40 = vld [vmem:[%s11826_s17 + $0x58] sm:$0xff] }
 0x237   : > { %v12982_v14 = vadd.f32 %v899_v32, %v846_v6  ;;  %v12984_v55 = vadd.f32 %v900_v13, %v847_v30  ;;  %v12986_v43 = vadd.f32 %v901_v57, %v848_v50  ;;  %v12988_v10 = vadd.f32 %v902_v21, %v849_v58  ;;  %v13003_v30 = vld [vmem:[%s11826_s17 + $0x30] sm:$0xff]  ;;  %v13006_v50 = vld [vmem:[%s11826_s17 + $0x38] sm:$0xff]  ;;  %v13009_v58 = vld [vmem:[%s11826_s17 + $0x40] sm:$0xff]  ;;  %19442 = vst [vmem:[#allocation31_spill] sm:$0xff] %v13026_v40 }
 0x238   : > { %v12990_v8 = vadd.f32 %v903_v37, %v850_v18  ;;  %v12994_v48 = vadd.f32 %v904_v53, %v851_v11  ;;  %v12996_v9 = vadd.f32 %v905_v1, %v852_v35  ;;  %v12998_v5 = vadd.f32 %v906_v34, %v853_v3  ;;  %19438 = vst [vmem:[#allocation27_spill] sm:$0xff] %v13006_v50  ;;  %v13020_v35 = vld [vmem:[%s11826_s17 + $0x48] sm:$0xff]  ;;  %v13041_v2 = vld [vmem:[%s11826_s17 + $0x60] sm:$0xff]  ;;  %v13047_v13 = vld [vmem:[%s11826_s17 + $0x70] sm:$0xff] }
 0x239   : > { %v13000_v6 = vadd.f32 %v907_v45, %v854_v28  ;;  %19439 = vst [vmem:[#allocation28_spill] sm:$0xff] %v13009_v58  ;;  %v13011_v18 = vadd.f32 %v908_v49, %v855_v38  ;;  %v13013_v4 = vadd.f32 %v909_v54, %v856_v15  ;;  %v13015_v11 = vadd.f32 %v910_v26, %v857_v20  ;;  %v13023_v28 = vld [vmem:[%s11826_s17 + $0x50] sm:$0xff]  ;;  %v13044_v32 = vld [vmem:[%s11826_s17 + $0x68] sm:$0xff]  ;;  %v13062_v57 = vld [vmem:[%s11826_s17 + $0x78] sm:$0xff] }
 0x23a   : > { %v13017_v3 = vadd.f32 %v911_v7, %v858_v39  ;;  %19440 = vst [vmem:[#allocation29_spill] sm:$0xff] %v13020_v35  ;;  %v13029_v38 = vadd.f32 %v912_v42, %v12918_v47  ;;  %v13032_v15 = vadd.f32 %v913_v63, %v12920_v61  ;;  %v13035_v20 = vadd.f32 %v914_v52, %v12922_v23  ;;  %v13065_v21 = vld [vmem:[%s11826_s17 + $0x80] sm:$0xff]  ;;  %v13068_v37 = vld [vmem:[%s11826_s17 + $0x88] sm:$0xff]  ;;  %v13074_v53 = vld [vmem:[%s11826_s17 + $0x98] sm:$0xff] }
 0x23b   : > { %19441 = vst [vmem:[#allocation30_spill] sm:$0xff] %v13023_v28  ;;  %v13038_v39 = vadd.f32 %v915_v29, %v12924_v31  ;;  %v13050_v47 = vadd.f32 %v916_v17, %v12926_v19  ;;  %v13053_v61 = vadd.f32 %v917_v46, %v12928_v56  ;;  %v13056_v23 = vadd.f32 %v918_v44, %v12930_v16  ;;  %v13071_v19 = vld [vmem:[%s11826_s17 + $0x90] sm:$0xff]  ;;  %v13077_v56 = vld [vmem:[%s11826_s17 + $0xa0] sm:$0xff]  ;;  %v13086_v45 = vld [vmem:[%s11826_s17 + $0xa8] sm:$0xff] }
 0x23c   : > { %19443 = vst [vmem:[#allocation32_spill] sm:$0xff] %v13041_v2  ;;  %v13059_v31 = vadd.f32 %v919_v36, %v12932_v59  ;;  %v973_v16 = vmul.f32 %v8824_v60, %v12935_v0  ;;  %v974_v1 = vmul.f32 %v8825_v12, %v12935_v0  ;;  %v975_v59 = vmul.f32 %v13003_v30, %v12935_v0  ;;  %v13089_v49 = vld [vmem:[%s11826_s17 + $0xb0] sm:$0xff]  ;;  %v13092_v54 = vld [vmem:[%s11826_s17 + $0xb8] sm:$0xff]  ;;  %v13103_v52 = vld [vmem:[%s11826_s17 + $0xc0] sm:$0xff] }
 0x23d   : > { %19444 = vst [vmem:[#allocation33_spill] sm:$0xff] %v13044_v32  ;;  %v976_v34 = vmul.f32 %v13006_v50, %v12935_v0  ;;  %v977_v26 = vmul.f32 %v13009_v58, %v12935_v0  ;;  %v978_v7 = vmul.f32 %v13020_v35, %v12935_v0  ;;  %v979_v42 = vmul.f32 %v13023_v28, %v12935_v0  ;;  %v13106_v29 = vld [vmem:[%s11826_s17 + $0xd8] sm:$0xff]  ;;  %v13117_v60 = vld [vmem:[%s11826_s17 + $0xe0] sm:$0xff] }
 0x23e   : > { %19445 = vst [vmem:[#allocation34_spill] sm:$0xff] %v13047_v13  ;;  %v980_v63 = vmul.f32 %v13026_v40, %v12935_v0  ;;  %v981_v17 = vmul.f32 %v13041_v2, %v12935_v0  ;;  %v982_v46 = vmul.f32 %v13044_v32, %v12935_v0  ;;  %v983_v44 = vmul.f32 %v13047_v13, %v12935_v0  ;;  %v19530_v50 = vld [vmem:[#allocation25_spill] sm:$0xff] }
 0x23f   : > { %19446 = vst [vmem:[#allocation35_spill] sm:$0xff] %v13062_v57  ;;  %v984_v36 = vmul.f32 %v13062_v57, %v12935_v0  ;;  %v985_v12 = vmul.f32 %v13065_v21, %v12935_v0  ;;  %v986_v40 = vmul.f32 %v13068_v37, %v12935_v0  ;;  %v987_v2 = vmul.f32 %v13071_v19, %v12935_v0 }
 0x240   : > { %19447 = vst [vmem:[#allocation36_spill] sm:$0xff] %v13065_v21  ;;  %v988_v32 = vmul.f32 %v13074_v53, %v12935_v0  ;;  %v989_v13 = vmul.f32 %v13077_v56, %v12935_v0  ;;  %v990_v57 = vmul.f32 %v13086_v45, %v12935_v0  ;;  %v991_v28 = vmul.f32 %v13089_v49, %v12935_v0 }
 0x241   : > { %19448 = vst [vmem:[#allocation37_spill] sm:$0xff] %v13068_v37  ;;  %v992_v21 = vmul.f32 %v13092_v54, %v12935_v0  ;;  %v993_v37 = vmul.f32 %v13103_v52, %v12935_v0  ;;  %v13152_v58 = vadd.f32 %v975_v59, %v12978_v24  ;;  %v13170_v24 = vadd.f32 %v981_v17, %v12990_v8  ;;  %v13199_v59 = vld [vmem:[%s11826_s17 + $0x41] sm:$0xff] }
 0x242   : > { %19449 = vst [vmem:[#allocation38_spill] sm:$0xff] %v13071_v19  ;;  %v19458_v19 = vld [vmem:[#allocation18_spill] sm:$0xff]  ;;  %v13190_v8 = vadd.f32 %v986_v40, %v13011_v18  ;;  %v13211_v18 = vadd.f32 %v990_v57, %v13029_v38  ;;  %v13217_v40 = vld [vmem:[%s11826_s17 + $0x51] sm:$0xff] }
 0x243   : > { %19450 = vst [vmem:[#allocation131_spill] sm:$0xff] %v13074_v53  ;;  %v994_v35 = vmul.f32 %v19458_v19, %v12935_v0  ;;  %v19459_v53 = vld [vmem:[#allocation19_spill] sm:$0xff]  ;;  %v13155_v19 = vadd.f32 %v976_v34, %v12980_v62  ;;  %v13173_v62 = vadd.f32 %v982_v46, %v12994_v48  ;;  %v13193_v48 = vadd.f32 %v987_v2, %v13013_v4  ;;  %v13220_v2 = vld [vmem:[%s11826_s17 + $0x59] sm:$0xff] }
 0x244   : > { %19451 = vst [vmem:[#allocation39_spill] sm:$0xff] %v13077_v56  ;;  %v995_v56 = vmul.f32 %v19459_v53, %v12935_v0  ;;  %v13158_v53 = vadd.f32 %v977_v26, %v12982_v14  ;;  %v13176_v14 = vadd.f32 %v983_v44, %v12996_v9  ;;  %v13196_v9 = vld [vmem:[%s11826_s17 + $0x39] sm:$0xff]  ;;  %v13202_v34 = vld [vmem:[%s11826_s17 + $0x49] sm:$0xff]  ;;  %v13214_v4 = vadd.f32 %v991_v28, %v13032_v15  ;;  %v13223_v26 = vld [vmem:[%s11826_s17 + $0x61] sm:$0xff] }
 0x245   : > { %19452 = vst [vmem:[#allocation40_spill] sm:$0xff] %v13086_v45  ;;  %v996_v45 = vmul.f32 %v13106_v29, %v12935_v0  ;;  %v13232_v38 = vadd.f32 %v994_v35, %v13050_v47  ;;  %v13238_v15 = vld [vmem:[%s11826_s17 + $0x69] sm:$0xff]  ;;  %v13253_v35 = vld [vmem:[%s11826_s17 + $0x81] sm:$0xff]  ;;  %v1057_v46 = vmul.f32 %v13217_v40, %v12940_v22  ;;  %v1058_v44 = vmul.f32 %v13220_v2, %v12940_v22 }
 0x246   : > { %19453 = vst [vmem:[#allocation41_spill] sm:$0xff] %v13089_v49  ;;  %v997_v49 = vmul.f32 %v13117_v60, %v12935_v0  ;;  %v13161_v0 = vadd.f32 %v978_v7, %v12984_v55  ;;  %v8851_v55 = vld [vmem:[%s11826_s17 + $0x29] sm:$0xff]  ;;  %v13235_v28 = vadd.f32 %v995_v56, %v13053_v61  ;;  %v13259_v61 = vld [vmem:[%s11826_s17 + $0x91] sm:$0xff]  ;;  %v1056_v7 = vmul.f32 %v13202_v34, %v12940_v22  ;;  %v13287_v17 = vld [vmem:[%s11826_s17 + $0xc1] sm:$0xff] }
 0x247   : > { %19454 = vst [vmem:[#allocation42_spill] sm:$0xff] %v13092_v54  ;;  %v13146_v54 = vadd.f32 %v973_v16, %v12974_v25  ;;  %v13164_v25 = vadd.f32 %v979_v42, %v12986_v43  ;;  %v8850_v16 = vld [vmem:[%s11826_s17 + $0x21] sm:$0xff]  ;;  %v13184_v43 = vadd.f32 %v984_v36, %v12998_v5  ;;  %v13205_v5 = vadd.f32 %v988_v32, %v13015_v11  ;;  %v13241_v32 = vld [vmem:[%s11826_s17 + $0x71] sm:$0xff]  ;;  %v13256_v47 = vld [vmem:[%s11826_s17 + $0x89] sm:$0xff] }
 0x248   : > { %19455 = vst [vmem:[#allocation43_spill] sm:$0xff] %v13103_v52  ;;  %v13149_v52 = vadd.f32 %v974_v1, %v12976_v51  ;;  %v13167_v51 = vadd.f32 %v980_v63, %v12988_v10  ;;  %v13181_v1 = vld [vmem:[%s11826_s17 + $0x31] sm:$0xff]  ;;  %v13187_v10 = vadd.f32 %v985_v12, %v13000_v6  ;;  %v13208_v6 = vadd.f32 %v989_v13, %v13017_v3  ;;  %v13244_v13 = vld [vmem:[%s11826_s17 + $0x79] sm:$0xff]  ;;  %v13270_v56 = vld [vmem:[%s11826_s17 + $0xa9] sm:$0xff] }
 0x249   : > { %19456 = vst [vmem:[#allocation44_spill] sm:$0xff] %v13106_v29  ;;  %v13226_v11 = vadd.f32 %v992_v21, %v13035_v20  ;;  %v13229_v3 = vadd.f32 %v993_v37, %v13038_v39  ;;  %v13247_v20 = vadd.f32 %v996_v45, %v13056_v23  ;;  %v13250_v39 = vadd.f32 %v997_v49, %v13059_v31  ;;  %v13264_v37 = vld [vmem:[%s11826_s17 + $0x99] sm:$0xff]  ;;  %v13267_v23 = vld [vmem:[%s11826_s17 + $0xa1] sm:$0xff]  ;;  %v13281_v42 = vld [vmem:[%s11826_s17 + $0xb1] sm:$0xff] }
 0x24a   : > { %19457 = vst [vmem:[#allocation45_spill] sm:$0xff] %v13117_v60  ;;  %v1051_v57 = vmul.f32 %v8850_v16, %v12940_v22  ;;  %v1052_v21 = vmul.f32 %v8851_v55, %v12940_v22  ;;  %v1053_v31 = vmul.f32 %v13181_v1, %v12940_v22  ;;  %v1054_v45 = vmul.f32 %v13196_v9, %v12940_v22  ;;  %v13284_v63 = vld [vmem:[%s11826_s17 + $0xb9] sm:$0xff]  ;;  %v13301_v55 = vld [vmem:[%s11826_s17 + $0xe1] sm:$0xff] }
 0x24b   : > { %19460 = vst [vmem:[#allocation46_spill] sm:$0xff] %v13181_v1  ;;  %v1055_v49 = vmul.f32 %v13199_v59, %v12940_v22  ;;  %v1059_v36 = vmul.f32 %v13223_v26, %v12940_v22  ;;  %v1060_v12 = vmul.f32 %v13238_v15, %v12940_v22  ;;  %v13298_v16 = vld [vmem:[%s11826_s17 + $0xd9] sm:$0xff] }
 0x24c   : > { %19461 = vst [vmem:[#allocation47_spill] sm:$0xff] %v13196_v9  ;;  %v1067_v9 = vmul.f32 %v13267_v23, %v12940_v22  ;;  %v19482_v1 = vld [vmem:[#allocation21_spill] sm:$0xff]  ;;  %v13334_v60 = vadd.f32 %v1051_v57, %v13146_v54  ;;  %v13352_v54 = vadd.f32 %v1057_v46, %v13164_v25  ;;  %v8877_v57 = vld [vmem:[%s11826_s17 + $0x2a] sm:$0xff] }
 0x24d   : > { %19462 = vst [vmem:[#allocation48_spill] sm:$0xff] %v13199_v59  ;;  %v1062_v59 = vmul.f32 %v13244_v13, %v12940_v22 }
 0x24e   : > { %19463 = vst [vmem:[#allocation49_spill] sm:$0xff] %v13202_v34  ;;  %v1061_v34 = vmul.f32 %v13241_v32, %v12940_v22 }
 0x24f   : > { %19464 = vst [vmem:[#allocation50_spill] sm:$0xff] %v13217_v40  ;;  %v1063_v40 = vmul.f32 %v13253_v35, %v12940_v22  ;;  %v13369_v25 = vadd.f32 %v1062_v59, %v13184_v43  ;;  %v13396_v59 = vld [vmem:[%s11826_s17 + $0x4a] sm:$0xff] }
 0x250   : > { %19465 = vst [vmem:[#allocation51_spill] sm:$0xff] %v13220_v2  ;;  %v1064_v2 = vmul.f32 %v13256_v47, %v12940_v22 }
 0x251   : > { %19466 = vst [vmem:[#allocation52_spill] sm:$0xff] %v13223_v26  ;;  %v1065_v26 = vmul.f32 %v13259_v61, %v12940_v22 }
 0x252   : > { %19467 = vst [vmem:[#allocation53_spill] sm:$0xff] %v13238_v15  ;;  %v1066_v15 = vmul.f32 %v13264_v37, %v12940_v22 }
 0x253   : > { %19468 = vst [vmem:[#allocation54_spill] sm:$0xff] %v13241_v32  ;;  %v1068_v32 = vmul.f32 %v13270_v56, %v12940_v22 }
 0x254   : > { %19469 = vst [vmem:[#allocation55_spill] sm:$0xff] %v13244_v13  ;;  %v1069_v13 = vmul.f32 %v13281_v42, %v12940_v22  ;;  %v13390_v43 = vadd.f32 %v1066_v15, %v13205_v5  ;;  %v13438_v15 = vld [vmem:[%s11826_s17 + $0x7a] sm:$0xff] }
 0x255   : > { %19470 = vst [vmem:[#allocation56_spill] sm:$0xff] %v13253_v35  ;;  %v1070_v35 = vmul.f32 %v13284_v63, %v12940_v22 }
 0x256   : > { %19471 = vst [vmem:[#allocation57_spill] sm:$0xff] %v13256_v47  ;;  %v19481_v47 = vld [vmem:[#allocation20_spill] sm:$0xff] }
 0x257   : > { %19472 = vst [vmem:[#allocation58_spill] sm:$0xff] %v13259_v61  ;;  %v1071_v61 = vmul.f32 %v13287_v17, %v12940_v22 }
 0x258   : > { %19473 = vst [vmem:[#allocation59_spill] sm:$0xff] %v13264_v37  ;;  %v1072_v37 = vmul.f32 %v19481_v47, %v12940_v22  ;;  %v13340_v47 = vadd.f32 %v1053_v31, %v13152_v58  ;;  %v13358_v58 = vadd.f32 %v1059_v36, %v13170_v24  ;;  %v13378_v24 = vld [vmem:[%s11826_s17 + $0x3a] sm:$0xff]  ;;  %v13381_v31 = vld [vmem:[%s11826_s17 + $0x42] sm:$0xff] }
 0x259   : > { %19474 = vst [vmem:[#allocation60_spill] sm:$0xff] %v13267_v23  ;;  %v1073_v23 = vmul.f32 %v19482_v1, %v12940_v22  ;;  %v13343_v1 = vadd.f32 %v1054_v45, %v13155_v19  ;;  %v8876_v19 = vld [vmem:[%s11826_s17 + $0x22] sm:$0xff]  ;;  %v13414_v5 = vadd.f32 %v1071_v61, %v13229_v3  ;;  %v1130_v61 = vmul.f32 %v8877_v57, %v12943_v27  ;;  %v13468_v45 = vld [vmem:[%s11826_s17 + $0xba] sm:$0xff] }
 0x25a   : > { %19475 = vst [vmem:[#allocation61_spill] sm:$0xff] %v13270_v56  ;;  %v1074_v56 = vmul.f32 %v13298_v16, %v12940_v22  ;;  %v13482_v36 = vld [vmem:[%s11826_s17 + $0xda] sm:$0xff] }
 0x25b   : > { %19476 = vst [vmem:[#allocation132_spill] sm:$0xff] %v13281_v42  ;;  %v1075_v42 = vmul.f32 %v13301_v55, %v12940_v22  ;;  %v13349_v22 = vadd.f32 %v1056_v7, %v13161_v0  ;;  %v13366_v0 = vadd.f32 %v1061_v34, %v13176_v14  ;;  %v13387_v14 = vadd.f32 %v1065_v26, %v13193_v48  ;;  %v13399_v34 = vld [vmem:[%s11826_s17 + $0x52] sm:$0xff] }
 0x25c   : > { %19477 = vst [vmem:[#allocation62_spill] sm:$0xff] %v13284_v63  ;;  %v13337_v63 = vadd.f32 %v1052_v21, %v13149_v52  ;;  %v13355_v52 = vadd.f32 %v1058_v44, %v13167_v51  ;;  %v13372_v51 = vadd.f32 %v1063_v40, %v13187_v10  ;;  %v13375_v21 = vld [vmem:[%s11826_s17 + $0x32] sm:$0xff]  ;;  %v13393_v10 = vadd.f32 %v1067_v9, %v13208_v6  ;;  %v13402_v40 = vld [vmem:[%s11826_s17 + $0x5a] sm:$0xff]  ;;  %v13417_v6 = vld [vmem:[%s11826_s17 + $0x62] sm:$0xff] }
 0x25d   : > { %19478 = vst [vmem:[#allocation63_spill] sm:$0xff] %v13287_v17  ;;  %v13408_v48 = vadd.f32 %v1069_v13, %v13214_v4  ;;  %v13411_v9 = vadd.f32 %v1070_v35, %v13226_v11  ;;  %v13423_v26 = vld [vmem:[%s11826_s17 + $0x72] sm:$0xff]  ;;  %v13429_v4 = vadd.f32 %v1073_v23, %v13235_v28  ;;  %v13432_v11 = vadd.f32 %v1074_v56, %v13247_v20  ;;  %v13444_v13 = vld [vmem:[%s11826_s17 + $0x8a] sm:$0xff]  ;;  %v13450_v35 = vld [vmem:[%s11826_s17 + $0x9a] sm:$0xff] }
 0x25e   : > { %19479 = vst [vmem:[#allocation64_spill] sm:$0xff] %v13298_v16  ;;  %v13346_v16 = vadd.f32 %v1055_v49, %v13158_v53  ;;  %v13363_v53 = vadd.f32 %v1060_v12, %v13173_v62  ;;  %v13384_v62 = vadd.f32 %v1064_v2, %v13190_v8  ;;  %v13405_v8 = vadd.f32 %v1068_v32, %v13211_v18  ;;  %v13420_v2 = vld [vmem:[%s11826_s17 + $0x6a] sm:$0xff]  ;;  %v13441_v32 = vld [vmem:[%s11826_s17 + $0x82] sm:$0xff]  ;;  %v13465_v56 = vld [vmem:[%s11826_s17 + $0xb2] sm:$0xff] }
 0x25f   : > { %19480 = vst [vmem:[#allocation65_spill] sm:$0xff] %v13301_v55  ;;  %v13426_v18 = vadd.f32 %v1072_v37, %v13232_v38  ;;  %v13435_v3 = vadd.f32 %v1075_v42, %v13250_v39  ;;  %v13447_v38 = vld [vmem:[%s11826_s17 + $0x92] sm:$0xff]  ;;  %v13453_v28 = vld [vmem:[%s11826_s17 + $0xa2] sm:$0xff]  ;;  %v1129_v20 = vmul.f32 %v8876_v19, %v12943_v27  ;;  %v1131_v39 = vmul.f32 %v13375_v21, %v12943_v27  ;;  %v13462_v23 = vld [vmem:[%s11826_s17 + $0xaa] sm:$0xff] }
 0x260   : > { %19483 = vst [vmem:[#allocation66_spill] sm:$0xff] %v13375_v21  ;;  %v1132_v37 = vmul.f32 %v13378_v24, %v12943_v27  ;;  %v1133_v49 = vmul.f32 %v13381_v31, %v12943_v27  ;;  %v1134_v7 = vmul.f32 %v13396_v59, %v12943_v27  ;;  %v1135_v42 = vmul.f32 %v13399_v34, %v12943_v27  ;;  %v13479_v44 = vld [vmem:[%s11826_s17 + $0xc2] sm:$0xff] }
 0x261   : > { %19484 = vst [vmem:[#allocation67_spill] sm:$0xff] %v13378_v24  ;;  %v1136_v46 = vmul.f32 %v13402_v40, %v12943_v27  ;;  %v1137_v12 = vmul.f32 %v13417_v6, %v12943_v27  ;;  %v1138_v19 = vmul.f32 %v13420_v2, %v12943_v27  ;;  %v1139_v57 = vmul.f32 %v13423_v26, %v12943_v27 }
 0x262   : > { %19485 = vst [vmem:[#allocation68_spill] sm:$0xff] %v13381_v31  ;;  %v1142_v31 = vmul.f32 %v13444_v13, %v12943_v27  ;;  %v1147_v24 = vmul.f32 %v13465_v56, %v12943_v27 }
 0x263   : > { %19486 = vst [vmem:[#allocation69_spill] sm:$0xff] %v13396_v59  ;;  %v1140_v59 = vmul.f32 %v13438_v15, %v12943_v27 }
 0x264   : > { %19487 = vst [vmem:[#allocation70_spill] sm:$0xff] %v13399_v34  ;;  %v13493_v34 = vld [vmem:[%s11826_s17 + $0xe2] sm:$0xff] }
 0x265   : > { %19488 = vst [vmem:[#allocation71_spill] sm:$0xff] %v13402_v40  ;;  %v1141_v40 = vmul.f32 %v13441_v32, %v12943_v27 }
 0x266   : > { %19489 = vst [vmem:[#allocation72_spill] sm:$0xff] %v13417_v6  ;;  %v1143_v6 = vmul.f32 %v13447_v38, %v12943_v27 }
 0x267   : > { %19490 = vst [vmem:[#allocation73_spill] sm:$0xff] %v13420_v2  ;;  %v1144_v2 = vmul.f32 %v13450_v35, %v12943_v27 }
 0x268   : > { %19491 = vst [vmem:[#allocation74_spill] sm:$0xff] %v13423_v26  ;;  %v1145_v26 = vmul.f32 %v13453_v28, %v12943_v27 }
 0x269   : > { %19492 = vst [vmem:[#allocation75_spill] sm:$0xff] %v13438_v15  ;;  %v1146_v15 = vmul.f32 %v13462_v23, %v12943_v27 }
 0x26a   : > { %19493 = vst [vmem:[#allocation76_spill] sm:$0xff] %v13441_v32  ;;  %v1148_v32 = vmul.f32 %v13468_v45, %v12943_v27 }
 0x26b   : > { %19494 = vst [vmem:[#allocation77_spill] sm:$0xff] %v13444_v13  ;;  %v1149_v13 = vmul.f32 %v13479_v44, %v12943_v27 }
 0x26c   : > { %19495 = vst [vmem:[#allocation78_spill] sm:$0xff] %v13447_v38  ;;  %v19504_v38 = vld [vmem:[#allocation22_spill] sm:$0xff] }
 0x26d   : > { %19496 = vst [vmem:[#allocation79_spill] sm:$0xff] %v13450_v35  ;;  %v1150_v21 = vmul.f32 %v19504_v38, %v12943_v27  ;;  %v19505_v35 = vld [vmem:[#allocation23_spill] sm:$0xff]  ;;  %v13528_v38 = vadd.f32 %v1131_v39, %v13340_v47  ;;  %v13549_v47 = vadd.f32 %v1138_v19, %v13363_v53  ;;  %v1206_v53 = vperm.slane %v19413_v41, 5 }
 0x26e   : > { %19497 = vst [vmem:[#allocation80_spill] sm:$0xff] %v13453_v28  ;;  %v1151_v55 = vmul.f32 %v19505_v35, %v12943_v27  ;;  %v1152_v28 = vmul.f32 %v13482_v36, %v12943_v27  ;;  %v13531_v35 = vadd.f32 %v1132_v37, %v13343_v1  ;;  %v13555_v1 = vadd.f32 %v1140_v59, %v13369_v25  ;;  %v13585_v59 = vld [vmem:[%s11826_s17 + $0x43] sm:$0xff]  ;;  %v13648_v39 = vld [vmem:[%s11826_s17 + $0x9b] sm:$0xff] }
 0x26f   : > { %19498 = vst [vmem:[#allocation81_spill] sm:$0xff] %v13462_v23  ;;  %v1153_v23 = vmul.f32 %v13493_v34, %v12943_v27  ;;  %v13540_v27 = vadd.f32 %v1135_v42, %v13352_v54  ;;  %v13561_v54 = vadd.f32 %v1142_v31, %v13384_v62  ;;  %v13573_v25 = vadd.f32 %v1144_v2, %v13390_v43  ;;  %v13582_v62 = vld [vmem:[%s11826_s17 + $0x3b] sm:$0xff]  ;;  %v13651_v37 = vld [vmem:[%s11826_s17 + $0xa3] sm:$0xff] }
 0x270   : > { %19499 = vst [vmem:[#allocation82_spill] sm:$0xff] %v13465_v56  ;;  %v13522_v56 = vadd.f32 %v1129_v20, %v13334_v60  ;;  %v13543_v60 = vadd.f32 %v1136_v46, %v13355_v52  ;;  %v8902_v52 = vld [vmem:[%s11826_s17 + $0x23] sm:$0xff]  ;;  %v13566_v20 = vld [vmem:[%s11826_s17 + $0x33] sm:$0xff]  ;;  %v13579_v31 = vadd.f32 %v1146_v15, %v13405_v8  ;;  %v13594_v43 = vadd.f32 %v1148_v32, %v13411_v9  ;;  %v13606_v2 = vld [vmem:[%s11826_s17 + $0x5b] sm:$0xff] }
 0x271   : > { %19500 = vst [vmem:[#allocation83_spill] sm:$0xff] %v13468_v45  ;;  %v13537_v45 = vadd.f32 %v1134_v7, %v13349_v22  ;;  %v13558_v22 = vadd.f32 %v1141_v40, %v13372_v51  ;;  %v13576_v51 = vadd.f32 %v1145_v26, %v13393_v10  ;;  %v13588_v40 = vld [vmem:[%s11826_s17 + $0x4b] sm:$0xff]  ;;  %v13597_v10 = vadd.f32 %v1149_v13, %v13414_v5  ;;  %v13609_v26 = vld [vmem:[%s11826_s17 + $0x63] sm:$0xff]  ;;  %v13624_v5 = vld [vmem:[%s11826_s17 + $0x73] sm:$0xff] }
 0x272   : > { %19501 = vst [vmem:[#allocation84_spill] sm:$0xff] %v13479_v44  ;;  %v13525_v44 = vadd.f32 %v1130_v61, %v13337_v63  ;;  %v13546_v63 = vadd.f32 %v1137_v12, %v13358_v58  ;;  %v8903_v58 = vld [vmem:[%s11826_s17 + $0x2b] sm:$0xff]  ;;  %v13600_v8 = vadd.f32 %v1150_v21, %v13426_v18  ;;  %v13618_v9 = vadd.f32 %v1153_v23, %v13435_v3  ;;  %v13627_v18 = vld [vmem:[%s11826_s17 + $0x7b] sm:$0xff]  ;;  %v13661_v12 = vld [vmem:[%s11826_s17 + $0xb3] sm:$0xff] }
 0x273   : > { %19502 = vst [vmem:[#allocation133_spill] sm:$0xff] %v13482_v36  ;;  %v13534_v36 = vadd.f32 %v1133_v49, %v13346_v16  ;;  %v13552_v16 = vadd.f32 %v1139_v57, %v13366_v0  ;;  %v13570_v0 = vadd.f32 %v1143_v6, %v13387_v14  ;;  %v13591_v14 = vadd.f32 %v1147_v24, %v13408_v48  ;;  %v13603_v6 = vld [vmem:[%s11826_s17 + $0x53] sm:$0xff]  ;;  %v13621_v21 = vld [vmem:[%s11826_s17 + $0x6b] sm:$0xff]  ;;  %v13664_v19 = vld [vmem:[%s11826_s17 + $0xbb] sm:$0xff] }
 0x274   : > { %19503 = vst [vmem:[#allocation85_spill] sm:$0xff] %v13493_v34  ;;  %v13612_v24 = vadd.f32 %v1151_v55, %v13429_v4  ;;  %v13615_v48 = vadd.f32 %v1152_v28, %v13432_v11  ;;  %v13630_v15 = vperm.slane %v19413_v41, 6  ;;  %v13633_v55 = vld [vmem:[%s11826_s17 + $0x83] sm:$0xff]  ;;  %v13636_v4 = vld [vmem:[%s11826_s17 + $0x8b] sm:$0xff]  ;;  %v13639_v11 = vld [vmem:[%s11826_s17 + $0x93] sm:$0xff]  ;;  %v1207_v3 = vmul.f32 %v8902_v52, %v1206_v53 }
 0x275   : > { %19506 = vst [vmem:[#allocation86_spill] sm:$0xff] %v13566_v20  ;;  %v1208_v32 = vmul.f32 %v8903_v58, %v1206_v53  ;;  %v13642_v13 = vperm.slane %v19413_v41, 7  ;;  %v19519_v28 = vld [vmem:[#allocation14_spill] sm:$0xff]  ;;  %v13654_v23 = vld [vmem:[%s11826_s17 + $0xab] sm:$0xff]  ;;  %v1209_v49 = vmul.f32 %v13566_v20, %v1206_v53  ;;  %v1210_v7 = vmul.f32 %v13582_v62, %v1206_v53  ;;  %v13667_v57 = vld [vmem:[%s11826_s17 + $0xc3] sm:$0xff] }
 0x276   : > { %19507 = vst [vmem:[#allocation87_spill] sm:$0xff] %v13582_v62  ;;  %v13645_v61 = vperm.slane %v19519_v28, 0  ;;  %v1211_v42 = vmul.f32 %v13585_v59, %v1206_v53  ;;  %v1212_v46 = vmul.f32 %v13588_v40, %v1206_v53  ;;  %v1213_v52 = vmul.f32 %v13603_v6, %v1206_v53  ;;  %v13674_v34 = vld [vmem:[%s11826_s17 + $0xdb] sm:$0xff]  ;;  %v13677_v62 = vld [vmem:[%s11826_s17 + $0xe3] sm:$0xff] }
 0x277   : > { %19508 = vst [vmem:[#allocation88_spill] sm:$0xff] %v13585_v59  ;;  %v1214_v58 = vmul.f32 %v13606_v2, %v1206_v53  ;;  %v1215_v41 = vmul.f32 %v13609_v26, %v1206_v53  ;;  %v1216_v20 = vmul.f32 %v13621_v21, %v1206_v53  ;;  %v1218_v59 = vmul.f32 %v13627_v18, %v1206_v53 }
 0x278   : > { %19509 = vst [vmem:[#allocation89_spill] sm:$0xff] %v13588_v40  ;;  %v1217_v40 = vmul.f32 %v13624_v5, %v1206_v53  ;;  %v1219_v28 = vmul.f32 %v13633_v55, %v1206_v53  ;;  %v1220_v17 = vmul.f32 %v13636_v4, %v1206_v53  ;;  %v1226_v29 = vmul.f32 %v13664_v19, %v1206_v53 }
 0x279   : > { %19510 = vst [vmem:[#allocation90_spill] sm:$0xff] %v13603_v6  ;;  %v1221_v6 = vmul.f32 %v13639_v11, %v1206_v53 }
 0x27a   : > { %19511 = vst [vmem:[#allocation91_spill] sm:$0xff] %v13606_v2  ;;  %v1222_v2 = vmul.f32 %v13648_v39, %v1206_v53 }
 0x27b   : > { %19512 = vst [vmem:[#allocation92_spill] sm:$0xff] %v13609_v26  ;;  %v1223_v26 = vmul.f32 %v13651_v37, %v1206_v53 }
 0x27c   : > { %19513 = vst [vmem:[#allocation93_spill] sm:$0xff] %v13621_v21  ;;  %v1224_v21 = vmul.f32 %v13654_v23, %v1206_v53 }
 0x27d   : > { %19514 = vst [vmem:[#allocation94_spill] sm:$0xff] %v13624_v5  ;;  %v19529_v5 = vld [vmem:[#allocation24_spill] sm:$0xff] }
 0x27e   : > { %19515 = vst [vmem:[#allocation95_spill] sm:$0xff] %v13627_v18  ;;  %v1227_v18 = vmul.f32 %v13667_v57, %v1206_v53 }
 0x27f   : > { %19516 = vst [vmem:[#allocation96_spill] sm:$0xff] %v13633_v55  ;;  %v1228_v55 = vmul.f32 %v19529_v5, %v1206_v53  ;;  %v13704_v5 = vadd.f32 %v1210_v7, %v13531_v35  ;;  %v8928_v35 = vld [vmem:[%s11826_s17 + $0x24] sm:$0xff] }
 0x280   : > { %19517 = vst [vmem:[#allocation97_spill] sm:$0xff] %v13636_v4  ;;  %v1229_v4 = vmul.f32 %v19530_v50, %v1206_v53  ;;  %v13707_v50 = vadd.f32 %v1211_v42, %v13534_v36  ;;  %v13724_v36 = vadd.f32 %v1216_v20, %v13549_v47  ;;  %v13745_v47 = vadd.f32 %v1220_v17, %v13561_v54  ;;  %v13757_v20 = vld [vmem:[%s11826_s17 + $0x4c] sm:$0xff] }
 0x281   : > { %19518 = vst [vmem:[#allocation98_spill] sm:$0xff] %v13639_v11  ;;  %v1230_v11 = vmul.f32 %v13674_v34, %v1206_v53  ;;  %v13766_v17 = vadd.f32 %v1224_v21, %v13579_v31  ;;  %v1253_v31 = vadd.f32 %v1228_v55, %v13600_v8  ;;  %v13797_v21 = vld [vmem:[%s11826_s17 + $0x8c] sm:$0xff]  ;;  %v13806_v8 = vld [vmem:[%s11826_s17 + $0xa4] sm:$0xff] }
 0x282   : > { %19520 = vst [vmem:[#allocation99_spill] sm:$0xff] %v13645_v61  ;;  %v1225_v61 = vmul.f32 %v13661_v12, %v1206_v53 }
 0x283   : > { %19521 = vst [vmem:[#allocation100_spill] sm:$0xff] %v13648_v39  ;;  %v1231_v39 = vmul.f32 %v13677_v62, %v1206_v53  ;;  %v13710_v53 = vadd.f32 %v1212_v46, %v13537_v45  ;;  %v13727_v45 = vadd.f32 %v1217_v40, %v13552_v16  ;;  %v13748_v16 = vadd.f32 %v1221_v6, %v13570_v0  ;;  %v13763_v40 = vld [vmem:[%s11826_s17 + $0x5c] sm:$0xff]  ;;  %v13781_v6 = vld [vmem:[%s11826_s17 + $0x6c] sm:$0xff]  ;;  %v13832_v46 = vld [vmem:[%s11826_s17 + $0xc4] sm:$0xff] }
 0x284   : > { %19522 = vst [vmem:[#allocation101_spill] sm:$0xff] %v13651_v37  ;;  %v13695_v37 = vadd.f32 %v1207_v3, %v13522_v56  ;;  %v13713_v56 = vadd.f32 %v1213_v52, %v13540_v27  ;;  %v8929_v3 = vld [vmem:[%s11826_s17 + $0x2c] sm:$0xff]  ;;  %v13730_v27 = vadd.f32 %v1218_v59, %v13555_v1  ;;  %v13751_v1 = vadd.f32 %v1222_v2, %v13573_v25  ;;  %v13760_v59 = vld [vmem:[%s11826_s17 + $0x54] sm:$0xff]  ;;  %v13835_v52 = vld [vmem:[%s11826_s17 + $0xdc] sm:$0xff] }
 0x285   : > { %19523 = vst [vmem:[#allocation102_spill] sm:$0xff] %v13654_v23  ;;  %v13769_v54 = vadd.f32 %v1225_v61, %v13591_v14  ;;  %v13772_v0 = vadd.f32 %v1226_v29, %v13594_v43  ;;  %v13775_v25 = vadd.f32 %v1227_v18, %v13597_v10  ;;  %v13784_v2 = vld [vmem:[%s11826_s17 + $0x74] sm:$0xff]  ;;  %v1254_v14 = vadd.f32 %v1229_v4, %v13612_v24  ;;  %v13791_v43 = vld [vmem:[%s11826_s17 + $0x7c] sm:$0xff]  ;;  %v13794_v10 = vld [vmem:[%s11826_s17 + $0x84] sm:$0xff] }
 0x286   : > { %19524 = vst [vmem:[#allocation103_spill] sm:$0xff] %v13661_v12  ;;  %v13698_v12 = vadd.f32 %v1208_v32, %v13525_v44  ;;  %v13716_v44 = vadd.f32 %v1214_v58, %v13543_v60  ;;  %v13733_v60 = vadd.f32 %v1219_v28, %v13558_v22  ;;  %v13736_v32 = vld [vmem:[%s11826_s17 + $0x34] sm:$0xff]  ;;  %v13754_v22 = vadd.f32 %v1223_v26, %v13576_v51  ;;  %v13778_v51 = vld [vmem:[%s11826_s17 + $0x64] sm:$0xff]  ;;  %v13803_v28 = vld [vmem:[%s11826_s17 + $0x9c] sm:$0xff] }
 0x287   : > { %19525 = vst [vmem:[#allocation104_spill] sm:$0xff] %v13664_v19  ;;  %v13701_v19 = vadd.f32 %v1209_v49, %v13528_v38  ;;  %v13719_v38 = vadd.f32 %v1215_v41, %v13546_v63  ;;  %v13739_v41 = vld [vmem:[%s11826_s17 + $0x3c] sm:$0xff]  ;;  %v13742_v63 = vld [vmem:[%s11826_s17 + $0x44] sm:$0xff]  ;;  %v1255_v26 = vadd.f32 %v1230_v11, %v13615_v48  ;;  %v1256_v29 = vadd.f32 %v1231_v39, %v13618_v9  ;;  %v13800_v18 = vld [vmem:[%s11826_s17 + $0x94] sm:$0xff] }
 0x288   : > { %19526 = vst [vmem:[#allocation105_spill] sm:$0xff] %v13667_v57  ;;  %v1285_v24 = vmul.f32 %v8928_v35, %v13630_v15  ;;  %v1286_v48 = vmul.f32 %v8929_v3, %v13630_v15  ;;  %v1287_v9 = vmul.f32 %v13736_v32, %v13630_v15  ;;  %v1288_v55 = vmul.f32 %v13739_v41, %v13630_v15  ;;  %v13815_v4 = vld [vmem:[%s11826_s17 + $0xac] sm:$0xff]  ;;  %v13818_v11 = vld [vmem:[%s11826_s17 + $0xb4] sm:$0xff]  ;;  %v13821_v61 = vld [vmem:[%s11826_s17 + $0xbc] sm:$0xff] }
 0x289   : > { %19527 = vst [vmem:[#allocation106_spill] sm:$0xff] %v13674_v34  ;;  %v1289_v39 = vmul.f32 %v13742_v63, %v13630_v15  ;;  %v1290_v49 = vmul.f32 %v13757_v20, %v13630_v15  ;;  %v1291_v7 = vmul.f32 %v13760_v59, %v13630_v15  ;;  %v1292_v42 = vmul.f32 %v13763_v40, %v13630_v15 }
 0x28a   : > { %19528 = vst [vmem:[#allocation107_spill] sm:$0xff] %v13677_v62  ;;  %v1293_v58 = vmul.f32 %v13778_v51, %v13630_v15  ;;  %v1294_v35 = vmul.f32 %v13781_v6, %v13630_v15  ;;  %v1295_v3 = vmul.f32 %v13784_v2, %v13630_v15  ;;  %v1311_v62 = vadd.f32 %v1286_v48, %v13698_v12  ;;  %v19567_v48 = vld [vmem:[#allocation37_spill] sm:$0xff] }
 0x28b   : > { %19531 = vst [vmem:[#allocation108_spill] sm:$0xff] %v13736_v32  ;;  %v1314_v34 = vadd.f32 %v1289_v39, %v13707_v50  ;;  %v1317_v57 = vadd.f32 %v1292_v42, %v13716_v44  ;;  %v19569_v39 = vld [vmem:[#allocation131_spill] sm:$0xff] }
 0x28c   : > { %19532 = vst [vmem:[#allocation109_spill] sm:$0xff] %v13739_v41  ;;  %v1303_v41 = vmul.f32 %v13818_v11, %v13630_v15 }
 0x28d   : > { %19533 = vst [vmem:[#allocation110_spill] sm:$0xff] %v13742_v63  ;;  %v1298_v63 = vmul.f32 %v13797_v21, %v13630_v15 }
 0x28e   : > { %19534 = vst [vmem:[#allocation111_spill] sm:$0xff] %v13757_v20  ;;  %v1296_v20 = vmul.f32 %v13791_v43, %v13630_v15 }
 0x28f   : > { %19535 = vst [vmem:[#allocation112_spill] sm:$0xff] %v13760_v59  ;;  %v13846_v59 = vld [vmem:[%s11826_s17 + $0xe4] sm:$0xff] }
 0x290   : > { %19536 = vst [vmem:[#allocation113_spill] sm:$0xff] %v13763_v40  ;;  %v1297_v40 = vmul.f32 %v13794_v10, %v13630_v15  ;;  %v1321_v12 = vadd.f32 %v1296_v20, %v13730_v27  ;;  %v19554_v20 = vld [vmem:[#allocation28_spill] sm:$0xff] }
 0x291   : > { %19537 = vst [vmem:[#allocation114_spill] sm:$0xff] %v13778_v51  ;;  %v1299_v51 = vmul.f32 %v13800_v18, %v13630_v15 }
 0x292   : > { %19538 = vst [vmem:[#allocation115_spill] sm:$0xff] %v13781_v6  ;;  %v1300_v6 = vmul.f32 %v13803_v28, %v13630_v15 }
 0x293   : > { %19539 = vst [vmem:[#allocation116_spill] sm:$0xff] %v13784_v2  ;;  %v1301_v2 = vmul.f32 %v13806_v8, %v13630_v15  ;;  %v1324_v50 = vadd.f32 %v1299_v51, %v13748_v16  ;;  %v1363_v16 = vmul.f32 %v13003_v30, %v13642_v13  ;;  %v13908_v51 = vld [vmem:[%s11826_s17 + $0xc8] sm:$0xff] }
 0x294   : > { %19540 = vst [vmem:[#allocation117_spill] sm:$0xff] %v13791_v43  ;;  %v1302_v43 = vmul.f32 %v13815_v4, %v13630_v15  ;;  %v19560_v30 = vld [vmem:[#allocation32_spill] sm:$0xff] }
 0x295   : > { %19541 = vst [vmem:[#allocation118_spill] sm:$0xff] %v13794_v10  ;;  %v1304_v10 = vmul.f32 %v13821_v61, %v13630_v15 }
 0x296   : > { %19542 = vst [vmem:[#allocation119_spill] sm:$0xff] %v13797_v21  ;;  %v1305_v21 = vmul.f32 %v13832_v46, %v13630_v15  ;;  %v1327_v44 = vadd.f32 %v1302_v43, %v13766_v17  ;;  %v19563_v43 = vld [vmem:[#allocation35_spill] sm:$0xff] }
 0x297   : > { %19543 = vst [vmem:[#allocation120_spill] sm:$0xff] %v13800_v18  ;;  %v19552_v18 = vld [vmem:[#allocation26_spill] sm:$0xff] }
 0x298   : > { %19544 = vst [vmem:[#allocation121_spill] sm:$0xff] %v13803_v28  ;;  %v1306_v32 = vmul.f32 %v19552_v18, %v13630_v15  ;;  %v1307_v28 = vmul.f32 %v12957_v33, %v13630_v15  ;;  %v1315_v18 = vadd.f32 %v1290_v49, %v13710_v53  ;;  %v1316_v33 = vadd.f32 %v1291_v7, %v13713_v56  ;;  %v19570_v7 = vld [vmem:[#allocation39_spill] sm:$0xff] }
 0x299   : > { %19545 = vst [vmem:[#allocation122_spill] sm:$0xff] %v13806_v8  ;;  %v1308_v8 = vmul.f32 %v13835_v52, %v13630_v15  ;;  %v1325_v53 = vadd.f32 %v1300_v6, %v13751_v1  ;;  %v1326_v56 = vadd.f32 %v1301_v2, %v13754_v22  ;;  %v19553_v1 = vld [vmem:[#allocation27_spill] sm:$0xff]  ;;  %v13911_v6 = vld [vmem:[%s11826_s17 + $0xd0] sm:$0xff]  ;;  %v1369_v2 = vmul.f32 %v19560_v30, %v13642_v13 }
 0x29a   : > { %19546 = vst [vmem:[#allocation123_spill] sm:$0xff] %v13815_v4  ;;  %v1309_v4 = vmul.f32 %v13846_v59, %v13630_v15  ;;  %v1319_v15 = vadd.f32 %v1294_v35, %v13724_v36  ;;  %v1329_v36 = vadd.f32 %v1304_v10, %v13772_v0  ;;  %v1331_v27 = vadd.f32 %v1306_v32, %v1253_v31  ;;  %v19557_v0 = vld [vmem:[#allocation31_spill] sm:$0xff]  ;;  %v19561_v31 = vld [vmem:[#allocation33_spill] sm:$0xff] }
 0x29b   : > { %19547 = vst [vmem:[#allocation124_spill] sm:$0xff] %v13818_v11  ;;  %v1310_v11 = vadd.f32 %v1285_v24, %v13695_v37  ;;  %v1320_v37 = vadd.f32 %v1295_v3, %v13727_v45  ;;  %v1330_v45 = vadd.f32 %v1305_v21, %v13775_v25  ;;  %v1364_v22 = vmul.f32 %v19553_v1, %v13642_v13  ;;  %v13922_v21 = vld [vmem:[%s11826_s17 + $0xe8] sm:$0xff]  ;;  %v19572_v3 = vld [vmem:[#allocation41_spill] sm:$0xff] }
 0x29c   : > { %19548 = vst [vmem:[#allocation125_spill] sm:$0xff] %v13821_v61  ;;  %v1312_v61 = vadd.f32 %v1287_v9, %v13701_v19  ;;  %v1322_v19 = vadd.f32 %v1297_v40, %v13733_v60  ;;  %v1332_v60 = vadd.f32 %v1307_v28, %v1254_v14  ;;  %v1365_v40 = vmul.f32 %v19554_v20, %v13642_v13  ;;  %v13925_v28 = vld [vmem:[%s11826_s17 + $0xf0] sm:$0xff]  ;;  %v19573_v20 = vld [vmem:[#allocation42_spill] sm:$0xff] }
 0x29d   : > { %19549 = vst [vmem:[#allocation126_spill] sm:$0xff] %v13832_v46  ;;  %v1313_v46 = vadd.f32 %v1288_v55, %v13704_v5  ;;  %v1323_v5 = vadd.f32 %v1298_v63, %v13745_v47  ;;  %v1333_v63 = vadd.f32 %v1308_v8, %v1255_v26  ;;  %v1334_v47 = vadd.f32 %v1309_v4, %v1256_v29  ;;  %v19562_v26 = vld [vmem:[#allocation34_spill] sm:$0xff]  ;;  %v19566_v8 = vld [vmem:[#allocation36_spill] sm:$0xff] }
 0x29e   : > { %19550 = vst [vmem:[#allocation127_spill] sm:$0xff] %v13835_v52  ;;  %v1318_v52 = vadd.f32 %v1293_v58, %v13719_v38  ;;  %v1328_v38 = vadd.f32 %v1303_v41, %v13769_v54  ;;  %v19555_v41 = vld [vmem:[#allocation29_spill] sm:$0xff]  ;;  %v19556_v54 = vld [vmem:[#allocation30_spill] sm:$0xff]  ;;  %v1368_v25 = vmul.f32 %v19557_v0, %v13642_v13  ;;  %v1370_v14 = vmul.f32 %v19561_v31, %v13642_v13  ;;  %v19571_v58 = vld [vmem:[#allocation40_spill] sm:$0xff] }
 0x29f   : > { %19551 = vst [vmem:[#allocation128_spill] sm:$0xff] %v13846_v59  ;;  %v1366_v17 = vmul.f32 %v19555_v41, %v13642_v13  ;;  %v1367_v32 = vmul.f32 %v19556_v54, %v13642_v13  ;;  %v1371_v29 = vmul.f32 %v19562_v26, %v13642_v13  ;;  %v1372_v10 = vmul.f32 %v19563_v43, %v13642_v13  ;;  %v19568_v55 = vld [vmem:[#allocation38_spill] sm:$0xff]  ;;  %v19574_v54 = vld [vmem:[#allocation43_spill] sm:$0xff]  ;;  %v19575_v26 = vld [vmem:[#allocation44_spill] sm:$0xff] }
 0x2a0   : > { %19558 = vst [vmem:[#allocation129_spill] sm:$0xff] %v13908_v51  ;;  %v1373_v24 = vmul.f32 %v19566_v8, %v13642_v13  ;;  %v1374_v9 = vmul.f32 %v19567_v48, %v13642_v13  ;;  %v1375_v4 = vmul.f32 %v19568_v55, %v13642_v13  ;;  %v1376_v49 = vmul.f32 %v19569_v39, %v13642_v13  ;;  %v19576_v8 = vld [vmem:[#allocation45_spill] sm:$0xff] }
 0x2a1   : > { %19559 = vst [vmem:[#allocation130_spill] sm:$0xff] %v13911_v6  ;;  %v1377_v42 = vmul.f32 %v19570_v7, %v13642_v13  ;;  %v1378_v35 = vmul.f32 %v19571_v58, %v13642_v13  ;;  %v1379_v1 = vmul.f32 %v19572_v3, %v13642_v13  ;;  %v1380_v41 = vmul.f32 %v19573_v20, %v13642_v13 }
 0x2a2   : > { %19564 = vst [vmem:[#allocation18_spill] sm:$0xff] %v13922_v21  ;;  %v1381_v0 = vmul.f32 %v19574_v54, %v13642_v13  ;;  %v1382_v30 = vmul.f32 %v13908_v51, %v13642_v13  ;;  %v1383_v31 = vmul.f32 %v13911_v6, %v13642_v13  ;;  %v1384_v43 = vmul.f32 %v19575_v26, %v13642_v13 }
 0x2a3   : > { %19565 = vst [vmem:[#allocation19_spill] sm:$0xff] %v13925_v28  ;;  %v1385_v48 = vmul.f32 %v19576_v8, %v13642_v13  ;;  %v1386_v55 = vmul.f32 %v13922_v21, %v13642_v13  ;;  %v1387_v39 = vmul.f32 %v13925_v28, %v13642_v13  ;;  %v1388_v7 = vadd.f32 %v1363_v16, %v1310_v11 }
 0x2a4   : > { %v1389_v58 = vadd.f32 %v1364_v22, %v1311_v62  ;;  %v1390_v3 = vadd.f32 %v1365_v40, %v1312_v61  ;;  %v1391_v20 = vadd.f32 %v1366_v17, %v1313_v46  ;;  %v1392_v54 = vadd.f32 %v1367_v32, %v1314_v34  ;;  %v13977_v32 = vld [vmem:[%s11826_s17 + $0xd1] sm:$0xff] }
 0x2a5   : > { %v1393_v51 = vadd.f32 %v1368_v25, %v1315_v18  ;;  %v1394_v59 = vadd.f32 %v1369_v2, %v1316_v33  ;;  %v1395_v6 = vadd.f32 %v1370_v14, %v1317_v57  ;;  %v1396_v23 = vadd.f32 %v1371_v29, %v1318_v52  ;;  %v19577_v52 = vld [vmem:[#allocation99_spill] sm:$0xff]  ;;  %19587 = vst [vmem:[#allocation21_spill] sm:$0xff] %v13977_v32  ;;  %v19589_v2 = vld [vmem:[#allocation54_spill] sm:$0xff] }
 0x2a6   : > { %v1397_v26 = vadd.f32 %v1372_v10, %v1319_v15  ;;  %v1398_v8 = vadd.f32 %v1373_v24, %v1320_v37  ;;  %v1399_v21 = vadd.f32 %v1374_v9, %v1321_v12  ;;  %v1400_v13 = vadd.f32 %v1375_v4, %v1322_v19  ;;  %v19578_v15 = vld [vmem:[#allocation46_spill] sm:$0xff]  ;;  %v19579_v12 = vld [vmem:[#allocation47_spill] sm:$0xff]  ;;  %v19591_v24 = vld [vmem:[#allocation56_spill] sm:$0xff] }
 0x2a7   : > { %v1401_v28 = vadd.f32 %v1376_v49, %v1323_v5  ;;  %v1402_v11 = vadd.f32 %v1377_v42, %v1324_v50  ;;  %v1403_v16 = vadd.f32 %v1378_v35, %v1325_v53  ;;  %v1404_v22 = vadd.f32 %v1379_v1, %v1326_v56  ;;  %v19580_v5 = vld [vmem:[#allocation48_spill] sm:$0xff]  ;;  %v19581_v53 = vld [vmem:[#allocation49_spill] sm:$0xff]  ;;  %v19590_v29 = vld [vmem:[#allocation55_spill] sm:$0xff] }
 0x2a8   : > { %v1405_v62 = vadd.f32 %v1380_v41, %v1327_v44  ;;  %v1406_v40 = vadd.f32 %v1381_v0, %v1328_v38  ;;  %v1407_v61 = vadd.f32 %v1382_v30, %v1329_v36  ;;  %v1408_v46 = vadd.f32 %v1383_v31, %v1330_v45  ;;  %v13966_v44 = vld [vmem:[%s11826_s17 + $0xc9] sm:$0xff]  ;;  %v19583_v38 = vld [vmem:[#allocation50_spill] sm:$0xff]  ;;  %v19592_v4 = vld [vmem:[#allocation57_spill] sm:$0xff] }
 0x2a9   : > { %v1409_v34 = vadd.f32 %v1384_v43, %v1331_v27  ;;  %v1410_v18 = vadd.f32 %v1385_v48, %v1332_v60  ;;  %v1411_v33 = vadd.f32 %v1386_v55, %v1333_v63  ;;  %v1412_v57 = vadd.f32 %v1387_v39, %v1334_v47  ;;  %19582 = vst [vmem:[#allocation20_spill] sm:$0xff] %v13966_v44  ;;  %v19584_v45 = vld [vmem:[#allocation51_spill] sm:$0xff]  ;;  %v19585_v60 = vld [vmem:[#allocation52_spill] sm:$0xff]  ;;  %v19586_v47 = vld [vmem:[#allocation53_spill] sm:$0xff] }
 0x2aa   : > { %v1441_v37 = vmul.f32 %v19578_v15, %v19577_v52  ;;  %v1442_v19 = vmul.f32 %v19579_v12, %v19577_v52  ;;  %v1443_v50 = vmul.f32 %v19580_v5, %v19577_v52  ;;  %v1444_v56 = vmul.f32 %v19581_v53, %v19577_v52  ;;  %v13980_v25 = vld [vmem:[%s11826_s17 + $0xe9] sm:$0xff]  ;;  %v13991_v42 = vld [vmem:[%s11826_s17 + $0xf1] sm:$0xff]  ;;  %v19594_v35 = vld [vmem:[#allocation58_spill] sm:$0xff] }
 0x2ab   : > { %v1445_v36 = vmul.f32 %v19583_v38, %v19577_v52  ;;  %v1446_v27 = vmul.f32 %v19584_v45, %v19577_v52  ;;  %v1447_v63 = vmul.f32 %v19585_v60, %v19577_v52  ;;  %v1448_v17 = vmul.f32 %v19586_v47, %v19577_v52  ;;  %19588 = vst [vmem:[#allocation22_spill] sm:$0xff] %v13980_v25  ;;  %v19595_v41 = vld [vmem:[#allocation59_spill] sm:$0xff]  ;;  %v19596_v30 = vld [vmem:[#allocation60_spill] sm:$0xff]  ;;  %v19597_v43 = vld [vmem:[#allocation61_spill] sm:$0xff] }
 0x2ac   : > { %v1449_v14 = vmul.f32 %v19589_v2, %v19577_v52  ;;  %v1450_v10 = vmul.f32 %v19590_v29, %v19577_v52  ;;  %v1451_v9 = vmul.f32 %v19591_v24, %v19577_v52  ;;  %v1452_v49 = vmul.f32 %v19592_v4, %v19577_v52  ;;  %19593 = vst [vmem:[#allocation23_spill] sm:$0xff] %v13991_v42  ;;  %v19598_v55 = vld [vmem:[#allocation132_spill] sm:$0xff]  ;;  %v19599_v15 = vld [vmem:[#allocation62_spill] sm:$0xff]  ;;  %v19600_v5 = vld [vmem:[#allocation63_spill] sm:$0xff] }
 0x2ad   : > { %v1453_v1 = vmul.f32 %v19594_v35, %v19577_v52  ;;  %v1454_v0 = vmul.f32 %v19595_v41, %v19577_v52  ;;  %v1455_v31 = vmul.f32 %v19596_v30, %v19577_v52  ;;  %v1456_v48 = vmul.f32 %v19597_v43, %v19577_v52  ;;  %v19601_v60 = vld [vmem:[#allocation64_spill] sm:$0xff]  ;;  %v19602_v2 = vld [vmem:[#allocation65_spill] sm:$0xff] }
 0x2ae   : > { %v1457_v39 = vmul.f32 %v19598_v55, %v19577_v52  ;;  %v1458_v12 = vmul.f32 %v19599_v15, %v19577_v52  ;;  %v1459_v53 = vmul.f32 %v19600_v5, %v19577_v52  ;;  %v1460_v38 = vmul.f32 %v13966_v44, %v19577_v52 }
 0x2af   : > { %v1461_v45 = vmul.f32 %v13977_v32, %v19577_v52  ;;  %v1462_v47 = vmul.f32 %v19601_v60, %v19577_v52  ;;  %v1463_v29 = vmul.f32 %v19602_v2, %v19577_v52  ;;  %v1464_v24 = vmul.f32 %v13980_v25, %v19577_v52 }
 0x2b0   : > { %v1465_v4 = vmul.f32 %v13991_v42, %v19577_v52  ;;  %v1466_v35 = vadd.f32 %v1441_v37, %v1388_v7  ;;  %v1467_v41 = vadd.f32 %v1442_v19, %v1389_v58  ;;  %v1468_v30 = vadd.f32 %v1443_v50, %v1390_v3  ;;  %v19603_v7 = vld [vmem:[#allocation14_spill] sm:$0xff] }
 0x2b1   : > { %v1469_v43 = vadd.f32 %v1444_v56, %v1391_v20  ;;  %v1470_v55 = vadd.f32 %v1445_v36, %v1392_v54  ;;  %v1471_v15 = vadd.f32 %v1446_v27, %v1393_v51  ;;  %v1472_v5 = vadd.f32 %v1447_v63, %v1394_v59  ;;  %v14039_v36 = vld [vmem:[%s11826_s17 + $0xd2] sm:$0xff]  ;;  %v19615_v27 = vld [vmem:[#allocation72_spill] sm:$0xff] }
 0x2b2   : > { %v1473_v32 = vadd.f32 %v1448_v17, %v1395_v6  ;;  %v1474_v44 = vadd.f32 %v1449_v14, %v1396_v23  ;;  %v1475_v60 = vadd.f32 %v1450_v10, %v1397_v26  ;;  %v1476_v2 = vadd.f32 %v1451_v9, %v1398_v8  ;;  %v19606_v8 = vld [vmem:[#allocation67_spill] sm:$0xff]  ;;  %19614 = vst [vmem:[#allocation28_spill] sm:$0xff] %v14039_v36  ;;  %v19616_v17 = vld [vmem:[#allocation73_spill] sm:$0xff]  ;;  %v19617_v10 = vld [vmem:[#allocation74_spill] sm:$0xff] }
 0x2b3   : > { %v1477_v25 = vadd.f32 %v1452_v49, %v1399_v21  ;;  %v1478_v42 = vadd.f32 %v1453_v1, %v1400_v13  ;;  %v1479_v52 = vadd.f32 %v1454_v0, %v1401_v28  ;;  %v1518_v37 = vperm.slane %v19603_v7, 1  ;;  %v19605_v28 = vld [vmem:[#allocation66_spill] sm:$0xff]  ;;  %v19618_v49 = vld [vmem:[#allocation75_spill] sm:$0xff]  ;;  %v14046_v0 = vld [vmem:[%s11826_s17 + $0xea] sm:$0xff] }
 0x2b4   : > { %v1480_v19 = vadd.f32 %v1455_v31, %v1402_v11  ;;  %v1481_v58 = vadd.f32 %v1456_v48, %v1403_v16  ;;  %v1482_v3 = vadd.f32 %v1457_v39, %v1404_v22  ;;  %v1483_v50 = vadd.f32 %v1458_v12, %v1405_v62  ;;  %v19609_v22 = vld [vmem:[#allocation68_spill] sm:$0xff]  ;;  %19619 = vst [vmem:[#allocation29_spill] sm:$0xff] %v14046_v0  ;;  %v14049_v31 = vld [vmem:[%s11826_s17 + $0xf2] sm:$0xff] }
 0x2b5   : > { %v1484_v20 = vadd.f32 %v1459_v53, %v1406_v40  ;;  %v1485_v56 = vadd.f32 %v1460_v38, %v1407_v61  ;;  %v1486_v54 = vadd.f32 %v1461_v45, %v1408_v46  ;;  %v1487_v51 = vadd.f32 %v1462_v47, %v1409_v34  ;;  %v19610_v40 = vld [vmem:[#allocation69_spill] sm:$0xff]  ;;  %v19611_v46 = vld [vmem:[#allocation70_spill] sm:$0xff]  ;;  %19620 = vst [vmem:[#allocation30_spill] sm:$0xff] %v14049_v31  ;;  %v19621_v48 = vld [vmem:[#allocation76_spill] sm:$0xff] }
 0x2b6   : > { %v1488_v59 = vadd.f32 %v1463_v29, %v1410_v18  ;;  %v1489_v6 = vadd.f32 %v1464_v24, %v1411_v33  ;;  %v1490_v23 = vadd.f32 %v1465_v4, %v1412_v57  ;;  %v14021_v21 = vperm.slane %v19603_v7, 2  ;;  %v19612_v18 = vld [vmem:[#allocation71_spill] sm:$0xff]  ;;  %v14036_v57 = vld [vmem:[%s11826_s17 + $0xca] sm:$0xff]  ;;  %v19622_v12 = vld [vmem:[#allocation77_spill] sm:$0xff] }
 0x2b7   : > { %v1519_v26 = vmul.f32 %v19605_v28, %v1518_v37  ;;  %v1520_v13 = vmul.f32 %v19606_v8, %v1518_v37  ;;  %v14026_v11 = vperm.slane %v19603_v7, 3  ;;  %v14029_v16 = vperm.slane %v19603_v7, 4  ;;  %19613 = vst [vmem:[#allocation27_spill] sm:$0xff] %v14036_v57  ;;  %v19623_v38 = vld [vmem:[#allocation78_spill] sm:$0xff]  ;;  %v19624_v47 = vld [vmem:[#allocation79_spill] sm:$0xff]  ;;  %v19625_v24 = vld [vmem:[#allocation80_spill] sm:$0xff] }
 0x2b8   : > { %19604 = vst [vmem:[#allocation24_spill] sm:$0xff] %v14021_v21  ;;  %v1521_v62 = vmul.f32 %v19609_v22, %v1518_v37  ;;  %v1522_v61 = vmul.f32 %v19610_v40, %v1518_v37  ;;  %v1523_v34 = vmul.f32 %v19611_v46, %v1518_v37  ;;  %v1524_v33 = vmul.f32 %v19612_v18, %v1518_v37  ;;  %v19626_v28 = vld [vmem:[#allocation81_spill] sm:$0xff]  ;;  %v19627_v22 = vld [vmem:[#allocation82_spill] sm:$0xff]  ;;  %v19628_v46 = vld [vmem:[#allocation83_spill] sm:$0xff] }
 0x2b9   : > { %19607 = vst [vmem:[#allocation25_spill] sm:$0xff] %v14026_v11  ;;  %v1525_v63 = vmul.f32 %v19615_v27, %v1518_v37  ;;  %v1526_v14 = vmul.f32 %v19616_v17, %v1518_v37  ;;  %v1527_v9 = vmul.f32 %v19617_v10, %v1518_v37  ;;  %v1528_v1 = vmul.f32 %v19618_v49, %v1518_v37  ;;  %v19629_v27 = vld [vmem:[#allocation84_spill] sm:$0xff]  ;;  %v19631_v7 = vld [vmem:[#allocation85_spill] sm:$0xff] }
 0x2ba   : > { %19608 = vst [vmem:[#allocation26_spill] sm:$0xff] %v14029_v16  ;;  %v1529_v39 = vmul.f32 %v19621_v48, %v1518_v37  ;;  %v1530_v53 = vmul.f32 %v19622_v12, %v1518_v37  ;;  %v1531_v45 = vmul.f32 %v19623_v38, %v1518_v37  ;;  %v1532_v29 = vmul.f32 %v19624_v47, %v1518_v37  ;;  %v19630_v48 = vld [vmem:[#allocation133_spill] sm:$0xff] }
 0x2bb   : > { %v1533_v4 = vmul.f32 %v19625_v24, %v1518_v37  ;;  %v1534_v8 = vmul.f32 %v19626_v28, %v1518_v37  ;;  %v1535_v40 = vmul.f32 %v19627_v22, %v1518_v37  ;;  %v1536_v18 = vmul.f32 %v19628_v46, %v1518_v37 }
 0x2bc   : > { %v1537_v17 = vmul.f32 %v19629_v27, %v1518_v37  ;;  %v1538_v10 = vmul.f32 %v14036_v57, %v1518_v37  ;;  %v1539_v49 = vmul.f32 %v14039_v36, %v1518_v37  ;;  %v1540_v12 = vmul.f32 %v19630_v48, %v1518_v37 }
 0x2bd   : > { %v1541_v38 = vmul.f32 %v19631_v7, %v1518_v37  ;;  %v1542_v47 = vmul.f32 %v14046_v0, %v1518_v37  ;;  %v1543_v24 = vmul.f32 %v14049_v31, %v1518_v37  ;;  %v1544_v16 = vadd.f32 %v1519_v26, %v1466_v35 }
 0x2be   : > { %v1545_v28 = vadd.f32 %v1520_v13, %v1467_v41  ;;  %v1546_v11 = vadd.f32 %v1521_v62, %v1468_v30  ;;  %v1547_v22 = vadd.f32 %v1522_v61, %v1469_v43  ;;  %v1548_v21 = vadd.f32 %v1523_v34, %v1470_v55  ;;  %v14086_v34 = vld [vmem:[%s11826_s17 + $0xd3] sm:$0xff] }
 0x2bf   : > { %v1549_v46 = vadd.f32 %v1524_v33, %v1471_v15  ;;  %v1550_v27 = vadd.f32 %v1525_v63, %v1472_v5  ;;  %v1551_v57 = vadd.f32 %v1526_v14, %v1473_v32  ;;  %v1552_v36 = vadd.f32 %v1527_v9, %v1474_v44  ;;  %v19632_v44 = vld [vmem:[#allocation24_spill] sm:$0xff]  ;;  %19642 = vst [vmem:[#allocation32_spill] sm:$0xff] %v14086_v34  ;;  %v19644_v63 = vld [vmem:[#allocation94_spill] sm:$0xff]  ;;  %v19645_v9 = vld [vmem:[#allocation95_spill] sm:$0xff] }
 0x2c0   : > { %v1553_v48 = vadd.f32 %v1528_v1, %v1475_v60  ;;  %v1554_v7 = vadd.f32 %v1529_v39, %v1476_v2  ;;  %v1555_v0 = vadd.f32 %v1530_v53, %v1477_v25  ;;  %v1556_v31 = vadd.f32 %v1531_v45, %v1478_v42  ;;  %v19633_v60 = vld [vmem:[#allocation86_spill] sm:$0xff]  ;;  %v19634_v42 = vld [vmem:[#allocation87_spill] sm:$0xff]  ;;  %v14089_v33 = vld [vmem:[%s11826_s17 + $0xeb] sm:$0xff] }
 0x2c1   : > { %v1557_v37 = vadd.f32 %v1532_v29, %v1479_v52  ;;  %v1558_v26 = vadd.f32 %v1533_v4, %v1480_v19  ;;  %v1559_v35 = vadd.f32 %v1534_v8, %v1481_v58  ;;  %v1560_v13 = vadd.f32 %v1535_v40, %v1482_v3  ;;  %v19635_v52 = vld [vmem:[#allocation88_spill] sm:$0xff]  ;;  %v19636_v58 = vld [vmem:[#allocation89_spill] sm:$0xff]  ;;  %19643 = vst [vmem:[#allocation33_spill] sm:$0xff] %v14089_v33  ;;  %v19649_v8 = vld [vmem:[#allocation98_spill] sm:$0xff] }
 0x2c2   : > { %v1561_v41 = vadd.f32 %v1536_v18, %v1483_v50  ;;  %v1562_v30 = vadd.f32 %v1537_v17, %v1484_v20  ;;  %v1563_v62 = vadd.f32 %v1538_v10, %v1485_v56  ;;  %v1564_v43 = vadd.f32 %v1539_v49, %v1486_v54  ;;  %v14075_v50 = vld [vmem:[%s11826_s17 + $0xcb] sm:$0xff]  ;;  %v19638_v20 = vld [vmem:[#allocation90_spill] sm:$0xff]  ;;  %v19639_v54 = vld [vmem:[#allocation91_spill] sm:$0xff] }
 0x2c3   : > { %v1565_v55 = vadd.f32 %v1540_v12, %v1487_v51  ;;  %v1566_v15 = vadd.f32 %v1541_v38, %v1488_v59  ;;  %v1567_v5 = vadd.f32 %v1542_v47, %v1489_v6  ;;  %v1568_v32 = vadd.f32 %v1543_v24, %v1490_v23  ;;  %19637 = vst [vmem:[#allocation31_spill] sm:$0xff] %v14075_v50  ;;  %v19640_v59 = vld [vmem:[#allocation92_spill] sm:$0xff]  ;;  %v19641_v23 = vld [vmem:[#allocation93_spill] sm:$0xff]  ;;  %v19652_v12 = vld [vmem:[#allocation102_spill] sm:$0xff] }
 0x2c4   : > { %v1597_v25 = vmul.f32 %v19633_v60, %v19632_v44  ;;  %v1598_v2 = vmul.f32 %v19634_v42, %v19632_v44  ;;  %v1599_v19 = vmul.f32 %v19635_v52, %v19632_v44  ;;  %v1600_v3 = vmul.f32 %v19636_v58, %v19632_v44  ;;  %v19646_v39 = vld [vmem:[#allocation96_spill] sm:$0xff]  ;;  %v19647_v45 = vld [vmem:[#allocation97_spill] sm:$0xff]  ;;  %v19653_v47 = vld [vmem:[#allocation103_spill] sm:$0xff] }
 0x2c5   : > { %v1601_v56 = vmul.f32 %v19638_v20, %v19632_v44  ;;  %v1602_v51 = vmul.f32 %v19639_v54, %v19632_v44  ;;  %v1603_v6 = vmul.f32 %v19640_v59, %v19632_v44  ;;  %v1604_v61 = vmul.f32 %v19641_v23, %v19632_v44  ;;  %v14100_v4 = vld [vmem:[%s11826_s17 + $0xf3] sm:$0xff]  ;;  %v19650_v18 = vld [vmem:[#allocation100_spill] sm:$0xff] }
 0x2c6   : > { %v1605_v14 = vmul.f32 %v19644_v63, %v19632_v44  ;;  %v1606_v1 = vmul.f32 %v19645_v9, %v19632_v44  ;;  %v1607_v53 = vmul.f32 %v19646_v39, %v19632_v44  ;;  %v1608_v29 = vmul.f32 %v19647_v45, %v19632_v44  ;;  %19648 = vst [vmem:[#allocation34_spill] sm:$0xff] %v14100_v4  ;;  %v19651_v10 = vld [vmem:[#allocation101_spill] sm:$0xff]  ;;  %v19654_v60 = vld [vmem:[#allocation104_spill] sm:$0xff]  ;;  %v19656_v59 = vld [vmem:[#allocation106_spill] sm:$0xff] }
 0x2c7   : > { %v1609_v40 = vmul.f32 %v19649_v8, %v19632_v44  ;;  %v1610_v17 = vmul.f32 %v19650_v18, %v19632_v44  ;;  %v1611_v49 = vmul.f32 %v19651_v10, %v19632_v44  ;;  %v1612_v38 = vmul.f32 %v19652_v12, %v19632_v44  ;;  %v19655_v52 = vld [vmem:[#allocation105_spill] sm:$0xff]  ;;  %v19657_v63 = vld [vmem:[#allocation107_spill] sm:$0xff] }
 0x2c8   : > { %v1613_v24 = vmul.f32 %v19653_v47, %v19632_v44  ;;  %v1614_v42 = vmul.f32 %v19654_v60, %v19632_v44  ;;  %v1615_v58 = vmul.f32 %v19655_v52, %v19632_v44  ;;  %v1616_v20 = vmul.f32 %v14075_v50, %v19632_v44 }
 0x2c9   : > { %v1617_v54 = vmul.f32 %v14086_v34, %v19632_v44  ;;  %v1618_v23 = vmul.f32 %v19656_v59, %v19632_v44  ;;  %v1619_v9 = vmul.f32 %v19657_v63, %v19632_v44  ;;  %v1620_v39 = vmul.f32 %v14089_v33, %v19632_v44 }
 0x2ca   : > { %v1621_v45 = vmul.f32 %v14100_v4, %v19632_v44  ;;  %v1622_v8 = vadd.f32 %v1597_v25, %v1544_v16  ;;  %v1623_v18 = vadd.f32 %v1598_v2, %v1545_v28  ;;  %v1624_v10 = vadd.f32 %v1599_v19, %v1546_v11 }
 0x2cb   : > { %v1625_v12 = vadd.f32 %v1600_v3, %v1547_v22  ;;  %v1626_v47 = vadd.f32 %v1601_v56, %v1548_v21  ;;  %v1627_v60 = vadd.f32 %v1602_v51, %v1549_v46  ;;  %v1628_v52 = vadd.f32 %v1603_v6, %v1550_v27  ;;  %v19660_v27 = vld [vmem:[#allocation109_spill] sm:$0xff]  ;;  %v19669_v51 = vld [vmem:[#allocation116_spill] sm:$0xff] }
 0x2cc   : > { %v1629_v34 = vadd.f32 %v1604_v61, %v1551_v57  ;;  %v1630_v50 = vadd.f32 %v1605_v14, %v1552_v36  ;;  %v1631_v59 = vadd.f32 %v1606_v1, %v1553_v48  ;;  %v1632_v63 = vadd.f32 %v1607_v53, %v1554_v7  ;;  %v19661_v7 = vld [vmem:[#allocation110_spill] sm:$0xff]  ;;  %v19670_v61 = vld [vmem:[#allocation117_spill] sm:$0xff] }
 0x2cd   : > { %v1633_v33 = vadd.f32 %v1608_v29, %v1555_v0  ;;  %v1634_v4 = vadd.f32 %v1609_v40, %v1556_v31  ;;  %v1635_v44 = vadd.f32 %v1610_v17, %v1557_v37  ;;  %v1636_v16 = vadd.f32 %v1611_v49, %v1558_v26  ;;  %v19658_v0 = vld [vmem:[#allocation25_spill] sm:$0xff]  ;;  %v19659_v31 = vld [vmem:[#allocation108_spill] sm:$0xff]  ;;  %v19662_v26 = vld [vmem:[#allocation111_spill] sm:$0xff] }
 0x2ce   : > { %v1637_v25 = vadd.f32 %v1612_v38, %v1559_v35  ;;  %v1638_v2 = vadd.f32 %v1613_v24, %v1560_v13  ;;  %v1639_v28 = vadd.f32 %v1614_v42, %v1561_v41  ;;  %v1640_v11 = vadd.f32 %v1615_v58, %v1562_v30  ;;  %v19663_v13 = vld [vmem:[#allocation112_spill] sm:$0xff]  ;;  %v19664_v30 = vld [vmem:[#allocation113_spill] sm:$0xff]  ;;  %v19673_v29 = vld [vmem:[#allocation118_spill] sm:$0xff] }
 0x2cf   : > { %v1641_v19 = vadd.f32 %v1616_v20, %v1563_v62  ;;  %v1642_v3 = vadd.f32 %v1617_v54, %v1564_v43  ;;  %v14128_v22 = vadd.f32 %v1618_v23, %v1565_v55  ;;  %v14130_v21 = vadd.f32 %v1619_v9, %v1566_v15  ;;  %v14149_v43 = vld [vmem:[%s11826_s17 + $0xcc] sm:$0xff]  ;;  %v14152_v55 = vld [vmem:[%s11826_s17 + $0xd4] sm:$0xff]  ;;  %v19674_v17 = vld [vmem:[#allocation119_spill] sm:$0xff] }
 0x2d0   : > { %v14132_v57 = vadd.f32 %v1620_v39, %v1567_v5  ;;  %v14134_v36 = vadd.f32 %v1621_v45, %v1568_v32  ;;  %v1675_v46 = vmul.f32 %v19659_v31, %v19658_v0  ;;  %v1676_v48 = vmul.f32 %v19660_v27, %v19658_v0  ;;  %19665 = vst [vmem:[#allocation35_spill] sm:$0xff] %v14149_v43  ;;  %v19667_v15 = vld [vmem:[#allocation114_spill] sm:$0xff]  ;;  %v19668_v32 = vld [vmem:[#allocation115_spill] sm:$0xff]  ;;  %v14163_v1 = vld [vmem:[%s11826_s17 + $0xec] sm:$0xff] }
 0x2d1   : > { %v1677_v37 = vmul.f32 %v19661_v7, %v19658_v0  ;;  %v1678_v35 = vmul.f32 %v19662_v26, %v19658_v0  ;;  %v1679_v41 = vmul.f32 %v19663_v13, %v19658_v0  ;;  %v1680_v62 = vmul.f32 %v19664_v30, %v19658_v0  ;;  %19666 = vst [vmem:[#allocation36_spill] sm:$0xff] %v14152_v55  ;;  %v14166_v53 = vld [vmem:[%s11826_s17 + $0xf4] sm:$0xff]  ;;  %v19675_v38 = vld [vmem:[#allocation120_spill] sm:$0xff]  ;;  %v19678_v23 = vld [vmem:[#allocation123_spill] sm:$0xff] }
 0x2d2   : > { %v1681_v5 = vmul.f32 %v19667_v15, %v19658_v0  ;;  %v1682_v56 = vmul.f32 %v19668_v32, %v19658_v0  ;;  %v1683_v6 = vmul.f32 %v19669_v51, %v19658_v0  ;;  %v1684_v14 = vmul.f32 %v19670_v61, %v19658_v0  ;;  %19671 = vst [vmem:[#allocation37_spill] sm:$0xff] %v14163_v1  ;;  %v19676_v42 = vld [vmem:[#allocation121_spill] sm:$0xff]  ;;  %v19677_v20 = vld [vmem:[#allocation122_spill] sm:$0xff]  ;;  %v19679_v39 = vld [vmem:[#allocation124_spill] sm:$0xff] }
 0x2d3   : > { %19672 = vst [vmem:[#allocation38_spill] sm:$0xff] %v14166_v53  ;;  %v1685_v40 = vmul.f32 %v19673_v29, %v19658_v0  ;;  %v1686_v49 = vmul.f32 %v19674_v17, %v19658_v0  ;;  %v1687_v24 = vmul.f32 %v19675_v38, %v19658_v0  ;;  %v1688_v58 = vmul.f32 %v19676_v42, %v19658_v0  ;;  %v19680_v31 = vld [vmem:[#allocation125_spill] sm:$0xff]  ;;  %v19681_v7 = vld [vmem:[#allocation126_spill] sm:$0xff]  ;;  %v19682_v15 = vld [vmem:[#allocation127_spill] sm:$0xff] }
 0x2d4   : > { %v1689_v54 = vmul.f32 %v19677_v20, %v19658_v0  ;;  %v1690_v9 = vmul.f32 %v19678_v23, %v19658_v0  ;;  %v1691_v45 = vmul.f32 %v19679_v39, %v19658_v0  ;;  %v1692_v27 = vmul.f32 %v19680_v31, %v19658_v0  ;;  %v19683_v51 = vld [vmem:[#allocation128_spill] sm:$0xff] }
 0x2d5   : > { %v1693_v26 = vmul.f32 %v19681_v7, %v19658_v0  ;;  %v1694_v13 = vmul.f32 %v14149_v43, %v19658_v0  ;;  %v1695_v30 = vmul.f32 %v14152_v55, %v19658_v0  ;;  %v1696_v32 = vmul.f32 %v19682_v15, %v19658_v0 }
 0x2d6   : > { %v1697_v61 = vmul.f32 %v19683_v51, %v19658_v0  ;;  %v1698_v29 = vmul.f32 %v14163_v1, %v19658_v0  ;;  %v1699_v17 = vmul.f32 %v14166_v53, %v19658_v0  ;;  %v14198_v38 = vadd.f32 %v1675_v46, %v1622_v8  ;;  %v9084_v0 = vld [vmem:[%s11826_s17 + $0x40] sm:$0xff]  ;;  %v9087_v46 = vld [vmem:[%s11826_s17 + $0x58] sm:$0xff] }
 0x2d7   : > { %v14200_v42 = vadd.f32 %v1676_v48, %v1623_v18  ;;  %v14202_v20 = vadd.f32 %v1677_v37, %v1624_v10  ;;  %v14204_v23 = vadd.f32 %v1678_v35, %v1625_v12  ;;  %v14206_v39 = vadd.f32 %v1679_v41, %v1626_v47  ;;  %v9092_v41 = vld [vmem:[%s11826_s17 + $0x80] sm:$0xff] }
 0x2d8   : > { %v14208_v31 = vadd.f32 %v1680_v62, %v1627_v60  ;;  %v14210_v7 = vadd.f32 %v1681_v5, %v1628_v52  ;;  %v14212_v15 = vadd.f32 %v1682_v56, %v1629_v34  ;;  %v14214_v8 = vadd.f32 %v1683_v6, %v1630_v50  ;;  %v9085_v60 = vld [vmem:[%s11826_s17 + $0x48] sm:$0xff]  ;;  %v9086_v52 = vld [vmem:[%s11826_s17 + $0x50] sm:$0xff]  ;;  %v9096_v56 = vld [vmem:[%s11826_s17 + $0xa0] sm:$0xff] }
 0x2d9   : > { %v14217_v18 = vadd.f32 %v1684_v14, %v1631_v59  ;;  %v14219_v10 = vadd.f32 %v1685_v40, %v1632_v63  ;;  %v14221_v12 = vadd.f32 %v1686_v49, %v1633_v33  ;;  %v14223_v47 = vadd.f32 %v1687_v24, %v1634_v4  ;;  %v9088_v33 = vld [vmem:[%s11826_s17 + $0x60] sm:$0xff]  ;;  %v9089_v63 = vld [vmem:[%s11826_s17 + $0x68] sm:$0xff]  ;;  %v9090_v4 = vld [vmem:[%s11826_s17 + $0x70] sm:$0xff] }
 0x2da   : > { %v14228_v34 = vadd.f32 %v1688_v58, %v1635_v44  ;;  %v14230_v48 = vadd.f32 %v1689_v54, %v1636_v16  ;;  %v14232_v50 = vadd.f32 %v1690_v9, %v1637_v25  ;;  %v14234_v59 = vadd.f32 %v1691_v45, %v1638_v2  ;;  %v9091_v25 = vld [vmem:[%s11826_s17 + $0x78] sm:$0xff]  ;;  %v9093_v2 = vld [vmem:[%s11826_s17 + $0x88] sm:$0xff]  ;;  %v9098_v14 = vld [vmem:[%s11826_s17 + $0xb0] sm:$0xff] }
 0x2db   : > { %v14239_v37 = vadd.f32 %v1692_v27, %v1639_v28  ;;  %v14241_v35 = vadd.f32 %v1693_v26, %v1640_v11  ;;  %v14243_v44 = vadd.f32 %v1694_v13, %v1641_v19  ;;  %v14245_v16 = vadd.f32 %v1695_v30, %v1642_v3  ;;  %v9094_v19 = vld [vmem:[%s11826_s17 + $0x90] sm:$0xff]  ;;  %v9095_v3 = vld [vmem:[%s11826_s17 + $0x98] sm:$0xff]  ;;  %v9097_v6 = vld [vmem:[%s11826_s17 + $0xa8] sm:$0xff] }
 0x2dc   : > { %v14251_v62 = vadd.f32 %v1696_v32, %v14128_v22  ;;  %v14254_v5 = vadd.f32 %v1697_v61, %v14130_v21  ;;  %v14257_v28 = vadd.f32 %v1698_v29, %v14132_v57  ;;  %v14260_v11 = vadd.f32 %v1699_v17, %v14134_v36  ;;  %v9099_v40 = vld [vmem:[%s11826_s17 + $0xb8] sm:$0xff]  ;;  %v9100_v58 = vld [vmem:[%s11826_s17 + $0xc0] sm:$0xff] }
 0x2dd   : > { %v19684_v49 = vld [vmem:[#allocation26_spill] sm:$0xff] }
 0x2de   : > { %v1753_v22 = vmul.f32 %v9084_v0, %v19684_v49  ;;  %v1754_v21 = vmul.f32 %v9085_v60, %v19684_v49  ;;  %v1755_v24 = vmul.f32 %v9086_v52, %v19684_v49  ;;  %v1756_v57 = vmul.f32 %v9087_v46, %v19684_v49  ;;  %v9103_v36 = vld [vmem:[%s11826_s17 + $0xd8] sm:$0xff]  ;;  %v9104_v26 = vld [vmem:[%s11826_s17 + $0xe0] sm:$0xff] }
 0x2df   : > { %v1757_v54 = vmul.f32 %v9088_v33, %v19684_v49  ;;  %v1758_v9 = vmul.f32 %v9089_v63, %v19684_v49  ;;  %v1759_v45 = vmul.f32 %v9090_v4, %v19684_v49  ;;  %v1760_v27 = vmul.f32 %v9091_v25, %v19684_v49  ;;  %v9107_v13 = vld [vmem:[%s11826_s17 + $0xf8] sm:$0xff]  ;;  %v9108_v29 = vld [vmem:[%s11826_s17 + $0x100] sm:$0xff] }
 0x2e0   : > { %v1761_v30 = vmul.f32 %v9092_v41, %v19684_v49  ;;  %v1762_v32 = vmul.f32 %v9093_v2, %v19684_v49  ;;  %v1763_v51 = vmul.f32 %v9094_v19, %v19684_v49  ;;  %v1764_v61 = vmul.f32 %v9095_v3, %v19684_v49  ;;  %v19685_v33 = vld [vmem:[#allocation129_spill] sm:$0xff]  ;;  %v19686_v4 = vld [vmem:[#allocation130_spill] sm:$0xff] }
 0x2e1   : > { %v1765_v17 = vmul.f32 %v9096_v56, %v19684_v49  ;;  %v1766_v0 = vmul.f32 %v9097_v6, %v19684_v49  ;;  %v1767_v60 = vmul.f32 %v9098_v14, %v19684_v49  ;;  %v1768_v52 = vmul.f32 %v9099_v40, %v19684_v49  ;;  %v19687_v19 = vld [vmem:[#allocation18_spill] sm:$0xff]  ;;  %v19688_v56 = vld [vmem:[#allocation19_spill] sm:$0xff] }
 0x2e2   : > { %v1769_v46 = vmul.f32 %v9100_v58, %v19684_v49  ;;  %v1770_v63 = vmul.f32 %v19685_v33, %v19684_v49  ;;  %v1771_v25 = vmul.f32 %v19686_v4, %v19684_v49  ;;  %v1772_v41 = vmul.f32 %v9103_v36, %v19684_v49 }
 0x2e3   : > { %v1773_v2 = vmul.f32 %v9104_v26, %v19684_v49  ;;  %v1774_v3 = vmul.f32 %v19687_v19, %v19684_v49  ;;  %v1775_v6 = vmul.f32 %v19688_v56, %v19684_v49  ;;  %v1776_v14 = vmul.f32 %v9107_v13, %v19684_v49  ;;  %v9129_v19 = vld [vmem:[%s11826_s17 + $0xd9] sm:$0xff] }
 0x2e4   : > { %v1777_v40 = vmul.f32 %v9108_v29, %v19684_v49  ;;  %v14303_v58 = vadd.f32 %v1753_v22, %v14198_v38  ;;  %v14306_v33 = vadd.f32 %v1754_v21, %v14200_v42  ;;  %v14309_v36 = vadd.f32 %v1755_v24, %v14202_v20  ;;  %v19689_v22 = vld [vmem:[#allocation14_spill] sm:$0xff]  ;;  %v9123_v29 = vld [vmem:[%s11826_s17 + $0xa9] sm:$0xff] }
 0x2e5   : > { %v14312_v26 = vadd.f32 %v1756_v57, %v14204_v23  ;;  %v14315_v4 = vadd.f32 %v1757_v54, %v14206_v39  ;;  %v14318_v13 = vadd.f32 %v1758_v9, %v14208_v31  ;;  %v14321_v49 = vadd.f32 %v1759_v45, %v14210_v7  ;;  %v9113_v24 = vld [vmem:[%s11826_s17 + $0x59] sm:$0xff]  ;;  %v9114_v57 = vld [vmem:[%s11826_s17 + $0x61] sm:$0xff]  ;;  %v9116_v9 = vld [vmem:[%s11826_s17 + $0x71] sm:$0xff] }
 0x2e6   : > { %v14324_v38 = vadd.f32 %v1760_v27, %v14212_v15  ;;  %v14327_v42 = vadd.f32 %v1761_v30, %v14214_v8  ;;  %v14330_v20 = vadd.f32 %v1762_v32, %v14217_v18  ;;  %v14333_v23 = vadd.f32 %v1763_v51, %v14219_v10  ;;  %v9110_v15 = vld [vmem:[%s11826_s17 + $0x41] sm:$0xff]  ;;  %v9111_v8 = vld [vmem:[%s11826_s17 + $0x49] sm:$0xff]  ;;  %v9117_v45 = vld [vmem:[%s11826_s17 + $0x79] sm:$0xff] }
 0x2e7   : > { %v14336_v39 = vadd.f32 %v1764_v61, %v14221_v12  ;;  %v14339_v31 = vadd.f32 %v1765_v17, %v14223_v47  ;;  %v14342_v7 = vadd.f32 %v1766_v0, %v14228_v34  ;;  %v1830_v18 = vperm.slane %v19689_v22, 5  ;;  %v9112_v34 = vld [vmem:[%s11826_s17 + $0x51] sm:$0xff]  ;;  %v9119_v30 = vld [vmem:[%s11826_s17 + $0x89] sm:$0xff]  ;;  %v9121_v51 = vld [vmem:[%s11826_s17 + $0x99] sm:$0xff] }
 0x2e8   : > { %v14348_v21 = vadd.f32 %v1767_v60, %v14230_v48  ;;  %v14351_v10 = vadd.f32 %v1768_v52, %v14232_v50  ;;  %v14354_v12 = vadd.f32 %v1769_v46, %v14234_v59  ;;  %v14357_v47 = vadd.f32 %v1770_v63, %v14239_v37  ;;  %v9115_v37 = vld [vmem:[%s11826_s17 + $0x69] sm:$0xff]  ;;  %v9120_v32 = vld [vmem:[%s11826_s17 + $0x91] sm:$0xff]  ;;  %v9122_v61 = vld [vmem:[%s11826_s17 + $0xa1] sm:$0xff] }
 0x2e9   : > { %v14363_v48 = vadd.f32 %v1771_v25, %v14241_v35  ;;  %v14366_v50 = vadd.f32 %v1772_v41, %v14243_v44  ;;  %v14369_v59 = vadd.f32 %v1773_v2, %v14245_v16  ;;  %v14372_v54 = vadd.f32 %v1774_v3, %v14251_v62  ;;  %v9118_v16 = vld [vmem:[%s11826_s17 + $0x81] sm:$0xff]  ;;  %v9124_v60 = vld [vmem:[%s11826_s17 + $0xb1] sm:$0xff]  ;;  %v9125_v52 = vld [vmem:[%s11826_s17 + $0xb9] sm:$0xff] }
 0x2ea   : > { %v14378_v27 = vadd.f32 %v1775_v6, %v14254_v5  ;;  %v14381_v35 = vadd.f32 %v1776_v14, %v14257_v28  ;;  %v14384_v44 = vadd.f32 %v1777_v40, %v14260_v11  ;;  %v14390_v62 = vperm.slane %v19689_v22, 6  ;;  %v19693_v28 = vld [vmem:[#allocation15_spill] sm:$0xff] }
 0x2eb   : > { %v1831_v5 = vmul.f32 %v9110_v15, %v1830_v18  ;;  %v14396_v17 = vperm.slane %v19689_v22, 7  ;;  %v14399_v0 = vperm.slane %v19693_v28, 0  ;;  %v9126_v46 = vld [vmem:[%s11826_s17 + $0xc1] sm:$0xff]  ;;  %v1832_v63 = vmul.f32 %v9111_v8, %v1830_v18  ;;  %v9133_v15 = vld [vmem:[%s11826_s17 + $0xf9] sm:$0xff]  ;;  %v19695_v8 = vld [vmem:[#allocation20_spill] sm:$0xff] }
 0x2ec   : > { %19690 = vst [vmem:[#allocation131_spill] sm:$0xff] %v14384_v44  ;;  %v1833_v25 = vmul.f32 %v9112_v34, %v1830_v18  ;;  %v1834_v41 = vmul.f32 %v9113_v24, %v1830_v18  ;;  %v1835_v2 = vmul.f32 %v9114_v57, %v1830_v18  ;;  %v9130_v3 = vld [vmem:[%s11826_s17 + $0xe1] sm:$0xff]  ;;  %v1836_v56 = vmul.f32 %v9115_v37, %v1830_v18  ;;  %v19696_v24 = vld [vmem:[#allocation21_spill] sm:$0xff] }
 0x2ed   : > { %19691 = vst [vmem:[#allocation39_spill] sm:$0xff] %v14390_v62  ;;  %v1837_v6 = vmul.f32 %v9116_v9, %v1830_v18  ;;  %v1838_v14 = vmul.f32 %v9117_v45, %v1830_v18  ;;  %v1839_v40 = vmul.f32 %v9118_v16, %v1830_v18  ;;  %v9134_v22 = vld [vmem:[%s11826_s17 + $0x101] sm:$0xff]  ;;  %v1840_v53 = vmul.f32 %v9119_v30, %v1830_v18 }
 0x2ee   : > { %19692 = vst [vmem:[#allocation40_spill] sm:$0xff] %v14396_v17  ;;  %v1841_v28 = vmul.f32 %v9120_v32, %v1830_v18  ;;  %v1842_v1 = vmul.f32 %v9121_v51, %v1830_v18  ;;  %v1843_v55 = vmul.f32 %v9122_v61, %v1830_v18  ;;  %v1844_v11 = vmul.f32 %v9123_v29, %v1830_v18  ;;  %v19697_v37 = vld [vmem:[#allocation22_spill] sm:$0xff]  ;;  %v19698_v45 = vld [vmem:[#allocation23_spill] sm:$0xff] }
 0x2ef   : > { %19694 = vst [vmem:[#allocation41_spill] sm:$0xff] %v14399_v0  ;;  %v1845_v43 = vmul.f32 %v9124_v60, %v1830_v18  ;;  %v1846_v0 = vmul.f32 %v9125_v52, %v1830_v18  ;;  %v1847_v17 = vmul.f32 %v9126_v46, %v1830_v18  ;;  %v1848_v34 = vmul.f32 %v19695_v8, %v1830_v18 }
 0x2f0   : > { %v1849_v57 = vmul.f32 %v19696_v24, %v1830_v18  ;;  %v1850_v62 = vmul.f32 %v9129_v19, %v1830_v18  ;;  %v1851_v44 = vmul.f32 %v9130_v3, %v1830_v18  ;;  %v1852_v9 = vmul.f32 %v19697_v37, %v1830_v18  ;;  %v9152_v19 = vld [vmem:[%s11826_s17 + $0xc2] sm:$0xff] }
 0x2f1   : > { %v1853_v16 = vmul.f32 %v19698_v45, %v1830_v18  ;;  %v1854_v30 = vmul.f32 %v9133_v15, %v1830_v18  ;;  %v1855_v32 = vmul.f32 %v9134_v22, %v1830_v18  ;;  %v14413_v51 = vadd.f32 %v1831_v5, %v14303_v58  ;;  %v9136_v22 = vld [vmem:[%s11826_s17 + $0x42] sm:$0xff]  ;;  %v9138_v18 = vld [vmem:[%s11826_s17 + $0x52] sm:$0xff] }
 0x2f2   : > { %v14416_v61 = vadd.f32 %v1832_v63, %v14306_v33  ;;  %v14419_v29 = vadd.f32 %v1833_v25, %v14309_v36  ;;  %v14422_v60 = vadd.f32 %v1834_v41, %v14312_v26  ;;  %v14425_v52 = vadd.f32 %v1835_v2, %v14315_v4  ;;  %v9148_v25 = vld [vmem:[%s11826_s17 + $0xa2] sm:$0xff]  ;;  %v9151_v2 = vld [vmem:[%s11826_s17 + $0xba] sm:$0xff] }
 0x2f3   : > { %v14428_v46 = vadd.f32 %v1836_v56, %v14318_v13  ;;  %v14431_v58 = vadd.f32 %v1837_v6, %v14321_v49  ;;  %v14434_v33 = vadd.f32 %v1838_v14, %v14324_v38  ;;  %v14437_v36 = vadd.f32 %v1839_v40, %v14327_v42  ;;  %v9137_v49 = vld [vmem:[%s11826_s17 + $0x4a] sm:$0xff]  ;;  %v9155_v40 = vld [vmem:[%s11826_s17 + $0xda] sm:$0xff]  ;;  %v9156_v15 = vld [vmem:[%s11826_s17 + $0xe2] sm:$0xff] }
 0x2f4   : > { %v14440_v26 = vadd.f32 %v1840_v53, %v14330_v20  ;;  %v14443_v4 = vadd.f32 %v1841_v28, %v14333_v23  ;;  %v14446_v13 = vadd.f32 %v1842_v1, %v14336_v39  ;;  %v14452_v38 = vadd.f32 %v1843_v55, %v14339_v31  ;;  %v9139_v1 = vld [vmem:[%s11826_s17 + $0x5a] sm:$0xff]  ;;  %v9140_v23 = vld [vmem:[%s11826_s17 + $0x62] sm:$0xff]  ;;  %v9141_v39 = vld [vmem:[%s11826_s17 + $0x6a] sm:$0xff] }
 0x2f5   : > { %v14455_v42 = vadd.f32 %v1844_v11, %v14342_v7  ;;  %v14458_v53 = vadd.f32 %v1845_v43, %v14348_v21  ;;  %v14461_v20 = vadd.f32 %v1846_v0, %v14351_v10  ;;  %v14467_v5 = vadd.f32 %v1847_v17, %v14354_v12  ;;  %v9142_v7 = vld [vmem:[%s11826_s17 + $0x72] sm:$0xff]  ;;  %v9143_v21 = vld [vmem:[%s11826_s17 + $0x7a] sm:$0xff]  ;;  %v9144_v10 = vld [vmem:[%s11826_s17 + $0x82] sm:$0xff] }
 0x2f6   : > { %v14470_v55 = vadd.f32 %v1848_v34, %v14357_v47  ;;  %v14473_v43 = vadd.f32 %v1849_v57, %v14363_v48  ;;  %v14476_v31 = vadd.f32 %v1850_v62, %v14366_v50  ;;  %v14482_v0 = vadd.f32 %v1851_v44, %v14369_v59  ;;  %v9145_v17 = vld [vmem:[%s11826_s17 + $0x8a] sm:$0xff]  ;;  %v9146_v50 = vld [vmem:[%s11826_s17 + $0x92] sm:$0xff]  ;;  %v9147_v62 = vld [vmem:[%s11826_s17 + $0x9a] sm:$0xff] }
 0x2f7   : > { %v14485_v12 = vadd.f32 %v1852_v9, %v14372_v54  ;;  %v14488_v47 = vadd.f32 %v1853_v16, %v14378_v27  ;;  %v14491_v48 = vadd.f32 %v1854_v30, %v14381_v35  ;;  %v19699_v11 = vld [vmem:[#allocation131_spill] sm:$0xff]  ;;  %v9149_v59 = vld [vmem:[%s11826_s17 + $0xaa] sm:$0xff]  ;;  %v9150_v44 = vld [vmem:[%s11826_s17 + $0xb2] sm:$0xff] }
 0x2f8   : > { %v14497_v63 = vadd.f32 %v1855_v32, %v19699_v11  ;;  %v19700_v41 = vld [vmem:[#allocation39_spill] sm:$0xff]  ;;  %v9159_v57 = vld [vmem:[%s11826_s17 + $0xfa] sm:$0xff] }
 0x2f9   : > { %v1909_v54 = vmul.f32 %v9136_v22, %v19700_v41  ;;  %v1910_v27 = vmul.f32 %v9137_v49, %v19700_v41  ;;  %v1911_v35 = vmul.f32 %v9138_v18, %v19700_v41  ;;  %v1912_v3 = vmul.f32 %v9139_v1, %v19700_v41  ;;  %v9160_v37 = vld [vmem:[%s11826_s17 + $0x102] sm:$0xff]  ;;  %v19702_v1 = vld [vmem:[#allocation28_spill] sm:$0xff] }
 0x2fa   : > { %v1913_v56 = vmul.f32 %v9140_v23, %v19700_v41  ;;  %v1914_v6 = vmul.f32 %v9141_v39, %v19700_v41  ;;  %v1915_v14 = vmul.f32 %v9142_v7, %v19700_v41  ;;  %v1916_v28 = vmul.f32 %v9143_v21, %v19700_v41  ;;  %v19701_v49 = vld [vmem:[#allocation27_spill] sm:$0xff]  ;;  %v19703_v21 = vld [vmem:[#allocation29_spill] sm:$0xff] }
 0x2fb   : > { %v1917_v8 = vmul.f32 %v9144_v10, %v19700_v41  ;;  %v1918_v34 = vmul.f32 %v9145_v17, %v19700_v41  ;;  %v1919_v24 = vmul.f32 %v9146_v50, %v19700_v41  ;;  %v1920_v9 = vmul.f32 %v9147_v62, %v19700_v41  ;;  %v19704_v17 = vld [vmem:[#allocation30_spill] sm:$0xff] }
 0x2fc   : > { %v1921_v45 = vmul.f32 %v9148_v25, %v19700_v41  ;;  %v1922_v16 = vmul.f32 %v9149_v59, %v19700_v41  ;;  %v1923_v30 = vmul.f32 %v9150_v44, %v19700_v41  ;;  %v1924_v32 = vmul.f32 %v9151_v2, %v19700_v41 }
 0x2fd   : > { %v1925_v22 = vmul.f32 %v9152_v19, %v19700_v41  ;;  %v1926_v18 = vmul.f32 %v19701_v49, %v19700_v41  ;;  %v1927_v23 = vmul.f32 %v19702_v1, %v19700_v41  ;;  %v1928_v39 = vmul.f32 %v9155_v40, %v19700_v41  ;;  %v9171_v40 = vld [vmem:[%s11826_s17 + $0x8b] sm:$0xff]  ;;  %v9185_v1 = vld [vmem:[%s11826_s17 + $0xfb] sm:$0xff] }
 0x2fe   : > { %v1929_v7 = vmul.f32 %v9156_v15, %v19700_v41  ;;  %v1930_v10 = vmul.f32 %v19703_v21, %v19700_v41  ;;  %v1931_v50 = vmul.f32 %v19704_v17, %v19700_v41  ;;  %v1932_v62 = vmul.f32 %v9159_v57, %v19700_v41  ;;  %v9172_v15 = vld [vmem:[%s11826_s17 + $0x93] sm:$0xff] }
 0x2ff   : > { %v1933_v11 = vmul.f32 %v9160_v37, %v19700_v41  ;;  %v14538_v25 = vadd.f32 %v1909_v54, %v14413_v51  ;;  %v14541_v59 = vadd.f32 %v1910_v27, %v14416_v61  ;;  %v14544_v44 = vadd.f32 %v1911_v35, %v14419_v29  ;;  %v9163_v54 = vld [vmem:[%s11826_s17 + $0x4b] sm:$0xff]  ;;  %v9164_v27 = vld [vmem:[%s11826_s17 + $0x53] sm:$0xff]  ;;  %v9166_v35 = vld [vmem:[%s11826_s17 + $0x63] sm:$0xff] }
 0x300   : > { %v14547_v2 = vadd.f32 %v1912_v3, %v14422_v60  ;;  %v14550_v19 = vadd.f32 %v1913_v56, %v14425_v52  ;;  %v14553_v41 = vadd.f32 %v1914_v6, %v14428_v46  ;;  %v14556_v51 = vadd.f32 %v1915_v14, %v14431_v58  ;;  %v9162_v52 = vld [vmem:[%s11826_s17 + $0x43] sm:$0xff]  ;;  %v9168_v56 = vld [vmem:[%s11826_s17 + $0x73] sm:$0xff]  ;;  %v9169_v6 = vld [vmem:[%s11826_s17 + $0x7b] sm:$0xff] }
 0x301   : > { %v14559_v61 = vadd.f32 %v1916_v28, %v14434_v33  ;;  %v14562_v29 = vadd.f32 %v1917_v8, %v14437_v36  ;;  %v14565_v60 = vadd.f32 %v1918_v34, %v14440_v26  ;;  %v14570_v46 = vadd.f32 %v1919_v24, %v14443_v4  ;;  %v9165_v26 = vld [vmem:[%s11826_s17 + $0x5b] sm:$0xff]  ;;  %v9175_v34 = vld [vmem:[%s11826_s17 + $0xab] sm:$0xff]  ;;  %v9176_v57 = vld [vmem:[%s11826_s17 + $0xb3] sm:$0xff] }
 0x302   : > { %v14573_v58 = vadd.f32 %v1920_v9, %v14446_v13  ;;  %v14576_v33 = vadd.f32 %v1921_v45, %v14452_v38  ;;  %v14579_v36 = vadd.f32 %v1922_v16, %v14455_v42  ;;  %v14585_v3 = vadd.f32 %v1923_v30, %v14458_v53  ;;  %v9167_v42 = vld [vmem:[%s11826_s17 + $0x6b] sm:$0xff]  ;;  %v9173_v8 = vld [vmem:[%s11826_s17 + $0x9b] sm:$0xff]  ;;  %v9178_v9 = vld [vmem:[%s11826_s17 + $0xc3] sm:$0xff] }
 0x303   : > { %v14588_v4 = vadd.f32 %v1924_v32, %v14461_v20  ;;  %v14591_v13 = vadd.f32 %v1925_v22, %v14467_v5  ;;  %v14594_v38 = vadd.f32 %v1926_v18, %v14470_v55  ;;  %v14600_v53 = vadd.f32 %v1927_v23, %v14473_v43  ;;  %v9170_v55 = vld [vmem:[%s11826_s17 + $0x83] sm:$0xff]  ;;  %v9177_v37 = vld [vmem:[%s11826_s17 + $0xbb] sm:$0xff] }
 0x304   : > { %v14603_v20 = vadd.f32 %v1928_v39, %v14476_v31  ;;  %v14606_v5 = vadd.f32 %v1929_v7, %v14482_v0  ;;  %v14609_v14 = vadd.f32 %v1930_v10, %v14485_v12  ;;  %v14615_v28 = vadd.f32 %v1931_v50, %v14488_v47  ;;  %v9174_v0 = vld [vmem:[%s11826_s17 + $0xa3] sm:$0xff] }
 0x305   : > { %v14618_v43 = vadd.f32 %v1932_v62, %v14491_v48  ;;  %v14621_v31 = vadd.f32 %v1933_v11, %v14497_v63  ;;  %v19705_v12 = vld [vmem:[#allocation40_spill] sm:$0xff]  ;;  %v9181_v63 = vld [vmem:[%s11826_s17 + $0xdb] sm:$0xff] }
 0x306   : > { %v1987_v24 = vmul.f32 %v9162_v52, %v19705_v12  ;;  %v1988_v45 = vmul.f32 %v9163_v54, %v19705_v12  ;;  %v1989_v47 = vmul.f32 %v9164_v27, %v19705_v12  ;;  %v1990_v48 = vmul.f32 %v9165_v26, %v19705_v12  ;;  %v9182_v30 = vld [vmem:[%s11826_s17 + $0xe3] sm:$0xff] }
 0x307   : > { %v1991_v16 = vmul.f32 %v9166_v35, %v19705_v12  ;;  %v1992_v32 = vmul.f32 %v9167_v42, %v19705_v12  ;;  %v1993_v22 = vmul.f32 %v9168_v56, %v19705_v12  ;;  %v1994_v49 = vmul.f32 %v9169_v6, %v19705_v12  ;;  %v9186_v23 = vld [vmem:[%s11826_s17 + $0x103] sm:$0xff]  ;;  %v19708_v56 = vld [vmem:[#allocation33_spill] sm:$0xff] }
 0x308   : > { %v1995_v18 = vmul.f32 %v9170_v55, %v19705_v12  ;;  %v1996_v39 = vmul.f32 %v9171_v40, %v19705_v12  ;;  %v1997_v7 = vmul.f32 %v9172_v15, %v19705_v12  ;;  %v1998_v21 = vmul.f32 %v9173_v8, %v19705_v12  ;;  %v19706_v52 = vld [vmem:[#allocation31_spill] sm:$0xff]  ;;  %v19707_v27 = vld [vmem:[#allocation32_spill] sm:$0xff]  ;;  %v19709_v55 = vld [vmem:[#allocation34_spill] sm:$0xff] }
 0x309   : > { %v1999_v10 = vmul.f32 %v9174_v0, %v19705_v12  ;;  %v2000_v17 = vmul.f32 %v9175_v34, %v19705_v12  ;;  %v2001_v50 = vmul.f32 %v9176_v57, %v19705_v12  ;;  %v2002_v62 = vmul.f32 %v9177_v37, %v19705_v12 }
 0x30a   : > { %v2003_v11 = vmul.f32 %v9178_v9, %v19705_v12  ;;  %v2004_v54 = vmul.f32 %v19706_v52, %v19705_v12  ;;  %v2005_v26 = vmul.f32 %v19707_v27, %v19705_v12  ;;  %v2006_v35 = vmul.f32 %v9181_v63, %v19705_v12 }
 0x30b   : > { %v2007_v42 = vmul.f32 %v9182_v30, %v19705_v12  ;;  %v2008_v6 = vmul.f32 %v19708_v56, %v19705_v12  ;;  %v2009_v40 = vmul.f32 %v19709_v55, %v19705_v12  ;;  %v2010_v15 = vmul.f32 %v9185_v1, %v19705_v12  ;;  %v9196_v30 = vld [vmem:[%s11826_s17 + $0x84] sm:$0xff] }
 0x30c   : > { %v2011_v8 = vmul.f32 %v9186_v23, %v19705_v12  ;;  %v14663_v0 = vadd.f32 %v1987_v24, %v14538_v25  ;;  %v14666_v34 = vadd.f32 %v1988_v45, %v14541_v59  ;;  %v14669_v57 = vadd.f32 %v1989_v47, %v14544_v44  ;;  %v9188_v12 = vld [vmem:[%s11826_s17 + $0x44] sm:$0xff]  ;;  %v9190_v24 = vld [vmem:[%s11826_s17 + $0x54] sm:$0xff]  ;;  %v9193_v47 = vld [vmem:[%s11826_s17 + $0x6c] sm:$0xff] }
 0x30d   : > { %v14672_v37 = vadd.f32 %v1990_v48, %v14547_v2  ;;  %v14675_v9 = vadd.f32 %v1991_v16, %v14550_v19  ;;  %v14678_v63 = vadd.f32 %v1992_v32, %v14553_v41  ;;  %v14681_v25 = vadd.f32 %v1993_v22, %v14556_v51  ;;  %v9189_v51 = vld [vmem:[%s11826_s17 + $0x4c] sm:$0xff]  ;;  %v9192_v45 = vld [vmem:[%s11826_s17 + $0x64] sm:$0xff]  ;;  %v9195_v16 = vld [vmem:[%s11826_s17 + $0x7c] sm:$0xff] }
 0x30e   : > { %v14684_v59 = vadd.f32 %v1994_v49, %v14559_v61  ;;  %v14687_v44 = vadd.f32 %v1995_v18, %v14562_v29  ;;  %v14690_v2 = vadd.f32 %v1996_v39, %v14565_v60  ;;  %v14693_v19 = vadd.f32 %v1997_v7, %v14570_v46  ;;  %v9197_v22 = vld [vmem:[%s11826_s17 + $0x8c] sm:$0xff]  ;;  %v9199_v49 = vld [vmem:[%s11826_s17 + $0x9c] sm:$0xff]  ;;  %v9200_v1 = vld [vmem:[%s11826_s17 + $0xa4] sm:$0xff] }
 0x30f   : > { %v14696_v41 = vadd.f32 %v1998_v21, %v14573_v58  ;;  %v14702_v61 = vadd.f32 %v1999_v10, %v14576_v33  ;;  %v14705_v29 = vadd.f32 %v2000_v17, %v14579_v36  ;;  %v14708_v60 = vadd.f32 %v2001_v50, %v14585_v3  ;;  %v9191_v58 = vld [vmem:[%s11826_s17 + $0x5c] sm:$0xff]  ;;  %v9202_v23 = vld [vmem:[%s11826_s17 + $0xb4] sm:$0xff]  ;;  %v9204_v21 = vld [vmem:[%s11826_s17 + $0xc4] sm:$0xff] }
 0x310   : > { %v14711_v46 = vadd.f32 %v2002_v62, %v14588_v4  ;;  %v14717_v48 = vadd.f32 %v2003_v11, %v14591_v13  ;;  %v14720_v33 = vadd.f32 %v2004_v54, %v14594_v38  ;;  %v14723_v36 = vadd.f32 %v2005_v26, %v14600_v53  ;;  %v9194_v4 = vld [vmem:[%s11826_s17 + $0x74] sm:$0xff]  ;;  %v9203_v7 = vld [vmem:[%s11826_s17 + $0xbc] sm:$0xff]  ;;  %v9208_v11 = vld [vmem:[%s11826_s17 + $0xe4] sm:$0xff] }
 0x311   : > { %v14726_v3 = vadd.f32 %v2006_v35, %v14603_v20  ;;  %v14732_v32 = vadd.f32 %v2007_v42, %v14606_v5  ;;  %v14735_v13 = vadd.f32 %v2008_v6, %v14609_v14  ;;  %v14738_v38 = vadd.f32 %v2009_v40, %v14615_v28  ;;  %v9198_v20 = vld [vmem:[%s11826_s17 + $0x94] sm:$0xff]  ;;  %v9201_v5 = vld [vmem:[%s11826_s17 + $0xac] sm:$0xff]  ;;  %v9207_v62 = vld [vmem:[%s11826_s17 + $0xdc] sm:$0xff] }
 0x312   : > { %v14741_v53 = vadd.f32 %v2010_v15, %v14618_v43  ;;  %v14747_v18 = vadd.f32 %v2011_v8, %v14621_v31  ;;  %v19710_v39 = vld [vmem:[#allocation41_spill] sm:$0xff]  ;;  %v9211_v35 = vld [vmem:[%s11826_s17 + $0xfc] sm:$0xff]  ;;  %v9212_v42 = vld [vmem:[%s11826_s17 + $0x104] sm:$0xff] }
 0x313   : > { %v2065_v14 = vmul.f32 %v9188_v12, %v19710_v39  ;;  %v2066_v28 = vmul.f32 %v9189_v51, %v19710_v39  ;;  %v2067_v43 = vmul.f32 %v9190_v24, %v19710_v39  ;;  %v2068_v10 = vmul.f32 %v9191_v58, %v19710_v39  ;;  %v19711_v12 = vld [vmem:[#allocation35_spill] sm:$0xff]  ;;  %v19712_v24 = vld [vmem:[#allocation36_spill] sm:$0xff] }
 0x314   : > { %v2069_v17 = vmul.f32 %v9192_v45, %v19710_v39  ;;  %v2070_v31 = vmul.f32 %v9193_v47, %v19710_v39  ;;  %v2071_v50 = vmul.f32 %v9194_v4, %v19710_v39  ;;  %v2072_v52 = vmul.f32 %v9195_v16, %v19710_v39  ;;  %v19713_v4 = vld [vmem:[#allocation37_spill] sm:$0xff] }
 0x315   : > { %v2073_v54 = vmul.f32 %v9196_v30, %v19710_v39  ;;  %v2074_v27 = vmul.f32 %v9197_v22, %v19710_v39  ;;  %v2075_v26 = vmul.f32 %v9198_v20, %v19710_v39  ;;  %v2076_v56 = vmul.f32 %v9199_v49, %v19710_v39  ;;  %v19714_v30 = vld [vmem:[#allocation38_spill] sm:$0xff] }
 0x316   : > { %v2077_v6 = vmul.f32 %v9200_v1, %v19710_v39  ;;  %v2078_v55 = vmul.f32 %v9201_v5, %v19710_v39  ;;  %v2079_v40 = vmul.f32 %v9202_v23, %v19710_v39  ;;  %v2080_v15 = vmul.f32 %v9203_v7, %v19710_v39 }
 0x317   : > { %v2081_v8 = vmul.f32 %v9204_v21, %v19710_v39  ;;  %v2082_v51 = vmul.f32 %v19711_v12, %v19710_v39  ;;  %v2083_v58 = vmul.f32 %v19712_v24, %v19710_v39  ;;  %v2084_v45 = vmul.f32 %v9207_v62, %v19710_v39 }
 0x318   : > { %v2085_v47 = vmul.f32 %v9208_v11, %v19710_v39  ;;  %v14783_v16 = vmul.f32 %v19713_v4, %v19710_v39  ;;  %v14787_v22 = vmul.f32 %v19714_v30, %v19710_v39  ;;  %v14790_v20 = vmul.f32 %v9211_v35, %v19710_v39 }
 0x319   : > { %v14793_v49 = vmul.f32 %v9212_v42, %v19710_v39  ;;  %v14796_v1 = vadd.f32 %v2065_v14, %v14663_v0  ;;  %v14799_v5 = vadd.f32 %v2066_v28, %v14666_v34  ;;  %v14802_v23 = vadd.f32 %v2067_v43, %v14669_v57 }
 0x31a   : > { %v14805_v7 = vadd.f32 %v2068_v10, %v14672_v37  ;;  %v14808_v21 = vadd.f32 %v2069_v17, %v14675_v9  ;;  %v14811_v62 = vadd.f32 %v2070_v31, %v14678_v63  ;;  %v14814_v39 = vadd.f32 %v2071_v50, %v14681_v25 }
 0x31b   : > { %19715 = vst [vmem:[#allocation42_spill] sm:$0xff] %v14796_v1  ;;  %v14817_v0 = vadd.f32 %v2072_v52, %v14684_v59  ;;  %v14820_v34 = vadd.f32 %v2073_v54, %v14687_v44  ;;  %v19720_v57 = vlaneseq  ;;  %v14826_v37 = vadd.f32 %v2074_v27, %v14690_v2 }
 0x31c   : > { %19716 = vst [vmem:[#allocation43_spill] sm:$0xff] %v14799_v5  ;;  %v14829_v9 = vadd.f32 %v2075_v26, %v14693_v19  ;;  %v14832_v63 = vadd.f32 %v2076_v56, %v14696_v41  ;;  %v14835_v25 = vadd.f32 %v2077_v6, %v14702_v61  ;;  %v14838_v59 = vadd.f32 %v2078_v55, %v14705_v29 }
 0x31d   : > { %19717 = vst [vmem:[#allocation44_spill] sm:$0xff] %v14802_v23  ;;  %v14823_v14 = vshrl.u32 %v19720_v57, 7  ;;  %v14841_v44 = vadd.f32 %v2079_v40, %v14708_v60  ;;  %v14844_v28 = vadd.f32 %v2080_v15, %v14711_v46  ;;  %v14847_v2 = vadd.f32 %v2081_v8, %v14717_v48 }
 0x31e   : > { %19718 = vst [vmem:[#allocation45_spill] sm:$0xff] %v14817_v0  ;;  %v14850_v19 = vadd.f32 %v2082_v51, %v14720_v33  ;;  %v14853_v41 = vadd.f32 %v2083_v58, %v14723_v36  ;;  %v14856_v61 = vadd.f32 %v2084_v45, %v14726_v3  ;;  %v14859_v29 = vadd.f32 %v2085_v47, %v14732_v32 }
 0x31f   : > { %19719 = vst [vmem:[#allocation99_spill] sm:$0xff] %v14820_v34  ;;  %v14862_v60 = vadd.s32 8, %v14823_v14  ;;  %v14865_v46 = vadd.s32 16, %v14823_v14  ;;  %v14868_v48 = vadd.s32 24, %v14823_v14  ;;  %v14871_v33 = vadd.s32 32, %v14823_v14 }
 0x320   : > { %19721 = vst [vmem:[#allocation46_spill] sm:$0xff] %v14823_v14  ;;  %v14874_v36 = vadd.s32 40, %v14823_v14  ;;  %v14877_v3 = vadd.s32 48, %v14823_v14  ;;  %v14880_v32 = vadd.s32 56, %v14823_v14  ;;  %v14883_v43 = vadd.s32 64, %v14823_v14 }
 0x321   : > { %19722 = vst [vmem:[#allocation47_spill] sm:$0xff] %v14832_v63  ;;  %v14886_v10 = vadd.s32 72, %v14823_v14  ;;  %v14889_v17 = vadd.s32 80, %v14823_v14  ;;  %v14892_v31 = vadd.s32 88, %v14823_v14  ;;  %v14895_v50 = vadd.s32 96, %v14823_v14 }
 0x322   : > { %19723 = vst [vmem:[#allocation48_spill] sm:$0xff] %v14835_v25  ;;  %v14898_v11 = vadd.s32 104, %v14823_v14  ;;  %v14901_v52 = vadd.s32 112, %v14823_v14  ;;  %v14904_v54 = vadd.s32 120, %v14823_v14  ;;  %v14907_v27 = vadd.s32 128, %v14823_v14 }
 0x323   : > { %19724 = vst [vmem:[#allocation49_spill] sm:$0xff] %v14838_v59  ;;  %v14917_v26 = vadd.s32 136, %v14823_v14  ;;  %v14920_v35 = vadd.s32 144, %v14823_v14  ;;  %v14923_v42 = vadd.s32 152, %v14823_v14  ;;  %v14926_v56 = vadd.s32 160, %v14823_v14 }
 0x324   : > { %19725 = vst [vmem:[#allocation50_spill] sm:$0xff] %v14841_v44  ;;  %v14929_v6 = vadd.s32 168, %v14823_v14  ;;  %v14932_v55 = vadd.s32 176, %v14823_v14  ;;  %v14935_v40 = vadd.s32 184, %v14823_v14  ;;  %v14938_v15 = vadd.s32 192, %v14823_v14 }
 0x325   : > { %19726 = vst [vmem:[#allocation51_spill] sm:$0xff] %v14844_v28  ;;  %v19745_v12 = vcvt.s32.f32 %v14823_v14  ;;  %v19746_v51 = vcvt.s32.f32 %v14862_v60  ;;  %v19747_v24 = vcvt.s32.f32 %v14865_v46  ;;  %v19748_v45 = vcvt.s32.f32 %v14868_v48 }
 0x326   : > { %19727 = vst [vmem:[#allocation52_spill] sm:$0xff] %v14847_v2  ;;  %v19749_v4 = vcvt.s32.f32 %v14871_v33  ;;  %v19750_v57 = vcvt.s32.f32 %v14874_v36  ;;  %v19751_v8 = vcvt.s32.f32 %v14877_v3 }
 0x327   : > { %19728 = vst [vmem:[#allocation53_spill] sm:$0xff] %v14850_v19  ;;  %v2166_v30 = vmul.f32 0.0625, %v19745_v12  ;;  %v2168_v58 = vmul.f32 0.0625, %v19747_v24  ;;  %v2169_v47 = vmul.f32 0.0625, %v19748_v45  ;;  %v19752_v12 = vcvt.s32.f32 %v14880_v32 }
 0x328   : > { %19729 = vst [vmem:[#allocation54_spill] sm:$0xff] %v14853_v41  ;;  %v2172_v14 = vmul.f32 0.0625, %v19751_v8  ;;  %v19754_v45 = vcvt.s32.f32 %v14886_v10  ;;  %v19757_v8 = vcvt.s32.f32 %v14895_v50 }
 0x329   : > { %19730 = vst [vmem:[#allocation55_spill] sm:$0xff] %v14856_v61  ;;  %v2171_v61 = vmul.f32 0.0625, %v19750_v57  ;;  %v19756_v57 = vcvt.s32.f32 %v14892_v31 }
 0x32a   : > { %19731 = vst [vmem:[#allocation56_spill] sm:$0xff] %v14859_v29  ;;  %v2170_v29 = vmul.f32 0.0625, %v19749_v4  ;;  %v19755_v4 = vcvt.s32.f32 %v14889_v17 }
 0x32b   : > { %19732 = vst [vmem:[#allocation57_spill] sm:$0xff] %v14862_v60  ;;  %v2173_v60 = vmul.f32 0.0625, %v19752_v12  ;;  %v2178_v12 = vmul.f32 0.0625, %v19757_v8 }
 0x32c   : > { %19733 = vst [vmem:[#allocation58_spill] sm:$0xff] %v14871_v33  ;;  %v2175_v33 = vmul.f32 0.0625, %v19754_v45  ;;  %v19760_v45 = vcvt.s32.f32 %v14904_v54 }
 0x32d   : > { %19734 = vst [vmem:[#allocation59_spill] sm:$0xff] %v14874_v36  ;;  %v2176_v36 = vmul.f32 0.0625, %v19755_v4  ;;  %v2203_v4 = vadd.f32 0.0001, %v2178_v12 }
 0x32e   : > { %19735 = vst [vmem:[#allocation60_spill] sm:$0xff] %v14877_v3  ;;  %v2177_v3 = vmul.f32 0.0625, %v19756_v57  ;;  %v19761_v57 = vcvt.s32.f32 %v14907_v27 }
 0x32f   : > { %19736 = vst [vmem:[#allocation61_spill] sm:$0xff] %v14883_v43 }
 0x330   : > { %19737 = vst [vmem:[#allocation132_spill] sm:$0xff] %v14886_v10 }
 0x331   : > { %19738 = vst [vmem:[#allocation62_spill] sm:$0xff] %v14889_v17  ;;  %v2181_v17 = vmul.f32 0.0625, %v19760_v45 }
 0x332   : > { %19739 = vst [vmem:[#allocation63_spill] sm:$0xff] %v14895_v50  ;;  %v2191_v50 = vadd.f32 0.0001, %v2166_v30  ;;  %v19763_v30 = vcvt.s32.f32 %v14920_v35 }
 0x333   : > { %19740 = vst [vmem:[#allocation64_spill] sm:$0xff] %v14901_v52 }
 0x334   : > { %19741 = vst [vmem:[#allocation65_spill] sm:$0xff] %v14904_v54  ;;  %v2193_v54 = vadd.f32 0.0001, %v2168_v58  ;;  %v19764_v58 = vcvt.s32.f32 %v14923_v42 }
 0x335   : > { %19742 = vst [vmem:[#allocation66_spill] sm:$0xff] %v14907_v27  ;;  %v2196_v27 = vadd.f32 0.0001, %v2171_v61 }
 0x336   : > { %2554 = vst.msk [vmem:[%s14911_s18] sm:$0xff] %vm88_vm3, %v14796_v1  ;;  %v2167_v1 = vmul.f32 0.0625, %v19746_v51  ;;  %v19753_v51 = vcvt.s32.f32 %v14883_v43 }
 0x337   : > { %19743 = vst [vmem:[#allocation67_spill] sm:$0xff] %v14917_v26 }
 0x338   : > { %19744 = vst [vmem:[#allocation68_spill] sm:$0xff] %v14920_v35  ;;  %v2174_v24 = vmul.f32 0.0625, %v19753_v51  ;;  %v19759_v51 = vcvt.s32.f32 %v14901_v52  ;;  %v2192_v8 = vadd.f32 0.0001, %v2167_v1  ;;  %v2194_v52 = vadd.f32 0.0001, %v2169_v47 }
 0x339   : > { %2555 = vst.msk [vmem:[%s14911_s18 + $0x8] sm:$0xff] %vm88_vm3, %v14799_v5  ;;  %v19758_v5 = vcvt.s32.f32 %v14898_v11  ;;  %v2184_v1 = vmul.f32 0.0625, %v19763_v30  ;;  %v2185_v47 = vmul.f32 0.0625, %v19764_v58  ;;  %v2200_v35 = vadd.f32 0.0001, %v2175_v33 }
 0x33a   : > { %2556 = vst.msk [vmem:[%s14911_s18 + $0x10] sm:$0xff] %vm88_vm3, %v14802_v23  ;;  %v2180_v10 = vmul.f32 0.0625, %v19759_v51  ;;  %v2182_v23 = vmul.f32 0.0625, %v19761_v57  ;;  %v19762_v51 = vcvt.s32.f32 %v14917_v26  ;;  %v2195_v57 = vadd.f32 0.0001, %v2170_v29 }
 0x33b   : > { %v2179_v43 = vmul.f32 0.0625, %v19758_v5  ;;  %2557 = vst.msk [vmem:[%s14911_s18 + $0x18] sm:$0xff] %vm88_vm3, %v14805_v7  ;;  %v2198_v26 = vadd.f32 0.0001, %v2173_v60  ;;  %v19765_v29 = vcvt.s32.f32 %v14926_v56  ;;  %v2199_v30 = vadd.f32 0.0001, %v2174_v24 }
 0x33c   : > { %2558 = vst.msk [vmem:[%s14911_s18 + $0x20] sm:$0xff] %vm88_vm3, %v14808_v21  ;;  %v2183_v45 = vmul.f32 0.0625, %v19762_v51  ;;  %v2197_v51 = vadd.f32 0.0001, %v2172_v14  ;;  %v15033_v58 = vadd.f32 %v14783_v16, %v14735_v13  ;;  %v19767_v14 = vcvt.s32.f32 %v14929_v6 }
 0x33d   : > { %2559 = vst.msk [vmem:[%s14911_s18 + $0x28] sm:$0xff] %vm88_vm3, %v14811_v62  ;;  %v2186_v61 = vmul.f32 0.0625, %v19765_v29  ;;  %v2201_v5 = vadd.f32 0.0001, %v2176_v36  ;;  %v15042_v33 = vadd.f32 %v14787_v22, %v14738_v38  ;;  %v19769_v24 = vcvt.s32.f32 %v14932_v55 }
 0x33e   : > { %2560 = vst.msk [vmem:[%s14911_s18 + $0x30] sm:$0xff] %vm88_vm3, %v14814_v39  ;;  %v2187_v60 = vmul.f32 0.0625, %v19767_v14  ;;  %v15051_v13 = vadd.f32 %v14790_v20, %v14741_v53  ;;  %v19771_v16 = vcvt.s32.f32 %v14935_v40  ;;  %v2206_v14 = vadd.f32 0.0001, %v2181_v17 }
 0x33f   : > { %2561 = vst.msk [vmem:[%s14911_s18 + $0x38] sm:$0xff] %vm88_vm3, %v14817_v0  ;;  %v2202_v0 = vadd.f32 0.0001, %v2177_v3  ;;  %v2188_v29 = vmul.f32 0.0625, %v19769_v24  ;;  %v2205_v3 = vadd.f32 0.0001, %v2180_v10  ;;  %v15060_v38 = vadd.f32 %v14793_v49, %v14747_v18 }
 0x340   : > { %2562 = vst.msk [vmem:[%s14911_s18 + $0x40] sm:$0xff] %vm88_vm3, %v14820_v34  ;;  %v2204_v34 = vadd.f32 0.0001, %v2179_v43  ;;  %v2189_v36 = vmul.f32 0.0625, %v19771_v16  ;;  %v19773_v22 = vcvt.s32.f32 %v14938_v15  ;;  %v15064_v12 = vadd.f32 0.0001, %v2182_v23 }
 0x341   : > { %19766 = vst [vmem:[#allocation69_spill] sm:$0xff] %v15033_v58  ;;  %v15066_v53 = vadd.f32 0.0001, %v2183_v45  ;;  %v15071_v20 = vadd.f32 0.0001, %v2184_v1  ;;  %v15075_v17 = vfloor.f32 %v2191_v50  ;;  %v15077_v24 = vfloor.f32 %v2192_v8 }
 0x342   : > { %2563 = vst.msk [vmem:[%s14911_s18 + $0x48] sm:$0xff] %vm88_vm3, %v14826_v37  ;;  %v2190_v43 = vmul.f32 0.0625, %v19773_v22  ;;  %v15073_v10 = vadd.f32 0.0001, %v2185_v47  ;;  %v15082_v18 = vadd.f32 0.0001, %v2186_v61  ;;  %v15086_v23 = vfloor.f32 %v2193_v54 }
 0x343   : > { %19768 = vst [vmem:[#allocation70_spill] sm:$0xff] %v15042_v33  ;;  %v15084_v49 = vadd.f32 0.0001, %v2187_v60  ;;  %v15088_v45 = vfloor.f32 %v2194_v52  ;;  %v15093_v50 = vadd.f32 0.0001, %v2188_v29  ;;  %v15097_v1 = vfloor.f32 %v2195_v57 }
 0x344   : > { %2564 = vst.msk [vmem:[%s14911_s18 + $0x50] sm:$0xff] %vm88_vm3, %v14829_v9  ;;  %v15095_v8 = vadd.f32 0.0001, %v2189_v36  ;;  %v15099_v47 = vfloor.f32 %v2196_v27  ;;  %v15104_v54 = vadd.f32 0.0001, %v2190_v43  ;;  %v15106_v52 = vfloor.f32 %v2197_v51 }
 0x345   : > { %19770 = vst [vmem:[#allocation71_spill] sm:$0xff] %v15051_v13  ;;  %v15108_v61 = vfloor.f32 %v2198_v26  ;;  %v15110_v60 = vfloor.f32 %v2199_v30  ;;  %v15115_v57 = vfloor.f32 %v2200_v35  ;;  %v15117_v27 = vfloor.f32 %v2201_v5 }
 0x346   : > { %2565 = vst.msk [vmem:[%s14911_s18 + $0x58] sm:$0xff] %vm88_vm3, %v14832_v63  ;;  %v2241_v16 = vmul.f32 16.0, %v15075_v17  ;;  %v2242_v36 = vmul.f32 16.0, %v15077_v24  ;;  %v15124_v26 = vfloor.f32 %v2202_v0  ;;  %v15126_v30 = vfloor.f32 %v2203_v4  ;;  %v19798_v0 = vld [vmem:[#allocation55_spill] sm:$0xff] }
 0x347   : > { %19772 = vst [vmem:[#allocation72_spill] sm:$0xff] %v15060_v38  ;;  %v19791_v29 = vmov %v15117_v27  ;;  %v15128_v22 = vfloor.f32 %v2204_v34  ;;  %v2243_v43 = vmul.f32 16.0, %v15086_v23  ;;  %v15134_v35 = vfloor.f32 %v2205_v3  ;;  %v19799_v3 = vld [vmem:[#allocation56_spill] sm:$0xff] }
 0x348   : > { %2566 = vst.msk [vmem:[%s14911_s18 + $0x60] sm:$0xff] %vm88_vm3, %v14835_v25  ;;  %v19793_v51 = vmov %v15124_v26  ;;  %v15136_v5 = vfloor.f32 %v2206_v14  ;;  %v2245_v14 = vmul.f32 16.0, %v15097_v1  ;;  %vm2291_vm6 = vcmp.lt.f32.partialorder %v15075_v17, 12.0 }
 0x349   : > { %19774 = vst [vmem:[#allocation73_spill] sm:$0xff] %v15071_v20  ;;  %vm2292_vm7 = vcmp.lt.f32.partialorder %v15077_v24, 12.0  ;;  %v2253_v4 = vmul.f32 16.0, %v15126_v30  ;;  %vm2293_vm10 = vcmp.lt.f32.partialorder %v15086_v23, 12.0  ;;  %vm2294_vm13 = vcmp.lt.f32.partialorder %v15088_v45, 12.0 }
 0x34a   : > { %19775 = vst [vmem:[#allocation74_spill] sm:$0xff] %v15073_v10  ;;  %vm2295_vm1 = vcmp.lt.f32.partialorder %v15097_v1, 12.0  ;;  %vm2296_vm4 = vcmp.lt.f32.partialorder %v15099_v47, 12.0 }
 0x34b   : > { %19776 = vst [vmem:[#allocation134_spill] sm:$0xff] %v15075_v17  ;;  %v2256_v17 = vmul.f32 16.0, %v15136_v5 }
 0x34c   : > { %19777 = vst [vmem:[#allocation135_spill] sm:$0xff] %v15077_v24 }
 0x34d   : > { %2567 = vst.msk [vmem:[%s14911_s18 + $0x68] sm:$0xff] %vm88_vm3, %v14838_v59 }
 0x34e   : > { %19778 = vst [vmem:[#allocation75_spill] sm:$0xff] %v15082_v18 }
 0x34f   : > { %19779 = vst [vmem:[#allocation76_spill] sm:$0xff] %v15084_v49 }
 0x350   : > { %19780 = vst [vmem:[#allocation136_spill] sm:$0xff] %v15086_v23 }
 0x351   : > { %19781 = vst [vmem:[#allocation137_spill] sm:$0xff] %v15088_v45 }
 0x352   : > { %2568 = vst.msk [vmem:[%s14911_s18 + $0x70] sm:$0xff] %vm88_vm3, %v14841_v44 }
 0x353   : > { %19782 = vst [vmem:[#allocation77_spill] sm:$0xff] %v15093_v50 }
 0x354   : > { %19783 = vst [vmem:[#allocation78_spill] sm:$0xff] %v15095_v8 }
 0x355   : > { %19784 = vst [vmem:[#allocation138_spill] sm:$0xff] %v15097_v1 }
 0x356   : > { %19785 = vst [vmem:[#allocation139_spill] sm:$0xff] %v15099_v47 }
 0x357   : > { %2569 = vst.msk [vmem:[%s14911_s18 + $0x78] sm:$0xff] %vm88_vm3, %v14844_v28 }
 0x358   : > { %19786 = vst [vmem:[#allocation140_spill] sm:$0xff] %v15106_v52 }
 0x359   : > { %19787 = vst [vmem:[#allocation141_spill] sm:$0xff] %v15108_v61 }
 0x35a   : > { %19788 = vst [vmem:[#allocation142_spill] sm:$0xff] %v15110_v60 }
 0x35b   : > { %2570 = vst.msk [vmem:[%s14911_s18 + $0x80] sm:$0xff] %vm88_vm3, %v14847_v2 }
 0x35c   : > { %19789 = vst [vmem:[#allocation143_spill] sm:$0xff] %v15115_v57 }
 0x35d   : > { %19790 = vst [vmem:[#allocation144_spill] sm:$0xff] %v15117_v27  ;;  %v19800_v27 = vld [vmem:[#allocation46_spill] sm:$0xff] }
 0x35e   : > { %2571 = vst.msk [vmem:[%s14911_s18 + $0x88] sm:$0xff] %vm88_vm3, %v14850_v19  ;;  %v19801_v2 = vcvt.s32.f32 %v19800_v27  ;;  %v19806_v19 = vcvt.s32.f32 %v14865_v46  ;;  %v2249_v27 = vmul.f32 16.0, %v15110_v60  ;;  %v2251_v46 = vmul.f32 16.0, %v19791_v29 }
 0x35f   : > { %19792 = vst [vmem:[#allocation145_spill] sm:$0xff] %v15124_v26  ;;  %v19810_v26 = vld [vmem:[#allocation58_spill] sm:$0xff] }
 0x360   : > { %19794 = vst [vmem:[#allocation146_spill] sm:$0xff] %v15126_v30  ;;  %v15154_v28 = vsub.f32 %v19801_v2, %v2241_v16  ;;  %v2246_v2 = vmul.f32 16.0, %v15099_v47  ;;  %v2247_v16 = vmul.f32 16.0, %v15106_v52 }
 0x361   : > { %19795 = vst [vmem:[#allocation147_spill] sm:$0xff] %v15128_v22 }
 0x362   : > { %2572 = vst.msk [vmem:[%s14911_s18 + $0x90] sm:$0xff] %vm88_vm3, %v14853_v41  ;;  %v2244_v41 = vmul.f32 16.0, %v15088_v45  ;;  %vm2316_vm8 = vcmp.lt.f32.partialorder %v15154_v28, 12.0  ;;  %v19837_v45 = vld [vmem:[#allocation132_spill] sm:$0xff] }
 0x363   : > { %19796 = vst [vmem:[#allocation148_spill] sm:$0xff] %v15134_v35  ;;  %vm15206_vm12 = vmand %vm2291_vm6, %vm2316_vm8 }
 0x364   : > { %19797 = vst [vmem:[#allocation149_spill] sm:$0xff] %v15136_v5 }
 0x365   : > { %2573 = vst.msk [vmem:[%s14911_s18 + $0x98] sm:$0xff] %vm88_vm3, %v19798_v0  ;;  %v19803_v0 = vld [vmem:[#allocation57_spill] sm:$0xff] }
 0x366   : > { %2574 = vst.msk [vmem:[%s14911_s18 + $0xa0] sm:$0xff] %vm88_vm3, %v19799_v3  ;;  %v19804_v34 = vcvt.s32.f32 %v19803_v0  ;;  %v15168_v3 = vsub.f32 %v19806_v19, %v2243_v43  ;;  %v2250_v0 = vmul.f32 16.0, %v15115_v57  ;;  %v19808_v19 = vcvt.s32.f32 %v14868_v48 }
 0x367   : > { %19802 = vst [vmem:[#allocation150_spill] sm:$0xff] %v15154_v28  ;;  %v19813_v28 = vfloor.f32 %v15064_v12 }
 0x368   : > { %v15158_v44 = vsub.f32 %v19804_v34, %v2242_v36  ;;  %2575 = vst.msk [vmem:[%s14911_s18 + $0xa8] sm:$0xff] %vm88_vm3, %v15033_v58  ;;  %v2248_v36 = vmul.f32 16.0, %v15108_v61  ;;  %v15184_v43 = vsub.f32 %v19808_v19, %v2244_v41  ;;  %v2252_v34 = vmul.f32 16.0, %v19793_v51 }
 0x369   : > { %19807 = vst [vmem:[#allocation152_spill] sm:$0xff] %v15168_v3  ;;  %vm2318_vm11 = vcmp.lt.f32.partialorder %v15168_v3, 12.0  ;;  %v2254_v41 = vmul.f32 16.0, %v15128_v22  ;;  %v2255_v19 = vmul.f32 16.0, %v15134_v35  ;;  %v19831_v3 = vcvt.s32.f32 %v14880_v32 }
 0x36a   : > { %19805 = vst [vmem:[#allocation151_spill] sm:$0xff] %v15158_v44  ;;  %vm2317_vm9 = vcmp.lt.f32.partialorder %v15158_v44, 12.0  ;;  %vm2319_vm14 = vcmp.lt.f32.partialorder %v15184_v43, 12.0  ;;  %vm2343_vm0 = vmand %vm2293_vm10, %vm2318_vm11  ;;  %v19840_v44 = vld [vmem:[#allocation62_spill] sm:$0xff] }
 0x36b   : > { %2576 = vst.msk [vmem:[%s14911_s18 + $0xb0] sm:$0xff] %vm88_vm3, %v15042_v33  ;;  %vm15220_vm15 = vmand %vm2292_vm7, %vm2317_vm9  ;;  %v15260_v23 = vsub.f32 %v19831_v3, %v2248_v36  ;;  %v19833_v3 = vfloor.f32 %v15104_v54  ;;  %vm2297_vm9 = vcmp.lt.f32.partialorder %v15106_v52, 12.0 }
 0x36c   : > { %2577 = vst.msk [vmem:[%s14911_s18 + $0xb8] sm:$0xff] %vm88_vm3, %v15051_v13  ;;  %v19811_v13 = vcvt.s32.f32 %v19810_v26  ;;  %vm2344_vm6 = vmand %vm2294_vm13, %vm2319_vm14 }
 0x36d   : > { %19809 = vst [vmem:[#allocation153_spill] sm:$0xff] %v15184_v43  ;;  %v15275_v36 = vmul.f32 16.0, %v19833_v3  ;;  %v19843_v3 = vld [vmem:[#allocation42_spill] sm:$0xff]  ;;  %vm2323_vm13 = vcmp.lt.f32.partialorder %v15260_v23, 12.0 }
 0x36e   : > { %2578 = vst.msk [vmem:[%s14911_s18 + $0xc0] sm:$0xff] %vm88_vm3, %v15060_v38  ;;  %v15197_v48 = vsub.f32 %v19811_v13, %v2245_v14  ;;  %v2257_v38 = vmul.f32 16.0, %v19813_v28  ;;  %v19816_v13 = vfloor.f32 %v15066_v53  ;;  %v19817_v14 = vld [vmem:[#allocation59_spill] sm:$0xff]  ;;  %v19822_v28 = vfloor.f32 %v15071_v20 }
 0x36f   : > { %v19818_v33 = vcvt.s32.f32 %v19817_v14  ;;  %v19825_v14 = vfloor.f32 %v15084_v49  ;;  %19832 = vst [vmem:[#allocation157_spill] sm:$0xff] %v15260_v23  ;;  %v19841_v49 = vcvt.s32.f32 %v19840_v44  ;;  %v19850_v44 = vld [vmem:[#allocation44_spill] sm:$0xff] }
 0x370   : > { %19812 = vst [vmem:[#allocation154_spill] sm:$0xff] %v15197_v48  ;;  %v2258_v26 = vmul.f32 16.0, %v19816_v13  ;;  %v15226_v25 = vmul.f32 16.0, %v19822_v28  ;;  %v19823_v13 = vfloor.f32 %v15073_v10  ;;  %v19826_v28 = vfloor.f32 %v15093_v50  ;;  %v19827_v10 = vld [vmem:[#allocation60_spill] sm:$0xff] }
 0x371   : > { %v15214_v58 = vsub.f32 %v19818_v33, %v2246_v2  ;;  %v19824_v33 = vfloor.f32 %v15082_v18  ;;  %v15238_v43 = vmul.f32 16.0, %v19825_v14  ;;  %vm2320_vm2 = vcmp.lt.f32.partialorder %v15197_v48, 12.0 }
 0x372   : > { %v15230_v63 = vmul.f32 16.0, %v19823_v13  ;;  %v15246_v24 = vmul.f32 16.0, %v19826_v28  ;;  %v19828_v13 = vcvt.s32.f32 %v19827_v10  ;;  %v19160_v10 = vmov 0.0   ;;  %vm2345_vm8 = vmand %vm2295_vm1, %vm2320_vm2 }
 0x373   : > { %19819 = vst [vmem:[#allocation155_spill] sm:$0xff] %v15214_v58  ;;  %v15234_v2 = vmul.f32 16.0, %v19824_v33  ;;  %v19830_v33 = vfloor.f32 %v15095_v8  ;;  %vm2321_vm7 = vcmp.lt.f32.partialorder %v15214_v58, 12.0  ;;  %v2367_v28 = vsel %vm15220_vm15, 1.0, %v19160_v10 }
 0x374   : > { %v15250_v20 = vsub.f32 %v19828_v13, %v2247_v16  ;;  %v2366_v16 = vsel %vm15206_vm12, 1.0, %v19160_v10  ;;  %v2368_v32 = vsel %vm2343_vm0, 1.0, %v19160_v10  ;;  %v19834_v13 = vld [vmem:[#allocation61_spill] sm:$0xff]  ;;  %v19838_v8 = vcvt.s32.f32 %v19837_v45  ;;  %vm2346_vm11 = vmand %vm2296_vm4, %vm2321_vm7 }
 0x375   : > { %v15256_v14 = vmul.f32 16.0, %v19830_v33  ;;  %v19835_v33 = vcvt.s32.f32 %v19834_v13  ;;  %v15287_v18 = vsub.f32 %v19841_v49, %v2251_v46  ;;  %v2369_v59 = vsel %vm2344_vm6, 1.0, %v19160_v10  ;;  %v19849_v46 = vld [vmem:[#allocation43_spill] sm:$0xff] }
 0x376   : > { %19829 = vst [vmem:[#allocation156_spill] sm:$0xff] %v15250_v20  ;;  %v15283_v50 = vsub.f32 %v19838_v8, %v2250_v0  ;;  %vm2322_vm10 = vcmp.lt.f32.partialorder %v15250_v20, 12.0  ;;  %v19844_v45 = vcvt.s32.f32 %v14892_v31  ;;  %v19846_v0 = vld [vmem:[#allocation63_spill] sm:$0xff]  ;;  %v15313_v10 = vmul.f32 %v2368_v32, %v19850_v44  ;;  %v19857_v20 = vld [vmem:[#allocation65_spill] sm:$0xff] }
 0x377   : > { %v15279_v48 = vsub.f32 %v19835_v33, %v2249_v27  ;;  %19842 = vst [vmem:[#allocation160_spill] sm:$0xff] %v15287_v18  ;;  %v15295_v27 = vmul.f32 %v2366_v16, %v19843_v3  ;;  %v19847_v13 = vcvt.s32.f32 %v19846_v0  ;;  %v15310_v33 = vmul.f32 %v2367_v28, %v19849_v46  ;;  %vm2347_vm14 = vmand %vm2297_vm9, %vm2322_vm10 }
 0x378   : > { %19839 = vst [vmem:[#allocation159_spill] sm:$0xff] %v15283_v50  ;;  %v15299_v8 = vsub.f32 %v19844_v45, %v2252_v34  ;;  %vm2298_vm12 = vcmp.lt.f32.partialorder %v15108_v61, 12.0  ;;  %v19851_v31 = vmov 0.0   ;;  %v19852_v16 = vcvt.s32.f32 %v14898_v11  ;;  %v19854_v11 = vld [vmem:[#allocation64_spill] sm:$0xff] }
 0x379   : > { %19836 = vst [vmem:[#allocation158_spill] sm:$0xff] %v15279_v48  ;;  %v15303_v49 = vsub.f32 %v19847_v13, %v2253_v4  ;;  %v2370_v34 = vsel %vm2345_vm8, 1.0, %v19851_v31  ;;  %v2416_v4 = vsel %vm88_vm3, %v15295_v27, 0.0  ;;  %v15325_v28 = vmul.f32 %v2369_v59, %v14805_v7  ;;  %vm2348_vm1 = vmand %vm2298_vm12, %vm2323_vm13 }
 0x37a   : > { %19845 = vst [vmem:[#allocation161_spill] sm:$0xff] %v15299_v8  ;;  %v15322_v45 = vsub.f32 %v19852_v16, %v2254_v41  ;;  %v2417_v32 = vsel %vm88_vm3, %v15310_v33, 0.0  ;;  %v2419_v0 = vsel %vm88_vm3, %v15313_v10, 0.0  ;;  %vm2299_vm15 = vcmp.lt.f32.partialorder %v15110_v60, 12.0 }
 0x37b   : > { %19848 = vst [vmem:[#allocation162_spill] sm:$0xff] %v15303_v49  ;;  %vm2324_vm0 = vcmp.lt.f32.partialorder %v15279_v48, 12.0  ;;  %v2371_v13 = vsel %vm2346_vm11, 1.0, %v19851_v31  ;;  %v2418_v23 = vadd.f32 %v2417_v32, %v2416_v4  ;;  %v19855_v41 = vcvt.s32.f32 %v19854_v11  ;;  %v19860_v32 = vld [vmem:[#allocation66_spill] sm:$0xff]  ;;  %v19862_v11 = vld [vmem:[#allocation67_spill] sm:$0xff] }
 0x37c   : > { %19853 = vst [vmem:[#allocation163_spill] sm:$0xff] %v15322_v45  ;;  %v19858_v59 = vcvt.s32.f32 %v19857_v20  ;;  %v15345_v58 = vmul.f32 %v2370_v34, %v14808_v21  ;;  %v2421_v48 = vsel %vm88_vm3, %v15325_v28, 0.0  ;;  %vm2300_vm2 = vcmp.lt.f32.partialorder %v15115_v57, 12.0  ;;  %vm2349_vm6 = vmand %vm2299_vm15, %vm2324_vm0 }
 0x37d   : > { %v15336_v16 = vsub.f32 %v19855_v41, %v2255_v19  ;;  %vm2325_vm4 = vcmp.lt.f32.partialorder %v15283_v50, 12.0  ;;  %v2372_v19 = vsel %vm2347_vm14, 1.0, %v19851_v31  ;;  %v2420_v4 = vadd.f32 %v2419_v0, %v2418_v23  ;;  %v19864_v0 = vld [vmem:[#allocation68_spill] sm:$0xff] }
 0x37e   : > { %v15340_v52 = vsub.f32 %v19858_v59, %v2256_v17  ;;  %v19861_v20 = vcvt.s32.f32 %v19860_v32  ;;  %v19863_v41 = vcvt.s32.f32 %v19862_v11  ;;  %v15363_v34 = vmul.f32 %v2371_v13, %v14811_v62  ;;  %vm2350_vm9 = vmand %vm2300_vm2, %vm2325_vm4 }
 0x37f   : > { %19856 = vst [vmem:[#allocation164_spill] sm:$0xff] %v15336_v16  ;;  %v2423_v50 = vsel %vm88_vm3, %v15345_v58, 0.0  ;;  %vm2301_vm7 = vcmp.lt.f32.partialorder %v19791_v29, 12.0  ;;  %vm2326_vm8 = vcmp.lt.f32.partialorder %v15287_v18, 12.0  ;;  %v2422_v23 = vadd.f32 %v2421_v48, %v2420_v4 }
 0x380   : > { %19859 = vst [vmem:[#allocation165_spill] sm:$0xff] %v15340_v52  ;;  %v15354_v17 = vsub.f32 %v19861_v20, %v2257_v38  ;;  %v15358_v59 = vsub.f32 %v19863_v41, %v2258_v26  ;;  %v2373_v38 = vsel %vm2348_vm1, 1.0, %v19851_v31  ;;  %v19865_v26 = vcvt.s32.f32 %v19864_v0  ;;  %vm15394_vm14 = vmand %vm2301_vm7, %vm2326_vm8 }
 0x381   : > { %v19866_v20 = vcvt.s32.f32 %v14923_v42  ;;  %v15383_v11 = vmul.f32 %v2372_v19, %v14814_v39  ;;  %v2425_v41 = vsel %vm88_vm3, %v15363_v34, 0.0  ;;  %vm2302_vm10 = vcmp.lt.f32.partialorder %v19793_v51, 12.0  ;;  %v19869_v42 = vld [vmem:[#allocation45_spill] sm:$0xff] }
 0x382   : > { %v15373_v32 = vsub.f32 %v19865_v26, %v15226_v25  ;;  %vm2327_vm11 = vcmp.lt.f32.partialorder %v15299_v8, 12.0  ;;  %v2374_v25 = vsel %vm2349_vm6, 1.0, %v19851_v31  ;;  %v2424_v48 = vadd.f32 %v2423_v50, %v2422_v23 }
 0x383   : > { %v15378_v13 = vsub.f32 %v19866_v20, %v15230_v63  ;;  %vm2303_vm12 = vcmp.lt.f32.partialorder %v15126_v30, 12.0  ;;  %vm2328_vm13 = vcmp.lt.f32.partialorder %v15303_v49, 12.0  ;;  %v15399_v19 = vmul.f32 %v2373_v38, %v19869_v42  ;;  %vm2352_vm15 = vmand %vm2302_vm10, %vm2327_vm11 }
 0x384   : > { %v2427_v4 = vsel %vm88_vm3, %v15383_v11, 0.0  ;;  %v19870_v0 = vcvt.s32.f32 %v14926_v56  ;;  %v19871_v23 = vcvt.s32.f32 %v14929_v6  ;;  %v2375_v20 = vsel %vm2350_vm9, 1.0, %v19851_v31  ;;  %v19874_v56 = vld [vmem:[#allocation99_spill] sm:$0xff]  ;;  %vm2353_vm2 = vmand %vm2303_vm12, %vm2328_vm13 }
 0x385   : > { %v2426_v8 = vadd.f32 %v2425_v41, %v2424_v48  ;;  %v19872_v38 = vcvt.s32.f32 %v14932_v55  ;;  %v19873_v29 = vcvt.s32.f32 %v14935_v40  ;;  %v15427_v6 = vmul.f32 %v2374_v25, %v19874_v56  ;;  %v19907_v48 = vld [vmem:[#allocation50_spill] sm:$0xff] }
 0x386   : > { %v15406_v50 = vsub.f32 %v19870_v0, %v15234_v2  ;;  %v15411_v26 = vsub.f32 %v19871_v23, %v15238_v43  ;;  %v2429_v43 = vsel %vm88_vm3, %v15399_v19, 0.0  ;;  %vm2304_vm0 = vcmp.lt.f32.partialorder %v15128_v22, 12.0 }
 0x387   : > { %v15417_v18 = vsub.f32 %v19872_v38, %v15246_v24  ;;  %v15422_v57 = vsub.f32 %v19873_v29, %v15256_v14  ;;  %vm2329_vm1 = vcmp.lt.f32.partialorder %v15322_v45, 12.0  ;;  %v2376_v55 = vsel %vm15394_vm14, 1.0, %v19851_v31 }
 0x388   : > { %v2428_v40 = vadd.f32 %v2427_v4, %v2426_v8  ;;  %vm2305_vm4 = vcmp.lt.f32.partialorder %v15134_v35, 12.0  ;;  %vm2330_vm6 = vcmp.lt.f32.partialorder %v15336_v16, 12.0  ;;  %v15443_v24 = vmul.f32 %v2375_v20, %v14826_v37  ;;  %vm2354_vm9 = vmand %vm2304_vm0, %vm2329_vm1 }
 0x389   : > { %v2431_v29 = vsel %vm88_vm3, %v15427_v6, 0.0  ;;  %v19875_v2 = vcvt.s32.f32 %v14938_v15  ;;  %vm2306_vm7 = vcmp.lt.f32.partialorder %v15136_v5, 12.0  ;;  %v2377_v41 = vsel %vm2352_vm15, 1.0, %v19851_v31  ;;  %vm2355_vm13 = vmand %vm2305_vm4, %vm2330_vm6 }
 0x38a   : > { %v2430_v8 = vadd.f32 %v2429_v43, %v2428_v40  ;;  %v19876_v25 = vfloor.f32 %v15064_v12  ;;  %v2378_v63 = vsel %vm2353_vm2, 1.0, %v19851_v31  ;;  %v15462_v4 = vmul.f32 %v2376_v55, %v14829_v9  ;;  %v19882_v12 = vld [vmem:[#allocation73_spill] sm:$0xff]  ;;  %v19886_v43 = vld [vmem:[#allocation74_spill] sm:$0xff]  ;;  %v19890_v40 = vld [vmem:[#allocation47_spill] sm:$0xff] }
 0x38b   : > { %v15450_v14 = vsub.f32 %v19875_v2, %v15275_v36  ;;  %v2433_v15 = vsel %vm88_vm3, %v15443_v24, 0.0  ;;  %v19879_v36 = vfloor.f32 %v15066_v53  ;;  %v19883_v23 = vfloor.f32 %v19882_v12  ;;  %v19891_v12 = vld [vmem:[#allocation48_spill] sm:$0xff] }
 0x38c   : > { %vm15456_vm8 = vcmp.lt.f32.partialorder %v19876_v25, 12.0  ;;  %vm2331_vm12 = vcmp.lt.f32.partialorder %v15340_v52, 12.0  ;;  %v2432_v38 = vadd.f32 %v2431_v29, %v2430_v8  ;;  %v19887_v53 = vfloor.f32 %v19886_v43 }
 0x38d   : > { %vm15468_vm10 = vcmp.lt.f32.partialorder %v19879_v36, 12.0  ;;  %vm15474_vm11 = vcmp.lt.f32.partialorder %v19883_v23, 12.0  ;;  %vm2332_vm15 = vcmp.lt.f32.partialorder %v15354_v17, 12.0  ;;  %v15491_v2 = vmul.f32 %v2377_v41, %v19890_v40  ;;  %vm2356_vm0 = vmand %vm2306_vm7, %vm2331_vm12 }
 0x38e   : > { %vm15485_vm14 = vcmp.lt.f32.partialorder %v19887_v53, 12.0  ;;  %v2435_v25 = vsel %vm88_vm3, %v15462_v4, 0.0  ;;  %v2379_v36 = vsel %vm2354_vm9, 1.0, %v19851_v31  ;;  %v15497_v23 = vmul.f32 %v2378_v63, %v19891_v12  ;;  %v19892_v63 = vld [vmem:[#allocation75_spill] sm:$0xff]  ;;  %vm15528_vm7 = vmand %vm15456_vm8, %vm2332_vm15 }
 0x38f   : > { %v2434_v29 = vadd.f32 %v2433_v15, %v2432_v38  ;;  %v2472_v8 = vmul.f32 %v15295_v27, %v19843_v3  ;;  %v2380_v43 = vsel %vm2355_vm13, 1.0, %v19851_v31  ;;  %v2437_v41 = vsel %vm88_vm3, %v15491_v2, 0.0  ;;  %v19896_v3 = vld [vmem:[#allocation76_spill] sm:$0xff]  ;;  %v19922_v15 = vld [vmem:[#allocation54_spill] sm:$0xff]  ;;  %v19923_v38 = vld [vmem:[#allocation55_spill] sm:$0xff] }
 0x390   : > { %v2473_v53 = vmul.f32 %v15310_v33, %v19849_v46  ;;  %v2474_v52 = vmul.f32 %v15313_v10, %v19850_v44  ;;  %v19893_v16 = vfloor.f32 %v19892_v63  ;;  %v19897_v27 = vfloor.f32 %v19896_v3  ;;  %v19902_v46 = vld [vmem:[#allocation49_spill] sm:$0xff] }
 0x391   : > { %vm2333_vm4 = vcmp.lt.f32.partialorder %v15358_v59, 12.0  ;;  %v2436_v5 = vadd.f32 %v2435_v25, %v2434_v29  ;;  %vm2334_vm6 = vcmp.lt.f32.partialorder %v15373_v32, 12.0  ;;  %v15533_v33 = vmul.f32 %v2379_v36, %v19902_v46  ;;  %v19903_v59 = vld [vmem:[#allocation77_spill] sm:$0xff]  ;;  %v19924_v29 = vld [vmem:[#allocation56_spill] sm:$0xff] }
 0x392   : > { %vm15512_vm1 = vcmp.lt.f32.partialorder %v19893_v16, 12.0  ;;  %vm15518_vm2 = vcmp.lt.f32.partialorder %v19897_v27, 12.0  ;;  %v2439_v44 = vsel %vm88_vm3, %v15497_v23, 0.0  ;;  %v2475_v16 = vmul.f32 %v15325_v28, %v14805_v7  ;;  %vm15552_vm8 = vmand %vm15468_vm10, %vm2333_vm4  ;;  %v19921_v27 = vld [vmem:[#allocation53_spill] sm:$0xff] }
 0x393   : > { %v19904_v25 = vfloor.f32 %v19903_v59  ;;  %v2381_v17 = vsel %vm2356_vm0, 1.0, %v19851_v31  ;;  %v15547_v63 = vmul.f32 %v2380_v43, %v19907_v48  ;;  %v2438_v3 = vadd.f32 %v2437_v41, %v2436_v5  ;;  %vm15576_vm13 = vmand %vm15474_vm11, %vm2334_vm6 }
 0x394   : > { %v2497_v36 = vsel %vm88_vm3, %v2472_v8, 0.0  ;;  %v2441_v7 = vsel %vm88_vm3, %v15533_v33, 0.0  ;;  %v2476_v28 = vmul.f32 %v15345_v58, %v14808_v21  ;;  %v2498_v59 = vsel %vm88_vm3, %v2473_v53, 0.0  ;;  %v19916_v58 = vld [vmem:[#allocation51_spill] sm:$0xff] }
 0x395   : > { %vm15541_vm9 = vcmp.lt.f32.partialorder %v19904_v25, 12.0  ;;  %v2500_v43 = vsel %vm88_vm3, %v2474_v52, 0.0  ;;  %v19910_v25 = vld [vmem:[#allocation78_spill] sm:$0xff]  ;;  %vm2335_vm10 = vcmp.lt.f32.partialorder %v15378_v13, 12.0  ;;  %v2382_v0 = vsel %vm15528_vm7, 1.0, %v19851_v31 }
 0x396   : > { %v19911_v5 = vfloor.f32 %v19910_v25  ;;  %v2440_v41 = vadd.f32 %v2439_v44, %v2438_v3  ;;  %v2499_v35 = vadd.f32 %v2498_v59, %v2497_v36  ;;  %v15581_v52 = vmul.f32 %v2381_v17, %v19916_v58  ;;  %vm2360_vm0 = vmand %vm15485_vm14, %vm2335_vm10 }
 0x397   : > { %v2443_v13 = vsel %vm88_vm3, %v15547_v63, 0.0  ;;  %v2477_v53 = vmul.f32 %v15363_v34, %v14811_v62  ;;  %v2502_v10 = vsel %vm88_vm3, %v2475_v16, 0.0  ;;  %v19917_v44 = vfloor.f32 %v15104_v54  ;;  %v19920_v62 = vld [vmem:[#allocation52_spill] sm:$0xff] }
 0x398   : > { %vm15564_vm12 = vcmp.lt.f32.partialorder %v19911_v5, 12.0  ;;  %vm2336_vm11 = vcmp.lt.f32.partialorder %v15406_v50, 12.0  ;;  %v2383_v20 = vsel %vm15552_vm8, 1.0, %v19851_v31  ;;  %v2442_v17 = vadd.f32 %v2441_v7, %v2440_v41 }
 0x399   : > { %vm15590_vm15 = vcmp.lt.f32.partialorder %v19917_v44, 12.0  ;;  %v2501_v3 = vadd.f32 %v2500_v43, %v2499_v35  ;;  %v15601_v34 = vmul.f32 %v2382_v0, %v19920_v62  ;;  %v2445_v54 = vsel %vm88_vm3, %v15581_v52, 0.0  ;;  %vm2361_vm14 = vmand %vm15512_vm1, %vm2336_vm11 }
 0x39a   : > { %v2478_v16 = vmul.f32 %v15383_v11, %v14814_v39  ;;  %v2504_v50 = vsel %vm88_vm3, %v2476_v28, 0.0  ;;  %vm2337_vm4 = vcmp.lt.f32.partialorder %v15411_v26, 12.0  ;;  %v2384_v35 = vsel %vm15576_vm13, 1.0, %v19851_v31 }
 0x39b   : > { %v2444_v36 = vadd.f32 %v2443_v13, %v2442_v17  ;;  %v2503_v55 = vadd.f32 %v2502_v10, %v2501_v3  ;;  %v15615_v7 = vmul.f32 %v2383_v20, %v19921_v27  ;;  %v2447_v59 = vsel %vm88_vm3, %v15601_v34, 0.0  ;;  %vm2362_vm1 = vmand %vm15518_vm2, %vm2337_vm4 }
 0x39c   : > { %v2479_v39 = vmul.f32 %v15399_v19, %v19869_v42  ;;  %v2506_v11 = vsel %vm88_vm3, %v2477_v53, 0.0  ;;  %vm2338_vm6 = vcmp.lt.f32.partialorder %v15417_v18, 12.0  ;;  %v2385_v26 = vsel %vm2360_vm0, 1.0, %v19851_v31 }
 0x39d   : > { %v2446_v28 = vadd.f32 %v2445_v54, %v2444_v36  ;;  %v2505_v43 = vadd.f32 %v2504_v50, %v2503_v55  ;;  %v15627_v25 = vmul.f32 %v2384_v35, %v19922_v15  ;;  %v2449_v5 = vsel %vm88_vm3, %v15615_v7, 0.0  ;;  %vm2363_vm2 = vmand %vm15541_vm9, %vm2338_vm6  ;;  %v19925_v54 = vld [vmem:[#allocation69_spill] sm:$0xff]  ;;  %v19926_v55 = vld [vmem:[#allocation70_spill] sm:$0xff] }
 0x39e   : > { %v2480_v42 = vmul.f32 %v15427_v6, %v19874_v56  ;;  %v2508_v19 = vsel %vm88_vm3, %v2478_v16, 0.0  ;;  %vm2339_vm7 = vcmp.lt.f32.partialorder %v15422_v57, 12.0  ;;  %v2386_v18 = vsel %vm2361_vm14, 1.0, %v19851_v31 }
 0x39f   : > { %v2448_v0 = vadd.f32 %v2447_v59, %v2446_v28  ;;  %v2507_v41 = vadd.f32 %v2506_v11, %v2505_v43  ;;  %v2410_v21 = vmul.f32 %v2385_v26, %v19923_v38  ;;  %v2451_v13 = vsel %vm88_vm3, %v15627_v25, 0.0  ;;  %vm2364_vm10 = vmand %vm15564_vm12, %vm2339_vm7 }
 0x3a0   : > { %v2481_v53 = vmul.f32 %v15443_v24, %v14826_v37  ;;  %v2510_v56 = vsel %vm88_vm3, %v2479_v39, 0.0  ;;  %vm2340_vm8 = vcmp.lt.f32.partialorder %v15450_v14, 12.0  ;;  %v2387_v57 = vsel %vm2362_vm1, 1.0, %v19851_v31 }
 0x3a1   : > { %v2450_v6 = vadd.f32 %v2449_v5, %v2448_v0  ;;  %v2509_v10 = vadd.f32 %v2508_v19, %v2507_v41  ;;  %v2411_v44 = vmul.f32 %v2386_v18, %v19924_v29  ;;  %v2453_v20 = vsel %vm88_vm3, %v2410_v21, 0.0  ;;  %vm2365_vm9 = vmand %vm15590_vm15, %vm2340_vm8  ;;  %v19928_v41 = vld [vmem:[#allocation72_spill] sm:$0xff] }
 0x3a2   : > { %v2482_v17 = vmul.f32 %v15462_v4, %v14829_v9  ;;  %v2512_v37 = vsel %vm88_vm3, %v2480_v42, 0.0  ;;  %v2388_v24 = vsel %vm2363_vm2, 1.0, %v19851_v31  ;;  %v2412_v16 = vmul.f32 %v2387_v57, %v19925_v54 }
 0x3a3   : > { %v2452_v3 = vadd.f32 %v2451_v13, %v2450_v6  ;;  %v2511_v14 = vadd.f32 %v2510_v56, %v2509_v10  ;;  %v2455_v8 = vsel %vm88_vm3, %v2411_v44, 0.0  ;;  %v2483_v50 = vmul.f32 %v15491_v2, %v19890_v40  ;;  %v19927_v40 = vld [vmem:[#allocation71_spill] sm:$0xff] }
 0x3a4   : > { %v2514_v35 = vsel %vm88_vm3, %v2481_v53, 0.0  ;;  %v2389_v9 = vsel %vm2364_vm10, 1.0, %v19851_v31  ;;  %v2413_v59 = vmul.f32 %v2388_v24, %v19926_v55  ;;  %v2457_v39 = vsel %vm88_vm3, %v2412_v16, 0.0 }
 0x3a5   : > { %v2454_v4 = vadd.f32 %v2453_v20, %v2452_v3  ;;  %v2513_v36 = vadd.f32 %v2512_v37, %v2511_v14  ;;  %v2484_v32 = vmul.f32 %v15497_v23, %v19891_v12  ;;  %v2516_v11 = vsel %vm88_vm3, %v2482_v17, 0.0 }
 0x3a6   : > { %v2390_v26 = vsel %vm2365_vm9, 1.0, %v19851_v31  ;;  %v2414_v2 = vmul.f32 %v2389_v9, %v19927_v40  ;;  %v2459_v5 = vsel %vm88_vm3, %v2413_v59, 0.0  ;;  %v2485_v42 = vmul.f32 %v15533_v33, %v19902_v46 }
 0x3a7   : > { %v2456_v28 = vadd.f32 %v2455_v8, %v2454_v4  ;;  %v2515_v43 = vadd.f32 %v2514_v35, %v2513_v36  ;;  %v2518_v19 = vsel %vm88_vm3, %v2483_v50, 0.0  ;;  %v2415_v13 = vmul.f32 %v2390_v26, %v19928_v41 }
 0x3a8   : > { %v2461_v12 = vsel %vm88_vm3, %v2414_v2, 0.0  ;;  %v2486_v31 = vmul.f32 %v15547_v63, %v19907_v48  ;;  %v2520_v23 = vsel %vm88_vm3, %v2484_v32, 0.0  ;;  %v2487_v46 = vmul.f32 %v15581_v52, %v19916_v58 }
 0x3a9   : > { %v2458_v18 = vadd.f32 %v2457_v39, %v2456_v28  ;;  %v2517_v0 = vadd.f32 %v2516_v11, %v2515_v43  ;;  %v2463_v57 = vsel %vm88_vm3, %v2415_v13, 0.0  ;;  %v2522_v33 = vsel %vm88_vm3, %v2485_v42, 0.0 }
 0x3aa   : > { %v2488_v20 = vmul.f32 %v15601_v34, %v19920_v62  ;;  %v2524_v17 = vsel %vm88_vm3, %v2486_v31, 0.0  ;;  %v2489_v63 = vmul.f32 %v15615_v7, %v19921_v27  ;;  %v2526_v24 = vsel %vm88_vm3, %v2487_v46, 0.0 }
 0x3ab   : > { %v2460_v53 = vadd.f32 %v2459_v5, %v2458_v18  ;;  %v2519_v56 = vadd.f32 %v2518_v19, %v2517_v0  ;;  %v2490_v58 = vmul.f32 %v15627_v25, %v19922_v15  ;;  %v2491_v62 = vmul.f32 %v2410_v21, %v19923_v38 }
 0x3ac   : > { %v2528_v52 = vsel %vm88_vm3, %v2488_v20, 0.0  ;;  %v2530_v34 = vsel %vm88_vm3, %v2489_v63, 0.0  ;;  %v2492_v4 = vmul.f32 %v2411_v44, %v19924_v29  ;;  %v2493_v39 = vmul.f32 %v2412_v16, %v19925_v54  ;;  %v19929_v44 = vld [vmem:[#allocation17_spill] sm:$0xff] }
 0x3ad   : > { %v2462_v6 = vadd.f32 %v2461_v12, %v2460_v53  ;;  %v2521_v10 = vadd.f32 %v2520_v23, %v2519_v56  ;;  %v2532_v27 = vsel %vm88_vm3, %v2490_v58, 0.0  ;;  %v2534_v15 = vsel %vm88_vm3, %v2491_v62, 0.0  ;;  %v19930_v56 = vld [vmem:[#allocation16_spill] sm:$0xff] }
 0x3ae   : > { %v2494_v11 = vmul.f32 %v2413_v59, %v19926_v55  ;;  %v2536_v38 = vsel %vm88_vm3, %v2492_v4, 0.0  ;;  %v2495_v28 = vmul.f32 %v2414_v2, %v19927_v40  ;;  %v2538_v29 = vsel %vm88_vm3, %v2493_v39, 0.0 }
 0x3af   : > { %v2464_v37 = vadd.f32 %v2463_v57, %v2462_v6  ;;  %v2523_v48 = vadd.f32 %v2522_v33, %v2521_v10  ;;  %v2496_v42 = vmul.f32 %v2415_v13, %v19928_v41 }
 0x3b0   : > { %v2540_v54 = vsel %vm88_vm3, %v2494_v11, 0.0  ;;  %v2542_v19 = vsel %vm88_vm3, %v2495_v28, 0.0 }
 0x3b1   : > { %v2465_v3 = vrot.slane %v2464_v37, 4  ;;  %v2525_v14 = vadd.f32 %v2524_v17, %v2523_v48  ;;  %v2544_v55 = vsel %vm88_vm3, %v2496_v42, 0.0 }
 0x3b3   : > { %v2466_v8 = vadd.f32 %v2465_v3, %v2464_v37  ;;  %v2527_v50 = vadd.f32 %v2526_v24, %v2525_v14 }
 0x3b5   : > { %v2467_v35 = vrot.slane %v2466_v8, 2  ;;  %v2529_v9 = vadd.f32 %v2528_v52, %v2527_v50 }
 0x3b7   : > { %v2468_v7 = vadd.f32 %v2467_v35, %v2466_v8  ;;  %v2531_v36 = vadd.f32 %v2530_v34, %v2529_v9 }
 0x3b9   : > { %v2469_v25 = vrot.slane %v2468_v7, 1  ;;  %v2533_v32 = vadd.f32 %v2532_v27, %v2531_v36 }
 0x3bb   : > { %v2470_v21 = vadd.f32 %v2469_v25, %v2468_v7  ;;  %v2535_v26 = vadd.f32 %v2534_v15, %v2533_v32 }
 0x3bd   : > { %v2471_v43 = vadd.f32 %v19929_v44, %v2470_v21   ;;  %v2537_v5 = vadd.f32 %v2536_v38, %v2535_v26 }
 0x3bf   : > { %v2539_v16 = vadd.f32 %v2538_v29, %v2537_v5  ;;  %v19932_v27 = vmov %v2471_v43  ;;  %v15714_v41 = vmul.f32 (%p159_p0), 0.0034722222, %v2471_v43 }
 0x3c1   : > { %v2541_v18 = vadd.f32 %v2540_v54, %v2539_v16  ;;  %v2581_v46 = vmul.f32 (%p159_p0), %v15714_v41, %v15714_v41 }
 0x3c3   : > { %v2543_v59 = vadd.f32 %v2542_v19, %v2541_v18 }
 0x3c5   : > { %v2545_v0 = vadd.f32 %v2544_v55, %v2543_v59 }
 0x3c7   : > { %v2546_v12 = vrot.slane %v2545_v0, 4 }
 0x3c9   : > { %v2547_v31 = vadd.f32 %v2546_v12, %v2545_v0 }
 0x3cb   : > { %v2548_v40 = vrot.slane %v2547_v31, 2 }
 0x3cd   : > { %v2549_v2 = vadd.f32 %v2548_v40, %v2547_v31 }
 0x3cf   : > { %v2550_v23 = vrot.slane %v2549_v2, 1 }
 0x3d1   : > { %v2551_v53 = vadd.f32 %v2550_v23, %v2549_v2  ;;  %161 = sbr.rel (!%p159_p0) target bundleno = 394 (0x18a), region = 203 }
 0x3d3   : > { %v2552_v57 = vadd.f32 %v19930_v56, %v2551_v53  }
 0x3d5   : > { %v19931_v26 = vmov %v2552_v57  ;;  %v2580_v13 = vmul.f32 (%p159_p0), 0.0034722222, %v2552_v57 }
 0x3d7   :  { %v2582_v33 = vsub.f32 %v2580_v13, %v2581_v46 }
 0x3d9   :  { %v2583_v6 = vadd.f32 1e-05, %v2582_v33 }
 0x3db   :  { %10751 = vrsqrt.f32 %v2583_v6  ;;  %vm2590_vm12 = vweird.f32 %v2583_v6 }
 0x3e1   :  { %v10752_v10 = vpop.eup %10751 }
 0x3e2   :  { %v2585_v20 = vmul.f32 %v10752_v10, %v2583_v6  ;;  %vm2591_vm13 = vweird.f32 %v10752_v10 }
 0x3e3   :  { %vm2592_vm15 = vmor %vm2590_vm12, %vm2591_vm13 }
 0x3e4   :  { %v2586_v17 = vmul.f32 %v10752_v10, %v2585_v20 }
 0x3e6   :  { %v2587_v37 = vmul.f32 0.5, %v2586_v17 }
 0x3e8   :  { %v2588_v48 = vsub.f32 1.5, %v2587_v37 }
 0x3ea   :  { %v2589_v63 = vmul.f32 %v10752_v10, %v2588_v48 }
 0x3ec   :  { %v15718_v24 = vsel %vm2592_vm15, %v10752_v10, %v2589_v63 }
 0x3ed LB: > { %s9213_s19 = sshll.u32 %s11615_s0, 8  ;;  %s2677_s20 = scalar_lea.vmem [#allocation5], %s11615_s0  ;;  %s11615_s0 = sphi %s15720_s0, %s2599_s0  }
 0x3ee   : > { %v15727_v3 = vld [vmem:[%s2677_s20] ss:$0 sm:$0xff]  ;;  %s15729_s21 = scalar_lea.vmem [#allocation2], %s9213_s19  ;;  %s2599_s0 = sadd.s32 1, %s11615_s0  }
 0x3ef   : > { %v2602_v14 = vld [vmem:[%s15729_s21] sm:$0xff]  ;;  %v2603_v58 = vld [vmem:[%s15729_s21 + $0x8] sm:$0xff]  ;;  %v2604_v52 = vld [vmem:[%s15729_s21 + $0x10] sm:$0xff]  ;;  %p2596_p1 = scmp.ge.s32.totalorder %s2599_s0, 2  }
 0x3f0   : > { %v2627_v8 = vsub.f32 %v2602_v14, %v15714_v41  ;;  %v2628_v50 = vsub.f32 %v2603_v58, %v15714_v41  ;;  %v2629_v62 = vsub.f32 %v2604_v52, %v15714_v41  ;;  %v2605_v34 = vld [vmem:[%s15729_s21 + $0x18] sm:$0xff]  ;;  %v2606_v35 = vld [vmem:[%s15729_s21 + $0x20] sm:$0xff]  ;;  %v2607_v9 = vld [vmem:[%s15729_s21 + $0x28] sm:$0xff]  ;;  %s15888_s22 = smov (%p2596_p1), 0  }
 0x3f1   : > { %v2630_v4 = vsub.f32 %v2605_v34, %v15714_v41  ;;  %v2631_v27 = vsub.f32 %v2606_v35, %v15714_v41  ;;  %v2632_v7 = vsub.f32 %v2607_v9, %v15714_v41  ;;  %v2608_v36 = vld [vmem:[%s15729_s21 + $0x30] sm:$0xff]  ;;  %v2609_v39 = vld [vmem:[%s15729_s21 + $0x38] sm:$0xff]  ;;  %v2610_v18 = vld [vmem:[%s15729_s21 + $0x40] sm:$0xff] }
 0x3f2   : > { %v2652_v15 = vmul.f32 %v2627_v8, %v15718_v24  ;;  %v2653_v25 = vmul.f32 %v2628_v50, %v15718_v24  ;;  %v2654_v32 = vmul.f32 %v2629_v62, %v15718_v24  ;;  %v2633_v11 = vsub.f32 %v2608_v36, %v15714_v41  ;;  %v2611_v55 = vld [vmem:[%s15729_s21 + $0x48] sm:$0xff]  ;;  %v2612_v59 = vld [vmem:[%s15729_s21 + $0x50] sm:$0xff]  ;;  %v2613_v2 = vld [vmem:[%s15729_s21 + $0x58] sm:$0xff] }
 0x3f3   : > { %v2655_v38 = vmul.f32 %v2630_v4, %v15718_v24  ;;  %v2656_v21 = vmul.f32 %v2631_v27, %v15718_v24  ;;  %v2657_v26 = vmul.f32 %v2632_v7, %v15718_v24  ;;  %v2634_v28 = vsub.f32 %v2609_v39, %v15714_v41  ;;  %v2614_v23 = vld [vmem:[%s15729_s21 + $0x60] sm:$0xff]  ;;  %v2615_v53 = vld [vmem:[%s15729_s21 + $0x68] sm:$0xff]  ;;  %v2616_v33 = vld [vmem:[%s15729_s21 + $0x70] sm:$0xff] }
 0x3f4   : > { %v2680_v29 = vadd.f32 %v15727_v3, %v2652_v15  ;;  %v2681_v44 = vadd.f32 %v15727_v3, %v2653_v25  ;;  %v2682_v43 = vadd.f32 %v15727_v3, %v2654_v32  ;;  %v2658_v5 = vmul.f32 %v2633_v11, %v15718_v24  ;;  %v2617_v37 = vld [vmem:[%s15729_s21 + $0x78] sm:$0xff]  ;;  %v2618_v15 = vld [vmem:[%s15729_s21 + $0x80] sm:$0xff] }
 0x3f5   : > { %v2683_v42 = vadd.f32 %v15727_v3, %v2655_v38  ;;  %v2684_v54 = vadd.f32 %v15727_v3, %v2656_v21  ;;  %v2685_v16 = vadd.f32 %v15727_v3, %v2657_v26  ;;  %v2659_v19 = vmul.f32 %v2634_v28, %v15718_v24  ;;  %v2619_v21 = vld [vmem:[%s15729_s21 + $0x88] sm:$0xff]  ;;  %v2620_v26 = vld [vmem:[%s15729_s21 + $0x90] sm:$0xff]  ;;  %v2621_v28 = vld [vmem:[%s15729_s21 + $0x98] sm:$0xff] }
 0x3f6   : > { %v2705_v0 = vmax.f32 %v2680_v29, 0.0  ;;  %v2706_v12 = vmax.f32 %v2681_v44, 0.0  ;;  %v2707_v31 = vmax.f32 %v2682_v43, 0.0  ;;  %v2686_v40 = vadd.f32 %v15727_v3, %v2658_v5 }
 0x3f7   : > { %v2708_v56 = vmax.f32 %v2683_v42, 0.0  ;;  %v2709_v57 = vmax.f32 %v2684_v54, 0.0  ;;  %v2710_v13 = vmax.f32 %v2685_v16, 0.0  ;;  %v2687_v46 = vadd.f32 %v15727_v3, %v2659_v19  ;;  %v2622_v42 = vld [vmem:[%s15729_s21 + $0xa0] sm:$0xff]  ;;  %v2623_v54 = vld [vmem:[%s15729_s21 + $0xa8] sm:$0xff] }
 0x3f8   : > { %2730 = vst.msk [vmem:[%s15729_s21] sm:$0xff] %vm88_vm3, %v2705_v0  ;;  %v2711_v6 = vmax.f32 %v2686_v40, 0.0  ;;  %v2635_v10 = vsub.f32 %v2610_v18, %v15714_v41  ;;  %v2636_v20 = vsub.f32 %v2611_v55, %v15714_v41  ;;  %v2637_v17 = vsub.f32 %v2612_v59, %v15714_v41  ;;  %v2624_v59 = vld [vmem:[%s15729_s21 + $0xb0] sm:$0xff] }
 0x3f9   : > { %2731 = vst.msk [vmem:[%s15729_s21 + $0x8] sm:$0xff] %vm88_vm3, %v2706_v12  ;;  %v2712_v48 = vmax.f32 %v2687_v46, 0.0  ;;  %v2638_v63 = vsub.f32 %v2613_v2, %v15714_v41  ;;  %v2639_v14 = vsub.f32 %v2614_v23, %v15714_v41  ;;  %v2640_v58 = vsub.f32 %v2615_v53, %v15714_v41  ;;  %v2625_v2 = vld [vmem:[%s15729_s21 + $0xb8] sm:$0xff] }
 0x3fa   : > { %2732 = vst.msk [vmem:[%s15729_s21 + $0x10] sm:$0xff] %vm88_vm3, %v2707_v31  ;;  %v2660_v52 = vmul.f32 %v2635_v10, %v15718_v24  ;;  %v2661_v8 = vmul.f32 %v2636_v20, %v15718_v24  ;;  %v2662_v50 = vmul.f32 %v2637_v17, %v15718_v24  ;;  %v2641_v62 = vsub.f32 %v2616_v33, %v15714_v41 }
 0x3fb   : > { %2733 = vst.msk [vmem:[%s15729_s21 + $0x18] sm:$0xff] %vm88_vm3, %v2708_v56  ;;  %v2663_v34 = vmul.f32 %v2638_v63, %v15718_v24  ;;  %v2664_v35 = vmul.f32 %v2639_v14, %v15718_v24  ;;  %v2665_v9 = vmul.f32 %v2640_v58, %v15718_v24  ;;  %v2642_v4 = vsub.f32 %v2617_v37, %v15714_v41 }
 0x3fc   : > { %2734 = vst.msk [vmem:[%s15729_s21 + $0x20] sm:$0xff] %vm88_vm3, %v2709_v57  ;;  %v2688_v27 = vadd.f32 %v15727_v3, %v2660_v52  ;;  %v2689_v7 = vadd.f32 %v15727_v3, %v2661_v8  ;;  %v2690_v36 = vadd.f32 %v15727_v3, %v2662_v50  ;;  %v2666_v39 = vmul.f32 %v2641_v62, %v15718_v24 }
 0x3fd   : > { %2735 = vst.msk [vmem:[%s15729_s21 + $0x28] sm:$0xff] %vm88_vm3, %v2710_v13  ;;  %v2691_v25 = vadd.f32 %v15727_v3, %v2663_v34  ;;  %v2692_v32 = vadd.f32 %v15727_v3, %v2664_v35  ;;  %v2693_v11 = vadd.f32 %v15727_v3, %v2665_v9  ;;  %v2667_v38 = vmul.f32 %v2642_v4, %v15718_v24  ;;  %v2626_v34 = vld [vmem:[%s15729_s21 + $0xc0] sm:$0xff] }
 0x3fe   : > { %2736 = vst.msk [vmem:[%s15729_s21 + $0x30] sm:$0xff] %vm88_vm3, %v2711_v6  ;;  %v2713_v29 = vmax.f32 %v2688_v27, 0.0  ;;  %v2714_v44 = vmax.f32 %v2689_v7, 0.0  ;;  %v2715_v43 = vmax.f32 %v2690_v36, 0.0  ;;  %v2694_v5 = vadd.f32 %v15727_v3, %v2666_v39 }
 0x3ff   : > { %2737 = vst.msk [vmem:[%s15729_s21 + $0x38] sm:$0xff] %vm88_vm3, %v2712_v48  ;;  %v2716_v16 = vmax.f32 %v2691_v25, 0.0  ;;  %v2717_v19 = vmax.f32 %v2692_v32, 0.0  ;;  %v2718_v18 = vmax.f32 %v2693_v11, 0.0  ;;  %v2695_v55 = vadd.f32 %v15727_v3, %v2667_v38 }
 0x400   : > { %2738 = vst.msk [vmem:[%s15729_s21 + $0x40] sm:$0xff] %vm88_vm3, %v2713_v29  ;;  %v2719_v0 = vmax.f32 %v2694_v5, 0.0  ;;  %v2643_v12 = vsub.f32 %v2618_v15, %v15714_v41  ;;  %v2644_v31 = vsub.f32 %v2619_v21, %v15714_v41  ;;  %v2645_v40 = vsub.f32 %v2620_v26, %v15714_v41 }
 0x401   : > { %2739 = vst.msk [vmem:[%s15729_s21 + $0x48] sm:$0xff] %vm88_vm3, %v2714_v44  ;;  %v2720_v23 = vmax.f32 %v2695_v55, 0.0  ;;  %v2646_v53 = vsub.f32 %v2621_v28, %v15714_v41  ;;  %v2647_v56 = vsub.f32 %v2622_v42, %v15714_v41  ;;  %v2648_v57 = vsub.f32 %v2623_v54, %v15714_v41 }
 0x402   : > { %2740 = vst.msk [vmem:[%s15729_s21 + $0x50] sm:$0xff] %vm88_vm3, %v2715_v43  ;;  %v2668_v13 = vmul.f32 %v2643_v12, %v15718_v24  ;;  %v2669_v46 = vmul.f32 %v2644_v31, %v15718_v24  ;;  %v2670_v33 = vmul.f32 %v2645_v40, %v15718_v24  ;;  %v2649_v6 = vsub.f32 %v2624_v59, %v15714_v41 }
 0x403   : > { %2741 = vst.msk [vmem:[%s15729_s21 + $0x58] sm:$0xff] %vm88_vm3, %v2716_v16  ;;  %v2671_v10 = vmul.f32 %v2646_v53, %v15718_v24  ;;  %v2672_v20 = vmul.f32 %v2647_v56, %v15718_v24  ;;  %v2673_v17 = vmul.f32 %v2648_v57, %v15718_v24  ;;  %v2650_v37 = vsub.f32 %v2625_v2, %v15714_v41 }
 0x404   : > { %2742 = vst.msk [vmem:[%s15729_s21 + $0x60] sm:$0xff] %vm88_vm3, %v2717_v19  ;;  %v2696_v48 = vadd.f32 %v15727_v3, %v2668_v13  ;;  %v2697_v63 = vadd.f32 %v15727_v3, %v2669_v46  ;;  %v2698_v14 = vadd.f32 %v15727_v3, %v2670_v33  ;;  %v2674_v58 = vmul.f32 %v2649_v6, %v15718_v24 }
 0x405   : > { %2743 = vst.msk [vmem:[%s15729_s21 + $0x68] sm:$0xff] %vm88_vm3, %v2718_v18  ;;  %v2699_v52 = vadd.f32 %v15727_v3, %v2671_v10  ;;  %v2700_v8 = vadd.f32 %v15727_v3, %v2672_v20  ;;  %v2701_v50 = vadd.f32 %v15727_v3, %v2673_v17  ;;  %v2675_v62 = vmul.f32 %v2650_v37, %v15718_v24 }
 0x406   : > { %2744 = vst.msk [vmem:[%s15729_s21 + $0x70] sm:$0xff] %vm88_vm3, %v2719_v0  ;;  %v2721_v35 = vmax.f32 %v2696_v48, 0.0  ;;  %v2722_v9 = vmax.f32 %v2697_v63, 0.0  ;;  %v2723_v4 = vmax.f32 %v2698_v14, 0.0  ;;  %v2702_v27 = vadd.f32 %v15727_v3, %v2674_v58 }
 0x407   : > { %2745 = vst.msk [vmem:[%s15729_s21 + $0x78] sm:$0xff] %vm88_vm3, %v2720_v23  ;;  %v2724_v7 = vmax.f32 %v2699_v52, 0.0  ;;  %v2703_v36 = vadd.f32 %v15727_v3, %v2675_v62  ;;  %v2725_v39 = vmax.f32 %v2700_v8, 0.0  ;;  %v2651_v15 = vsub.f32 %v2626_v34, %v15714_v41 }
 0x408   : > { %2746 = vst.msk [vmem:[%s15729_s21 + $0x80] sm:$0xff] %vm88_vm3, %v2721_v35  ;;  %v2726_v25 = vmax.f32 %v2701_v50, 0.0  ;;  %v2727_v32 = vmax.f32 %v2702_v27, 0.0  ;;  %v15884_v28 = vmov (%p2596_p1), 0.0   ;;  %v15886_v29 = vmov (%p2596_p1), 0.0  }
 0x409   : > { %2747 = vst.msk [vmem:[%s15729_s21 + $0x88] sm:$0xff] %vm88_vm3, %v2722_v9  ;;  %v2676_v11 = vmul.f32 %v2651_v15, %v15718_v24  ;;  %v2728_v38 = vmax.f32 %v2703_v36, 0.0 }
 0x40a   : > { %2748 = vst.msk [vmem:[%s15729_s21 + $0x90] sm:$0xff] %vm88_vm3, %v2723_v4 }
 0x40b   : > { %2749 = vst.msk [vmem:[%s15729_s21 + $0x98] sm:$0xff] %vm88_vm3, %v2724_v7  ;;  %v2704_v21 = vadd.f32 %v15727_v3, %v2676_v11 }
 0x40c   : > { %2750 = vst.msk [vmem:[%s15729_s21 + $0xa0] sm:$0xff] %vm88_vm3, %v2725_v39  ;;  %2598 = sbr.rel (!%p2596_p1) target bundleno = 1005 (0x3ed), region = 214 }
 0x40d   : > { %2751 = vst.msk [vmem:[%s15729_s21 + $0xa8] sm:$0xff] %vm88_vm3, %v2726_v25  ;;  %v2729_v26 = vmax.f32 %v2704_v21, 0.0 }
 0x40e   : > { %2752 = vst.msk [vmem:[%s15729_s21 + $0xb0] sm:$0xff] %vm88_vm3, %v2727_v32 }
 0x40f   : > { %2753 = vst.msk [vmem:[%s15729_s21 + $0xb8] sm:$0xff] %vm88_vm3, %v2728_v38 }
 0x410   : > { %2754 = vst.msk [vmem:[%s15729_s21 + $0xc0] sm:$0xff] %vm88_vm3, %v2729_v26 }
 0x411 LB: > { %19933 = vst [vmem:[#allocation166_spill] sm:$0xff] %v11619_v28  ;;  %s9214_s23 = sshll.u32 %s11627_s22, 8  ;;  %s11650_s5 = smov 32   ;;  %vm3077_vm11 = vcmask 785408   ;;  %v10502_v51 = vld [vmem:[%s18821_s3 + $0xb8] sm:$0xff]  ;;  %s11627_s22 = sphi %s15888_s22, %s2760_s22   ;;  %v11623_v29 = vphi %v15886_v29, %v20020_v29   ;;  %v11619_v28 = vphi %v15884_v28, %v20019_v28  }
 0x412   : > { %19934 = vst [vmem:[#allocation167_spill] sm:$0xff] %v11623_v29  ;;  %s15902_s24 = scalar_lea.vmem [#allocation2], %s9214_s23  ;;  %s11651_s1 = smov 64  }
 0x413   : > { %s11652_s25 = smov 96   ;;  %s2760_s22 = sadd.s32 1, %s11627_s22  }
 0x414   : > { %p2757_p2 = scmp.ge.s32.totalorder %s2760_s22, 2  }
 0x417   : > { %v9224_v41 = vld [vmem:[%s15902_s24 + $0x41] sm:$0xff]  ;;  %v9225_v24 = vld [vmem:[%s15902_s24 + $0x49] sm:$0xff]  ;;  %v9226_v19 = vld [vmem:[%s15902_s24 + $0x51] sm:$0xff] }
 0x418   : > { %v9220_v3 = vld [vmem:[%s15902_s24 + $0x21] sm:$0xff]  ;;  %v15907_v44 = vpack.i.bf16 %v9225_v24, %v9224_v41  ;;  %v9221_v43 = vld [vmem:[%s15902_s24 + $0x29] sm:$0xff]  ;;  %v9227_v18 = vld [vmem:[%s15902_s24 + $0x59] sm:$0xff] }
 0x419   : > { %v9216_v5 = vld [vmem:[%s15902_s24 + $0x1] sm:$0xff]  ;;  %v9217_v42 = vld [vmem:[%s15902_s24 + $0x9] sm:$0xff]  ;;  %v15912_v54 = vpack.i.bf16 %v9221_v43, %v9220_v3  ;;  %v9222_v55 = vld [vmem:[%s15902_s24 + $0x31] sm:$0xff]  ;;  %v15925_v31 = vpack.i.bf16 %v9227_v18, %v9226_v19 }
 0x41a   : > { %v10754_v16 = vpack.i.bf16 %v9217_v42, %v9216_v5  ;;  %10775 = vrot.lane.b32.xlu2 %v15907_v44, %s11650_s5  ;;  %v9223_v59 = vld [vmem:[%s15902_s24 + $0x39] sm:$0xff]  ;;  %v9218_v0 = vld [vmem:[%s15902_s24 + $0x11] sm:$0xff]  ;;  %v9233_v23 = vld [vmem:[%s15902_s24 + $0x2] sm:$0xff] }
 0x41b   : > { %10765 = vrot.lane.b32.xlu1 %v15912_v54, %s11650_s5  ;;  %v9219_v12 = vld [vmem:[%s15902_s24 + $0x19] sm:$0xff]  ;;  %v15927_v40 = vpack.i.bf16 %v9223_v59, %v9222_v55  ;;  %v9234_v53 = vld [vmem:[%s15902_s24 + $0xa] sm:$0xff]  ;;  %v9228_v13 = vld [vmem:[%s15902_s24 + $0x61] sm:$0xff] }
 0x41c   : > { %10755 = vrot.lane.b32.xlu0 %v10754_v16, %s11650_s5  ;;  %v15929_v2 = vpack.i.bf16 %v9219_v12, %v9218_v0  ;;  %v9230_v56 = vld [vmem:[%s15902_s24 + $0x71] sm:$0xff]  ;;  %v9231_v57 = vld [vmem:[%s15902_s24 + $0x79] sm:$0xff]  ;;  %v9229_v46 = vld [vmem:[%s15902_s24 + $0x69] sm:$0xff]  ;;  %v10794_v33 = vpack.i.bf16 %v9234_v53, %v9233_v23 }
 0x41d   : > { %v15943_v6 = vpack.i.bf16 %v9231_v57, %v9230_v56  ;;  %v15945_v10 = vpack.i.bf16 %v9229_v46, %v9228_v13  ;;  %v9239_v20 = vld [vmem:[%s15902_s24 + $0x32] sm:$0xff]  ;;  %v9240_v17 = vld [vmem:[%s15902_s24 + $0x3a] sm:$0xff]  ;;  %v9237_v37 = vld [vmem:[%s15902_s24 + $0x22] sm:$0xff] }
 0x41e   : > { %v9238_v48 = vld [vmem:[%s15902_s24 + $0x2a] sm:$0xff]  ;;  %v9235_v63 = vld [vmem:[%s15902_s24 + $0x12] sm:$0xff]  ;;  %v9236_v14 = vld [vmem:[%s15902_s24 + $0x1a] sm:$0xff]  ;;  %v15958_v58 = vpack.i.bf16 %v9240_v17, %v9239_v20 }
 0x41f   : > { %v15960_v52 = vpack.i.bf16 %v9238_v48, %v9237_v37  ;;  %v10799_v8 = vpack.i.bf16 %v9236_v14, %v9235_v63  ;;  %v9245_v50 = vld [vmem:[%s15902_s24 + $0x62] sm:$0xff]  ;;  %v9246_v62 = vld [vmem:[%s15902_s24 + $0x6a] sm:$0xff]  ;;  %v9243_v34 = vld [vmem:[%s15902_s24 + $0x52] sm:$0xff] }
 0x420   : > { %v9244_v35 = vld [vmem:[%s15902_s24 + $0x5a] sm:$0xff]  ;;  %v9241_v9 = vld [vmem:[%s15902_s24 + $0x42] sm:$0xff]  ;;  %v9242_v4 = vld [vmem:[%s15902_s24 + $0x4a] sm:$0xff]  ;;  %v15973_v27 = vpack.i.bf16 %v9246_v62, %v9245_v50 }
 0x421   : > { %v15975_v7 = vpack.i.bf16 %v9244_v35, %v9243_v34  ;;  %v15977_v36 = vpack.i.bf16 %v9242_v4, %v9241_v9  ;;  %v9252_v39 = vld [vmem:[%s15902_s24 + $0x13] sm:$0xff]  ;;  %v9253_v15 = vld [vmem:[%s15902_s24 + $0x1b] sm:$0xff]  ;;  %v9250_v25 = vld [vmem:[%s15902_s24 + $0x3] sm:$0xff] }
 0x422   : > { %10780 = vrot.lane.b32.xlu2 %v15925_v31, %s11650_s5  ;;  %v9251_v32 = vld [vmem:[%s15902_s24 + $0xb] sm:$0xff]  ;;  %v9248_v38 = vld [vmem:[%s15902_s24 + $0x7a] sm:$0xff]  ;;  %v10839_v21 = vpack.i.bf16 %v9253_v15, %v9252_v39  ;;  %v15995_v24 = vld [vmem:[%s15902_s24 + $0x43] sm:$0xff] }
 0x423   : > { %10770 = vrot.lane.b32.xlu1 %v15927_v40, %s11650_s5  ;;  %v9247_v11 = vld [vmem:[%s15902_s24 + $0x72] sm:$0xff]  ;;  %v10834_v26 = vpack.i.bf16 %v9251_v32, %v9250_v25  ;;  %v16007_v5 = vld [vmem:[%s15902_s24 + $0x3b] sm:$0xff]  ;;  %v16010_v42 = vld [vmem:[%s15902_s24 + $0x23] sm:$0xff] }
 0x424   : > { %10760 = vrot.lane.b32.xlu0 %v15929_v2, %s11650_s5  ;;  %v15991_v41 = vpack.i.bf16 %v9248_v38, %v9247_v11  ;;  %v16001_v3 = vld [vmem:[%s15902_s24 + $0x4b] sm:$0xff]  ;;  %v16004_v43 = vld [vmem:[%s15902_s24 + $0x33] sm:$0xff]  ;;  %v16026_v0 = vld [vmem:[%s15902_s24 + $0x7b] sm:$0xff] }
 0x425   : > { %v16013_v16 = vld [vmem:[%s15902_s24 + $0x2b] sm:$0xff]  ;;  %v10854_v19 = vpack.i.bf16 %v16001_v3, %v15995_v24  ;;  %v10849_v18 = vpack.i.bf16 %v16007_v5, %v16004_v43  ;;  %v9264_v59 = vld [vmem:[%s15902_s24 + $0x73] sm:$0xff]  ;;  %v9262_v12 = vld [vmem:[%s15902_s24 + $0x63] sm:$0xff] }
 0x426   : > { %v10844_v55 = vpack.i.bf16 %v16013_v16, %v16010_v42  ;;  %v9263_v23 = vld [vmem:[%s15902_s24 + $0x6b] sm:$0xff]  ;;  %v9260_v53 = vld [vmem:[%s15902_s24 + $0x53] sm:$0xff]  ;;  %v9261_v56 = vld [vmem:[%s15902_s24 + $0x5b] sm:$0xff]  ;;  %v10869_v57 = vpack.i.bf16 %v16026_v0, %v9264_v59  ;;  %v10984_v25 = vpack.i.bf16 %v16010_v42, %v9264_v59  ;;  %v10999_v42 = vpack.i.bf16 %v16004_v43, %v16013_v16 }
 0x427   : > { %v10864_v13 = vpack.i.bf16 %v9263_v23, %v9262_v12  ;;  %v16033_v46 = vpack.i.bf16 %v9261_v56, %v9260_v53  ;;  %v9316_v20 = vld [vmem:[%s15902_s24 + $0x89] sm:$0xff]  ;;  %v10486_v37 = vld [vmem:[%s18821_s3 + $0x38] sm:$0xff]  ;;  %v10483_v34 = vld [vmem:[%s18821_s3 + $0x20] sm:$0xff] }
 0x428   : > { %v9332_v48 = vld [vmem:[%s15902_s24 + $0x82] sm:$0xff]  ;;  %v9333_v63 = vld [vmem:[%s15902_s24 + $0x8a] sm:$0xff]  ;;  %3762 = vmatpush.bf16.msra.mxu2 %v10486_v37  ;;  %v10482_v35 = vld [vmem:[%s18821_s3 + $0x18] sm:$0xff] }
 0x429   : > { %v10485_v14 = vld [vmem:[%s18821_s3 + $0x30] sm:$0xff]  ;;  %v10484_v50 = vld [vmem:[%s18821_s3 + $0x28] sm:$0xff]  ;;  %v16142_v43 = vld [vmem:[%s18821_s3 + $0x98] sm:$0xff] }
 0x42a   : > { %10795 = vrot.lane.b32.xlu2 %v10794_v33, %s11651_s1  ;;  %v9315_v33 = vld [vmem:[%s15902_s24 + $0x81] sm:$0xff]  ;;  %v10481_v15 = vld [vmem:[%s18821_s3 + $0x10] sm:$0xff]  ;;  %10629 = vmatpush.bf16.msra.mxu1 %v16142_v43 }
 0x42b   : > { %10790 = vrot.lane.b32.xlu1 %v15943_v6, %s11650_s5  ;;  %v10909_v17 = vpack.i.bf16 %v9316_v20, %v9315_v33  ;;  %v10480_v32 = vld [vmem:[%s18821_s3 + $0x8] sm:$0xff]  ;;  %v9273_v16 = vld [vmem:[%s15902_s24 + $0x34] sm:$0xff]  ;;  %v16151_v53 = vld [vmem:[%s15902_s24 + $0x60] sm:$0xff]  ;;  %v11014_v33 = vpack.i.bf16 %v15995_v24, %v16007_v5 }
 0x42c   : > { %10785 = vrot.lane.b32.xlu0 %v15945_v10, %s11650_s5  ;;  %3763 = vmatpush.bf16.msra.mxu2 %v10485_v14  ;;  %v16166_v20 = vld [vmem:[%s18821_s3 + $0x90] sm:$0xff]  ;;  %v9527_v30 = vld [vmem:[%s15902_s24 + $0x7b] sm:$0xff] }
 0x42d   : > { %v9359_v37 = vld [vmem:[%s15902_s24 + $0x4c] sm:$0xff] }
 0x42e   : > { %10630 = vmatpush.bf16.msra.mxu1 %v16166_v20 }
 0x430   : > { %3764 = vmatpush.bf16.msra.mxu2 %v10484_v50 }
 0x432   : > { %10810 = vrot.lane.b32.xlu2 %v15958_v58, %s11651_s1 }
 0x433   : > { %10805 = vrot.lane.b32.xlu1 %v15960_v52, %s11651_s1 }
 0x434   : > { %10800 = vrot.lane.b32.xlu0 %v10799_v8, %s11651_s1  ;;  %3765 = vmatpush.bf16.msra.mxu2 %v10483_v34 }
 0x438   : > { %3766 = vmatpush.bf16.msra.mxu2 %v10482_v35 }
 0x43a   : > { %10825 = vrot.lane.b32.xlu2 %v15973_v27, %s11651_s1 }
 0x43b   : > { %10820 = vrot.lane.b32.xlu1 %v15975_v7, %s11651_s1 }
 0x43c   : > { %10815 = vrot.lane.b32.xlu0 %v15977_v36, %s11651_s1  ;;  %3767 = vmatpush.bf16.msra.mxu2 %v10481_v15  ;;  %v11029_v15 = vpack.i.bf16 %v16026_v0, %v16001_v3  ;;  %v9349_v3 = vld [vmem:[%s15902_s24 + $0x83] sm:$0xff]  ;;  %v9350_v0 = vld [vmem:[%s15902_s24 + $0x8b] sm:$0xff] }
 0x440   : > { %3768 = vmatpush.bf16.msra.mxu2 %v10480_v32 }
 0x442   : > { %10840 = vrot.lane.b32.xlu2 %v10839_v21, %s11652_s25 }
 0x443   : > { %10835 = vrot.lane.b32.xlu1 %v10834_v26, %s11652_s25  ;;  %v10479_v26 = vld [vmem:[%s18821_s3] sm:$0xff] }
 0x444   : > { %10830 = vrot.lane.b32.xlu0 %v15991_v41, %s11651_s1  ;;  %3769 = vmatpush.bf16.msra.mxu2 %v10479_v26  ;;  %v16207_v26 = vld [vmem:[%s15902_s24 + $0x50] sm:$0xff] }
 0x44a   : > { %10855 = vrot.lane.b32.xlu2 %v10854_v19, %s11652_s25 }
 0x44b   : > { %10850 = vrot.lane.b32.xlu1 %v10849_v18, %s11652_s25 }
 0x44c   : > { %10845 = vrot.lane.b32.xlu0 %v10844_v55, %s11652_s25 }
 0x452   : > { %10870 = vrot.lane.b32.xlu2 %v10869_v57, %s11652_s25 }
 0x453   : > { %10865 = vrot.lane.b32.xlu1 %v10864_v13, %s11652_s25 }
 0x454   : > { %10860 = vrot.lane.b32.xlu0 %v16033_v46, %s11652_s25 }
 0x45a   : > { %10885 = vrot.lane.b32.xlu2 %v15927_v40, %s11650_s5 }
 0x45b   : > { %10880 = vrot.lane.b32.xlu1 %v15912_v54, %s11650_s5 }
 0x45c   : > { %10875 = vrot.lane.b32.xlu0 %v15929_v2, %s11650_s5 }
 0x462   : > { %10900 = vrot.lane.b32.xlu2 %v15945_v10, %s11650_s5 }
 0x463   : > { %10895 = vrot.lane.b32.xlu1 %v15925_v31, %s11650_s5 }
 0x464   : > { %10890 = vrot.lane.b32.xlu0 %v15907_v44, %s11650_s5 }
 0x46a   : > { %10915 = vrot.lane.b32.xlu2 %v10799_v8, %s11651_s1  ;;  %v16081_v8 = vpack.i.bf16 %v9333_v63, %v9332_v48 }
 0x46b   : > { %10910 = vrot.lane.b32.xlu1 %v10909_v17, %s11650_s5  ;;  %v9358_v17 = vld [vmem:[%s15902_s24 + $0x44] sm:$0xff] }
 0x46c   : > { %10905 = vrot.lane.b32.xlu0 %v15943_v6, %s11650_s5  ;;  %v16175_v24 = vpack.c.bf16 %v9359_v37, %v9358_v17 }
 0x46e   : > { %9411 = vmatmul.msk.bf16.vlgmr.msra.gmra.mxu1 %vm88_vm3, %v16175_v24 }
 0x472   : > { %10930 = vrot.lane.b32.xlu2 %v15977_v36, %s11651_s1 }
 0x473   : > { %10925 = vrot.lane.b32.xlu1 %v15958_v58, %s11651_s1 }
 0x474   : > { %10920 = vrot.lane.b32.xlu0 %v15960_v52, %s11651_s1  ;;  %v16063_v2 = vpop.permute.xlu2 %10775 }
 0x47a   : > { %10945 = vrot.lane.b32.xlu2 %v15991_v41, %s11651_s1 }
 0x47b   : > { %10940 = vrot.lane.b32.xlu1 %v15973_v27, %s11651_s1 }
 0x47c   : > { %10935 = vrot.lane.b32.xlu0 %v15975_v7, %s11651_s1  ;;  %v16074_v6 = vpop.permute.xlu2 %10780 }
 0x47d   : > { %v10782_v32 = vunpack.i.l.bf16 %v16074_v6 }
 0x482   : > { %10960 = vrot.lane.b32.xlu2 %v10844_v55, %s11652_s25  ;;  %v9274_v55 = vld [vmem:[%s15902_s24 + $0x3c] sm:$0xff] }
 0x483   : > { %10955 = vrot.lane.b32.xlu1 %v16081_v8, %s11651_s1  ;;  %v16157_v56 = vpack.c.bf16 %v9274_v55, %v9273_v16 }
 0x484   : > { %10950 = vrot.lane.b32.xlu0 %v10839_v21, %s11652_s25  ;;  %v16090_v62 = vpop.permute.xlu2 %10795 }
 0x48a   : > { %10975 = vrot.lane.b32.xlu2 %v16033_v46, %s11652_s25 }
 0x48b   : > { %10970 = vrot.lane.b32.xlu1 %v10854_v19, %s11652_s25  ;;  %v10487_v19 = vld [vmem:[%s18821_s3 + $0x40] sm:$0xff] }
 0x48c   : > { %10965 = vrot.lane.b32.xlu0 %v10849_v18, %s11652_s25  ;;  %v16102_v9 = vpop.permute.xlu2 %10810 }
 0x48d   : > { %v16104_v4 = vpop.permute.xlu1 %10765 }
 0x48e   : > { %v16106_v39 = vpop.permute.xlu0 %10755 }
 0x48f   : > { %v10758_v37 = vunpack.i.h.bf16 %v16106_v39 }
 0x492   : > { %10990 = vrot.lane.b32.xlu2 %v15912_v54, %s11650_s5  ;;  %v10488_v54 = vld [vmem:[%s18821_s3 + $0x48] sm:$0xff] }
 0x493   : > { %10985 = vrot.lane.b32.xlu1 %v10984_v25, %s11652_s25  ;;  %10631 = vmatpush.bf16.msra.mxu3 %v10488_v54  ;;  %v10777_v25 = vunpack.i.l.bf16 %v16063_v2 }
 0x494   : > { %10980 = vrot.lane.b32.xlu0 %v10864_v13, %s11652_s25  ;;  %v10826_v11 = vpop.permute.xlu2 %10825  ;;  %3817 = vmatpush.bf16.msrb.mxu2 %v10488_v54  ;;  %v10783_v54 = vunpack.i.h.bf16 %v16074_v6 }
 0x495   : > { %v16119_v38 = vpop.permute.xlu1 %10770  ;;  %v10828_v59 = vunpack.i.h.bf16 %v10826_v11  ;;  %v10827_v12 = vunpack.i.l.bf16 %v10826_v11  ;;  %v16200_v11 = vld [vmem:[%s15902_s24 + $0x40] sm:$0xff] }
 0x496   : > { %v16121_v21 = vpop.permute.xlu0 %10760 }
 0x497   : > { %10632 = vmatpush.bf16.msra.mxu3 %v10487_v19 }
 0x498   : > { %3818 = vmatpush.bf16.msrb.mxu2 %v10487_v19  ;;  %v3055_v19 = vsel %vm88_vm3, %v16207_v26, %v10782_v32  ;;  %v9360_v32 = vld [vmem:[%s15902_s24 + $0x54] sm:$0xff] }
 0x49a   : > { %11005 = vrot.lane.b32.xlu2 %v15927_v40, %s11650_s5  ;;  %9459 = vmatmul.msk.bf16.vlgmr.msra.gmra.mxu3 %vm88_vm3, %v16157_v56 }
 0x49b   : > { %11000 = vrot.lane.b32.xlu1 %v10999_v42, %s11652_s25  ;;  %v16210_v42 = vld [vmem:[%s15902_s24 + $0x58] sm:$0xff] }
 0x49c   : > { %10995 = vrot.lane.b32.xlu0 %v15960_v52, %s11651_s1  ;;  %v16145_v18 = vpop.permute.xlu2 %10840  ;;  %v16154_v52 = vld [vmem:[%s15902_s24 + $0x68] sm:$0xff] }
 0x49d   : > { %v16148_v40 = vpop.permute.xlu1 %10790 }
 0x49e   : > { %v10786_v23 = vpop.permute.xlu0 %10785 }
 0x49f   : > { %v10788_v57 = vunpack.i.h.bf16 %v10786_v23  ;;  %v10787_v13 = vunpack.i.l.bf16 %v10786_v23 }
 0x4a1   : > { %v3057_v48 = vsel %vm88_vm3, %v16151_v53, %v10787_v13  ;;  %v3058_v63 = vsel %vm88_vm3, %v16154_v52, %v10788_v57 }
 0x4a2   : > { %v16178_v5 = vsel %vm124_vm5, %v3057_v48, %v10827_v12  ;;  %v16181_v14 = vsel %vm124_vm5, %v3058_v63, %v10828_v59  ;;  %11020 = vrot.lane.b32.xlu2 %v15907_v44, %s11650_s5  ;;  %v10778_v44 = vunpack.i.h.bf16 %v16063_v2  ;;  %v3053_v2 = vsel %vm88_vm3, %v16200_v11, %v10777_v25 }
 0x4a3   : > { %11015 = vrot.lane.b32.xlu1 %v11014_v33, %s11652_s25  ;;  %v10757_v48 = vunpack.i.l.bf16 %v16106_v39  ;;  %v10793_v63 = vunpack.i.h.bf16 %v16148_v40  ;;  %v9361_v39 = vld [vmem:[%s15902_s24 + $0x5c] sm:$0xff] }
 0x4a4   : > { %11010 = vrot.lane.b32.xlu0 %v15958_v58, %s11651_s1  ;;  %v10856_v50 = vpop.permute.xlu2 %10855  ;;  %v16203_v58 = vld [vmem:[%s15902_s24 + $0x48] sm:$0xff] }
 0x4a5   : > { %v16190_v34 = vpop.permute.xlu1 %10805  ;;  %v3054_v6 = vsel %vm88_vm3, %v16203_v58, %v10778_v44  ;;  %v10858_v55 = vunpack.i.h.bf16 %v10856_v50  ;;  %v10857_v59 = vunpack.i.l.bf16 %v10856_v50 }
 0x4a6   : > { %v16192_v35 = vpop.permute.xlu0 %10800 }
 0x4aa   : > { %11035 = vrot.lane.b32.xlu2 %v15925_v31, %s11650_s5  ;;  %v3056_v31 = vsel %vm88_vm3, %v16210_v42, %v10783_v54  ;;  %9460 = vmatmul.msk.bf16.gmra.mxu3 %vm88_vm3, %v16175_v24  ;;  %v2765_v54 = vld [vmem:[%s15902_s24] sm:$0xff] }
 0x4ab   : > { %11030 = vrot.lane.b32.xlu1 %v11029_v15, %s11652_s25 }
 0x4ac   : > { %11025 = vrot.lane.b32.xlu0 %v15977_v36, %s11651_s1  ;;  %v10871_v16 = vpop.permute.xlu2 %10870  ;;  %v16227_v36 = vpack.i.bf16 %v9350_v0, %v9349_v3  ;;  %v2766_v3 = vld [vmem:[%s15902_s24 + $0x8] sm:$0xff]  ;;  %v10792_v0 = vunpack.i.l.bf16 %v16148_v40  ;;  %v10798_v40 = vunpack.i.h.bf16 %v16090_v62 }
 0x4ad   : > { %v10821_v12 = vpop.permute.xlu1 %10820 }
 0x4ae   : > { %v10816_v23 = vpop.permute.xlu0 %10815  ;;  %v10823_v57 = vunpack.i.h.bf16 %v10821_v12  ;;  %v10822_v13 = vunpack.i.l.bf16 %v10821_v12  ;;  %v16247_v12 = vpack.c.bf16 %v9361_v39, %v9360_v32 }
 0x4af   : > { %v10818_v33 = vunpack.i.h.bf16 %v10816_v23  ;;  %v10817_v17 = vunpack.i.l.bf16 %v10816_v23 }
 0x4b0   : > { %v16235_v50 = vsel %vm124_vm5, %v3055_v19, %v10822_v13  ;;  %v16238_v15 = vsel %vm124_vm5, %v3056_v31, %v10823_v57  ;;  %v16256_v31 = vld [vmem:[%s15902_s24 + $0x70] sm:$0xff]  ;;  %v16259_v57 = vld [vmem:[%s15902_s24 + $0x78] sm:$0xff]  ;;  %9412 = vmatmul.msk.bf16.gmra.mxu1 %vm88_vm3, %v16247_v12 }
 0x4b1   : > { %v3069_v44 = vsel %vm124_vm5, %v3053_v2, %v10817_v17  ;;  %v3070_v25 = vsel %vm124_vm5, %v3054_v6, %v10818_v33  ;;  %v10797_v6 = vunpack.i.l.bf16 %v16090_v62  ;;  %v3059_v33 = vsel %vm88_vm3, %v16256_v31, %v10792_v0 }
 0x4b2   : > { %v16250_v23 = vsel %vm3077_vm11, %v3069_v44, %v10857_v59  ;;  %v16253_v19 = vsel %vm3077_vm11, %v3070_v25, %v10858_v55  ;;  %11050 = vrot.lane.b32.xlu2 %v16227_v36, %s11652_s25  ;;  %v3045_v55 = vsel %vm88_vm3, %v2765_v54, %v10757_v48  ;;  %v3046_v59 = vsel %vm88_vm3, %v2766_v3, %v10758_v37 }
 0x4b3   : > { %11045 = vrot.lane.b32.xlu1 %v16033_v46, %s11652_s25  ;;  %v3060_v62 = vsel %vm88_vm3, %v16259_v57, %v10793_v63  ;;  %v10873_v17 = vunpack.i.h.bf16 %v10871_v16  ;;  %v3061_v37 = vsel %vm124_vm5, %v3045_v55, %v10797_v6  ;;  %v3062_v54 = vsel %vm124_vm5, %v3046_v59, %v10798_v40  ;;  %v10496_v40 = vld [vmem:[%s18821_s3 + $0x88] sm:$0xff]  ;;  %v10506_v59 = vld [vmem:[%s18821_s3 + $0xd8] sm:$0xff] }
 0x4b4   : > { %11040 = vrot.lane.b32.xlu0 %v15975_v7, %s11651_s1  ;;  %v16273_v13 = vpop.permute.xlu2 %10885  ;;  %v10872_v7 = vunpack.i.l.bf16 %v10871_v16  ;;  %v10508_v16 = vld [vmem:[%s18821_s3 + $0xe8] sm:$0xff]  ;;  %3580 = vmatpush.bf16.msra.mxu0 %v10496_v40 }
 0x4b5   : > { %v10836_v44 = vpop.permute.xlu1 %10835  ;;  %4365 = vmatpush.bf16.msrb.mxu3 %v10508_v16  ;;  %4310 = vmatpush.bf16.msrb.mxu1 %v10506_v59  ;;  %v9525_v55 = vld [vmem:[%s15902_s24 + $0x6b] sm:$0xff] }
 0x4b6   : > { %v10831_v25 = vpop.permute.xlu0 %10830  ;;  %v10838_v46 = vunpack.i.h.bf16 %v10836_v44  ;;  %v10837_v32 = vunpack.i.l.bf16 %v10836_v44 }
 0x4b7   : > { %v10833_v48 = vunpack.i.h.bf16 %v10831_v25  ;;  %v10832_v39 = vunpack.i.l.bf16 %v10831_v25 }
 0x4b8   : > { %v3078_v0 = vsel %vm3077_vm11, %v3061_v37, %v10837_v32  ;;  %v3079_v63 = vsel %vm3077_vm11, %v3062_v54, %v10838_v46  ;;  %v16320_v46 = vld [vmem:[%s15902_s24 + $0x18] sm:$0xff]  ;;  %v10803_v32 = vunpack.i.h.bf16 %v16192_v35  ;;  %v9362_v37 = vld [vmem:[%s15902_s24 + $0x64] sm:$0xff]  ;;  %v9363_v54 = vld [vmem:[%s15902_s24 + $0x6c] sm:$0xff] }
 0x4b9   : > { %v3075_v3 = vsel %vm124_vm5, %v3059_v33, %v10832_v39  ;;  %v3076_v2 = vsel %vm124_vm5, %v3060_v62, %v10833_v48  ;;  %v3094_v44 = vpack.c.bf16 %v3079_v63, %v3078_v0  ;;  %v10763_v62 = vunpack.i.h.bf16 %v16121_v21  ;;  %v10494_v39 = vld [vmem:[%s18821_s3 + $0x78] sm:$0xff] }
 0x4ba   : > { %v16291_v25 = vsel %vm3077_vm11, %v3075_v3, %v10872_v7  ;;  %v16294_v6 = vsel %vm3077_vm11, %v3076_v2, %v10873_v17  ;;  %v10762_v2 = vunpack.i.l.bf16 %v16121_v21  ;;  %v16313_v17 = vld [vmem:[%s15902_s24 + $0x10] sm:$0xff]  ;;  %v10802_v48 = vunpack.i.l.bf16 %v16192_v35  ;;  %9461 = vmatmul.msk.bf16.gmra.mxu3 %vm88_vm3, %v16247_v12 }
 0x4bb   : > { %3770 = vmatmul.bf16.vlgmr.msra.gmra.mxu2 %v3094_v44  ;;  %11060 = vrot.lane.b32.xlu1 %v15973_v27, %s11651_s1  ;;  %v10495_v27 = vld [vmem:[%s18821_s3 + $0x80] sm:$0xff]  ;;  %v3048_v35 = vsel %vm88_vm3, %v16320_v46, %v10763_v62  ;;  %v10843_v3 = vunpack.i.h.bf16 %v16145_v18  ;;  %v10842_v0 = vunpack.i.l.bf16 %v16145_v18  ;;  %v16340_v63 = vpack.c.bf16 %v9363_v54, %v9362_v37 }
 0x4bc   : > { %11055 = vrot.lane.b32.xlu0 %v15945_v10, %s11650_s5  ;;  %v16307_v33 = vpop.permute.xlu2 %10900  ;;  %v3047_v21 = vsel %vm88_vm3, %v16313_v17, %v10762_v2  ;;  %3581 = vmatpush.bf16.msra.mxu0 %v10495_v27  ;;  %v3064_v44 = vsel %vm124_vm5, %v3048_v35, %v10803_v32  ;;  %v10493_v32 = vld [vmem:[%s18821_s3 + $0x70] sm:$0xff]  ;;  %v9493_v54 = vld [vmem:[%s15902_s24 + $0x79] sm:$0xff] }
 0x4bd   : > { %v16315_v7 = vpop.permute.xlu1 %10850  ;;  %v3063_v16 = vsel %vm124_vm5, %v3047_v21, %v10802_v48  ;;  %v3081_v18 = vsel %vm3077_vm11, %v3064_v44, %v10843_v3  ;;  %v10505_v35 = vld [vmem:[%s18821_s3 + $0xd0] sm:$0xff] }
 0x4be   : > { %v16317_v10 = vpop.permute.xlu0 %10845  ;;  %v3080_v62 = vsel %vm3077_vm11, %v3063_v16, %v10842_v0  ;;  %4311 = vmatpush.bf16.msrb.mxu1 %v10505_v35  ;;  %v10808_v35 = vunpack.i.h.bf16 %v16190_v34  ;;  %v10852_v49 = vunpack.i.l.bf16 %v16315_v7 }
 0x4bf   : > { %v3096_v44 = vpack.c.bf16 %v3081_v18, %v3080_v62  ;;  %v10768_v62 = vunpack.i.h.bf16 %v16104_v4 }
 0x4c0   : > { %3582 = vmatpush.bf16.msra.mxu0 %v10494_v39  ;;  %9413 = vmatmul.msk.bf16.gmra.mxu1 %vm88_vm3, %v16340_v63  ;;  %v9492_v39 = vld [vmem:[%s15902_s24 + $0x71] sm:$0xff] }
 0x4c1   : > { %v16360_v0 = vpack.i.bf16 %v9493_v54, %v9492_v39 }
 0x4c3   : > { %11075 = vrot.lane.b32.xlu1 %v15991_v41, %s11651_s1 }
 0x4c4   : > { %v16344_v40 = vpop.permute.xlu2 %10915  ;;  %3583 = vmatpush.bf16.msra.mxu0 %v10493_v32  ;;  %11070 = vrot.lane.b32.xlu0 %v16360_v0, %s11650_s5  ;;  %v9364_v32 = vld [vmem:[%s15902_s24 + $0x74] sm:$0xff] }
 0x4c5   : > { %v10866_v59 = vpop.permute.xlu1 %10865 }
 0x4c6   : > { %v10861_v2 = vpop.permute.xlu0 %10860  ;;  %v10868_v27 = vunpack.i.h.bf16 %v10866_v59  ;;  %v10867_v48 = vunpack.i.l.bf16 %v10866_v59  ;;  %v10847_v59 = vunpack.i.l.bf16 %v16317_v10 }
 0x4c7   : > { %v10863_v21 = vunpack.i.h.bf16 %v10861_v2  ;;  %v10862_v37 = vunpack.i.l.bf16 %v10861_v2 }
 0x4c8   : > { %v16372_v16 = vsel %vm3077_vm11, %v16178_v5, %v10867_v48  ;;  %v16378_v2 = vsel %vm3077_vm11, %v16181_v14, %v10868_v27  ;;  %v10767_v14 = vunpack.i.l.bf16 %v16104_v4  ;;  %v16398_v48 = vld [vmem:[%s15902_s24 + $0x20] sm:$0xff]  ;;  %v10504_v4 = vld [vmem:[%s18821_s3 + $0xc8] sm:$0xff]  ;;  %v10848_v5 = vunpack.i.h.bf16 %v16317_v10 }
 0x4c9   : > { %v16364_v41 = vsel %vm3077_vm11, %v16235_v50, %v10862_v37  ;;  %v16368_v3 = vsel %vm3077_vm11, %v16238_v15, %v10863_v21  ;;  %v10492_v50 = vld [vmem:[%s18821_s3 + $0x68] sm:$0xff]  ;;  %v10491_v37 = vld [vmem:[%s18821_s3 + $0x60] sm:$0xff]  ;;  %4312 = vmatpush.bf16.msrb.mxu1 %v10504_v4  ;;  %v10489_v4 = vld [vmem:[%s18821_s3 + $0x50] sm:$0xff] }
 0x4ca   : > { %3584 = vmatpush.bf16.msra.mxu0 %v10492_v50  ;;  %v16401_v21 = vld [vmem:[%s15902_s24 + $0x28] sm:$0xff]  ;;  %9462 = vmatmul.msk.bf16.gmra.mxu3 %vm88_vm3, %v16340_v63  ;;  %v3049_v39 = vsel %vm88_vm3, %v16398_v48, %v10767_v14  ;;  %v9365_v50 = vld [vmem:[%s15902_s24 + $0x7c] sm:$0xff] }
 0x4cb   : > { %3775 = vmatmul.bf16.gmra.mxu2 %v3096_v44  ;;  %11090 = vrot.lane.b32.xlu1 %v16081_v8, %s11651_s1  ;;  %v10490_v8 = vld [vmem:[%s18821_s3 + $0x58] sm:$0xff]  ;;  %v3050_v54 = vsel %vm88_vm3, %v16401_v21, %v10768_v62  ;;  %v10807_v44 = vunpack.i.l.bf16 %v16190_v34  ;;  %v16426_v28 = vpack.c.bf16 %v9365_v50, %v9364_v32  ;;  %v9495_v32 = vld [vmem:[%s15902_s24 + $0x89] sm:$0xff] }
 0x4cc   : > { %v16387_v15 = vpop.permute.xlu2 %10930  ;;  %v3066_v62 = vsel %vm124_vm5, %v3050_v54, %v10808_v35  ;;  %v16461_v50 = vld [vmem:[%s15902_s24 + $0x38] sm:$0xff] }
 0x4cd   : > { %v16391_v18 = vpop.permute.xlu1 %10880  ;;  %v3065_v34 = vsel %vm124_vm5, %v3049_v39, %v10807_v44  ;;  %v3083_v10 = vsel %vm3077_vm11, %v3066_v62, %v10848_v5  ;;  %v10503_v39 = vld [vmem:[%s18821_s3 + $0xc0] sm:$0xff]  ;;  %v10772_v5 = vunpack.i.l.bf16 %v16119_v38  ;;  %v16458_v44 = vld [vmem:[%s15902_s24 + $0x30] sm:$0xff] }
 0x4ce   : > { %v16393_v27 = vpop.permute.xlu0 %10875  ;;  %3585 = vmatpush.bf16.msra.mxu0 %v10491_v37  ;;  %v9524_v37 = vld [vmem:[%s15902_s24 + $0x63] sm:$0xff]  ;;  %4313 = vmatpush.bf16.msrb.mxu1 %v10503_v39 }
 0x4cf   : > { %v16428_v14 = vpack.i.bf16 %v9525_v55, %v9524_v37  ;;  %v3082_v55 = vsel %vm3077_vm11, %v3065_v34, %v10847_v59  ;;  %v10773_v59 = vunpack.i.h.bf16 %v16119_v38 }
 0x4d0   : > { %9414 = vmatmul.msk.bf16.gmra.mxu1 %vm88_vm3, %v16426_v28  ;;  %v3098_v54 = vpack.c.bf16 %v3083_v10, %v3082_v55 }
 0x4d1   : > { %11065 = vrot.lane.b32.xlu2 %v16428_v14, %s11652_s25  ;;  %v3052_v39 = vsel %vm88_vm3, %v16461_v50, %v10773_v59  ;;  %v9526_v59 = vld [vmem:[%s15902_s24 + $0x73] sm:$0xff] }
 0x4d2   : > { %3586 = vmatpush.bf16.msra.mxu0 %v10490_v8  ;;  %v9494_v8 = vld [vmem:[%s15902_s24 + $0x81] sm:$0xff]  ;;  %v16494_v61 = vpack.i.bf16 %v9527_v30, %v9526_v59  ;;  %4314 = vmatpush.bf16.msrb.mxu1 %v10502_v51  ;;  %v10501_v51 = vld [vmem:[%s18821_s3 + $0xb0] sm:$0xff]  ;;  %v10902_v59 = vunpack.i.l.bf16 %v16307_v33 }
 0x4d3   : > { %v16450_v35 = vpack.i.bf16 %v9495_v32, %v9494_v8  ;;  %v10812_v8 = vunpack.i.l.bf16 %v16102_v9  ;;  %v3051_v32 = vsel %vm88_vm3, %v16458_v44, %v10772_v5 }
 0x4d4   : > { %v10946_v29 = vpop.permute.xlu2 %10945 }
 0x4d5   : > { %v16434_v45 = vpop.permute.xlu1 %10895  ;;  %11085 = vrot.lane.b32.xlu0 %v16450_v35, %s11650_s5  ;;  %v10948_v34 = vunpack.i.h.bf16 %v10946_v29  ;;  %v10947_v62 = vunpack.i.l.bf16 %v10946_v29  ;;  %v10507_v29 = vld [vmem:[%s18821_s3 + $0xe0] sm:$0xff] }
 0x4d6   : > { %v16436_v22 = vpop.permute.xlu0 %10890  ;;  %3587 = vmatpush.bf16.msra.mxu0 %v10489_v4  ;;  %v10813_v4 = vunpack.i.h.bf16 %v16102_v9  ;;  %4366 = vmatpush.bf16.msrb.mxu3 %v10507_v29 }
 0x4d7   : > { %4315 = vmatpush.bf16.msrb.mxu1 %v10501_v51 }
 0x4d9   : > { %11080 = vrot.lane.b32.xlu2 %v16494_v61, %s11652_s25 }
 0x4da   : > { %3635 = vmatpush.bf16.msrb.mxu0 %v16142_v43  ;;  %9463 = vmatmul.msk.bf16.gmra.mxu3 %vm88_vm3, %v16426_v28 }
 0x4db   : > { %3780 = vmatmul.bf16.gmra.mxu2 %v3098_v54  ;;  %v9367_v54 = vld [vmem:[%s15902_s24 + $0x8c] sm:$0xff] }
 0x4dc   : > { %v16463_v37 = vpop.permute.xlu2 %10960 }
 0x4dd   : > { %v16465_v43 = vpop.permute.xlu1 %10910 }
 0x4de   : > { %v10906_v55 = vpop.permute.xlu0 %10905  ;;  %3636 = vmatpush.bf16.msrb.mxu0 %v16166_v20  ;;  %v9366_v20 = vld [vmem:[%s15902_s24 + $0x84] sm:$0xff] }
 0x4df   : > { %v10908_v38 = vunpack.i.h.bf16 %v10906_v55  ;;  %v10907_v10 = vunpack.i.l.bf16 %v10906_v55  ;;  %v10853_v55 = vunpack.i.h.bf16 %v16315_v7  ;;  %v16492_v60 = vpack.c.bf16 %v9367_v54, %v9366_v20  ;;  %v9496_v20 = vld [vmem:[%s15902_s24 + $0x91] sm:$0xff] }
 0x4e0   : > { %v10898_v54 = vunpack.i.h.bf16 %v16434_v45 }
 0x4e1   : > { %v3425_v9 = vsel %vm88_vm3, %v16259_v57, %v10908_v38  ;;  %v3424_v5 = vsel %vm88_vm3, %v16256_v31, %v10907_v10  ;;  %v3067_v38 = vsel %vm124_vm5, %v3051_v32, %v10812_v8  ;;  %v3068_v10 = vsel %vm124_vm5, %v3052_v39, %v10813_v4  ;;  %9415 = vmatmul.msk.bf16.gmra.mxu1 %vm88_vm3, %v16492_v60  ;;  %v9497_v8 = vld [vmem:[%s15902_s24 + $0x99] sm:$0xff] }
 0x4e2   : > { %v16497_v7 = vsel %vm124_vm5, %v3424_v5, %v10947_v62  ;;  %v16500_v57 = vsel %vm124_vm5, %v3425_v9, %v10948_v34  ;;  %v3084_v34 = vsel %vm3077_vm11, %v3067_v38, %v10852_v49  ;;  %v3085_v29 = vsel %vm3077_vm11, %v3068_v10, %v10853_v55  ;;  %v9513_v32 = vld [vmem:[%s15902_s24 + $0x92] sm:$0xff]  ;;  %v9514_v39 = vld [vmem:[%s15902_s24 + $0x9a] sm:$0xff]  ;;  %v10500_v38 = vld [vmem:[%s18821_s3 + $0xa8] sm:$0xff]  ;;  %11095 = vrot.lane.b32.xlu2 %v16227_v36, %s11652_s25 }
 0x4e3   : > { %v3100_v4 = vpack.c.bf16 %v3085_v29, %v3084_v34  ;;  %v10897_v9 = vunpack.i.l.bf16 %v16434_v45  ;;  %v16523_v5 = vpack.i.bf16 %v9497_v8, %v9496_v20  ;;  %v16525_v49 = vpack.i.bf16 %v9514_v39, %v9513_v32  ;;  %v9533_v10 = vld [vmem:[%s15902_s24 + $0x24] sm:$0xff]  ;;  %v9534_v34 = vld [vmem:[%s15902_s24 + $0x2c] sm:$0xff]  ;;  %4316 = vmatpush.bf16.msrb.mxu1 %v10500_v38 }
 0x4e4   : > { %v10976_v31 = vpop.permute.xlu2 %10975  ;;  %v10903_v55 = vunpack.i.h.bf16 %v16307_v33  ;;  %v16540_v29 = vpack.c.bf16 %v9534_v34, %v9533_v10  ;;  %v3421_v33 = vsel %vm88_vm3, %v16210_v42, %v10898_v54  ;;  %v3422_v42 = vsel %vm88_vm3, %v16151_v53, %v10902_v59  ;;  %v9298_v34 = vld [vmem:[%s15902_s24 + $0x80] sm:$0xff] }
 0x4e5   : > { %v16508_v30 = vpop.permute.xlu1 %10925  ;;  %19935 = vst [vmem:[#allocation168_spill] sm:$0xff] %v16525_v49  ;;  %11100 = vrot.lane.b32.xlu0 %v16523_v5, %s11650_s5  ;;  %11105 = vrot.lane.b32.xlu1 %v16525_v49, %s11651_s1  ;;  %v3420_v51 = vsel %vm88_vm3, %v16207_v26, %v10897_v9  ;;  %v10978_v20 = vunpack.i.h.bf16 %v10976_v31  ;;  %v10977_v8 = vunpack.i.l.bf16 %v10976_v31  ;;  %v10878_v36 = vunpack.i.h.bf16 %v16393_v27  ;;  %v10499_v31 = vld [vmem:[%s18821_s3 + $0xa0] sm:$0xff] }
 0x4e6   : > { %v16510_v62 = vpop.permute.xlu0 %10920  ;;  %v3423_v10 = vsel %vm88_vm3, %v16154_v52, %v10903_v55  ;;  %v10877_v26 = vunpack.i.l.bf16 %v16393_v27  ;;  %v10913_v55 = vunpack.i.h.bf16 %v16465_v43  ;;  %v10912_v27 = vunpack.i.l.bf16 %v16465_v43 }
 0x4e7   : > { %4317 = vmatpush.bf16.msrb.mxu1 %v10499_v31 }
 0x4e8   : > { %v3412_v43 = vsel %vm88_vm3, %v16313_v17, %v10877_v26 }
 0x4ea   : > { %9589 = vmatmul.msk.bf16.vlgmr.msrb.gmra.mxu3 %vm88_vm3, %v16540_v29 }
 0x4eb   : > { %3785 = vmatmul.bf16.gmra.mxu2 %v3100_v4 }
 0x4ec   : > { %v16536_v45 = vpop.permute.xlu2 %10990 }
 0x4ed   : > { %v10941_v4 = vpop.permute.xlu1 %10940 }
 0x4ee   : > { %v10936_v32 = vpop.permute.xlu0 %10935  ;;  %v10943_v39 = vunpack.i.h.bf16 %v10941_v4  ;;  %v10942_v47 = vunpack.i.l.bf16 %v10941_v4  ;;  %v9299_v4 = vld [vmem:[%s15902_s24 + $0x88] sm:$0xff] }
 0x4ef   : > { %v10938_v1 = vunpack.i.h.bf16 %v10936_v32  ;;  %v10937_v49 = vunpack.i.l.bf16 %v10936_v32 }
 0x4f0   : > { %v16560_v54 = vsel %vm124_vm5, %v3423_v10, %v10943_v39  ;;  %v16563_v52 = vsel %vm124_vm5, %v3422_v42, %v10942_v47 }
 0x4f1   : > { %v3437_v9 = vsel %vm124_vm5, %v3421_v33, %v10938_v1  ;;  %v3436_v53 = vsel %vm124_vm5, %v3420_v51, %v10937_v49  ;;  %v10918_v1 = vunpack.i.h.bf16 %v16344_v40  ;;  %v10917_v49 = vunpack.i.l.bf16 %v16344_v40 }
 0x4f2   : > { %v16570_v59 = vsel %vm3077_vm11, %v3436_v53, %v10977_v8  ;;  %v16573_v38 = vsel %vm3077_vm11, %v3437_v9, %v10978_v20  ;;  %v3413_v33 = vsel %vm88_vm3, %v16320_v46, %v10878_v36  ;;  %v3427_v20 = vsel %vm88_vm3, %v9299_v4, %v10913_v55 }
 0x4f3   : > { %v3468_v47 = vpack.c.bf16 %v16573_v38, %v16570_v59  ;;  %v3426_v8 = vsel %vm88_vm3, %v9298_v34, %v10912_v27  ;;  %v3428_v40 = vsel %vm124_vm5, %v3412_v43, %v10917_v49  ;;  %v3429_v46 = vsel %vm124_vm5, %v3413_v33, %v10918_v1 }
 0x4f4   : > { %v16585_v51 = vpop.permute.xlu2 %11005  ;;  %v10882_v27 = vunpack.i.l.bf16 %v16391_v18  ;;  %v19936_v34 = vpack.c.bf16 %v16253_v19, %v16250_v23  ;;  %v10883_v4 = vunpack.i.h.bf16 %v16391_v18  ;;  %v10922_v43 = vunpack.i.l.bf16 %v16510_v62  ;;  %v9531_v18 = vld [vmem:[%s15902_s24 + $0x9b] sm:$0xff] }
 0x4f5   : > { %v10956_v32 = vpop.permute.xlu1 %10955  ;;  %v10923_v23 = vunpack.i.h.bf16 %v16510_v62  ;;  %v10963_v62 = vunpack.i.h.bf16 %v16463_v37 }
 0x4f6   : > { %v10951_v39 = vpop.permute.xlu0 %10950  ;;  %v10958_v10 = vunpack.i.h.bf16 %v10956_v32  ;;  %v10957_v42 = vunpack.i.l.bf16 %v10956_v32  ;;  %v9530_v32 = vld [vmem:[%s15902_s24 + $0x93] sm:$0xff] }
 0x4f7   : > { %v10953_v31 = vunpack.i.h.bf16 %v10951_v39  ;;  %v10952_v9 = vunpack.i.l.bf16 %v10951_v39  ;;  %v3414_v39 = vsel %vm88_vm3, %v16398_v48, %v10882_v27  ;;  %v9748_v27 = vld [vmem:[%s15902_s24 + $0x41] sm:$0xff] }
 0x4f8   : > { %v16592_v17 = vsel %vm124_vm5, %v3426_v8, %v10957_v42  ;;  %v16595_v36 = vsel %vm124_vm5, %v3427_v20, %v10958_v10  ;;  %v9615_v20 = vld [vmem:[%s15902_s24 + $0x31] sm:$0xff]  ;;  %v9616_v8 = vld [vmem:[%s15902_s24 + $0x39] sm:$0xff] }
 0x4f9   : > { %v3444_v26 = vsel %vm3077_vm11, %v3428_v40, %v10952_v9  ;;  %v3445_v53 = vsel %vm3077_vm11, %v3429_v46, %v10953_v31  ;;  %v11114_v19 = vpack.i.bf16 %v9616_v8, %v9615_v20  ;;  %v9632_v10 = vld [vmem:[%s15902_s24 + $0x32] sm:$0xff]  ;;  %v9633_v42 = vld [vmem:[%s15902_s24 + $0x3a] sm:$0xff]  ;;  %v3415_v31 = vsel %vm88_vm3, %v16401_v21, %v10883_v4 }
 0x4fa   : > { %v3460_v55 = vpack.c.bf16 %v3445_v53, %v3444_v26  ;;  %9590 = vmatmul.msk.bf16.gmra.mxu3 %vm88_vm3, %v16157_v56  ;;  %v16624_v9 = vpack.i.bf16 %v9531_v18, %v9530_v32  ;;  %v11119_v40 = vpack.i.bf16 %v9633_v42, %v9632_v10  ;;  %v10962_v46 = vunpack.i.l.bf16 %v16463_v37 }
 0x4fb   : > { %3790 = vmatmul.bf16.gmra.mxu2 %v19936_v34  ;;  %11115 = vrot.lane.b32.xlu0 %v11114_v19, %s11650_s5  ;;  %v3430_v56 = vsel %vm124_vm5, %v3414_v39, %v10922_v43  ;;  %v3431_v26 = vsel %vm124_vm5, %v3415_v31, %v10923_v23  ;;  %v9749_v34 = vld [vmem:[%s15902_s24 + $0x49] sm:$0xff]  ;;  %v10993_v19 = vunpack.i.h.bf16 %v16536_v45  ;;  %v10992_v31 = vunpack.i.l.bf16 %v16536_v45 }
 0x4fc   : > { %3588 = vmatmul.bf16.vlgmr.msra.gmra.mxu0 %v3460_v55  ;;  %v16604_v1 = vpop.permute.xlu2 %11020  ;;  %11110 = vrot.lane.b32.xlu2 %v16624_v9, %s11652_s25  ;;  %v10528_v55 = vld [vmem:[%s18821_s3 + $0x188] sm:$0xff]  ;;  %v3446_v37 = vsel %vm3077_vm11, %v3430_v56, %v10962_v46  ;;  %v11129_v43 = vpack.i.bf16 %v9749_v34, %v9748_v27  ;;  %v3447_v23 = vsel %vm3077_vm11, %v3431_v26, %v10963_v62 }
 0x4fd   : > { %v16606_v49 = vpop.permute.xlu1 %10970  ;;  %11120 = vrot.lane.b32.xlu1 %v11119_v40, %s11651_s1  ;;  %5493 = vmatpush.bf16.msra.mxu3 %v10528_v55  ;;  %v3462_v40 = vpack.c.bf16 %v3447_v23, %v3446_v37  ;;  %v9765_v62 = vld [vmem:[%s15902_s24 + $0x42] sm:$0xff]  ;;  %v9766_v56 = vld [vmem:[%s15902_s24 + $0x4a] sm:$0xff]  ;;  %v4143_v45 = vsel %vm88_vm3, %v16401_v21, %v10993_v19  ;;  %v4142_v55 = vsel %vm88_vm3, %v16398_v48, %v10992_v31 }
 0x4fe   : > { %v16608_v33 = vpop.permute.xlu0 %10965 }
 0x503   : > { %11130 = vrot.lane.b32.xlu0 %v11129_v43, %s11650_s5 }
 0x504   : > { %v16634_v53 = vpop.permute.xlu2 %11035 }
 0x505   : > { %v10986_v4 = vpop.permute.xlu1 %10985 }
 0x506   : > { %v10981_v20 = vpop.permute.xlu0 %10980  ;;  %v10987_v8 = vunpack.i.l.bf16 %v10986_v4  ;;  %v10988_v27 = vunpack.i.h.bf16 %v10986_v4  ;;  %v10887_v4 = vunpack.i.l.bf16 %v16273_v13 }
 0x507   : > { %v10983_v32 = vunpack.i.h.bf16 %v10981_v20  ;;  %v10982_v39 = vunpack.i.l.bf16 %v10981_v20 }
 0x508   : > { %v16654_v42 = vsel %vm3077_vm11, %v16497_v7, %v10987_v8  ;;  %v10526_v7 = vld [vmem:[%s18821_s3 + $0x178] sm:$0xff] }
 0x509   : > { %v16646_v18 = vsel %vm3077_vm11, %v16563_v52, %v10982_v39  ;;  %v16650_v10 = vsel %vm3077_vm11, %v16560_v54, %v10983_v32  ;;  %v19937_v52 = vpack.c.bf16 %v16368_v3, %v16364_v41  ;;  %v11134_v54 = vpack.i.bf16 %v9766_v56, %v9765_v62  ;;  %5438 = vmatpush.bf16.msra.mxu1 %v10526_v7 }
 0x50a   : > { %v3470_v46 = vpack.c.bf16 %v16650_v10, %v16646_v18  ;;  %v10888_v39 = vunpack.i.h.bf16 %v16273_v13  ;;  %9591 = vmatmul.msk.bf16.gmra.mxu3 %vm88_vm3, %v16175_v24  ;;  %v10928_v24 = vunpack.i.h.bf16 %v16508_v30  ;;  %v10968_v13 = vunpack.i.h.bf16 %v16608_v33 }
 0x50b   : > { %3795 = vmatmul.bf16.gmra.mxu2 %v19937_v52  ;;  %11135 = vrot.lane.b32.xlu1 %v11134_v54, %s11651_s1  ;;  %v10967_v62 = vunpack.i.l.bf16 %v16608_v33  ;;  %v11008_v52 = vunpack.i.h.bf16 %v16585_v51  ;;  %v11007_v7 = vunpack.i.l.bf16 %v16585_v51 }
 0x50c   : > { %3593 = vmatmul.bf16.gmra.mxu0 %v3462_v40  ;;  %v11051_v26 = vpop.permute.xlu2 %11050  ;;  %11145 = vrot.lane.b32.xlu0 %v11129_v43, %s11650_s5 }
 0x50d   : > { %v11053_v34 = vunpack.i.h.bf16 %v11051_v26  ;;  %v11052_v20 = vunpack.i.l.bf16 %v11051_v26  ;;  %v11001_v37 = vpop.permute.xlu1 %11000  ;;  %v9750_v26 = vld [vmem:[%s15902_s24 + $0x51] sm:$0xff] }
 0x50e   : > { %v10996_v8 = vpop.permute.xlu0 %10995  ;;  %v11002_v41 = vunpack.i.l.bf16 %v11001_v37 }
 0x50f   : > { %v10998_v3 = vunpack.i.h.bf16 %v10996_v8  ;;  %v10997_v32 = vunpack.i.l.bf16 %v10996_v8  ;;  %v16678_v21 = vsel %vm3077_vm11, %v16592_v17, %v11052_v20  ;;  %v16682_v48 = vsel %vm3077_vm11, %v16595_v36, %v11053_v34 }
 0x510   : > { %v3474_v31 = vpack.c.bf16 %v16682_v48, %v16678_v21  ;;  %v10927_v17 = vunpack.i.l.bf16 %v16508_v30  ;;  %v3416_v30 = vsel %vm88_vm3, %v16458_v44, %v10887_v4  ;;  %v11003_v4 = vunpack.i.h.bf16 %v11001_v37  ;;  %v9649_v37 = vld [vmem:[%s15902_s24 + $0x33] sm:$0xff] }
 0x511   : > { %v4159_v23 = vsel %vm124_vm5, %v4143_v45, %v10998_v3  ;;  %v4158_v19 = vsel %vm124_vm5, %v4142_v55, %v10997_v32  ;;  %v3417_v45 = vsel %vm88_vm3, %v16461_v50, %v10888_v39  ;;  %v9751_v55 = vld [vmem:[%s15902_s24 + $0x59] sm:$0xff]  ;;  %v4145_v32 = vsel %vm88_vm3, %v16461_v50, %v11008_v52 }
 0x512   : > { %v4174_v40 = vsel %vm3077_vm11, %v4158_v19, %v10988_v27  ;;  %v4175_v36 = vsel %vm3077_vm11, %v4159_v23, %v11002_v41  ;;  %v3433_v43 = vsel %vm124_vm5, %v3417_v45, %v10928_v24  ;;  %v3432_v27 = vsel %vm124_vm5, %v3416_v30, %v10927_v17  ;;  %v9767_v17 = vld [vmem:[%s15902_s24 + $0x52] sm:$0xff] }
 0x513   : > { %v4190_v56 = vpack.c.bf16 %v4175_v36, %v4174_v40  ;;  %11150 = vrot.lane.b32.xlu1 %v11134_v54, %s11651_s1  ;;  %v11159_v51 = vpack.i.bf16 %v9751_v55, %v9750_v26  ;;  %v3448_v20 = vsel %vm3077_vm11, %v3432_v27, %v10967_v62  ;;  %v3449_v8 = vsel %vm3077_vm11, %v3433_v43, %v10968_v13  ;;  %v9768_v40 = vld [vmem:[%s15902_s24 + $0x5a] sm:$0xff] }
 0x514   : > { %v4144_v39 = vsel %vm88_vm3, %v16458_v44, %v11007_v7  ;;  %v3464_v19 = vpack.c.bf16 %v3449_v8, %v3448_v20  ;;  %v19938_v36 = vpack.c.bf16 %v16378_v2, %v16372_v16  ;;  %v11164_v50 = vpack.i.bf16 %v9768_v40, %v9767_v17  ;;  %v10525_v44 = vld [vmem:[%s18821_s3 + $0x170] sm:$0xff]  ;;  %v9650_v13 = vld [vmem:[%s15902_s24 + $0x3b] sm:$0xff] }
 0x515   : > { %4318 = vmatmul.bf16.vlgmr.msrb.gmra.mxu1 %v4190_v56  ;;  %v16706_v34 = vpop.permute.xlu1 %11015  ;;  %11160 = vrot.lane.b32.xlu0 %v11159_v51, %s11650_s5  ;;  %v11124_v62 = vpack.i.bf16 %v9650_v13, %v9649_v37  ;;  %v10893_v45 = vunpack.i.h.bf16 %v16436_v22  ;;  %v10892_v16 = vunpack.i.l.bf16 %v16436_v22  ;;  %v10933_v55 = vunpack.i.h.bf16 %v16387_v15 }
 0x516   : > { %v11011_v33 = vpop.permute.xlu0 %11010  ;;  %v11017_v23 = vunpack.i.l.bf16 %v16706_v34  ;;  %5439 = vmatpush.bf16.msra.mxu1 %v10525_v44  ;;  %v10932_v43 = vunpack.i.l.bf16 %v16387_v15  ;;  %v11023_v8 = vunpack.i.h.bf16 %v16604_v1  ;;  %v11022_v15 = vunpack.i.l.bf16 %v16604_v1 }
 0x517   : > { %v11013_v41 = vunpack.i.h.bf16 %v11011_v33  ;;  %v11012_v3 = vunpack.i.l.bf16 %v11011_v33  ;;  %11125 = vrot.lane.b32.xlu2 %v11124_v62, %s11652_s25  ;;  %v3418_v27 = vsel %vm88_vm3, %v16200_v11, %v10892_v16  ;;  %v10973_v33 = vunpack.i.h.bf16 %v16606_v49 }
 0x518   : > { %v3434_v11 = vsel %vm124_vm5, %v3418_v27, %v10932_v43  ;;  %v11018_v44 = vunpack.i.h.bf16 %v16706_v34  ;;  %v19939_v16 = vpack.c.bf16 %v16294_v6, %v16291_v25  ;;  %v10524_v34 = vld [vmem:[%s18821_s3 + $0x168] sm:$0xff]  ;;  %v11038_v43 = vunpack.i.h.bf16 %v16634_v53 }
 0x519   : > { %v4161_v54 = vsel %vm124_vm5, %v4145_v32, %v11013_v41  ;;  %v4160_v24 = vsel %vm124_vm5, %v4144_v39, %v11012_v3  ;;  %v9782_v41 = vld [vmem:[%s15902_s24 + $0x43] sm:$0xff]  ;;  %v9783_v3 = vld [vmem:[%s15902_s24 + $0x4b] sm:$0xff] }
 0x51a   : > { %v4176_v52 = vsel %vm3077_vm11, %v4160_v24, %v11003_v4  ;;  %v4177_v7 = vsel %vm3077_vm11, %v4161_v54, %v11017_v23  ;;  %9592 = vmatmul.msk.bf16.gmra.mxu3 %vm88_vm3, %v16247_v12  ;;  %v3419_v12 = vsel %vm88_vm3, %v16203_v58, %v10893_v45  ;;  %v9469_v32 = vld [vmem:[%s15902_s24 + $0x40] sm:$0xff]  ;;  %v9470_v58 = vld [vmem:[%s15902_s24 + $0x48] sm:$0xff]  ;;  %v11139_v39 = vpack.i.bf16 %v9783_v3, %v9782_v41 }
 0x51b   : > { %3800 = vmatmul.bf16.gmra.mxu2 %v19938_v36  ;;  %11165 = vrot.lane.b32.xlu1 %v11164_v50, %s11651_s1  ;;  %v4192_v30 = vpack.c.bf16 %v4177_v7, %v4176_v52  ;;  %v3435_v4 = vsel %vm124_vm5, %v3419_v12, %v10933_v55  ;;  %v9752_v54 = vld [vmem:[%s15902_s24 + $0x61] sm:$0xff]  ;;  %v9753_v24 = vld [vmem:[%s15902_s24 + $0x69] sm:$0xff]  ;;  %v4147_v17 = vsel %vm88_vm3, %v9470_v58, %v11023_v8  ;;  %v16786_v55 = vpop.f32.mrf.mxu1  ;;  %v11037_v12 = vunpack.i.l.bf16 %v16634_v53 }
 0x51c   : > { %3598 = vmatmul.bf16.gmra.mxu0 %v3464_v19  ;;  %v3451_v23 = vsel %vm3077_vm11, %v3435_v4, %v10973_v33  ;;  %v4146_v40 = vsel %vm88_vm3, %v9469_v32, %v11022_v15  ;;  %v11189_v36 = vpack.i.bf16 %v9753_v24, %v9752_v54  ;;  %v9769_v7 = vld [vmem:[%s15902_s24 + $0x62] sm:$0xff]  ;;  %v9770_v45 = vld [vmem:[%s15902_s24 + $0x6a] sm:$0xff]  ;;  %5440 = vmatpush.bf16.msra.mxu1 %v10524_v34  ;;  %v9784_v33 = vld [vmem:[%s15902_s24 + $0x53] sm:$0xff] }
 0x51d   : > { %v11031_v56 = vpop.permute.xlu1 %11030  ;;  %11175 = vrot.lane.b32.xlu0 %v11159_v51, %s11650_s5  ;;  %v16752_v20 = vpop.f32.mrf.mxu3  ;;  %v9471_v8 = vld [vmem:[%s15902_s24 + $0x50] sm:$0xff]  ;;  %v9472_v15 = vld [vmem:[%s15902_s24 + $0x58] sm:$0xff]  ;;  %v10523_v24 = vld [vmem:[%s18821_s3 + $0x160] sm:$0xff] }
 0x51e   : > { %v11033_v2 = vunpack.i.h.bf16 %v11031_v56  ;;  %v11026_v51 = vpop.permute.xlu0 %11025  ;;  %v4149_v32 = vsel %vm88_vm3, %v9472_v15, %v11038_v43  ;;  %v4148_v53 = vsel %vm88_vm3, %v9471_v8, %v11037_v12 }
 0x51f   : > { %v11028_v1 = vunpack.i.h.bf16 %v11026_v51  ;;  %v11027_v19 = vunpack.i.l.bf16 %v11026_v51  ;;  %11140 = vrot.lane.b32.xlu2 %v11139_v39, %s11652_s25 }
 0x520   : > { %v16739_v26 = vsel %vm3077_vm11, %v16500_v57, %v11033_v2  ;;  %v10972_v57 = vunpack.i.l.bf16 %v16606_v49  ;;  %v11194_v2 = vpack.i.bf16 %v9770_v45, %v9769_v7  ;;  %5441 = vmatpush.bf16.msra.mxu1 %v10523_v24  ;;  %v16839_v7 = vld [vmem:[%s15902_s24 + $0x68] sm:$0xff] }
 0x521   : > { %v3472_v22 = vpack.c.bf16 %v16739_v26, %v16654_v42  ;;  %v4163_v13 = vsel %vm124_vm5, %v4147_v17, %v11028_v1  ;;  %v4162_v62 = vsel %vm124_vm5, %v4146_v40, %v11027_v19  ;;  %v9771_v1 = vld [vmem:[%s15902_s24 + $0x72] sm:$0xff]  ;;  %v9772_v19 = vld [vmem:[%s15902_s24 + $0x7a] sm:$0xff] }
 0x522   : > { %v3450_v49 = vsel %vm3077_vm11, %v3434_v11, %v10972_v57  ;;  %v9785_v57 = vld [vmem:[%s15902_s24 + $0x5b] sm:$0xff]  ;;  %v11224_v54 = vpack.i.bf16 %v9772_v19, %v9771_v1 }
 0x523   : > { %11180 = vrot.lane.b32.xlu1 %v11164_v50, %s11651_s1  ;;  %v11032_v50 = vunpack.i.l.bf16 %v11031_v56  ;;  %v3466_v37 = vpack.c.bf16 %v3451_v23, %v3450_v49  ;;  %v4178_v56 = vsel %vm3077_vm11, %v4162_v62, %v11018_v44  ;;  %v11169_v51 = vpack.i.bf16 %v9785_v57, %v9784_v33  ;;  %v16805_v58 = vpop.f32.mrf.mxu1  ;;  %v16836_v62 = vld [vmem:[%s15902_s24 + $0x60] sm:$0xff]  ;;  %v9774_v57 = vld [vmem:[%s15902_s24 + $0x8a] sm:$0xff]  ;;  %v16889_v19 = vld [vmem:[%s15902_s24 + $0x78] sm:$0xff] }
 0x524   : > { %v9773_v33 = vld [vmem:[%s15902_s24 + $0x82] sm:$0xff]  ;;  %v19947_v42 = vld [vmem:[#allocation168_spill] sm:$0xff] }
 0x525   : > { %4323 = vmatmul.bf16.gmra.mxu1 %v4192_v30  ;;  %11190 = vrot.lane.b32.xlu0 %v11189_v36, %s11650_s5  ;;  %v16774_v52 = vpop.f32.mrf.mxu3  ;;  %v4179_v30 = vsel %vm3077_vm11, %v4163_v13, %v11032_v50  ;;  %v11046_v3 = vpop.permute.xlu1 %11045  ;;  %v11254_v15 = vpack.i.bf16 %v9774_v57, %v9773_v33 }
 0x526   : > { %v4194_v25 = vpack.c.bf16 %v4179_v30, %v4178_v56  ;;  %v11041_v27 = vpop.permute.xlu0 %11040  ;;  %v11047_v11 = vunpack.i.l.bf16 %v11046_v3 }
 0x527   : > { %11155 = vrot.lane.b32.xlu2 %v11139_v39, %s11652_s25  ;;  %v11042_v41 = vunpack.i.l.bf16 %v11041_v27  ;;  %v11048_v39 = vunpack.i.h.bf16 %v11046_v3 }
 0x529   : > { %v4164_v49 = vsel %vm124_vm5, %v4148_v53, %v11042_v41  ;;  %v9268_v41 = vld [vmem:[%s15902_s24 + $0xc] sm:$0xff] }
 0x52a   : > { %9593 = vmatmul.msk.bf16.gmra.mxu3 %vm88_vm3, %v16340_v63  ;;  %v11043_v63 = vunpack.i.h.bf16 %v11041_v27  ;;  %v4180_v17 = vsel %vm3077_vm11, %v4164_v49, %v11047_v11  ;;  %v16886_v49 = vld [vmem:[%s15902_s24 + $0x70] sm:$0xff] }
 0x52b   : > { %3805 = vmatmul.bf16.gmra.mxu2 %v19939_v16  ;;  %11195 = vrot.lane.b32.xlu1 %v11194_v2, %s11651_s1 }
 0x52c   : > { %3603 = vmatmul.bf16.gmra.mxu0 %v3466_v37  ;;  %v4165_v4 = vsel %vm124_vm5, %v4149_v32, %v11043_v63  ;;  %v9267_v63 = vld [vmem:[%s15902_s24 + $0x4] sm:$0xff] }
 0x52d   : > { %11205 = vrot.lane.b32.xlu0 %v11189_v36, %s11650_s5  ;;  %v16793_v6 = vpop.f32.mrf.mxu3  ;;  %v4181_v40 = vsel %vm3077_vm11, %v4165_v4, %v11048_v39  ;;  %v11061_v13 = vpop.permute.xlu1 %11060  ;;  %v3095_v18 = vpack.c.bf16 %v9268_v41, %v9267_v63 }
 0x52e   : > { %v4196_v59 = vpack.c.bf16 %v4181_v40, %v4180_v17  ;;  %v11056_v38 = vpop.permute.xlu0 %11055  ;;  %v11063_v45 = vunpack.i.h.bf16 %v11061_v13  ;;  %v11062_v16 = vunpack.i.l.bf16 %v11061_v13 }
 0x52f   : > { %11170 = vrot.lane.b32.xlu2 %v11169_v51, %s11652_s25  ;;  %v11058_v50 = vunpack.i.h.bf16 %v11056_v38  ;;  %v11057_v37 = vunpack.i.l.bf16 %v11056_v38 }
 0x531   : > { %v4151_v34 = vsel %vm88_vm3, %v16839_v7, %v11058_v50  ;;  %v4150_v56 = vsel %vm88_vm3, %v16836_v62, %v11057_v37 }
 0x532   : > { %v4166_v43 = vsel %vm124_vm5, %v4150_v56, %v11062_v16  ;;  %v4167_v12 = vsel %vm124_vm5, %v4151_v34, %v11063_v45  ;;  %v9352_v16 = vld [vmem:[%s15902_s24 + $0x14] sm:$0xff] }
 0x533   : > { %11210 = vrot.lane.b32.xlu1 %v11194_v2, %s11651_s1  ;;  %v11066_v2 = vpop.permute.xlu2 %11065  ;;  %v10521_v56 = vld [vmem:[%s18821_s3 + $0x150] sm:$0xff] }
 0x534   : > { %v11068_v30 = vunpack.i.h.bf16 %v11066_v2 }
 0x535   : > { %4328 = vmatmul.bf16.gmra.mxu1 %v4194_v25  ;;  %11220 = vrot.lane.b32.xlu0 %v16360_v0, %s11650_s5  ;;  %v16811_v23 = vpop.f32.mrf.mxu3  ;;  %v11067_v25 = vunpack.i.l.bf16 %v11066_v2  ;;  %v11076_v11 = vpop.permute.xlu1 %11075  ;;  %v9353_v2 = vld [vmem:[%s15902_s24 + $0x1c] sm:$0xff] }
 0x536   : > { %v4183_v32 = vsel %vm3077_vm11, %v4167_v12, %v11068_v30  ;;  %v11078_v40 = vunpack.i.h.bf16 %v11076_v11  ;;  %v9547_v30 = vld [vmem:[%s15902_s24 + $0x94] sm:$0xff]  ;;  %v16926_v12 = vpack.c.bf16 %v9353_v2, %v9352_v16 }
 0x537   : > { %11185 = vrot.lane.b32.xlu2 %v11169_v51, %s11652_s25  ;;  %v10522_v51 = vld [vmem:[%s18821_s3 + $0x158] sm:$0xff]  ;;  %v4182_v3 = vsel %vm3077_vm11, %v4166_v43, %v11067_v25 }
 0x538   : > { %5442 = vmatpush.bf16.msra.mxu1 %v10522_v51  ;;  %v4198_v53 = vpack.c.bf16 %v4183_v32, %v4182_v3  ;;  %v9548_v25 = vld [vmem:[%s15902_s24 + $0x9c] sm:$0xff] }
 0x539   : > { %v16930_v26 = vpack.c.bf16 %v9548_v25, %v9547_v30  ;;  %v10515_v51 = vld [vmem:[%s18821_s3 + $0x120] sm:$0xff] }
 0x53a   : > { %9594 = vmatmul.msk.bf16.gmra.mxu3 %vm88_vm3, %v16426_v28  ;;  %v9790_v32 = vld [vmem:[%s15902_s24 + $0x83] sm:$0xff] }
 0x53b   : > { %11225 = vrot.lane.b32.xlu1 %v11224_v54, %s11651_s1  ;;  %9456 = vmatmul.msk.bf16.vlgmr.msrb.gmra.mxu2 %vm88_vm3, %v3095_v18  ;;  %v9791_v18 = vld [vmem:[%s15902_s24 + $0x8b] sm:$0xff] }
 0x53c   : > { %3608 = vmatmul.bf16.gmra.mxu0 %v3468_v47  ;;  %v16829_v47 = vpop.f32.mrf.mxu1  ;;  %5443 = vmatpush.bf16.msra.mxu1 %v10521_v56  ;;  %v9778_v56 = vld [vmem:[%s15902_s24 + $0xaa] sm:$0xff] }
 0x53d   : > { %11235 = vrot.lane.b32.xlu0 %v16360_v0, %s11650_s5  ;;  %v16833_v44 = vpop.f32.mrf.mxu3  ;;  %v10527_v0 = vld [vmem:[%s18821_s3 + $0x180] sm:$0xff]  ;;  %v11091_v3 = vpop.permute.xlu1 %11090 }
 0x53e   : > { %v16824_v36 = vpop.f32.mrf.mxu2  ;;  %5494 = vmatpush.bf16.msra.mxu3 %v10527_v0  ;;  %v10516_v0 = vld [vmem:[%s18821_s3 + $0x128] sm:$0xff] }
 0x53f   : > { %19940 = vst [vmem:[#allocation169_spill] sm:$0xff] %v16824_v36  ;;  %11200 = vrot.lane.b32.xlu2 %v16428_v14, %s11652_s25  ;;  %4874 = vmatpush.bf16.msra.mxu0 %v10516_v0 }
 0x543   : > { %11240 = vrot.lane.b32.xlu1 %v11224_v54, %s11651_s1  ;;  %v11077_v54 = vunpack.i.l.bf16 %v11076_v11  ;;  %4875 = vmatpush.bf16.msra.mxu0 %v10515_v51  ;;  %v11093_v11 = vunpack.i.h.bf16 %v11091_v3 }
 0x544   : > { %v16864_v8 = vpop.f32.mrf.mxu1 }
 0x545   : > { %4333 = vmatmul.bf16.gmra.mxu1 %v4196_v59  ;;  %11250 = vrot.lane.b32.xlu0 %v16450_v35, %s11650_s5  ;;  %v16857_v27 = vpop.f32.mrf.mxu3 }
 0x546   : > { %v16842_v28 = vpop.f32.mrf.mxu2  ;;  %19942 = vst [vmem:[#allocation171_spill] sm:$0xff] %v16857_v27  ;;  %v9598_v27 = vld [vmem:[%s15902_s24 + $0x30] sm:$0xff] }
 0x547   : > { %19941 = vst [vmem:[#allocation170_spill] sm:$0xff] %v16842_v28  ;;  %11215 = vrot.lane.b32.xlu2 %v16428_v14, %s11652_s25  ;;  %v10518_v14 = vld [vmem:[%s18821_s3 + $0x138] sm:$0xff] }
 0x548   : > { %4929 = vmatpush.bf16.msra.mxu2 %v10518_v14 }
 0x54a   : > { %9595 = vmatmul.msk.bf16.gmra.mxu3 %vm88_vm3, %v16492_v60  ;;  %v11081_v60 = vpop.permute.xlu2 %11080 }
 0x54b   : > { %11255 = vrot.lane.b32.xlu1 %v11254_v15, %s11651_s1  ;;  %v11082_v38 = vunpack.i.l.bf16 %v11081_v60  ;;  %v11083_v37 = vunpack.i.h.bf16 %v11081_v60  ;;  %9457 = vmatmul.msk.bf16.gmra.mxu2 %vm88_vm3, %v16926_v12 }
 0x54c   : > { %3613 = vmatmul.bf16.gmra.mxu0 %v3470_v46  ;;  %v11071_v46 = vpop.permute.xlu0 %11070  ;;  %v16894_v24 = vpop.f32.mrf.mxu1 }
 0x54d   : > { %11265 = vrot.lane.b32.xlu0 %v16450_v35, %s11650_s5  ;;  %v11072_v39 = vunpack.i.l.bf16 %v11071_v46  ;;  %v16883_v4 = vpop.f32.mrf.mxu3  ;;  %v11073_v1 = vunpack.i.h.bf16 %v11071_v46  ;;  %v16952_v46 = vld [vmem:[%s15902_s24 + $0x80] sm:$0xff] }
 0x54e   : > { %v16874_v10 = vpop.f32.mrf.mxu2  ;;  %19944 = vst [vmem:[#allocation173_spill] sm:$0xff] %v16883_v4  ;;  %v9804_v4 = vld [vmem:[%s15902_s24 + $0x6c] sm:$0xff] }
 0x54f   : > { %19943 = vst [vmem:[#allocation172_spill] sm:$0xff] %v16874_v10  ;;  %v4152_v17 = vsel %vm88_vm3, %v16886_v49, %v11072_v39  ;;  %11230 = vrot.lane.b32.xlu2 %v16494_v61, %s11652_s25  ;;  %v4153_v59 = vsel %vm88_vm3, %v16889_v19, %v11073_v1  ;;  %v11259_v39 = vpack.i.bf16 %v9791_v18, %v9790_v32  ;;  %v11092_v1 = vunpack.i.l.bf16 %v11091_v3  ;;  %v10512_v3 = vld [vmem:[%s18821_s3 + $0x108] sm:$0xff] }
 0x550   : > { %v4168_v50 = vsel %vm124_vm5, %v4152_v17, %v11077_v54  ;;  %v4169_v13 = vsel %vm124_vm5, %v4153_v59, %v11078_v40  ;;  %v10514_v54 = vld [vmem:[%s18821_s3 + $0x118] sm:$0xff]  ;;  %v9760_v40 = vld [vmem:[%s15902_s24 + $0xa1] sm:$0xff]  ;;  %v9761_v59 = vld [vmem:[%s15902_s24 + $0xa9] sm:$0xff] }
 0x551   : > { %v4184_v34 = vsel %vm3077_vm11, %v4168_v50, %v11082_v38  ;;  %v4185_v43 = vsel %vm3077_vm11, %v4169_v13, %v11083_v37  ;;  %4876 = vmatpush.bf16.msra.mxu0 %v10514_v54  ;;  %v11309_v13 = vpack.i.bf16 %v9761_v59, %v9760_v40 }
 0x552   : > { %v4200_v57 = vpack.c.bf16 %v4185_v43, %v4184_v34  ;;  %v11096_v14 = vpop.permute.xlu2 %11095  ;;  %v9777_v34 = vld [vmem:[%s15902_s24 + $0xa2] sm:$0xff] }
 0x553   : > { %11270 = vrot.lane.b32.xlu1 %v11254_v15, %s11651_s1  ;;  %v11098_v38 = vunpack.i.h.bf16 %v11096_v14  ;;  %v11097_v50 = vunpack.i.l.bf16 %v11096_v14  ;;  %v11314_v25 = vpack.i.bf16 %v9778_v56, %v9777_v34  ;;  %v10520_v43 = vld [vmem:[%s18821_s3 + $0x148] sm:$0xff]  ;;  %v17014_v14 = vld [vmem:[%s15902_s24 + $0x98] sm:$0xff] }
 0x554   : > { %v16936_v33 = vpop.f32.mrf.mxu1  ;;  %v11086_v15 = vpop.permute.xlu0 %11085  ;;  %5444 = vmatpush.bf16.msra.mxu1 %v10520_v43  ;;  %v9762_v34 = vld [vmem:[%s15902_s24 + $0xb1] sm:$0xff]  ;;  %v9763_v56 = vld [vmem:[%s15902_s24 + $0xb9] sm:$0xff] }
 0x555   : > { %4338 = vmatmul.bf16.gmra.mxu1 %v4198_v53  ;;  %11280 = vrot.lane.b32.xlu0 %v16523_v5, %s11650_s5  ;;  %v16909_v45 = vpop.f32.mrf.mxu3  ;;  %v11088_v63 = vunpack.i.h.bf16 %v11086_v15  ;;  %v11087_v41 = vunpack.i.l.bf16 %v11086_v15  ;;  %v16955_v53 = vld [vmem:[%s15902_s24 + $0x88] sm:$0xff] }
 0x556   : > { %v16897_v35 = vpop.f32.mrf.mxu2  ;;  %19946 = vst [vmem:[#allocation175_spill] sm:$0xff] %v16909_v45  ;;  %v9803_v45 = vld [vmem:[%s15902_s24 + $0x64] sm:$0xff] }
 0x557   : > { %19945 = vst [vmem:[#allocation174_spill] sm:$0xff] %v16897_v35  ;;  %11245 = vrot.lane.b32.xlu2 %v16494_v61, %s11652_s25  ;;  %v4155_v60 = vsel %vm88_vm3, %v16955_v53, %v11088_v63  ;;  %v4154_v17 = vsel %vm88_vm3, %v16952_v46, %v11087_v41  ;;  %v11106_v48 = vpop.permute.xlu1 %11105 }
 0x558   : > { %v4170_v16 = vsel %vm124_vm5, %v4154_v17, %v11092_v1  ;;  %v4171_v2 = vsel %vm124_vm5, %v4155_v60, %v11093_v11  ;;  %v17011_v1 = vld [vmem:[%s15902_s24 + $0x90] sm:$0xff]  ;;  %v11108_v60 = vunpack.i.h.bf16 %v11106_v48  ;;  %v11107_v17 = vunpack.i.l.bf16 %v11106_v48 }
 0x559   : > { %v4186_v15 = vsel %vm3077_vm11, %v4170_v16, %v11097_v50  ;;  %v4187_v21 = vsel %vm3077_vm11, %v4171_v2, %v11098_v38  ;;  %v9779_v48 = vld [vmem:[%s15902_s24 + $0xb2] sm:$0xff] }
 0x55a   : > { %9596 = vmatmul.msk.bf16.gmra.mxu3 %vm88_vm3, %v16930_v26  ;;  %v4202_v51 = vpack.c.bf16 %v4187_v21, %v4186_v15  ;;  %v11111_v63 = vpop.permute.xlu2 %11110  ;;  %v11339_v15 = vpack.i.bf16 %v9763_v56, %v9762_v34  ;;  %v9357_v21 = vld [vmem:[%s15902_s24 + $0x3c] sm:$0xff] }
 0x55b   : > { %11285 = vrot.lane.b32.xlu1 %v19947_v42, %s11651_s1  ;;  %9458 = vmatmul.msk.bf16.gmra.mxu2 %vm88_vm3, %v16540_v29  ;;  %v11113_v16 = vunpack.i.h.bf16 %v11111_v63  ;;  %v11112_v2 = vunpack.i.l.bf16 %v11111_v63  ;;  %v10519_v63 = vld [vmem:[%s18821_s3 + $0x140] sm:$0xff]  ;;  %v10510_v56 = vld [vmem:[%s18821_s3 + $0xf8] sm:$0xff] }
 0x55c   : > { %3618 = vmatmul.bf16.gmra.mxu0 %v3472_v22  ;;  %v16971_v37 = vpop.f32.mrf.mxu1  ;;  %v11101_v30 = vpop.permute.xlu0 %11100  ;;  %5445 = vmatpush.bf16.msra.mxu1 %v10519_v63 }
 0x55d   : > { %11295 = vrot.lane.b32.xlu0 %v16523_v5, %s11650_s5  ;;  %v16947_v61 = vpop.f32.mrf.mxu3  ;;  %v11103_v18 = vunpack.i.h.bf16 %v11101_v30 }
 0x55e   : > { %v16932_v22 = vpop.f32.mrf.mxu2  ;;  %19949 = vst [vmem:[#allocation176_spill] sm:$0xff] %v16947_v61 }
 0x55f   : > { %19948 = vst [vmem:[#allocation168_spill] sm:$0xff] %v16932_v22  ;;  %11260 = vrot.lane.b32.xlu2 %v11259_v39, %s11652_s25  ;;  %v4157_v40 = vsel %vm88_vm3, %v17014_v14, %v11103_v18 }
 0x560   : > { %v4173_v43 = vsel %vm124_vm5, %v4157_v40, %v11108_v60 }
 0x563   : > { %11300 = vrot.lane.b32.xlu1 %v19947_v42, %s11651_s1  ;;  %v10513_v42 = vld [vmem:[%s18821_s3 + $0x110] sm:$0xff] }
 0x564   : > { %4877 = vmatpush.bf16.msra.mxu0 %v10513_v42  ;;  %v17005_v32 = vpop.f32.mrf.mxu1 }
 0x565   : > { %4343 = vmatmul.bf16.gmra.mxu1 %v4200_v57  ;;  %v16975_v0 = vpop.f32.mrf.mxu3  ;;  %11310 = vrot.lane.b32.xlu0 %v11309_v13, %s11650_s5  ;;  %v10517_v57 = vld [vmem:[%s18821_s3 + $0x130] sm:$0xff]  ;;  %19952 = vst [vmem:[#allocation179_spill] sm:$0xff] %v17005_v32 }
 0x566   : > { %v16959_v5 = vpop.f32.mrf.mxu2  ;;  %19951 = vst [vmem:[#allocation178_spill] sm:$0xff] %v16975_v0  ;;  %4930 = vmatpush.bf16.msra.mxu2 %v10517_v57  ;;  %v10511_v57 = vld [vmem:[%s18821_s3 + $0x100] sm:$0xff] }
 0x567   : > { %19950 = vst [vmem:[#allocation177_spill] sm:$0xff] %v16959_v5  ;;  %11275 = vrot.lane.b32.xlu2 %v11259_v39, %s11652_s25  ;;  %v11102_v39 = vunpack.i.l.bf16 %v11101_v30  ;;  %v9356_v30 = vld [vmem:[%s15902_s24 + $0x34] sm:$0xff] }
 0x568   : > { %4878 = vmatpush.bf16.msra.mxu0 %v10512_v3  ;;  %v17054_v40 = vpack.c.bf16 %v9357_v21, %v9356_v30 }
 0x569   : > { %v4156_v59 = vsel %vm88_vm3, %v17011_v1, %v11102_v39 }
 0x56b   : > { %11315 = vrot.lane.b32.xlu1 %v11314_v25, %s11651_s1  ;;  %9722 = vmatmul.msk.bf16.vlgmr.msra.gmra.mxu2 %vm88_vm3, %v17054_v40 }
 0x56c   : > { %3623 = vmatmul.bf16.gmra.mxu0 %v3474_v31  ;;  %v17050_v39 = vpop.f32.mrf.mxu1 }
 0x56d   : > { %v17000_v41 = vpop.f32.mrf.mxu3  ;;  %11325 = vrot.lane.b32.xlu0 %v11309_v13, %s11650_s5  ;;  %v17008_v11 = vpop.permute.xlu0 %11115  ;;  %4879 = vmatpush.bf16.msra.mxu0 %v10511_v57  ;;  %19954 = vst [vmem:[#allocation181_spill] sm:$0xff] %v17050_v39  ;;  %v9795_v57 = vld [vmem:[%s15902_s24 + $0xab] sm:$0xff] }
 0x56e   : > { %v16996_v31 = vpop.f32.mrf.mxu2  ;;  %v11117_v32 = vunpack.i.l.bf16 %v17008_v11 }
 0x56f   : > { %v17017_v54 = vpop.permute.xlu1 %11120  ;;  %11290 = vrot.lane.b32.xlu2 %v16624_v9, %s11652_s25 }
 0x571   : > { %v17027_v50 = vpop.permute.xlu2 %11125  ;;  %4880 = vmatpush.bf16.msra.mxu0 %v10510_v56 }
 0x573   : > { %11330 = vrot.lane.b32.xlu1 %v11314_v25, %s11651_s1  ;;  %v4172_v25 = vsel %vm124_vm5, %v4156_v59, %v11107_v17  ;;  %v4189_v17 = vsel %vm3077_vm11, %v4173_v43, %v11113_v16  ;;  %v9800_v59 = vld [vmem:[%s15902_s24 + $0x4c] sm:$0xff] }
 0x574   : > { %v4188_v60 = vsel %vm3077_vm11, %v4172_v25, %v11112_v2  ;;  %v17087_v56 = vpop.f32.mrf.mxu1 }
 0x575   : > { %4348 = vmatmul.bf16.gmra.mxu1 %v4202_v51  ;;  %v17036_v42 = vpop.f32.mrf.mxu3  ;;  %v9780_v51 = vld [vmem:[%s15902_s24 + $0xba] sm:$0xff]  ;;  %v11131_v3 = vpop.permute.xlu0 %11130  ;;  %11340 = vrot.lane.b32.xlu0 %v11339_v15, %s11650_s5  ;;  %v4204_v30 = vpack.c.bf16 %v4189_v17, %v4188_v60  ;;  %v10509_v15 = vld [vmem:[%s18821_s3 + $0xf0] sm:$0xff]  ;;  %v17084_v17 = vld [vmem:[%s15902_s24 + $0x48] sm:$0xff]  ;;  %19956 = vst [vmem:[#allocation183_spill] sm:$0xff] %v17087_v56  ;;  %v5323_v56 = vpack.c.bf16 %v9804_v4, %v9803_v45  ;;  %s17696_s3 = smov (%p2757_p2), 0  }
 0x576   : > { %v17029_v13 = vpop.f32.mrf.mxu2  ;;  %v11344_v18 = vpack.i.bf16 %v9780_v51, %v9779_v48  ;;  %v11133_v48 = vunpack.i.h.bf16 %v11131_v3  ;;  %v11132_v51 = vunpack.i.l.bf16 %v11131_v3  ;;  %v17081_v60 = vld [vmem:[%s15902_s24 + $0x40] sm:$0xff]  ;;  %4881 = vmatpush.bf16.msra.mxu0 %v10509_v15 }
 0x577   : > { %11305 = vrot.lane.b32.xlu2 %v16624_v9, %s11652_s25  ;;  %v9794_v9 = vld [vmem:[%s15902_s24 + $0xa3] sm:$0xff] }
 0x578   : > { %v11319_v63 = vpack.i.bf16 %v9795_v57, %v9794_v9  ;;  %v5271_v5 = vsel %vm88_vm3, %v17084_v17, %v11133_v48  ;;  %v5270_v3 = vsel %vm88_vm3, %v17081_v60, %v11132_v51 }
 0x579   : > { %v17025_v38 = vpop.f32.mrf.mxu0  ;;  %v11141_v25 = vpop.permute.xlu2 %11140 }
 0x57a   : > { %19953 = vst [vmem:[#allocation180_spill] sm:$0xff] %v17025_v38  ;;  %v11143_v15 = vunpack.i.h.bf16 %v11141_v25 }
 0x57b   : > { %11345 = vrot.lane.b32.xlu1 %v11344_v18, %s11651_s1 }
 0x57c   : > { %9408 = vmatmul.msk.bf16.vlgmr.msrb.gmra.mxu0 %vm88_vm3, %v16926_v12  ;;  %v9799_v12 = vld [vmem:[%s15902_s24 + $0x44] sm:$0xff] }
 0x57d   : > { %v5319_v34 = vpack.c.bf16 %v9800_v59, %v9799_v12  ;;  %v11136_v16 = vpop.permute.xlu1 %11135  ;;  %v17069_v43 = vpop.f32.mrf.mxu3 }
 0x57e   : > { %v17076_v21 = vpop.f32.mrf.mxu2  ;;  %v17078_v18 = vpop.permute.xlu0 %11145  ;;  %v11138_v12 = vunpack.i.h.bf16 %v11136_v16  ;;  %v11137_v59 = vunpack.i.l.bf16 %v11136_v16  ;;  %v11142_v16 = vunpack.i.l.bf16 %v11141_v25  ;;  %v9802_v25 = vld [vmem:[%s15902_s24 + $0x5c] sm:$0xff] }
 0x57f   : > { %9855 = vmatmul.msk.bf16.vlgmr.msra.gmra.mxu3 %vm88_vm3, %v5319_v34  ;;  %11320 = vrot.lane.b32.xlu2 %v11319_v63, %s11652_s25 }
 0x580   : > { %v5286_v22 = vsel %vm124_vm5, %v5270_v3, %v11137_v59  ;;  %v5287_v35 = vsel %vm124_vm5, %v5271_v5, %v11138_v12  ;;  %9723 = vmatmul.msk.bf16.gmra.mxu2 %vm88_vm3, %v5319_v34  ;;  %v17126_v34 = vld [vmem:[%s15902_s24 + $0x50] sm:$0xff] }
 0x581   : > { %v17066_v2 = vpop.f32.mrf.mxu0  ;;  %v17097_v57 = vpop.permute.xlu2 %11155  ;;  %v5302_v51 = vsel %vm3077_vm11, %v5286_v22, %v11142_v16 }
 0x582   : > { %19955 = vst [vmem:[#allocation182_spill] sm:$0xff] %v17066_v2  ;;  %v9801_v2 = vld [vmem:[%s15902_s24 + $0x54] sm:$0xff] }
 0x583   : > { %v5321_v59 = vpack.c.bf16 %v9802_v25, %v9801_v2  ;;  %v9796_v2 = vld [vmem:[%s15902_s24 + $0xb3] sm:$0xff] }
 0x585   : > { %4353 = vmatmul.bf16.gmra.mxu1 %v4204_v30  ;;  %v17093_v30 = vpop.permute.xlu1 %11150  ;;  %v17101_v10 = vpop.f32.mrf.mxu3 }
 0x586   : > { %v17105_v28 = vpop.f32.mrf.mxu2 }
 0x587   : > { %v11161_v48 = vpop.permute.xlu0 %11160  ;;  %11335 = vrot.lane.b32.xlu2 %v11319_v63, %s11652_s25  ;;  %v9797_v63 = vld [vmem:[%s15902_s24 + $0xbb] sm:$0xff] }
 0x588   : > { %v11162_v16 = vunpack.i.l.bf16 %v11161_v48 }
 0x589   : > { %v17095_v9 = vpop.f32.mrf.mxu0  ;;  %v11171_v22 = vpop.permute.xlu2 %11170 }
 0x58a   : > { %19957 = vst [vmem:[#allocation184_spill] sm:$0xff] %v17095_v9  ;;  %v5303_v9 = vsel %vm3077_vm11, %v5287_v35, %v11143_v15  ;;  %v11163_v15 = vunpack.i.h.bf16 %v11161_v48 }
 0x58b   : > { %v5318_v12 = vpack.c.bf16 %v5303_v9, %v5302_v51  ;;  %v11349_v9 = vpack.i.bf16 %v9797_v63, %v9796_v2  ;;  %v11173_v63 = vunpack.i.h.bf16 %v11171_v22 }
 0x58c   : > { %9409 = vmatmul.msk.bf16.gmra.mxu0 %vm88_vm3, %v16540_v29 }
 0x58d   : > { %v11166_v5 = vpop.permute.xlu1 %11165  ;;  %v17119_v36 = vpop.f32.mrf.mxu3 }
 0x58e   : > { %v11168_v51 = vunpack.i.h.bf16 %v11166_v5  ;;  %v11167_v38 = vunpack.i.l.bf16 %v11166_v5 }
 0x58f   : > { %9856 = vmatmul.msk.bf16.gmra.mxu3 %vm88_vm3, %v5321_v59  ;;  %v17123_v25 = vpop.permute.xlu0 %11175  ;;  %11350 = vrot.lane.b32.xlu2 %v11349_v9, %s11652_s25  ;;  %v11172_v9 = vunpack.i.l.bf16 %v11171_v22  ;;  %v9599_v22 = vld [vmem:[%s15902_s24 + $0x38] sm:$0xff] }
 0x590   : > { %9724 = vmatmul.msk.bf16.gmra.mxu2 %vm88_vm3, %v5321_v59 }
 0x591   : > { %v17113_v29 = vpop.f32.mrf.mxu0  ;;  %v17142_v2 = vpop.permute.xlu2 %11185 }
 0x592   : > { %19958 = vst [vmem:[#allocation185_spill] sm:$0xff] %v17113_v29  ;;  %v4319_v3 = vpop.f32.mrf.mxu1  ;;  %v17129_v29 = vld [vmem:[%s15902_s24 + $0x58] sm:$0xff] }
 0x593   : > { %v17117_v35 = vadd.f32 %v17000_v41, %v4319_v3  ;;  %v17132_v41 = vpop.f32.mrf.mxu2  ;;  %v5273_v48 = vsel %vm88_vm3, %v17129_v29, %v11163_v15  ;;  %v5272_v3 = vsel %vm88_vm3, %v17126_v34, %v11162_v16 }
 0x594   : > { %v5288_v61 = vsel %vm124_vm5, %v5272_v3, %v11167_v38  ;;  %v5289_v15 = vsel %vm124_vm5, %v5273_v48, %v11168_v51  ;;  %v11123_v51 = vunpack.i.h.bf16 %v17017_v54 }
 0x595   : > { %19959 = vst [vmem:[#allocation186_spill] sm:$0xff] %v17117_v35  ;;  %5446 = vmatmul.bf16.vlgmr.msra.gmra.mxu1 %v5318_v12  ;;  %v17138_v12 = vpop.permute.xlu1 %11180  ;;  %v17159_v38 = vpop.f32.mrf.mxu3 }
 0x597   : > { %v11191_v16 = vpop.permute.xlu0 %11190 }
 0x599   : > { %v17140_v35 = vpop.f32.mrf.mxu0 }
 0x59a   : > { %19960 = vst [vmem:[#allocation187_spill] sm:$0xff] %v17140_v35  ;;  %v4321_v5 = vpop.f32.mrf.mxu1  ;;  %v11118_v35 = vunpack.i.h.bf16 %v17008_v11  ;;  %v4706_v11 = vsel %vm88_vm3, %v9598_v27, %v11117_v32  ;;  %v11193_v32 = vunpack.i.h.bf16 %v11191_v16 }
 0x59b   : > { %v17145_v0 = vadd.f32 %v17036_v42, %v4321_v5  ;;  %v5304_v42 = vsel %vm3077_vm11, %v5288_v61, %v11172_v9  ;;  %v5305_v5 = vsel %vm3077_vm11, %v5289_v15, %v11173_v63  ;;  %v11201_v61 = vpop.permute.xlu2 %11200  ;;  %v17169_v63 = vpop.f32.mrf.mxu2  ;;  %v11128_v15 = vunpack.i.h.bf16 %v17027_v50 }
 0x59c   : > { %9410 = vmatmul.msk.bf16.gmra.mxu0 %vm88_vm3, %v17054_v40  ;;  %v11122_v40 = vunpack.i.l.bf16 %v17017_v54  ;;  %v4707_v3 = vsel %vm88_vm3, %v9599_v22, %v11118_v35  ;;  %v5320_v45 = vpack.c.bf16 %v5305_v5, %v5304_v42  ;;  %v11127_v54 = vunpack.i.l.bf16 %v17027_v50 }
 0x59d   : > { %19961 = vst [vmem:[#allocation188_spill] sm:$0xff] %v17145_v0  ;;  %v11196_v48 = vpop.permute.xlu1 %11195  ;;  %v4723_v27 = vsel %vm124_vm5, %v4707_v3, %v11123_v51  ;;  %v11192_v22 = vunpack.i.l.bf16 %v11191_v16  ;;  %v5275_v50 = vsel %vm88_vm3, %v16839_v7, %v11193_v32 }
 0x59e   : > { %v4722_v35 = vsel %vm124_vm5, %v4706_v11, %v11122_v40  ;;  %v11198_v0 = vunpack.i.h.bf16 %v11196_v48  ;;  %v11197_v39 = vunpack.i.l.bf16 %v11196_v48  ;;  %v17186_v40 = vpop.f32.mrf.mxu3  ;;  %v11203_v48 = vunpack.i.h.bf16 %v11201_v61 }
 0x59f   : > { %9857 = vmatmul.msk.bf16.gmra.mxu3 %vm88_vm3, %v5323_v56  ;;  %v17178_v42 = vpop.permute.xlu0 %11205  ;;  %v4738_v5 = vsel %vm3077_vm11, %v4722_v35, %v11127_v54 }
 0x5a0   : > { %v5291_v54 = vsel %vm124_vm5, %v5275_v50, %v11198_v0  ;;  %v11153_v0 = vunpack.i.h.bf16 %v17093_v30  ;;  %v11152_v50 = vunpack.i.l.bf16 %v17093_v30  ;;  %9725 = vmatmul.msk.bf16.gmra.mxu2 %vm88_vm3, %v5323_v56  ;;  %v11157_v30 = vunpack.i.l.bf16 %v17097_v57 }
 0x5a1   : > { %v17166_v4 = vpop.f32.mrf.mxu0 }
 0x5a2   : > { %19962 = vst [vmem:[#allocation189_spill] sm:$0xff] %v17166_v4  ;;  %v4324_v9 = vpop.f32.mrf.mxu1  ;;  %v4739_v4 = vsel %vm3077_vm11, %v4723_v27, %v11128_v15  ;;  %v11202_v15 = vunpack.i.l.bf16 %v11201_v61  ;;  %v9806_v61 = vld [vmem:[%s15902_s24 + $0x7c] sm:$0xff] }
 0x5a3   : > { %v17174_v59 = vadd.f32 %v17069_v43, %v4324_v9  ;;  %v5274_v43 = vsel %vm88_vm3, %v16836_v62, %v11192_v22  ;;  %v17190_v3 = vpop.permute.xlu2 %11215  ;;  %v4754_v11 = vpack.c.bf16 %v4739_v4, %v4738_v5  ;;  %v17198_v35 = vpop.f32.mrf.mxu2  ;;  %v11148_v4 = vunpack.i.h.bf16 %v17078_v18  ;;  %v9805_v22 = vld [vmem:[%s15902_s24 + $0x74] sm:$0xff] }
 0x5a4   : > { %v5290_v62 = vsel %vm124_vm5, %v5274_v43, %v11197_v39  ;;  %v5307_v5 = vsel %vm3077_vm11, %v5291_v54, %v11203_v48  ;;  %v5325_v39 = vpack.c.bf16 %v9806_v61, %v9805_v22 }
 0x5a5   : > { %5451 = vmatmul.bf16.gmra.mxu1 %v5320_v45  ;;  %v17188_v51 = vpop.permute.xlu1 %11210  ;;  %v4709_v43 = vsel %vm88_vm3, %v17084_v17, %v11148_v4 }
 0x5a6   : > { %v17217_v48 = vpop.f32.mrf.mxu3 }
 0x5a7   : > { %v11221_v32 = vpop.permute.xlu0 %11220 }
 0x5a8   : > { %v11222_v54 = vunpack.i.l.bf16 %v11221_v32 }
 0x5a9   : > { %v3604_v16 = vpop.f32.mrf.mxu0 }
 0x5aa   : > { %v3654_v45 = vadd.f32 %v16786_v55, %v3604_v16  ;;  %v4326_v9 = vpop.f32.mrf.mxu1  ;;  %v11147_v55 = vunpack.i.l.bf16 %v17078_v18 }
 0x5ab   : > { %v17194_v7 = vadd.f32 %v17101_v10, %v4326_v9  ;;  %v5306_v10 = vsel %vm3077_vm11, %v5290_v62, %v11202_v15  ;;  %v11158_v15 = vunpack.i.h.bf16 %v17097_v57  ;;  %v4725_v62 = vsel %vm124_vm5, %v4709_v43, %v11153_v0 }
 0x5ac   : > { %v17201_v27 = vadd.f32 %v16996_v31, %v3654_v45  ;;  %4882 = vmatmul.bf16.vlgmr.msra.gmra.mxu0 %v4754_v11  ;;  %v4708_v18 = vsel %vm88_vm3, %v17081_v60, %v11147_v55  ;;  %v5322_v11 = vpack.c.bf16 %v5307_v5, %v5306_v10  ;;  %v11231_v45 = vpop.permute.xlu2 %11230  ;;  %v11223_v60 = vunpack.i.h.bf16 %v11221_v32  ;;  %v17228_v55 = vpop.f32.mrf.mxu2 }
 0x5ad   : > { %v11226_v31 = vpop.permute.xlu1 %11225  ;;  %v4724_v17 = vsel %vm124_vm5, %v4708_v18, %v11152_v50  ;;  %v4741_v61 = vsel %vm3077_vm11, %v4725_v62, %v11158_v15  ;;  %v5276_v5 = vsel %vm88_vm3, %v16886_v49, %v11222_v54  ;;  %v11232_v15 = vunpack.i.l.bf16 %v11231_v45  ;;  %v9807_v54 = vld [vmem:[%s15902_s24 + $0x84] sm:$0xff] }
 0x5ae   : > { %v4740_v22 = vsel %vm3077_vm11, %v4724_v17, %v11157_v30  ;;  %v11228_v10 = vunpack.i.h.bf16 %v11226_v31  ;;  %v11227_v57 = vunpack.i.l.bf16 %v11226_v31  ;;  %v11177_v30 = vunpack.i.l.bf16 %v17123_v25  ;;  %v17250_v62 = vpop.f32.mrf.mxu3 }
 0x5af   : > { %9858 = vmatmul.msk.bf16.gmra.mxu3 %vm88_vm3, %v5325_v39  ;;  %v17226_v4 = vpop.permute.xlu0 %11235 }
 0x5b0   : > { %9726 = vmatmul.msk.bf16.gmra.mxu2 %vm88_vm3, %v5325_v39  ;;  %v3836_v39 = vadd.f32 %v16752_v20, %v17201_v27 }
 0x5b1   : > { %v3606_v16 = vpop.f32.mrf.mxu0 }
 0x5b2   : > { %v4329_v9 = vpop.f32.mrf.mxu1 }
 0x5b3   : > { %v17222_v56 = vadd.f32 %v17119_v36, %v4329_v9  ;;  %v5277_v36 = vsel %vm88_vm3, %v16889_v19, %v11223_v60  ;;  %v11233_v9 = vunpack.i.h.bf16 %v11231_v45  ;;  %v5292_v19 = vsel %vm124_vm5, %v5276_v5, %v11227_v57  ;;  %v9808_v45 = vld [vmem:[%s15902_s24 + $0x8c] sm:$0xff] }
 0x5b4   : > { %v17238_v50 = vpop.permute.xlu2 %11245  ;;  %v5293_v49 = vsel %vm124_vm5, %v5277_v36, %v11228_v10  ;;  %v11182_v10 = vunpack.i.l.bf16 %v17138_v12  ;;  %v17258_v57 = vpop.f32.mrf.mxu2  ;;  %v11183_v36 = vunpack.i.h.bf16 %v17138_v12 }
 0x5b5   : > { %5456 = vmatmul.bf16.gmra.mxu1 %v5322_v11  ;;  %v17236_v0 = vpop.permute.xlu1 %11240  ;;  %v4756_v11 = vpack.c.bf16 %v4741_v61, %v4740_v22  ;;  %v5309_v22 = vsel %vm3077_vm11, %v5293_v49, %v11233_v9  ;;  %v5327_v61 = vpack.c.bf16 %v9808_v45, %v9807_v54  ;;  %v11187_v9 = vunpack.i.l.bf16 %v17142_v2 }
 0x5b6   : > { %v17280_v45 = vpop.f32.mrf.mxu3 }
 0x5b7   : > { %v11251_v60 = vpop.permute.xlu0 %11250 }
 0x5b8   : > { %v11253_v49 = vunpack.i.h.bf16 %v11251_v60 }
 0x5b9   : > { %v3609_v32 = vpop.f32.mrf.mxu0 }
 0x5ba   : > { %v3659_v43 = vadd.f32 %v16829_v47, %v3609_v32  ;;  %v4331_v18 = vpop.f32.mrf.mxu1  ;;  %v11178_v47 = vunpack.i.h.bf16 %v17123_v25 }
 0x5bb   : > { %v17242_v31 = vadd.f32 %v17159_v38, %v4331_v18  ;;  %v5308_v38 = vsel %vm3077_vm11, %v5292_v19, %v11232_v15 }
 0x5bc   : > { %v17248_v17 = vadd.f32 %v17076_v21, %v3659_v43  ;;  %4887 = vmatmul.bf16.gmra.mxu0 %v4756_v11  ;;  %v4710_v21 = vsel %vm88_vm3, %v17126_v34, %v11177_v30  ;;  %v4711_v5 = vsel %vm88_vm3, %v17129_v29, %v11178_v47  ;;  %v5324_v43 = vpack.c.bf16 %v5309_v22, %v5308_v38  ;;  %v11261_v18 = vpop.permute.xlu2 %11260 }
 0x5bd   : > { %v11256_v25 = vpop.permute.xlu1 %11255  ;;  %v11188_v11 = vunpack.i.h.bf16 %v17142_v2  ;;  %v3656_v34 = vadd.f32 %v16805_v58, %v3606_v16  ;;  %v4726_v12 = vsel %vm124_vm5, %v4710_v21, %v11182_v10  ;;  %v4727_v29 = vsel %vm124_vm5, %v4711_v5, %v11183_v36 }
 0x5be   : > { %v11252_v30 = vunpack.i.l.bf16 %v11251_v60  ;;  %v4742_v2 = vsel %vm3077_vm11, %v4726_v12, %v11187_v9  ;;  %v11258_v20 = vunpack.i.h.bf16 %v11256_v25  ;;  %v11257_v27 = vunpack.i.l.bf16 %v11256_v25  ;;  %v17293_v25 = vpop.f32.mrf.mxu2 }
 0x5bf   : > { %9859 = vmatmul.msk.bf16.gmra.mxu3 %vm88_vm3, %v5327_v61  ;;  %v17277_v54 = vpop.permute.xlu0 %11265  ;;  %v3789_v58 = vadd.f32 %v17029_v13, %v3656_v34  ;;  %v4743_v16 = vsel %vm3077_vm11, %v4727_v29, %v11188_v11  ;;  %v11263_v5 = vunpack.i.h.bf16 %v11261_v18  ;;  %v11208_v12 = vunpack.i.h.bf16 %v17178_v42 }
 0x5c0   : > { %v5278_v60 = vsel %vm88_vm3, %v16952_v46, %v11252_v30  ;;  %v4758_v13 = vpack.c.bf16 %v4743_v16, %v4742_v2  ;;  %v11212_v29 = vunpack.i.l.bf16 %v17188_v51  ;;  %v11213_v30 = vunpack.i.h.bf16 %v17188_v51  ;;  %9727 = vmatmul.msk.bf16.gmra.mxu2 %vm88_vm3, %v5327_v61 }
 0x5c1   : > { %v3611_v32 = vpop.f32.mrf.mxu0  ;;  %v5294_v46 = vsel %vm124_vm5, %v5278_v60, %v11257_v27  ;;  %v11218_v27 = vunpack.i.h.bf16 %v17190_v3  ;;  %v3841_v61 = vadd.f32 %v16793_v6, %v17248_v17 }
 0x5c2   : > { %v4334_v15 = vpop.f32.mrf.mxu1  ;;  %v3661_v51 = vadd.f32 %v16864_v8, %v3611_v32 }
 0x5c3   : > { %v4384_v19 = vadd.f32 %v17186_v40, %v4334_v15  ;;  %v5279_v40 = vsel %vm88_vm3, %v16955_v53, %v11253_v49  ;;  %v3838_v53 = vadd.f32 %v16774_v52, %v3789_v58  ;;  %v11207_v15 = vunpack.i.l.bf16 %v17178_v42 }
 0x5c4   : > { %v17290_v10 = vpop.permute.xlu2 %11275  ;;  %v5295_v9 = vsel %vm124_vm5, %v5279_v40, %v11258_v20  ;;  %v11217_v40 = vunpack.i.l.bf16 %v17190_v3  ;;  %v3794_v32 = vadd.f32 %v17105_v28, %v3661_v51 }
 0x5c5   : > { %v17275_v47 = vadd.f32 %v4384_v19, %v3836_v39  ;;  %5461 = vmatmul.bf16.gmra.mxu1 %v5324_v43  ;;  %v17288_v38 = vpop.permute.xlu1 %11270  ;;  %v11262_v43 = vunpack.i.l.bf16 %v11261_v18  ;;  %v9605_v19 = vld [vmem:[%s15902_s24 + $0x68] sm:$0xff] }
 0x5c6   : > { %v4713_v42 = vsel %vm88_vm3, %v9605_v19, %v11208_v12 }
 0x5c7   : > { %v11281_v39 = vpop.permute.xlu0 %11280  ;;  %v5310_v52 = vsel %vm3077_vm11, %v5294_v46, %v11262_v43 }
 0x5c9   : > { %v3614_v22 = vpop.f32.mrf.mxu0 }
 0x5ca   : > { %v3664_v21 = vadd.f32 %v16894_v24, %v3614_v22  ;;  %v4336_v36 = vpop.f32.mrf.mxu1  ;;  %v9604_v24 = vld [vmem:[%s15902_s24 + $0x60] sm:$0xff] }
 0x5cb   : > { %v4386_v11 = vadd.f32 %v17217_v48, %v4336_v36  ;;  %v5311_v48 = vsel %vm3077_vm11, %v5295_v9, %v11263_v5  ;;  %v4712_v49 = vsel %vm88_vm3, %v9604_v24, %v11207_v15  ;;  %v17328_v36 = vpop.f32.mrf.mxu2  ;;  %v11282_v5 = vunpack.i.l.bf16 %v11281_v39 }
 0x5cc   : > { %v17301_v34 = vadd.f32 %v17132_v41, %v3664_v21  ;;  %4892 = vmatmul.bf16.gmra.mxu0 %v4758_v13  ;;  %v17313_v41 = vpop.f32.mrf.mxu3  ;;  %v5326_v16 = vpack.c.bf16 %v5311_v48, %v5310_v52  ;;  %v11291_v20 = vpop.permute.xlu2 %11290  ;;  %v4728_v22 = vsel %vm124_vm5, %v4712_v49, %v11212_v29  ;;  %v4729_v13 = vsel %vm124_vm5, %v4713_v42, %v11213_v30  ;;  %v9679_v42 = vld [vmem:[%s15902_s24 + $0x9c] sm:$0xff] }
 0x5cd   : > { %v17305_v18 = vadd.f32 %v4386_v11, %v3838_v53  ;;  %v11286_v2 = vpop.permute.xlu1 %11285  ;;  %v4744_v8 = vsel %vm3077_vm11, %v4728_v22, %v11217_v40  ;;  %v4745_v53 = vsel %vm3077_vm11, %v4729_v13, %v11218_v27  ;;  %v5280_v11 = vsel %vm88_vm3, %v17011_v1, %v11282_v5  ;;  %v9607_v27 = vld [vmem:[%s15902_s24 + $0x78] sm:$0xff]  ;;  %v9811_v22 = vld [vmem:[%s15902_s24 + $0xa4] sm:$0xff] }
 0x5ce   : > { %v11288_v6 = vunpack.i.h.bf16 %v11286_v2  ;;  %v11287_v17 = vunpack.i.l.bf16 %v11286_v2  ;;  %v4760_v12 = vpack.c.bf16 %v4745_v53, %v4744_v8  ;;  %v11293_v19 = vunpack.i.h.bf16 %v11291_v20  ;;  %v9678_v2 = vld [vmem:[%s15902_s24 + $0x94] sm:$0xff] }
 0x5cf   : > { %9860 = vmatmul.msk.bf16.gmra.mxu3 %vm88_vm3, %v16930_v26  ;;  %v11283_v26 = vunpack.i.h.bf16 %v11281_v39  ;;  %v17333_v3 = vpop.permute.xlu0 %11295  ;;  %v3843_v52 = vadd.f32 %v16811_v23, %v3794_v32  ;;  %v11238_v23 = vunpack.i.h.bf16 %v17226_v4  ;;  %v11243_v13 = vunpack.i.h.bf16 %v17236_v0 }
 0x5d0   : > { %v5296_v48 = vsel %vm124_vm5, %v5280_v11, %v11287_v17  ;;  %v11248_v53 = vunpack.i.h.bf16 %v17238_v50  ;;  %v3846_v11 = vadd.f32 %v16833_v44, %v17301_v34 }
 0x5d1   : > { %v17317_v58 = vpop.f32.mrf.mxu0  ;;  %v4715_v5 = vsel %vm88_vm3, %v9607_v27, %v11238_v23 }
 0x5d2   : > { %v4339_v60 = vpop.f32.mrf.mxu1 }
 0x5d3   : > { %v4389_v21 = vadd.f32 %v17250_v62, %v4339_v60  ;;  %v5281_v62 = vsel %vm88_vm3, %v17014_v14, %v11283_v26  ;;  %v11292_v14 = vunpack.i.l.bf16 %v11291_v20  ;;  %v17353_v49 = vpop.f32.mrf.mxu2  ;;  %v4767_v20 = vpack.c.bf16 %v9679_v42, %v9678_v2 }
 0x5d4   : > { %v17344_v15 = vpop.permute.xlu2 %11305  ;;  %v17347_v39 = vpop.f32.mrf.mxu3  ;;  %v5297_v29 = vsel %vm124_vm5, %v5281_v62, %v11288_v6  ;;  %v11247_v6 = vunpack.i.l.bf16 %v17238_v50 }
 0x5d5   : > { %v17331_v43 = vadd.f32 %v4389_v21, %v3841_v61  ;;  %5466 = vmatmul.bf16.gmra.mxu1 %v5326_v16  ;;  %v17342_v46 = vpop.permute.xlu1 %11300  ;;  %v9606_v16 = vld [vmem:[%s15902_s24 + $0x70] sm:$0xff]  ;;  %v5312_v40 = vsel %vm3077_vm11, %v5296_v48, %v11292_v14  ;;  %v5313_v60 = vsel %vm3077_vm11, %v5297_v29, %v11293_v19  ;;  %v11242_v61 = vunpack.i.l.bf16 %v17236_v0  ;;  %9728 = vmatmul.msk.bf16.gmra.mxu2 %vm88_vm3, %v4767_v20 }
 0x5d6   : > { %v5328_v32 = vpack.c.bf16 %v5313_v60, %v5312_v40  ;;  %v3666_v0 = vadd.f32 %v16936_v33, %v17317_v58  ;;  %v17395_v33 = vld [vmem:[%s15902_s24 + $0xa8] sm:$0xff] }
 0x5d7   : > { %v11311_v51 = vpop.permute.xlu0 %11310 }
 0x5d8   : > { %v11313_v19 = vunpack.i.h.bf16 %v11311_v51  ;;  %v11312_v14 = vunpack.i.l.bf16 %v11311_v51  ;;  %v3799_v44 = vadd.f32 %v17169_v63, %v3666_v0  ;;  %v19964_v51 = vld [vmem:[#allocation171_spill] sm:$0xff] }
 0x5d9   : > { %v3619_v9 = vpop.f32.mrf.mxu0 }
 0x5da   : > { %v3669_v24 = vadd.f32 %v16971_v37, %v3619_v9  ;;  %v4341_v28 = vpop.f32.mrf.mxu1  ;;  %v11237_v37 = vunpack.i.l.bf16 %v17226_v4 }
 0x5db   : > { %v4391_v1 = vadd.f32 %v17280_v45, %v4341_v28  ;;  %v17386_v28 = vpop.f32.mrf.mxu2 }
 0x5dc   : > { %v17357_v30 = vadd.f32 %v17198_v35, %v3669_v24  ;;  %4897 = vmatmul.bf16.gmra.mxu0 %v4760_v12  ;;  %v9812_v35 = vld [vmem:[%s15902_s24 + $0xac] sm:$0xff]  ;;  %v4714_v21 = vsel %vm88_vm3, %v9606_v16, %v11237_v37  ;;  %v11321_v24 = vpop.permute.xlu2 %11320  ;;  %v4731_v12 = vsel %vm124_vm5, %v4715_v5, %v11243_v13  ;;  %v4398_v50 = vpop.f32.mrf.mxu3  ;;  %v5283_v37 = vsel %vm88_vm3, %v17395_v33, %v11313_v19  ;;  %v19963_v16 = vld [vmem:[#allocation181_spill] sm:$0xff] }
 0x5dd   : > { %v17363_v45 = vadd.f32 %v4391_v1, %v3843_v52  ;;  %v11316_v4 = vpop.permute.xlu1 %11315  ;;  %v5331_v26 = vpack.c.bf16 %v9812_v35, %v9811_v22  ;;  %v4730_v62 = vsel %vm124_vm5, %v4714_v21, %v11242_v61  ;;  %v17392_v1 = vld [vmem:[%s15902_s24 + $0xa0] sm:$0xff]  ;;  %v4747_v34 = vsel %vm3077_vm11, %v4731_v12, %v11248_v53 }
 0x5de   : > { %v4746_v58 = vsel %vm3077_vm11, %v4730_v62, %v11247_v6  ;;  %v11317_v48 = vunpack.i.l.bf16 %v11316_v4  ;;  %v5282_v2 = vsel %vm88_vm3, %v17392_v1, %v11312_v14  ;;  %v11323_v63 = vunpack.i.h.bf16 %v11321_v24  ;;  %v9814_v12 = vld [vmem:[%s15902_s24 + $0xbc] sm:$0xff] }
 0x5df   : > { %9861 = vmatmul.msk.bf16.gmra.mxu3 %vm88_vm3, %v5331_v26  ;;  %v17400_v29 = vpop.permute.xlu0 %11325  ;;  %v4762_v27 = vpack.c.bf16 %v4747_v34, %v4746_v58  ;;  %v11322_v40 = vunpack.i.l.bf16 %v11321_v24  ;;  %v3848_v22 = vadd.f32 %v19964_v51, %v3799_v44  ;;  %v11268_v53 = vunpack.i.h.bf16 %v17277_v54 }
 0x5e0   : > { %v5298_v35 = vsel %vm124_vm5, %v5282_v2, %v11317_v48  ;;  %v11272_v24 = vunpack.i.l.bf16 %v17288_v38  ;;  %v11273_v19 = vunpack.i.h.bf16 %v17288_v38  ;;  %v11277_v48 = vunpack.i.l.bf16 %v17290_v10  ;;  %v19966_v38 = vld [vmem:[#allocation179_spill] sm:$0xff] }
 0x5e1   : > { %v17375_v8 = vpop.f32.mrf.mxu0  ;;  %v5314_v62 = vsel %vm3077_vm11, %v5298_v35, %v11322_v40  ;;  %v9745_v35 = vld [vmem:[%s15902_s24 + $0xb0] sm:$0xff] }
 0x5e2   : > { %v4344_v17 = vpop.f32.mrf.mxu1 }
 0x5e3   : > { %v4394_v9 = vadd.f32 %v17313_v41, %v4344_v17  ;;  %v11318_v41 = vunpack.i.h.bf16 %v11316_v4  ;;  %v17413_v13 = vpop.f32.mrf.mxu2  ;;  %v11267_v4 = vunpack.i.l.bf16 %v17277_v54 }
 0x5e4   : > { %v17423_v17 = vpop.permute.xlu2 %11335  ;;  %v4400_v0 = vpop.f32.mrf.mxu3 }
 0x5e5   : > { %v17389_v52 = vadd.f32 %v4394_v9, %v3846_v11  ;;  %5471 = vmatmul.bf16.gmra.mxu1 %v5328_v32  ;;  %v17407_v60 = vpop.permute.xlu1 %11330  ;;  %v5299_v21 = vsel %vm124_vm5, %v5283_v37, %v11318_v41  ;;  %v9608_v32 = vld [vmem:[%s15902_s24 + $0x80] sm:$0xff]  ;;  %v9813_v9 = vld [vmem:[%s15902_s24 + $0xb4] sm:$0xff]  ;;  %9729 = vmatmul.msk.bf16.gmra.mxu2 %vm88_vm3, %v5331_v26  ;;  %v11278_v41 = vunpack.i.h.bf16 %v17290_v10  ;;  %v3671_v26 = vadd.f32 %v19966_v38, %v17375_v8 }
 0x5e6   : > { %v5315_v11 = vsel %vm3077_vm11, %v5299_v21, %v11323_v63  ;;  %v5333_v54 = vpack.c.bf16 %v9814_v12, %v9813_v9  ;;  %v19965_v37 = vld [vmem:[#allocation183_spill] sm:$0xff] }
 0x5e7   : > { %v5330_v44 = vpack.c.bf16 %v5315_v11, %v5314_v62  ;;  %v11341_v34 = vpop.permute.xlu0 %11340  ;;  %v9746_v21 = vld [vmem:[%s15902_s24 + $0xb8] sm:$0xff] }
 0x5e8   : > { %v11343_v10 = vunpack.i.h.bf16 %v11341_v34  ;;  %v11342_v51 = vunpack.i.l.bf16 %v11341_v34  ;;  %v11298_v34 = vunpack.i.h.bf16 %v17333_v3 }
 0x5e9   : > { %v3624_v42 = vpop.f32.mrf.mxu0 }
 0x5ea   : > { %v3674_v23 = vadd.f32 %v19963_v16, %v3624_v42  ;;  %v4346_v20 = vpop.f32.mrf.mxu1  ;;  %v5285_v62 = vsel %vm88_vm3, %v9746_v21, %v11343_v10  ;;  %v5284_v11 = vsel %vm88_vm3, %v9745_v35, %v11342_v51  ;;  %v11308_v51 = vunpack.i.h.bf16 %v17344_v15  ;;  %v19969_v35 = vld [vmem:[#allocation176_spill] sm:$0xff] }
 0x5eb   : > { %v4396_v61 = vadd.f32 %v17347_v39, %v4346_v20  ;;  %v9609_v39 = vld [vmem:[%s15902_s24 + $0x88] sm:$0xff] }
 0x5ec   : > { %v17417_v5 = vadd.f32 %v17258_v57, %v3674_v23  ;;  %4902 = vmatmul.bf16.gmra.mxu0 %v4762_v27  ;;  %v4716_v57 = vsel %vm88_vm3, %v9608_v32, %v11267_v4  ;;  %v4717_v14 = vsel %vm88_vm3, %v9609_v39, %v11268_v53  ;;  %v19967_v23 = vld [vmem:[#allocation173_spill] sm:$0xff]  ;;  %v17450_v4 = vpop.f32.mrf.mxu2  ;;  %v3804_v32 = vadd.f32 %v17228_v55, %v3671_v26  ;;  %v11351_v39 = vpop.permute.xlu2 %11350 }
 0x5ed   : > { %v17421_v6 = vadd.f32 %v4396_v61, %v3848_v22  ;;  %v4732_v16 = vsel %vm124_vm5, %v4716_v57, %v11272_v24  ;;  %v3851_v20 = vadd.f32 %v19967_v23, %v17357_v30  ;;  %v4733_v63 = vsel %vm124_vm5, %v4717_v14, %v11273_v19  ;;  %v11346_v22 = vpop.permute.xlu1 %11345 }
 0x5ee   : > { %v4748_v8 = vsel %vm3077_vm11, %v4732_v16, %v11277_v48  ;;  %v4749_v30 = vsel %vm3077_vm11, %v4733_v63, %v11278_v41  ;;  %v11347_v53 = vunpack.i.l.bf16 %v11346_v22  ;;  %v11353_v57 = vunpack.i.h.bf16 %v11351_v39 }
 0x5ef   : > { %9862 = vmatmul.msk.bf16.gmra.mxu3 %vm88_vm3, %v5333_v54  ;;  %v4764_v12 = vpack.c.bf16 %v4749_v30, %v4748_v8  ;;  %v11352_v19 = vunpack.i.l.bf16 %v11351_v39  ;;  %v19968_v54 = vld [vmem:[#allocation175_spill] sm:$0xff]  ;;  %v11297_v41 = vunpack.i.l.bf16 %v17333_v3  ;;  %v11302_v16 = vunpack.i.l.bf16 %v17342_v46 }
 0x5f0   : > { %v3853_v55 = vadd.f32 %v19968_v54, %v3804_v32  ;;  %v3856_v21 = vadd.f32 %v19969_v35, %v17417_v5 }
 0x5f1   : > { %v3626_v58 = vpop.f32.mrf.mxu0 }
 0x5f2   : > { %v3676_v2 = vadd.f32 %v19965_v37, %v3626_v58  ;;  %v4349_v42 = vpop.f32.mrf.mxu1  ;;  %v5300_v58 = vsel %vm124_vm5, %v5284_v11, %v11347_v53  ;;  %v9610_v37 = vld [vmem:[%s15902_s24 + $0x90] sm:$0xff] }
 0x5f3   : > { %v4399_v27 = vadd.f32 %v4398_v50, %v4349_v42  ;;  %v11348_v50 = vunpack.i.h.bf16 %v11346_v22  ;;  %v5316_v42 = vsel %vm3077_vm11, %v5300_v58, %v11352_v19  ;;  %v11307_v22 = vunpack.i.l.bf16 %v17344_v15 }
 0x5f4   : > { %v3809_v40 = vadd.f32 %v17293_v25, %v3676_v2  ;;  %v4403_v25 = vpop.f32.mrf.mxu3  ;;  %v9611_v2 = vld [vmem:[%s15902_s24 + $0x98] sm:$0xff]  ;;  %v17470_v26 = vpop.f32.mrf.mxu2  ;;  %v11327_v19 = vunpack.i.l.bf16 %v17400_v29  ;;  %s17528_s24 = scalar_lea.vmem [#allocation3], %s9214_s23 }
 0x5f5   : > { %v17446_v61 = vadd.f32 %v4399_v27, %v3851_v20  ;;  %5476 = vmatmul.bf16.gmra.mxu1 %v5330_v44  ;;  %v5301_v44 = vsel %vm124_vm5, %v5285_v62, %v11348_v50  ;;  %v4719_v23 = vsel %vm88_vm3, %v9611_v2, %v11298_v34  ;;  %v4718_v20 = vsel %vm88_vm3, %v9610_v37, %v11297_v41 }
 0x5f6   : > { %v5317_v38 = vsel %vm3077_vm11, %v5301_v44, %v11353_v57  ;;  %v4734_v32 = vsel %vm124_vm5, %v4718_v20, %v11302_v16  ;;  %v4720_v44 = vsel %vm88_vm3, %v17392_v1, %v11327_v19  ;;  %v11338_v41 = vunpack.i.h.bf16 %v17423_v17  ;;  %v19977_v19 = vld [vmem:[#allocation150_spill] sm:$0xff] }
 0x5f7   : > { %v5332_v3 = vpack.c.bf16 %v5317_v38, %v5316_v42  ;;  %v4750_v50 = vsel %vm3077_vm11, %v4734_v32, %v11307_v22  ;;  %v11337_v37 = vunpack.i.l.bf16 %v17423_v17  ;;  %vm5681_vm4 = vcmp.lt.f32.partialorder %v19977_v19, 8.0 }
 0x5f9   : > { %v17457_v9 = vpop.f32.mrf.mxu0 }
 0x5fa   : > { %v4351_v24 = vpop.f32.mrf.mxu1 }
 0x5fb   : > { %v4401_v14 = vadd.f32 %v4400_v0, %v4351_v24  ;;  %v11303_v0 = vunpack.i.h.bf16 %v17342_v46 }
 0x5fc   : > { %4907 = vmatmul.bf16.gmra.mxu0 %v4764_v12  ;;  %v4405_v10 = vpop.f32.mrf.mxu3  ;;  %v4932_v62 = vpop.f32.mrf.mxu2  ;;  %v19970_v12 = vld [vmem:[#allocation178_spill] sm:$0xff] }
 0x5fd   : > { %v17464_v48 = vadd.f32 %v4401_v14, %v3853_v55  ;;  %v4735_v46 = vsel %vm124_vm5, %v4719_v23, %v11303_v0  ;;  %v3858_v57 = vadd.f32 %v19970_v12, %v3809_v40  ;;  %v11333_v55 = vunpack.i.h.bf16 %v17407_v60  ;;  %v19971_v23 = vld [vmem:[#allocation180_spill] sm:$0xff] }
 0x5fe   : > { %v4751_v53 = vsel %vm3077_vm11, %v4735_v46, %v11308_v51  ;;  %v11332_v14 = vunpack.i.l.bf16 %v17407_v60  ;;  %v3639_v20 = vadd.f32 %v17457_v9, %v19971_v23 }
 0x5ff   : > { %v4766_v24 = vpack.c.bf16 %v4751_v53, %v4750_v50  ;;  %v19974_v53 = vld [vmem:[#allocation170_spill] sm:$0xff] }
 0x601   : > { %v3640_v27 = vpop.f32.mrf.mxu0 }
 0x602   : > { %v4354_v63 = vpop.f32.mrf.mxu1 }
 0x603   : > { %v4404_v8 = vadd.f32 %v4403_v25, %v4354_v63  ;;  %v11328_v25 = vunpack.i.h.bf16 %v17400_v29  ;;  %v4736_v29 = vsel %vm124_vm5, %v4720_v44, %v11332_v14  ;;  %v19979_v44 = vld [vmem:[#allocation135_spill] sm:$0xff] }
 0x604   : > { %v5496_v15 = vpop.f32.mrf.mxu3  ;;  %v4934_v42 = vpop.f32.mrf.mxu2  ;;  %v4752_v60 = vsel %vm3077_vm11, %v4736_v29, %v11337_v37  ;;  %vm5666_vm6 = vcmp.lt.f32.partialorder %v19979_v44, 8.0  ;;  %v19982_v29 = vld [vmem:[#allocation188_spill] sm:$0xff] }
 0x605   : > { %v17482_v30 = vadd.f32 %v4404_v8, %v3856_v21  ;;  %5481 = vmatmul.bf16.gmra.mxu1 %v5332_v3  ;;  %v4721_v58 = vsel %vm88_vm3, %v17395_v33, %v11328_v25  ;;  %v19973_v21 = vld [vmem:[#allocation182_spill] sm:$0xff] }
 0x606   : > { %v4737_v2 = vsel %vm124_vm5, %v4721_v58, %v11333_v55  ;;  %v3641_v8 = vadd.f32 %v3640_v27, %v19973_v21  ;;  %v19976_v25 = vld [vmem:[#allocation134_spill] sm:$0xff]  ;;  %v19978_v27 = vld [vmem:[#allocation184_spill] sm:$0xff] }
 0x607   : > { %v4753_v0 = vsel %vm3077_vm11, %v4737_v2, %v11338_v41  ;;  %vm5665_vm0 = vcmp.lt.f32.partialorder %v19976_v25, 8.0  ;;  %v19980_v41 = vld [vmem:[#allocation151_spill] sm:$0xff] }
 0x608   : > { %v4768_v16 = vpack.c.bf16 %v4753_v0, %v4752_v60  ;;  %vm5697_vm14 = vmand %vm5665_vm0, %vm5681_vm4  ;;  %vm5682_vm1 = vcmp.lt.f32.partialorder %v19980_v41, 8.0 }
 0x609   : > { %v3643_v39 = vpop.f32.mrf.mxu0  ;;  %vm5698_vm7 = vmand %vm5666_vm6, %vm5682_vm1 }
 0x60a   : > { %v4356_v11 = vpop.f32.mrf.mxu1  ;;  %v3644_v55 = vadd.f32 %v3643_v39, %v19978_v27 }
 0x60b   : > { %v4406_v5 = vadd.f32 %v4405_v10, %v4356_v11  ;;  %v19972_v10 = vld [vmem:[#allocation169_spill] sm:$0xff]  ;;  %v3774_v11 = vadd.f32 %v19974_v53, %v3641_v8  ;;  %v19984_v53 = vld [vmem:[#allocation136_spill] sm:$0xff] }
 0x60c   : > { %4912 = vmatmul.bf16.gmra.mxu0 %v4766_v24  ;;  %v5498_v38 = vpop.f32.mrf.mxu3  ;;  %v4937_v3 = vpop.f32.mrf.mxu2  ;;  %v3772_v51 = vadd.f32 %v19972_v10, %v3639_v20  ;;  %v19975_v24 = vld [vmem:[#allocation186_spill] sm:$0xff]  ;;  %vm5667_vm2 = vcmp.lt.f32.partialorder %v19984_v53, 8.0  ;;  %v19991_v53 = vld [vmem:[#allocation189_spill] sm:$0xff] }
 0x60d   : > { %v17489_v54 = vadd.f32 %v4406_v5, %v3858_v57  ;;  %v3823_v14 = vadd.f32 %v17353_v49, %v3774_v11 }
 0x60e   : > { %v3821_v35 = vadd.f32 %v17328_v36, %v3772_v51 }
 0x60f   : > { %v4409_v49 = vadd.f32 %v19982_v29, %v3823_v14 }
 0x610   : > { %v4408_v12 = vadd.f32 %v19975_v24, %v3821_v35  ;;  %v19983_v35 = vld [vmem:[#allocation185_spill] sm:$0xff]  ;;  %v19986_v24 = vld [vmem:[#allocation174_spill] sm:$0xff] }
 0x611   : > { %v3645_v34 = vpop.f32.mrf.mxu0 }
 0x612   : > { %v5447_v40 = vpop.f32.mrf.mxu1  ;;  %v3646_v21 = vadd.f32 %v3645_v34, %v19983_v35 }
 0x613   : > { %v5497_v9 = vadd.f32 %v5496_v15, %v5447_v40  ;;  %v11653_v40 = vmov 0.0  }
 0x614   : > { %v5501_v17 = vpop.f32.mrf.mxu3  ;;  %v17512_v32 = vpop.f32.mrf.mxu2  ;;  %v5713_v37 = vsel %vm5697_vm14, 1.0, %v11653_v40  ;;  %v5714_v8 = vsel %vm5698_vm7, 1.0, %v11653_v40 }
 0x619   : > { %v17503_v33 = vpop.f32.mrf.mxu0 }
 0x61a   : > { %v5449_v1 = vpop.f32.mrf.mxu1 }
 0x61b   : > { %v5499_v20 = vadd.f32 %v5498_v38, %v5449_v1 }
 0x61c   : > { %4917 = vmatmul.bf16.gmra.mxu0 %v4768_v16  ;;  %v17514_v46 = vpop.f32.mrf.mxu3  ;;  %v17535_v60 = vpop.f32.mrf.mxu2 }
 0x621   : > { %v17507_v63 = vpop.f32.mrf.mxu0 }
 0x622   : > { %v5452_v22 = vpop.f32.mrf.mxu1 }
 0x624   : > { %v17537_v0 = vpop.f32.mrf.mxu3 }
 0x629   : > { %v4883_v50 = vpop.f32.mrf.mxu0 }
 0x62a   : > { %v4933_v57 = vadd.f32 %v4932_v62, %v4883_v50  ;;  %v17518_v5 = vpop.f32.mrf.mxu1  ;;  %v19981_v62 = vld [vmem:[#allocation172_spill] sm:$0xff] }
 0x62b   : > { %v3777_v15 = vadd.f32 %v19981_v62, %v3644_v55 }
 0x62c   : > { %v4972_v36 = vadd.f32 %v4933_v57, %v4408_v12  ;;  %v3779_v12 = vadd.f32 %v19986_v24, %v3646_v21  ;;  %v5502_v57 = vadd.f32 %v5501_v17, %v5452_v22  ;;  %v17554_v44 = vpop.f32.mrf.mxu3  ;;  %v19987_v17 = vld [vmem:[#allocation187_spill] sm:$0xff]  ;;  %v5504_v21 = vadd.f32 %v17514_v46, %v17518_v5  ;;  %v19994_v46 = vld [vmem:[#allocation177_spill] sm:$0xff] }
 0x62d   : > { %v3826_v51 = vadd.f32 %v17386_v28, %v3777_v15 }
 0x62e   : > { %v5536_v58 = vadd.f32 %v5497_v9, %v4972_v36 }
 0x62f   : > { %v4410_v38 = vadd.f32 %v17174_v59, %v3826_v51  ;;  %v3649_v59 = vadd.f32 %v17503_v33, %v19987_v17 }
 0x630   : > { %5838 = vst.msk [vmem:[%s17528_s24] sm:$0xff] %vm124_vm5, %v5536_v58  ;;  %v5729_v23 = vmul.f32 %v5713_v37, %v5536_v58  ;;  %v19988_v37 = vld [vmem:[#allocation137_spill] sm:$0xff] }
 0x631   : > { %v4885_v39 = vpop.f32.mrf.mxu0  ;;  %vm5668_vm9 = vcmp.lt.f32.partialorder %v19988_v37, 8.0 }
 0x632   : > { %v4935_v2 = vadd.f32 %v4934_v42, %v4885_v39  ;;  %v17539_v16 = vpop.f32.mrf.mxu1  ;;  %v19985_v42 = vld [vmem:[#allocation152_spill] sm:$0xff]  ;;  %v5783_v11 = vmul.f32 %v5729_v23, %v5536_v58  ;;  %v5745_v28 = vsel %vm124_vm5, %v5729_v23, 0.0  ;;  %v4944_v58 = vpop.f32.mrf.mxu2  ;;  %v19989_v39 = vld [vmem:[#allocation153_spill] sm:$0xff] }
 0x633   : > { %vm5683_vm8 = vcmp.lt.f32.partialorder %v19985_v42, 8.0  ;;  %vm5684_vm12 = vcmp.lt.f32.partialorder %v19989_v39, 8.0  ;;  %v3651_v42 = vadd.f32 %v17507_v63, %v19991_v53 }
 0x634   : > { %v4973_v10 = vadd.f32 %v4935_v2, %v4409_v49  ;;  %vm5699_vm10 = vmand %vm5667_vm2, %vm5683_vm8  ;;  %v5799_v27 = vsel %vm124_vm5, %v5783_v11, 0.0  ;;  %v19990_v49 = vld [vmem:[#allocation168_spill] sm:$0xff] }
 0x635   : > { %v5715_v41 = vsel %vm5699_vm10, 1.0, %v11653_v40  ;;  %v3782_v2 = vadd.f32 %v19990_v49, %v3649_v59  ;;  %vm5700_vm13 = vmand %vm5668_vm9, %vm5684_vm12  ;;  %v3784_v5 = vadd.f32 %v19994_v46, %v3651_v42  ;;  %v19999_v46 = vld [vmem:[#allocation141_spill] sm:$0xff] }
 0x636   : > { %v5537_v50 = vadd.f32 %v5499_v20, %v4973_v10  ;;  %vm5672_vm8 = vcmp.lt.f32.partialorder %v19999_v46, 8.0 }
 0x638   : > { %v5730_v9 = vmul.f32 %v5714_v8, %v5537_v50  ;;  %5839 = vst.msk [vmem:[%s17528_s24 + $0x8] sm:$0xff] %vm124_vm5, %v5537_v50 }
 0x639   : > { %v4888_v1 = vpop.f32.mrf.mxu0 }
 0x63a   : > { %v5746_v34 = vsel %vm124_vm5, %v5730_v9, 0.0  ;;  %v5784_v25 = vmul.f32 %v5730_v9, %v5537_v50  ;;  %v4938_v19 = vadd.f32 %v4937_v3, %v4888_v1  ;;  %v5459_v62 = vpop.f32.mrf.mxu1  ;;  %v3828_v3 = vadd.f32 %v17413_v13, %v3779_v12  ;;  %v4947_v24 = vpop.f32.mrf.mxu2  ;;  %v19992_v12 = vld [vmem:[#allocation138_spill] sm:$0xff] }
 0x63b   : > { %v5747_v36 = vadd.f32 %v5746_v34, %v5745_v28  ;;  %v3831_v50 = vadd.f32 %v17450_v4, %v3782_v2  ;;  %v5716_v9 = vsel %vm5700_vm13, 1.0, %v11653_v40  ;;  %vm5669_vm15 = vcmp.lt.f32.partialorder %v19992_v12, 8.0 }
 0x63c   : > { %v5800_v55 = vsel %vm124_vm5, %v5784_v25, 0.0  ;;  %v4974_v14 = vadd.f32 %v4938_v19, %v4410_v38  ;;  %v4411_v10 = vadd.f32 %v17194_v7, %v3828_v3  ;;  %v5507_v25 = vadd.f32 %v17537_v0, %v17539_v16 }
 0x63d   : > { %v5801_v22 = vadd.f32 %v5800_v55, %v5799_v27  ;;  %v4412_v4 = vadd.f32 %v17222_v56, %v3831_v50  ;;  %v3833_v56 = vadd.f32 %v17470_v26, %v3784_v5  ;;  %v20000_v5 = vld [vmem:[#allocation157_spill] sm:$0xff] }
 0x63e   : > { %v5538_v15 = vadd.f32 %v5502_v57, %v4974_v14  ;;  %v19993_v57 = vld [vmem:[#allocation154_spill] sm:$0xff]  ;;  %vm5688_vm10 = vcmp.lt.f32.partialorder %v20000_v5, 8.0 }
 0x63f   : > { %vm5685_vm11 = vcmp.lt.f32.partialorder %v19993_v57, 8.0  ;;  %vm5704_vm9 = vmand %vm5672_vm8, %vm5688_vm10 }
 0x640   : > { %v5731_v29 = vmul.f32 %v5715_v41, %v5538_v15  ;;  %5840 = vst.msk [vmem:[%s17528_s24 + $0x10] sm:$0xff] %vm124_vm5, %v5538_v15  ;;  %vm5701_vm0 = vmand %vm5669_vm15, %vm5685_vm11  ;;  %v19996_v41 = vld [vmem:[#allocation155_spill] sm:$0xff] }
 0x641   : > { %v4890_v23 = vpop.f32.mrf.mxu0  ;;  %v5717_v17 = vsel %vm5701_vm0, 1.0, %v11653_v40  ;;  %vm5686_vm14 = vcmp.lt.f32.partialorder %v19996_v41, 8.0 }
 0x642   : > { %v5748_v20 = vsel %vm124_vm5, %v5731_v29, 0.0  ;;  %v5785_v33 = vmul.f32 %v5731_v29, %v5538_v15  ;;  %v4940_v51 = vadd.f32 %v17512_v32, %v4890_v23  ;;  %v5511_v32 = vpop.f32.mrf.mxu3  ;;  %v5462_v38 = vpop.f32.mrf.mxu1  ;;  %v4413_v29 = vadd.f32 %v17242_v31, %v3833_v56  ;;  %v20001_v56 = vld [vmem:[#allocation142_spill] sm:$0xff] }
 0x643   : > { %v5749_v13 = vadd.f32 %v5748_v20, %v5747_v36  ;;  %v4949_v0 = vpop.f32.mrf.mxu2  ;;  %v5509_v23 = vadd.f32 %v17554_v44, %v5459_v62  ;;  %v5512_v50 = vadd.f32 %v5511_v32, %v5462_v38  ;;  %vm5673_vm12 = vcmp.lt.f32.partialorder %v20001_v56, 8.0 }
 0x644   : > { %v5802_v35 = vsel %vm124_vm5, %v5785_v33, 0.0  ;;  %v4975_v8 = vadd.f32 %v4940_v51, %v4411_v10 }
 0x645   : > { %v5803_v11 = vadd.f32 %v5802_v35, %v5801_v22  ;;  %v19995_v22 = vld [vmem:[#allocation139_spill] sm:$0xff]  ;;  %v19998_v35 = vld [vmem:[#allocation156_spill] sm:$0xff] }
 0x646   : > { %v5539_v7 = vadd.f32 %v5504_v21, %v4975_v8  ;;  %vm5670_vm4 = vcmp.lt.f32.partialorder %v19995_v22, 8.0  ;;  %vm5687_vm7 = vcmp.lt.f32.partialorder %v19998_v35, 8.0 }
 0x647   : > { %vm5702_vm6 = vmand %vm5670_vm4, %vm5686_vm14 }
 0x648   : > { %v5732_v1 = vmul.f32 %v5716_v9, %v5539_v7  ;;  %5841 = vst.msk [vmem:[%s17528_s24 + $0x18] sm:$0xff] %vm124_vm5, %v5539_v7  ;;  %v5718_v10 = vsel %vm5702_vm6, 1.0, %v11653_v40 }
 0x649   : > { %v4893_v28 = vpop.f32.mrf.mxu0 }
 0x64a   : > { %v5750_v63 = vsel %vm124_vm5, %v5732_v1, 0.0  ;;  %v5786_v34 = vmul.f32 %v5732_v1, %v5539_v7  ;;  %v4943_v19 = vadd.f32 %v17535_v60, %v4893_v28  ;;  %v5513_v60 = vpop.f32.mrf.mxu3  ;;  %v5464_v15 = vpop.f32.mrf.mxu1 }
 0x64b   : > { %v5751_v36 = vadd.f32 %v5750_v63, %v5749_v13  ;;  %v19997_v13 = vld [vmem:[#allocation140_spill] sm:$0xff]  ;;  %v4952_v44 = vpop.f32.mrf.mxu2 }
 0x64c   : > { %v5804_v27 = vsel %vm124_vm5, %v5786_v34, 0.0  ;;  %v4976_v55 = vadd.f32 %v4943_v19, %v4412_v4  ;;  %vm5671_vm1 = vcmp.lt.f32.partialorder %v19997_v13, 8.0  ;;  %v5514_v34 = vadd.f32 %v5513_v60, %v5464_v15 }
 0x64d   : > { %v5805_v14 = vadd.f32 %v5804_v27, %v5803_v11  ;;  %vm5703_vm2 = vmand %vm5671_vm1, %vm5687_vm7 }
 0x64e   : > { %v5540_v59 = vadd.f32 %v5507_v25, %v4976_v55  ;;  %v5719_v57 = vsel %vm5703_vm2, 1.0, %v11653_v40  ;;  %v5720_v55 = vsel %vm5704_vm9, 1.0, %v11653_v40 }
 0x650   : > { %v5733_v3 = vmul.f32 %v5717_v17, %v5540_v59  ;;  %5842 = vst.msk [vmem:[%s17528_s24 + $0x20] sm:$0xff] %vm124_vm5, %v5540_v59 }
 0x651   : > { %v4895_v16 = vpop.f32.mrf.mxu0 }
 0x652   : > { %v5752_v37 = vsel %vm124_vm5, %v5733_v3, 0.0  ;;  %v5787_v39 = vmul.f32 %v5733_v3, %v5540_v59  ;;  %v4945_v49 = vadd.f32 %v4944_v58, %v4895_v16  ;;  %v5516_v62 = vpop.f32.mrf.mxu3  ;;  %v5467_v11 = vpop.f32.mrf.mxu1  ;;  %v20002_v59 = vld [vmem:[#allocation158_spill] sm:$0xff] }
 0x653   : > { %v5753_v26 = vadd.f32 %v5752_v37, %v5751_v36  ;;  %v4954_v19 = vpop.f32.mrf.mxu2  ;;  %vm5689_vm13 = vcmp.lt.f32.partialorder %v20002_v59, 8.0 }
 0x654   : > { %v5806_v2 = vsel %vm124_vm5, %v5787_v39, 0.0  ;;  %v4977_v20 = vadd.f32 %v4945_v49, %v4413_v29  ;;  %vm5705_vm15 = vmand %vm5673_vm12, %vm5689_vm13 }
 0x655   : > { %v5807_v33 = vadd.f32 %v5806_v2, %v5805_v14  ;;  %v5721_v29 = vsel %vm5705_vm15, 1.0, %v11653_v40 }
 0x656   : > { %v5541_v51 = vadd.f32 %v5509_v23, %v4977_v20  ;;  %v20003_v23 = vld [vmem:[#allocation143_spill] sm:$0xff] }
 0x657   : > { %vm5674_vm11 = vcmp.lt.f32.partialorder %v20003_v23, 8.0  ;;  %v20004_v20 = vld [vmem:[#allocation159_spill] sm:$0xff] }
 0x658   : > { %v5734_v21 = vmul.f32 %v5718_v10, %v5541_v51  ;;  %5843 = vst.msk [vmem:[%s17528_s24 + $0x28] sm:$0xff] %vm124_vm5, %v5541_v51  ;;  %vm5690_vm0 = vcmp.lt.f32.partialorder %v20004_v20, 8.0 }
 0x659   : > { %v4898_v31 = vpop.f32.mrf.mxu0  ;;  %vm5706_vm4 = vmand %vm5674_vm11, %vm5690_vm0 }
 0x65a   : > { %v5754_v58 = vsel %vm124_vm5, %v5734_v21, 0.0  ;;  %v5788_v8 = vmul.f32 %v5734_v21, %v5541_v51  ;;  %v4948_v53 = vadd.f32 %v4947_v24, %v4898_v31  ;;  %v5518_v36 = vpop.f32.mrf.mxu3  ;;  %v5469_v14 = vpop.f32.mrf.mxu1 }
 0x65b   : > { %v5755_v42 = vadd.f32 %v5754_v58, %v5753_v26  ;;  %v4957_v26 = vpop.f32.mrf.mxu2  ;;  %v5519_v58 = vadd.f32 %v5518_v36, %v5469_v14 }
 0x65c   : > { %v5808_v9 = vsel %vm124_vm5, %v5788_v8, 0.0  ;;  %v4978_v7 = vadd.f32 %v4948_v53, %v17275_v47  ;;  %v5722_v53 = vsel %vm5706_vm4, 1.0, %v11653_v40 }
 0x65d   : > { %v5809_v12 = vadd.f32 %v5808_v9, %v5807_v33 }
 0x65e   : > { %v5542_v1 = vadd.f32 %v5512_v50, %v4978_v7 }
 0x660   : > { %v5735_v4 = vmul.f32 %v5719_v57, %v5542_v1  ;;  %5844 = vst.msk [vmem:[%s17528_s24 + $0x30] sm:$0xff] %vm124_vm5, %v5542_v1 }
 0x661   : > { %v4900_v24 = vpop.f32.mrf.mxu0 }
 0x662   : > { %v5756_v32 = vsel %vm124_vm5, %v5735_v4, 0.0  ;;  %v5789_v38 = vmul.f32 %v5735_v4, %v5542_v1  ;;  %v4950_v28 = vadd.f32 %v4949_v0, %v4900_v24  ;;  %v5521_v2 = vpop.f32.mrf.mxu3  ;;  %v5472_v33 = vpop.f32.mrf.mxu1 }
 0x663   : > { %v5757_v63 = vadd.f32 %v5756_v32, %v5755_v42  ;;  %v20006_v42 = vld [vmem:[#allocation160_spill] sm:$0xff]  ;;  %v4959_v9 = vpop.f32.mrf.mxu2 }
 0x664   : > { %v5810_v47 = vsel %vm124_vm5, %v5789_v38, 0.0  ;;  %v4979_v25 = vadd.f32 %v4950_v28, %v17305_v18  ;;  %v5517_v18 = vadd.f32 %v5516_v62, %v5467_v11  ;;  %v20005_v62 = vld [vmem:[#allocation144_spill] sm:$0xff]  ;;  %vm5691_vm6 = vcmp.lt.f32.partialorder %v20006_v42, 8.0 }
 0x665   : > { %v5811_v27 = vadd.f32 %v5810_v47, %v5809_v12  ;;  %vm5675_vm14 = vcmp.lt.f32.partialorder %v20005_v62, 8.0  ;;  %v20007_v47 = vld [vmem:[#allocation145_spill] sm:$0xff] }
 0x666   : > { %v5543_v17 = vadd.f32 %v5514_v34, %v4979_v25  ;;  %vm5707_vm1 = vmand %vm5675_vm14, %vm5691_vm6  ;;  %vm5676_vm7 = vcmp.lt.f32.partialorder %v20007_v47, 8.0  ;;  %v20008_v34 = vld [vmem:[#allocation161_spill] sm:$0xff] }
 0x667   : > { %v5723_v28 = vsel %vm5707_vm1, 1.0, %v11653_v40  ;;  %vm5692_vm2 = vcmp.lt.f32.partialorder %v20008_v34, 8.0 }
 0x668   : > { %v5736_v22 = vmul.f32 %v5720_v55, %v5543_v17  ;;  %5845 = vst.msk [vmem:[%s17528_s24 + $0x38] sm:$0xff] %vm124_vm5, %v5543_v17  ;;  %vm5708_vm8 = vmand %vm5676_vm7, %vm5692_vm2 }
 0x669   : > { %v4903_v41 = vpop.f32.mrf.mxu0 }
 0x66a   : > { %v5758_v3 = vsel %vm124_vm5, %v5736_v22, 0.0  ;;  %v5790_v0 = vmul.f32 %v5736_v22, %v5543_v17  ;;  %v4953_v60 = vadd.f32 %v4952_v44, %v4903_v41  ;;  %v5523_v7 = vpop.f32.mrf.mxu3  ;;  %v5474_v57 = vpop.f32.mrf.mxu1 }
 0x66b   : > { %v5759_v16 = vadd.f32 %v5758_v3, %v5757_v63  ;;  %v4962_v14 = vpop.f32.mrf.mxu2  ;;  %v5524_v22 = vadd.f32 %v5523_v7, %v5474_v57 }
 0x66c   : > { %v5812_v15 = vsel %vm124_vm5, %v5790_v0, 0.0  ;;  %v4980_v37 = vadd.f32 %v4953_v60, %v17331_v43  ;;  %v5724_v0 = vsel %vm5708_vm8, 1.0, %v11653_v40  ;;  %v20009_v60 = vld [vmem:[#allocation146_spill] sm:$0xff] }
 0x66d   : > { %v5813_v39 = vadd.f32 %v5812_v15, %v5811_v27  ;;  %vm5677_vm10 = vcmp.lt.f32.partialorder %v20009_v60, 8.0 }
 0x66e   : > { %v5544_v49 = vadd.f32 %v5517_v18, %v4980_v37 }
 0x670   : > { %v5737_v10 = vmul.f32 %v5721_v29, %v5544_v49  ;;  %5846 = vst.msk [vmem:[%s17528_s24 + $0x40] sm:$0xff] %vm124_vm5, %v5544_v49 }
 0x671   : > { %v4905_v51 = vpop.f32.mrf.mxu0 }
 0x672   : > { %v5760_v13 = vsel %vm124_vm5, %v5737_v10, 0.0  ;;  %v5791_v35 = vmul.f32 %v5737_v10, %v5544_v49  ;;  %v4955_v43 = vadd.f32 %v4954_v19, %v4905_v51  ;;  %v5477_v56 = vpop.f32.mrf.mxu1 }
 0x673   : > { %v5761_v21 = vadd.f32 %v5760_v13, %v5759_v16  ;;  %v20010_v16 = vld [vmem:[#allocation162_spill] sm:$0xff]  ;;  %v4964_v20 = vpop.f32.mrf.mxu2 }
 0x674   : > { %v5814_v31 = vsel %vm124_vm5, %v5791_v35, 0.0  ;;  %v4981_v8 = vadd.f32 %v4955_v43, %v17363_v45  ;;  %v5522_v45 = vadd.f32 %v5521_v2, %v5472_v33  ;;  %vm5693_vm9 = vcmp.lt.f32.partialorder %v20010_v16, 8.0  ;;  %v20011_v43 = vld [vmem:[#allocation147_spill] sm:$0xff] }
 0x675   : > { %v5815_v50 = vadd.f32 %v5814_v31, %v5813_v39  ;;  %vm5709_vm12 = vmand %vm5677_vm10, %vm5693_vm9  ;;  %vm5678_vm13 = vcmp.lt.f32.partialorder %v20011_v43, 8.0 }
 0x676   : > { %v5545_v44 = vadd.f32 %v5519_v58, %v4981_v8  ;;  %v5725_v51 = vsel %vm5709_vm12, 1.0, %v11653_v40 }
 0x678   : > { %v5738_v11 = vmul.f32 %v5722_v53, %v5545_v44  ;;  %5847 = vst.msk [vmem:[%s17528_s24 + $0x48] sm:$0xff] %vm124_vm5, %v5545_v44 }
 0x679   : > { %v4908_v12 = vpop.f32.mrf.mxu0 }
 0x67a   : > { %v5762_v1 = vsel %vm124_vm5, %v5738_v11, 0.0  ;;  %v5792_v46 = vmul.f32 %v5738_v11, %v5545_v44  ;;  %v4958_v5 = vadd.f32 %v4957_v26, %v4908_v12  ;;  %v5479_v13 = vpop.f32.mrf.mxu1 }
 0x67b   : > { %v5763_v4 = vadd.f32 %v5762_v1, %v5761_v21  ;;  %v20012_v21 = vld [vmem:[#allocation163_spill] sm:$0xff]  ;;  %v4967_v12 = vpop.f32.mrf.mxu2 }
 0x67c   : > { %v5816_v24 = vsel %vm124_vm5, %v5792_v46, 0.0  ;;  %v4982_v32 = vadd.f32 %v4958_v5, %v17389_v52  ;;  %v5526_v52 = vpop.f32.mrf.mxu3  ;;  %vm5694_vm15 = vcmp.lt.f32.partialorder %v20012_v21, 8.0  ;;  %v20013_v46 = vld [vmem:[#allocation148_spill] sm:$0xff]  ;;  %v20017_v21 = vld [vmem:[#allocation167_spill] sm:$0xff] }
 0x67d   : > { %v5817_v38 = vadd.f32 %v5816_v24, %v5815_v50  ;;  %v5527_v49 = vadd.f32 %v5526_v52, %v5477_v56  ;;  %vm5710_vm11 = vmand %vm5678_vm13, %vm5694_vm15  ;;  %vm5679_vm0 = vcmp.lt.f32.partialorder %v20013_v46, 8.0 }
 0x67e   : > { %v5546_v63 = vadd.f32 %v5522_v45, %v4982_v32  ;;  %v20014_v45 = vld [vmem:[#allocation164_spill] sm:$0xff] }
 0x67f   : > { %vm5695_vm4 = vcmp.lt.f32.partialorder %v20014_v45, 8.0 }
 0x680   : > { %v5739_v25 = vmul.f32 %v5723_v28, %v5546_v63  ;;  %5848 = vst.msk [vmem:[%s17528_s24 + $0x50] sm:$0xff] %vm124_vm5, %v5546_v63  ;;  %vm5711_vm14 = vmand %vm5679_vm0, %vm5695_vm4 }
 0x681   : > { %v4910_v19 = vpop.f32.mrf.mxu0 }
 0x682   : > { %v5764_v36 = vsel %vm124_vm5, %v5739_v25, 0.0  ;;  %v5793_v27 = vmul.f32 %v5739_v25, %v5546_v63  ;;  %v4960_v55 = vadd.f32 %v4959_v9, %v4910_v19  ;;  %v5726_v9 = vsel %vm5710_vm11, 1.0, %v11653_v40  ;;  %v5482_v1 = vpop.f32.mrf.mxu1 }
 0x683   : > { %v5765_v17 = vadd.f32 %v5764_v36, %v5763_v4  ;;  %v5727_v25 = vsel %vm5711_vm14, 1.0, %v11653_v40  ;;  %v20015_v36 = vld [vmem:[#allocation149_spill] sm:$0xff] }
 0x684   : > { %v5818_v59 = vsel %vm124_vm5, %v5793_v27, 0.0  ;;  %v4983_v41 = vadd.f32 %v4960_v55, %v17421_v6  ;;  %v5528_v33 = vpop.f32.mrf.mxu3  ;;  %vm5680_vm6 = vcmp.lt.f32.partialorder %v20015_v36, 8.0  ;;  %v20016_v27 = vld [vmem:[#allocation165_spill] sm:$0xff] }
 0x685   : > { %v5819_v3 = vadd.f32 %v5818_v59, %v5817_v38  ;;  %v5529_v62 = vadd.f32 %v5528_v33, %v5479_v13  ;;  %vm5696_vm1 = vcmp.lt.f32.partialorder %v20016_v27, 8.0 }
 0x686   : > { %v5547_v18 = vadd.f32 %v5524_v22, %v4983_v41  ;;  %vm5712_vm7 = vmand %vm5680_vm6, %vm5696_vm1 }
 0x687   : > { %v5728_v16 = vsel %vm5712_vm7, 1.0, %v11653_v40 }
 0x688   : > { %v5740_v15 = vmul.f32 %v5724_v0, %v5547_v18  ;;  %5849 = vst.msk [vmem:[%s17528_s24 + $0x58] sm:$0xff] %vm124_vm5, %v5547_v18 }
 0x689   : > { %v4913_v37 = vpop.f32.mrf.mxu0 }
 0x68a   : > { %v5766_v39 = vsel %vm124_vm5, %v5740_v15, 0.0  ;;  %v5794_v29 = vmul.f32 %v5740_v15, %v5547_v18  ;;  %v4963_v26 = vadd.f32 %v4962_v14, %v4913_v37  ;;  %v4969_v14 = vpop.f32.mrf.mxu2 }
 0x68b   : > { %v5767_v6 = vadd.f32 %v5766_v39, %v5765_v17  ;;  %v5484_v17 = vpop.f32.mrf.mxu1 }
 0x68c   : > { %v5820_v2 = vsel %vm124_vm5, %v5794_v29, 0.0  ;;  %v4984_v23 = vadd.f32 %v4963_v26, %v17446_v61  ;;  %v5531_v57 = vpop.f32.mrf.mxu3 }
 0x68d   : > { %v5821_v10 = vadd.f32 %v5820_v2, %v5819_v3 }
 0x68e   : > { %v5548_v35 = vadd.f32 %v5527_v49, %v4984_v23 }
 0x690   : > { %v5741_v31 = vmul.f32 %v5725_v51, %v5548_v35  ;;  %5850 = vst.msk [vmem:[%s17528_s24 + $0x60] sm:$0xff] %vm124_vm5, %v5548_v35 }
 0x691   : > { %v4915_v58 = vpop.f32.mrf.mxu0 }
 0x692   : > { %v5768_v8 = vsel %vm124_vm5, %v5741_v31, 0.0  ;;  %v5795_v50 = vmul.f32 %v5741_v31, %v5548_v35  ;;  %v4965_v61 = vadd.f32 %v4964_v20, %v4915_v58 }
 0x693   : > { %v5769_v53 = vadd.f32 %v5768_v8, %v5767_v6  ;;  %v20018_v8 = vld [vmem:[#allocation166_spill] sm:$0xff] }
 0x694   : > { %v5822_v44 = vsel %vm124_vm5, %v5795_v50, 0.0  ;;  %v4985_v42 = vadd.f32 %v4965_v61, %v17464_v48  ;;  %v5532_v48 = vadd.f32 %v5531_v57, %v5482_v1  ;;  %v5533_v52 = vpop.f32.mrf.mxu3 }
 0x695   : > { %v5823_v11 = vadd.f32 %v5822_v44, %v5821_v10  ;;  %v5534_v0 = vadd.f32 %v5533_v52, %v5484_v17 }
 0x696   : > { %v5549_v7 = vadd.f32 %v5529_v62, %v4985_v42 }
 0x698   : > { %v5742_v5 = vmul.f32 %v5726_v9, %v5549_v7  ;;  %5851 = vst.msk [vmem:[%s17528_s24 + $0x68] sm:$0xff] %vm124_vm5, %v5549_v7 }
 0x699   : > { %v4918_v4 = vpop.f32.mrf.mxu0 }
 0x69a   : > { %v5770_v24 = vsel %vm124_vm5, %v5742_v5, 0.0  ;;  %v5796_v32 = vmul.f32 %v5742_v5, %v5549_v7  ;;  %v4968_v38 = vadd.f32 %v4967_v12, %v4918_v4 }
 0x69b   : > { %v5771_v28 = vadd.f32 %v5770_v24, %v5769_v53 }
 0x69c   : > { %v5824_v63 = vsel %vm124_vm5, %v5796_v32, 0.0  ;;  %v4986_v47 = vadd.f32 %v4968_v38, %v17482_v30 }
 0x69d   : > { %v5825_v34 = vadd.f32 %v5824_v63, %v5823_v11 }
 0x69e   : > { %v5550_v19 = vadd.f32 %v5532_v48, %v4986_v47 }
 0x6a0   : > { %v5743_v55 = vmul.f32 %v5727_v25, %v5550_v19  ;;  %5852 = vst.msk [vmem:[%s17528_s24 + $0x70] sm:$0xff] %vm124_vm5, %v5550_v19 }
 0x6a1   : > { %v4920_v56 = vpop.f32.mrf.mxu0 }
 0x6a2   : > { %v5772_v59 = vsel %vm124_vm5, %v5743_v55, 0.0  ;;  %v5797_v22 = vmul.f32 %v5743_v55, %v5550_v19  ;;  %v4970_v30 = vadd.f32 %v4969_v14, %v4920_v56 }
 0x6a3   : > { %v5773_v41 = vadd.f32 %v5772_v59, %v5771_v28 }
 0x6a4   : > { %v5826_v3 = vsel %vm124_vm5, %v5797_v22, 0.0  ;;  %v4987_v18 = vadd.f32 %v4970_v30, %v17489_v54 }
 0x6a5   : > { %v5827_v60 = vadd.f32 %v5826_v3, %v5825_v34 }
 0x6a6   : > { %v5551_v15 = vadd.f32 %v5534_v0, %v4987_v18 }
 0x6a8   : > { %v5744_v37 = vmul.f32 %v5728_v16, %v5551_v15  ;;  %5853 = vst.msk [vmem:[%s17528_s24 + $0x78] sm:$0xff] %vm124_vm5, %v5551_v15 }
 0x6aa   : > { %v5774_v39 = vsel %vm124_vm5, %v5744_v37, 0.0  ;;  %v5798_v29 = vmul.f32 %v5744_v37, %v5551_v15 }
 0x6ab   : > { %v5775_v49 = vadd.f32 %v5774_v39, %v5773_v41 }
 0x6ac   : > { %v5828_v26 = vsel %vm124_vm5, %v5798_v29, 0.0 }
 0x6ad   : > { %v5776_v6 = vrot.slane %v5775_v49, 4  ;;  %v5829_v2 = vadd.f32 %v5828_v26, %v5827_v60 }
 0x6af   : > { %v5777_v23 = vadd.f32 %v5776_v6, %v5775_v49  ;;  %v5830_v20 = vrot.slane %v5829_v2, 4 }
 0x6b1   : > { %v5778_v33 = vrot.slane %v5777_v23, 2  ;;  %v5831_v10 = vadd.f32 %v5830_v20, %v5829_v2 }
 0x6b3   : > { %v5779_v54 = vadd.f32 %v5778_v33, %v5777_v23  ;;  %v5832_v51 = vrot.slane %v5831_v10, 2 }
 0x6b5   : > { %v5780_v13 = vrot.slane %v5779_v54, 1  ;;  %v5833_v40 = vadd.f32 %v5832_v51, %v5831_v10 }
 0x6b7   : > { %v5781_v35 = vadd.f32 %v5780_v13, %v5779_v54  ;;  %v5834_v43 = vrot.slane %v5833_v40, 1 }
 0x6b9   : > { %v5782_v31 = vadd.f32 %v20017_v21, %v5781_v35   ;;  %v5835_v58 = vadd.f32 %v5834_v43, %v5833_v40  ;;  %2759 = sbr.rel (!%p2757_p2) target bundleno = 1041 (0x411), region = 225 }
 0x6bb   : > { %v5836_v50 = vadd.f32 %v20018_v8, %v5835_v58   ;;  %v20020_v29 = vmov %v5782_v31  ;;  %v17690_v61 = vmul.f32 (%p2757_p2), 0.0078125, %v5782_v31 }
 0x6bd   : > { %v20019_v28 = vmov %v5836_v50  ;;  %v5855_v53 = vmul.f32 (%p2757_p2), 0.0078125, %v5836_v50  ;;  %v5856_v44 = vmul.f32 (%p2757_p2), %v17690_v61, %v17690_v61 }
 0x6bf   :  { %v5857_v62 = vsub.f32 %v5855_v53, %v5856_v44 }
 0x6c1   :  { %v5858_v42 = vadd.f32 1e-05, %v5857_v62 }
 0x6c3   :  { %11354 = vrsqrt.f32 %v5858_v42  ;;  %vm5865_vm2 = vweird.f32 %v5858_v42 }
 0x6c9   :  { %v11355_v11 = vpop.eup %11354 }
 0x6ca   :  { %v5860_v9 = vmul.f32 %v11355_v11, %v5858_v42  ;;  %vm5866_vm8 = vweird.f32 %v11355_v11 }
 0x6cb   :  { %vm5867_vm10 = vmor %vm5865_vm2, %vm5866_vm8 }
 0x6cc   :  { %v5861_v7 = vmul.f32 %v11355_v11, %v5860_v9 }
 0x6ce   :  { %v5862_v12 = vmul.f32 0.5, %v5861_v7 }
 0x6d0   :  { %v5863_v57 = vsub.f32 1.5, %v5862_v12 }
 0x6d2   :  { %v5864_v1 = vmul.f32 %v11355_v11, %v5863_v57 }
 0x6d4   :  { %v17694_v46 = vsel %vm5867_vm10, %v11355_v11, %v5864_v1 }
 0x6d5 LB: > { %s9863_s22 = sshll.u32 %s11631_s3, 8  ;;  %s5925_s23 = scalar_lea.vmem [#allocation6], %s11631_s3  ;;  %s11631_s3 = sphi %s17696_s3, %s5874_s3  }
 0x6d6   : > { %v17703_v45 = vld [vmem:[%s5925_s23] ss:$0 sm:$0xff]  ;;  %s17705_s25 = scalar_lea.vmem [#allocation3], %s9863_s22  ;;  %s5874_s3 = sadd.s32 1, %s11631_s3  }
 0x6d7   : > { %v5877_v5 = vld [vmem:[%s17705_s25] sm:$0xff]  ;;  %v5878_v4 = vld [vmem:[%s17705_s25 + $0x8] sm:$0xff]  ;;  %v5879_v24 = vld [vmem:[%s17705_s25 + $0x10] sm:$0xff]  ;;  %p5871_p3 = scmp.ge.s32.totalorder %s5874_s3, 2  }
 0x6d8   : > { %v5893_v32 = vsub.f32 %v5877_v5, %v17690_v61  ;;  %v5894_v48 = vsub.f32 %v5878_v4, %v17690_v61  ;;  %v5895_v38 = vsub.f32 %v5879_v24, %v17690_v61  ;;  %v5880_v28 = vld [vmem:[%s17705_s25 + $0x18] sm:$0xff]  ;;  %v5881_v63 = vld [vmem:[%s17705_s25 + $0x20] sm:$0xff]  ;;  %v5882_v47 = vld [vmem:[%s17705_s25 + $0x28] sm:$0xff]  ;;  %s17810_s16 = smov (%p5871_p3), 0  }
 0x6d9   : > { %v5896_v34 = vsub.f32 %v5880_v28, %v17690_v61  ;;  %v5897_v25 = vsub.f32 %v5881_v63, %v17690_v61  ;;  %v5898_v19 = vsub.f32 %v5882_v47, %v17690_v61  ;;  %v5883_v36 = vld [vmem:[%s17705_s25 + $0x30] sm:$0xff]  ;;  %v5884_v27 = vld [vmem:[%s17705_s25 + $0x38] sm:$0xff]  ;;  %v5885_v39 = vld [vmem:[%s17705_s25 + $0x40] sm:$0xff] }
 0x6da   : > { %v5909_v55 = vmul.f32 %v5893_v32, %v17694_v46  ;;  %v5910_v14 = vmul.f32 %v5894_v48, %v17694_v46  ;;  %v5911_v52 = vmul.f32 %v5895_v38, %v17694_v46  ;;  %v5899_v17 = vsub.f32 %v5883_v36, %v17690_v61  ;;  %v5886_v29 = vld [vmem:[%s17705_s25 + $0x48] sm:$0xff]  ;;  %v5887_v49 = vld [vmem:[%s17705_s25 + $0x50] sm:$0xff]  ;;  %v5888_v20 = vld [vmem:[%s17705_s25 + $0x58] sm:$0xff] }
 0x6db   : > { %v5912_v56 = vmul.f32 %v5896_v34, %v17694_v46  ;;  %v5913_v59 = vmul.f32 %v5897_v25, %v17694_v46  ;;  %v5914_v22 = vmul.f32 %v5898_v19, %v17694_v46  ;;  %v5900_v30 = vsub.f32 %v5884_v27, %v17690_v61  ;;  %v5889_v33 = vld [vmem:[%s17705_s25 + $0x60] sm:$0xff]  ;;  %v5890_v10 = vld [vmem:[%s17705_s25 + $0x68] sm:$0xff]  ;;  %v5891_v35 = vld [vmem:[%s17705_s25 + $0x70] sm:$0xff] }
 0x6dc   : > { %v5928_v41 = vadd.f32 %v17703_v45, %v5909_v55  ;;  %v5929_v3 = vadd.f32 %v17703_v45, %v5910_v14  ;;  %v5930_v0 = vadd.f32 %v17703_v45, %v5911_v52  ;;  %v5915_v18 = vmul.f32 %v5899_v17, %v17694_v46  ;;  %v5892_v8 = vld [vmem:[%s17705_s25 + $0x78] sm:$0xff] }
 0x6dd   : > { %v5931_v60 = vadd.f32 %v17703_v45, %v5912_v56  ;;  %v5932_v16 = vadd.f32 %v17703_v45, %v5913_v59  ;;  %v5933_v15 = vadd.f32 %v17703_v45, %v5914_v22  ;;  %v5916_v37 = vmul.f32 %v5900_v30, %v17694_v46 }
 0x6de   : > { %v5944_v26 = vmax.f32 %v5928_v41, 0.0  ;;  %v5945_v6 = vmax.f32 %v5929_v3, 0.0  ;;  %v5946_v2 = vmax.f32 %v5930_v0, 0.0  ;;  %v5934_v23 = vadd.f32 %v17703_v45, %v5915_v18 }
 0x6df   : > { %v5947_v54 = vmax.f32 %v5931_v60, 0.0  ;;  %v5948_v51 = vmax.f32 %v5932_v16, 0.0  ;;  %v5949_v13 = vmax.f32 %v5933_v15, 0.0  ;;  %v5935_v40 = vadd.f32 %v17703_v45, %v5916_v37 }
 0x6e0   : > { %5960 = vst.msk [vmem:[%s17705_s25] sm:$0xff] %vm124_vm5, %v5944_v26  ;;  %v5950_v43 = vmax.f32 %v5934_v23, 0.0  ;;  %v5901_v21 = vsub.f32 %v5885_v39, %v17690_v61  ;;  %v5902_v31 = vsub.f32 %v5886_v29, %v17690_v61  ;;  %v5903_v58 = vsub.f32 %v5887_v49, %v17690_v61 }
 0x6e1   : > { %5961 = vst.msk [vmem:[%s17705_s25 + $0x8] sm:$0xff] %vm124_vm5, %v5945_v6  ;;  %v5951_v50 = vmax.f32 %v5935_v40, 0.0  ;;  %v5904_v53 = vsub.f32 %v5888_v20, %v17690_v61  ;;  %v5905_v44 = vsub.f32 %v5889_v33, %v17690_v61  ;;  %v5906_v62 = vsub.f32 %v5890_v10, %v17690_v61 }
 0x6e2   : > { %5962 = vst.msk [vmem:[%s17705_s25 + $0x10] sm:$0xff] %vm124_vm5, %v5946_v2  ;;  %v5917_v42 = vmul.f32 %v5901_v21, %v17694_v46  ;;  %v5918_v11 = vmul.f32 %v5902_v31, %v17694_v46  ;;  %v5919_v9 = vmul.f32 %v5903_v58, %v17694_v46  ;;  %v5907_v7 = vsub.f32 %v5891_v35, %v17690_v61 }
 0x6e3   : > { %5963 = vst.msk [vmem:[%s17705_s25 + $0x18] sm:$0xff] %vm124_vm5, %v5947_v54  ;;  %v5920_v12 = vmul.f32 %v5904_v53, %v17694_v46  ;;  %v5921_v57 = vmul.f32 %v5905_v44, %v17694_v46  ;;  %v5922_v1 = vmul.f32 %v5906_v62, %v17694_v46  ;;  %v5908_v5 = vsub.f32 %v5892_v8, %v17690_v61 }
 0x6e4   : > { %5964 = vst.msk [vmem:[%s17705_s25 + $0x20] sm:$0xff] %vm124_vm5, %v5948_v51  ;;  %v5936_v4 = vadd.f32 %v17703_v45, %v5917_v42  ;;  %v5937_v24 = vadd.f32 %v17703_v45, %v5918_v11  ;;  %v5938_v32 = vadd.f32 %v17703_v45, %v5919_v9  ;;  %v5923_v48 = vmul.f32 %v5907_v7, %v17694_v46 }
 0x6e5   : > { %5965 = vst.msk [vmem:[%s17705_s25 + $0x28] sm:$0xff] %vm124_vm5, %v5949_v13  ;;  %v5939_v38 = vadd.f32 %v17703_v45, %v5920_v12  ;;  %v5940_v28 = vadd.f32 %v17703_v45, %v5921_v57  ;;  %v5941_v63 = vadd.f32 %v17703_v45, %v5922_v1  ;;  %v5924_v47 = vmul.f32 %v5908_v5, %v17694_v46 }
 0x6e6   : > { %5966 = vst.msk [vmem:[%s17705_s25 + $0x30] sm:$0xff] %vm124_vm5, %v5950_v43  ;;  %v5952_v34 = vmax.f32 %v5936_v4, 0.0  ;;  %v5953_v25 = vmax.f32 %v5937_v24, 0.0  ;;  %v5954_v19 = vmax.f32 %v5938_v32, 0.0  ;;  %v5942_v36 = vadd.f32 %v17703_v45, %v5923_v48 }
 0x6e7   : > { %5967 = vst.msk [vmem:[%s17705_s25 + $0x38] sm:$0xff] %vm124_vm5, %v5951_v50  ;;  %v5955_v27 = vmax.f32 %v5939_v38, 0.0  ;;  %v5943_v55 = vadd.f32 %v17703_v45, %v5924_v47  ;;  %v5956_v14 = vmax.f32 %v5940_v28, 0.0  ;;  %v5957_v52 = vmax.f32 %v5941_v63, 0.0 }
 0x6e8   : > { %5968 = vst.msk [vmem:[%s17705_s25 + $0x40] sm:$0xff] %vm124_vm5, %v5952_v34  ;;  %v5958_v17 = vmax.f32 %v5942_v36, 0.0  ;;  %v17806_v45 = vmov (%p5871_p3), 0.0   ;;  %v17808_v59 = vmov (%p5871_p3), 0.0  }
 0x6e9   : > { %5969 = vst.msk [vmem:[%s17705_s25 + $0x48] sm:$0xff] %vm124_vm5, %v5953_v25  ;;  %v5959_v56 = vmax.f32 %v5943_v55, 0.0 }
 0x6ea   : > { %5970 = vst.msk [vmem:[%s17705_s25 + $0x50] sm:$0xff] %vm124_vm5, %v5954_v19 }
 0x6eb   : > { %5971 = vst.msk [vmem:[%s17705_s25 + $0x58] sm:$0xff] %vm124_vm5, %v5955_v27  ;;  %5873 = sbr.rel (!%p5871_p3) target bundleno = 1749 (0x6d5), region = 236 }
 0x6ec   : > { %5972 = vst.msk [vmem:[%s17705_s25 + $0x60] sm:$0xff] %vm124_vm5, %v5956_v14 }
 0x6ed   : > { %5973 = vst.msk [vmem:[%s17705_s25 + $0x68] sm:$0xff] %vm124_vm5, %v5957_v52 }
 0x6ee   : > { %5974 = vst.msk [vmem:[%s17705_s25 + $0x70] sm:$0xff] %vm124_vm5, %v5958_v17 }
 0x6ef   : > { %5975 = vst.msk [vmem:[%s17705_s25 + $0x78] sm:$0xff] %vm124_vm5, %v5959_v56 }
 0x6f0 LB: > { %s9864_s2 = sshll.u32 %s11643_s16, 8  ;;  %s11654_s6 = smov 64   ;;  %v10568_v26 = vld [vmem:[%s18822_s4 + $0x138] sm:$0xff]  ;;  %v10567_v20 = vld [vmem:[%s18822_s4 + $0x130] sm:$0xff]  ;;  %v10566_v43 = vld [vmem:[%s18822_s4 + $0x128] sm:$0xff]  ;;  %s11643_s16 = sphi %s17810_s16, %s5981_s16   ;;  %v11639_v59 = vphi %v17808_v59, %v20036_v59   ;;  %v11635_v45 = vphi %v17806_v45, %v20035_v45  }
 0x6f1   : > { %s17824_s9 = scalar_lea.vmem [#allocation3], %s9864_s2  ;;  %6510 = vmatpush.bf16.msra.mxu2 %v10568_v26  ;;  %v10556_v33 = vld [vmem:[%s18822_s4 + $0xd8] sm:$0xff]  ;;  %v10555_v51 = vld [vmem:[%s18822_s4 + $0xd0] sm:$0xff]  ;;  %v10554_v58 = vld [vmem:[%s18822_s4 + $0xc8] sm:$0xff]  ;;  %s5981_s16 = sadd.s32 1, %s11643_s16  }
 0x6f2   : > { %v10536_v10 = vld [vmem:[%s18822_s4 + $0x38] sm:$0xff]  ;;  %6450 = vmatpush.bf16.msra.mxu0 %v10556_v33  ;;  %v10535_v35 = vld [vmem:[%s18822_s4 + $0x30] sm:$0xff]  ;;  %v10565_v53 = vld [vmem:[%s18822_s4 + $0x120] sm:$0xff]  ;;  %p5978_p4 = scmp.ge.s32.totalorder %s5981_s16, 2  }
 0x6f3   : > { %6666 = vmatpush.bf16.msra.mxu3 %v10536_v10  ;;  %v17896_v8 = vld [vmem:[%s18822_s4 + $0x118] sm:$0xff]  ;;  %v10534_v44 = vld [vmem:[%s18822_s4 + $0x28] sm:$0xff]  ;;  %v17912_v11 = vld [vmem:[%s18822_s4 + $0x110] sm:$0xff] }
 0x6f4   : > { %10633 = vmatpush.bf16.msra.mxu1 %v17896_v8  ;;  %v10544_v9 = vld [vmem:[%s18822_s4 + $0x78] sm:$0xff]  ;;  %v10553_v12 = vld [vmem:[%s18822_s4 + $0xc0] sm:$0xff]  ;;  %v17928_v5 = vld [vmem:[%s18822_s4 + $0x108] sm:$0xff] }
 0x6f5   : > { %6511 = vmatpush.bf16.msra.mxu2 %v10567_v20  ;;  %v10533_v1 = vld [vmem:[%s18822_s4 + $0x20] sm:$0xff]  ;;  %v10552_v32 = vld [vmem:[%s18822_s4 + $0xb8] sm:$0xff]  ;;  %v10543_v38 = vld [vmem:[%s18822_s4 + $0x70] sm:$0xff] }
 0x6f6   : > { %v9906_v61 = vld [vmem:[%s17824_s9 + $0x11] sm:$0xff]  ;;  %v9907_v46 = vld [vmem:[%s17824_s9 + $0x19] sm:$0xff]  ;;  %v9866_v22 = vld [vmem:[%s17824_s9 + $0x1] sm:$0xff]  ;;  %6451 = vmatpush.bf16.msra.mxu0 %v10555_v51 }
 0x6f7   : > { %v11357_v30 = vpack.i.bf16 %v9907_v46, %v9906_v61  ;;  %v9867_v41 = vld [vmem:[%s17824_s9 + $0x9] sm:$0xff]  ;;  %v17835_v60 = vld [vmem:[%s17824_s9 + $0x33] sm:$0xff]  ;;  %v9927_v16 = vld [vmem:[%s17824_s9 + $0x3b] sm:$0xff]  ;;  %6667 = vmatpush.bf16.msra.mxu3 %v10535_v35 }
 0x6f8   : > { %v11367_v3 = vpack.i.bf16 %v9867_v41, %v9866_v22  ;;  %v9924_v0 = vld [vmem:[%s17824_s9 + $0x23] sm:$0xff]  ;;  %v9925_v18 = vld [vmem:[%s17824_s9 + $0x2b] sm:$0xff]  ;;  %v17841_v39 = vpack.i.bf16 %v9927_v16, %v17835_v60  ;;  %v17856_v2 = vld [vmem:[%s17824_s9 + $0x39] sm:$0xff]  ;;  %10634 = vmatpush.bf16.msra.mxu1 %v17912_v11 }
 0x6f9   : > { %11358 = vrot.lane.b32.xlu0 %v11357_v30, %s11654_s6  ;;  %v9908_v15 = vld [vmem:[%s17824_s9 + $0x21] sm:$0xff]  ;;  %v9909_v37 = vld [vmem:[%s17824_s9 + $0x29] sm:$0xff]  ;;  %v17843_v29 = vpack.i.bf16 %v9925_v18, %v9924_v0  ;;  %v17853_v6 = vld [vmem:[%s17824_s9 + $0x31] sm:$0xff]  ;;  %6512 = vmatpush.bf16.msra.mxu2 %v10566_v43 }
 0x6fa   : > { %11368 = vrot.lane.b32.xlu1 %v11367_v3, %s11654_s6  ;;  %11378 = vrot.lane.b32.xlu2 %v17841_v39, %s11654_s6  ;;  %v11372_v49 = vpack.i.bf16 %v9909_v37, %v9908_v15  ;;  %v17860_v23 = vld [vmem:[%s17824_s9 + $0x43] sm:$0xff]  ;;  %v17873_v54 = vpack.i.bf16 %v17856_v2, %v17853_v6  ;;  %v9883_v21 = vld [vmem:[%s17824_s9 + $0xb] sm:$0xff] }
 0x6fb   : > { %v11392_v13 = vpack.i.bf16 %v9908_v15, %v17860_v23  ;;  %v9882_v40 = vld [vmem:[%s17824_s9 + $0x3] sm:$0xff]  ;;  %v9930_v62 = vld [vmem:[%s17824_s9 + $0x14] sm:$0xff]  ;;  %6452 = vmatpush.bf16.msra.mxu0 %v10554_v58  ;;  %6668 = vmatpush.bf16.msra.mxu3 %v10534_v44  ;;  %v9933_v52 = vld [vmem:[%s17824_s9 + $0x2c] sm:$0xff] }
 0x6fc   : > { %v11397_v31 = vpack.i.bf16 %v9882_v40, %v9909_v37  ;;  %v9912_v50 = vld [vmem:[%s17824_s9 + $0x41] sm:$0xff]  ;;  %v9922_v4 = vld [vmem:[%s17824_s9 + $0x13] sm:$0xff]  ;;  %10635 = vmatpush.bf16.msra.mxu1 %v17928_v5  ;;  %v10119_v55 = vld [vmem:[%s17824_s9 + $0x49] sm:$0xff] }
 0x6fd   : > { %v9931_v42 = vld [vmem:[%s17824_s9 + $0x1c] sm:$0xff]  ;;  %v11402_v7 = vpack.i.bf16 %v9912_v50, %v9883_v21  ;;  %6513 = vmatpush.bf16.msra.mxu2 %v10565_v53  ;;  %v11412_v24 = vpack.i.bf16 %v9922_v4, %v17853_v6  ;;  %v10551_v34 = vld [vmem:[%s18822_s4 + $0xb0] sm:$0xff]  ;;  %v10550_v27 = vld [vmem:[%s18822_s4 + $0xa8] sm:$0xff]  ;;  %v17979_v56 = vpack.i.bf16 %v10119_v55, %v9912_v50 }
 0x6fe   : > { %v6268_v57 = vpack.c.bf16 %v9931_v42, %v9930_v62  ;;  %v9885_v48 = vld [vmem:[%s17824_s9 + $0x1b] sm:$0xff]  ;;  %v10531_v19 = vld [vmem:[%s18822_s4 + $0x10] sm:$0xff]  ;;  %v9932_v14 = vld [vmem:[%s17824_s9 + $0x24] sm:$0xff] }
 0x6ff   : > { %6453 = vmatpush.bf16.msra.mxu0 %v10553_v12  ;;  %6669 = vmatpush.bf16.msra.mxu3 %v10533_v1  ;;  %v10532_v28 = vld [vmem:[%s18822_s4 + $0x18] sm:$0xff]  ;;  %v17949_v63 = vld [vmem:[%s18822_s4 + $0x100] sm:$0xff]  ;;  %v11417_v47 = vpack.i.bf16 %v9922_v4, %v9885_v48  ;;  %v11422_v25 = vpack.i.bf16 %v17853_v6, %v9885_v48  ;;  %v10530_v17 = vld [vmem:[%s18822_s4 + $0x8] sm:$0xff]  ;;  %v17981_v61 = vpack.c.bf16 %v9933_v52, %v9932_v14 }
 0x700   : > { %10017 = vmatmul.msk.bf16.vlgmr.msra.gmra.mxu2 %vm124_vm5, %v6268_v57  ;;  %10636 = vmatpush.bf16.msra.mxu1 %v17949_v63  ;;  %v17963_v36 = vld [vmem:[%s18822_s4 + $0xf8] sm:$0xff]  ;;  %v10549_v0 = vld [vmem:[%s18822_s4 + $0xa0] sm:$0xff]  ;;  %v10559_v18 = vld [vmem:[%s18822_s4 + $0xf0] sm:$0xff] }
 0x701   : > { %11363 = vrot.lane.b32.xlu0 %v17843_v29, %s11654_s6  ;;  %6694 = vmatpush.bf16.msrb.mxu2 %v10544_v9  ;;  %v10120_v46 = vld [vmem:[%s17824_s9 + $0x51] sm:$0xff]  ;;  %v9935_v41 = vld [vmem:[%s17824_s9 + $0x3c] sm:$0xff]  ;;  %v10542_v16 = vld [vmem:[%s18822_s4 + $0x68] sm:$0xff] }
 0x702   : > { %11373 = vrot.lane.b32.xlu1 %v11372_v49, %s11654_s6  ;;  %11383 = vrot.lane.b32.xlu2 %v11357_v30, %s11654_s6  ;;  %v11437_v22 = vpack.i.bf16 %v10120_v46, %v17835_v60  ;;  %v17997_v30 = vld [vmem:[%s17824_s9 + $0x34] sm:$0xff]  ;;  %v10529_v60 = vld [vmem:[%s18822_s4] sm:$0xff] }
 0x703   : > { %6454 = vmatpush.bf16.msra.mxu0 %v10552_v32  ;;  %6670 = vmatpush.bf16.msra.mxu3 %v10532_v28  ;;  %v6274_v3 = vpack.c.bf16 %v9935_v41, %v17997_v30  ;;  %v10558_v15 = vld [vmem:[%s18822_s4 + $0xe8] sm:$0xff]  ;;  %v10557_v37 = vld [vmem:[%s18822_s4 + $0xe0] sm:$0xff]  ;;  %v10540_v20 = vld [vmem:[%s18822_s4 + $0x58] sm:$0xff] }
 0x704   : > { %10637 = vmatpush.bf16.msra.mxu1 %v17963_v36  ;;  %v10575_v33 = vld [vmem:[%s18822_s4 + $0x170] sm:$0xff]  ;;  %v10538_v10 = vld [vmem:[%s18822_s4 + $0x48] sm:$0xff]  ;;  %v10537_v51 = vld [vmem:[%s18822_s4 + $0x40] sm:$0xff] }
 0x705   : > { %6695 = vmatpush.bf16.msrb.mxu2 %v10543_v38  ;;  %v10243_v40 = vld [vmem:[%s17824_s9 + $0x59] sm:$0xff]  ;;  %v10547_v32 = vld [vmem:[%s18822_s4 + $0x90] sm:$0xff]  ;;  %v18099_v28 = vld [vmem:[%s17824_s9 + $0x22] sm:$0xff] }
 0x706   : > { %v18069_v35 = vpack.i.bf16 %v10243_v40, %v10120_v46  ;;  %v10573_v21 = vld [vmem:[%s18822_s4 + $0x160] sm:$0xff]  ;;  %v9899_v50 = vld [vmem:[%s17824_s9 + $0x18] sm:$0xff] }
 0x707   : > { %6455 = vmatpush.bf16.msra.mxu0 %v10551_v34  ;;  %6671 = vmatpush.bf16.msra.mxu3 %v10531_v19  ;;  %v5986_v42 = vld [vmem:[%s17824_s9] sm:$0xff]  ;;  %v10572_v48 = vld [vmem:[%s18822_s4 + $0x158] sm:$0xff] }
 0x708   : > { %10638 = vmatpush.bf16.msra.mxu1 %v10559_v18 }
 0x709   : > { %11388 = vrot.lane.b32.xlu0 %v17873_v54, %s11654_s6  ;;  %6696 = vmatpush.bf16.msrb.mxu2 %v10542_v16  ;;  %v10570_v16 = vld [vmem:[%s18822_s4 + $0x148] sm:$0xff] }
 0x70a   : > { %11393 = vrot.lane.b32.xlu1 %v11392_v13, %s11654_s6  ;;  %11398 = vrot.lane.b32.xlu2 %v11397_v31, %s11654_s6  ;;  %v10574_v13 = vld [vmem:[%s18822_s4 + $0x168] sm:$0xff]  ;;  %v18077_v31 = vld [vmem:[%s17824_s9 + $0x53] sm:$0xff] }
 0x70b   : > { %6456 = vmatpush.bf16.msra.mxu0 %v10550_v27  ;;  %6672 = vmatpush.bf16.msra.mxu3 %v10530_v17  ;;  %v18112_v17 = vld [vmem:[%s17824_s9 + $0x20] sm:$0xff] }
 0x70c   : > { %10639 = vmatpush.bf16.msra.mxu1 %v10558_v15 }
 0x70f   : > { %6457 = vmatpush.bf16.msra.mxu0 %v10549_v0  ;;  %6673 = vmatpush.bf16.msra.mxu3 %v10529_v60  ;;  %v18118_v0 = vld [vmem:[%s17824_s9 + $0x61] sm:$0xff] }
 0x710   : > { %10018 = vmatmul.msk.bf16.gmra.mxu2 %vm124_vm5, %v17981_v61  ;;  %10640 = vmatpush.bf16.msra.mxu1 %v10557_v37 }
 0x711   : > { %11403 = vrot.lane.b32.xlu0 %v11402_v7, %s11654_s6 }
 0x712   : > { %11408 = vrot.lane.b32.xlu1 %v11372_v49, %s11654_s6  ;;  %11413 = vrot.lane.b32.xlu2 %v11412_v24, %s11654_s6  ;;  %v10135_v49 = vld [vmem:[%s17824_s9 + $0x4b] sm:$0xff] }
 0x713   : > { %6478 = vmatpush.bf16.msrb.mxu0 %v17896_v8  ;;  %v11472_v6 = vpack.i.bf16 %v10135_v49, %v17860_v23  ;;  %v10539_v23 = vld [vmem:[%s18822_s4 + $0x50] sm:$0xff] }
 0x714   : > { %v9898_v8 = vld [vmem:[%s17824_s9 + $0x10] sm:$0xff] }
 0x717   : > { %6479 = vmatpush.bf16.msrb.mxu0 %v17912_v11  ;;  %v5987_v11 = vld [vmem:[%s17824_s9 + $0x8] sm:$0xff] }
 0x719   : > { %11418 = vrot.lane.b32.xlu0 %v11417_v47, %s11654_s6 }
 0x71a   : > { %11423 = vrot.lane.b32.xlu1 %v11422_v25, %s11654_s6  ;;  %6808 = vrot.lane.b32.xlu2 %v17856_v2, %s11654_s6  ;;  %v10576_v2 = vld [vmem:[%s18822_s4 + $0x178] sm:$0xff] }
 0x71b   : > { %6480 = vmatpush.bf16.msrb.mxu0 %v17928_v5  ;;  %7049 = vmatpush.bf16.msrb.mxu1 %v10576_v2 }
 0x71f   : > { %6481 = vmatpush.bf16.msrb.mxu0 %v17949_v63  ;;  %7050 = vmatpush.bf16.msrb.mxu1 %v10575_v33  ;;  %v18102_v63 = vld [vmem:[%s17824_s9 + $0x2a] sm:$0xff] }
 0x720   : > { %10019 = vmatmul.msk.bf16.gmra.mxu2 %vm124_vm5, %v6274_v3  ;;  %v18115_v3 = vld [vmem:[%s17824_s9 + $0x28] sm:$0xff] }
 0x721   : > { %11428 = vrot.lane.b32.xlu0 %v17843_v29, %s11654_s6 }
 0x722   : > { %11433 = vrot.lane.b32.xlu1 %v17979_v56, %s11654_s6  ;;  %11438 = vrot.lane.b32.xlu2 %v11437_v22, %s11654_s6 }
 0x723   : > { %6482 = vmatpush.bf16.msrb.mxu0 %v17963_v36  ;;  %7051 = vmatpush.bf16.msrb.mxu1 %v10574_v13  ;;  %v10571_v36 = vld [vmem:[%s18822_s4 + $0x150] sm:$0xff]  ;;  %v9874_v13 = vld [vmem:[%s17824_s9 + $0x2] sm:$0xff] }
 0x727   : > { %6483 = vmatpush.bf16.msrb.mxu0 %v10559_v18  ;;  %7052 = vmatpush.bf16.msrb.mxu1 %v10573_v21  ;;  %v18121_v18 = vld [vmem:[%s17824_s9 + $0x63] sm:$0xff] }
 0x728   : > { %v11487_v60 = vpack.i.bf16 %v18121_v18, %v18118_v0 }
 0x729   : > { %11443 = vrot.lane.b32.xlu0 %v17843_v29, %s11654_s6  ;;  %v18032_v29 = vld [vmem:[%s17824_s9 + $0x44] sm:$0xff] }
 0x72a   : > { %11448 = vrot.lane.b32.xlu1 %v17873_v54, %s11654_s6  ;;  %11453 = vrot.lane.b32.xlu2 %v17841_v39, %s11654_s6  ;;  %v6277_v26 = vpack.c.bf16 %v18032_v29, %v18032_v29  ;;  %v10548_v54 = vld [vmem:[%s18822_s4 + $0x98] sm:$0xff] }
 0x72b   : > { %10641 = vmatpush.bf16.msrb.mxu3 %v10548_v54  ;;  %6484 = vmatpush.bf16.msrb.mxu0 %v10558_v15 }
 0x72c   : > { %7053 = vmatpush.bf16.msrb.mxu1 %v10572_v48  ;;  %v18175_v48 = vld [vmem:[%s17824_s9 + $0x38] sm:$0xff] }
 0x72f   : > { %6485 = vmatpush.bf16.msrb.mxu0 %v10557_v37  ;;  %10642 = vmatpush.bf16.msrb.mxu3 %v10547_v32 }
 0x730   : > { %10020 = vmatmul.msk.bf16.gmra.mxu2 %vm124_vm5, %v6277_v26  ;;  %7054 = vmatpush.bf16.msrb.mxu1 %v10571_v36 }
 0x731   : > { %11458 = vrot.lane.b32.xlu0 %v17841_v39, %s11654_s6  ;;  %v10541_v39 = vld [vmem:[%s18822_s4 + $0x60] sm:$0xff] }
 0x732   : > { %11463 = vrot.lane.b32.xlu1 %v17979_v56, %s11654_s6  ;;  %6697 = vmatpush.bf16.msrb.mxu2 %v10541_v39 }
 0x733   : > { %11468 = vrot.lane.b32.xlu2 %v11472_v6, %s11654_s6 }
 0x734   : > { %7055 = vmatpush.bf16.msrb.mxu1 %v10570_v16  ;;  %v18203_v16 = vld [vmem:[%s17824_s9 + $0x1a] sm:$0xff] }
 0x736   : > { %6698 = vmatpush.bf16.msrb.mxu2 %v10540_v20 }
 0x739   : > { %11473 = vrot.lane.b32.xlu0 %v11472_v6, %s11654_s6 }
 0x73a   : > { %6699 = vmatpush.bf16.msrb.mxu2 %v10539_v23  ;;  %11478 = vrot.lane.b32.xlu1 %v18069_v35, %s11654_s6 }
 0x73e   : > { %6700 = vmatpush.bf16.msrb.mxu2 %v10538_v10  ;;  %v18138_v10 = vld [vmem:[%s17824_s9 + $0x32] sm:$0xff] }
 0x741   : > { %6842 = vrot.lane.b32.xlu0 %v18077_v31, %s11654_s6 }
 0x742   : > { %6701 = vmatpush.bf16.msrb.mxu2 %v10537_v51  ;;  %11488 = vrot.lane.b32.xlu1 %v11487_v60, %s11654_s6  ;;  %v18200_v60 = vld [vmem:[%s17824_s9 + $0x12] sm:$0xff] }
 0x749   : > { %11498 = vrot.lane.b32.xlu0 %v11472_v6, %s11654_s6 }
 0x74a   : > { %11503 = vrot.lane.b32.xlu1 %v18069_v35, %s11654_s6 }
 0x754   : > { %v18071_v43 = vpop.permute.xlu2 %11378 }
 0x755   : > { %v11381_v20 = vunpack.i.h.bf16 %v18071_v43  ;;  %v11380_v23 = vunpack.i.l.bf16 %v18071_v43  ;;  %v10546_v43 = vld [vmem:[%s18822_s4 + $0x88] sm:$0xff] }
 0x756   : > { %10643 = vmatpush.bf16.msrb.mxu3 %v10546_v43 }
 0x757   : > { %v6263_v40 = vsel %vm124_vm5, %v18138_v10, %v11380_v23 }
 0x75c   : > { %v11384_v47 = vpop.permute.xlu2 %11383 }
 0x75d   : > { %v11386_v22 = vunpack.i.h.bf16 %v11384_v47  ;;  %v11385_v41 = vunpack.i.l.bf16 %v11384_v47  ;;  %v10603_v47 = vld [vmem:[%s18822_s4 + $0x250] sm:$0xff] }
 0x75f   : > { %v6087_v49 = vsel %vm124_vm5, %v9898_v8, %v11385_v41  ;;  %v6088_v26 = vsel %vm124_vm5, %v9899_v50, %v11386_v22 }
 0x760   : > { %v6102_v33 = vpack.c.bf16 %v6088_v26, %v6087_v49  ;;  %v10602_v26 = vld [vmem:[%s18822_s4 + $0x248] sm:$0xff] }
 0x764   : > { %v11399_v2 = vpop.permute.xlu2 %11398 }
 0x765   : > { %v11401_v51 = vunpack.i.h.bf16 %v11399_v2 }
 0x76b   : > { %v11359_v58 = vpop.permute.xlu0 %11358 }
 0x76c   : > { %v11361_v53 = vunpack.i.h.bf16 %v11359_v58  ;;  %v11360_v44 = vunpack.i.l.bf16 %v11359_v58  ;;  %v11369_v62 = vpop.permute.xlu1 %11368  ;;  %v10588_v58 = vld [vmem:[%s18822_s4 + $0x1d8] sm:$0xff] }
 0x76d   : > { %v11371_v9 = vunpack.i.h.bf16 %v11369_v62  ;;  %v11370_v7 = vunpack.i.l.bf16 %v11369_v62  ;;  %v10259_v62 = vld [vmem:[%s17824_s9 + $0x5b] sm:$0xff]  ;;  %7109 = vmatpush.bf16.msra.mxu2 %v10588_v58 }
 0x76e   : > { %v6252_v12 = vsel %vm124_vm5, %v9898_v8, %v11360_v44  ;;  %v6253_v57 = vsel %vm124_vm5, %v9899_v50, %v11361_v53  ;;  %v10569_v8 = vld [vmem:[%s18822_s4 + $0x140] sm:$0xff]  ;;  %v9875_v53 = vld [vmem:[%s17824_s9 + $0xa] sm:$0xff]  ;;  %v10604_v44 = vld [vmem:[%s18822_s4 + $0x258] sm:$0xff] }
 0x76f   : > { %v6266_v1 = vpack.c.bf16 %v6253_v57, %v6252_v12  ;;  %v6085_v5 = vsel %vm124_vm5, %v5986_v42, %v11370_v7  ;;  %v6086_v4 = vsel %vm124_vm5, %v5987_v11, %v11371_v9  ;;  %v6092_v11 = vsel %vm124_vm5, %v9874_v13, %v11401_v51  ;;  %7056 = vmatpush.bf16.msrb.mxu1 %v10569_v8  ;;  %v18226_v51 = vld [vmem:[%s17824_s9 + $0x40] sm:$0xff] }
 0x770   : > { %v6099_v24 = vpack.c.bf16 %v6086_v4, %v6085_v5  ;;  %v11482_v7 = vpack.i.bf16 %v10259_v62, %v18077_v31  ;;  %v11400_v5 = vunpack.i.l.bf16 %v11399_v2  ;;  %v10545_v31 = vld [vmem:[%s18822_s4 + $0x80] sm:$0xff] }
 0x771   : > { %6458 = vmatmul.bf16.vlgmr.msra.gmra.mxu0 %v6266_v1  ;;  %10644 = vmatpush.bf16.msrb.mxu3 %v10545_v31  ;;  %v10601_v8 = vld [vmem:[%s18822_s4 + $0x240] sm:$0xff] }
 0x772   : > { %6674 = vmatmul.bf16.vlgmr.msra.gmra.mxu3 %v6099_v24  ;;  %6726 = vmatpush.bf16.msra.mxu0 %v10548_v54  ;;  %v18141_v54 = vld [vmem:[%s17824_s9 + $0x3a] sm:$0xff]  ;;  %v6090_v36 = vsel %vm124_vm5, %v18115_v3, %v11400_v5 }
 0x773   : > { %v11364_v38 = vpop.permute.xlu0 %11363  ;;  %v6264_v21 = vsel %vm124_vm5, %v18141_v54, %v11381_v20  ;;  %11483 = vrot.lane.b32.xlu2 %v11482_v7, %s11654_s6 }
 0x774   : > { %v11366_v34 = vunpack.i.h.bf16 %v11364_v38  ;;  %v11365_v25 = vunpack.i.l.bf16 %v11364_v38  ;;  %v11374_v19 = vpop.permute.xlu1 %11373  ;;  %v6273_v35 = vpack.c.bf16 %v6264_v21, %v6263_v40  ;;  %v10587_v38 = vld [vmem:[%s18822_s4 + $0x1d0] sm:$0xff]  ;;  %v10582_v40 = vld [vmem:[%s18822_s4 + $0x1a8] sm:$0xff] }
 0x775   : > { %v11376_v14 = vunpack.i.h.bf16 %v11374_v19  ;;  %v11375_v52 = vunpack.i.l.bf16 %v11374_v19  ;;  %7110 = vmatpush.bf16.msra.mxu2 %v10587_v38  ;;  %v10586_v21 = vld [vmem:[%s18822_s4 + $0x1c8] sm:$0xff] }
 0x776   : > { %v6261_v27 = vsel %vm124_vm5, %v18099_v28, %v11365_v25  ;;  %v6262_v55 = vsel %vm124_vm5, %v18102_v63, %v11366_v34  ;;  %6727 = vmatpush.bf16.msra.mxu0 %v10547_v32  ;;  %v18172_v32 = vld [vmem:[%s17824_s9 + $0x30] sm:$0xff] }
 0x777   : > { %v6270_v46 = vpack.c.bf16 %v6262_v55, %v6261_v27  ;;  %v6254_v15 = vsel %vm124_vm5, %v18112_v17, %v11375_v52  ;;  %v6255_v37 = vsel %vm124_vm5, %v18115_v3, %v11376_v14  ;;  %v11414_v55 = vpop.permute.xlu2 %11413 }
 0x778   : > { %v6269_v6 = vpack.c.bf16 %v6255_v37, %v6254_v15  ;;  %v11416_v41 = vunpack.i.h.bf16 %v11414_v55  ;;  %v18206_v15 = vld [vmem:[%s17824_s9 + $0x42] sm:$0xff]  ;;  %v10584_v37 = vld [vmem:[%s18822_s4 + $0x1b8] sm:$0xff] }
 0x779   : > { %6491 = vmatmul.bf16.vlgmr.msra.gmra.mxu1 %v6270_v46  ;;  %7077 = vmatpush.bf16.msra.mxu3 %v10584_v37  ;;  %v10599_v37 = vld [vmem:[%s18822_s4 + $0x230] sm:$0xff] }
 0x77a   : > { %6728 = vmatpush.bf16.msra.mxu0 %v10546_v43  ;;  %7467 = vmatpush.bf16.msra.mxu1 %v10604_v44  ;;  %v10581_v44 = vld [vmem:[%s18822_s4 + $0x1a0] sm:$0xff] }
 0x77b   : > { %v11389_v39 = vpop.permute.xlu0 %11388  ;;  %11493 = vrot.lane.b32.xlu2 %v17979_v56, %s11654_s6  ;;  %7111 = vmatpush.bf16.msra.mxu2 %v10586_v21 }
 0x77c   : > { %v11394_v9 = vpop.permute.xlu1 %11393  ;;  %v11391_v12 = vunpack.i.h.bf16 %v11389_v39  ;;  %v11390_v57 = vunpack.i.l.bf16 %v11389_v39  ;;  %v6094_v39 = vsel %vm124_vm5, %v18200_v60, %v11416_v41  ;;  %v10585_v41 = vld [vmem:[%s18822_s4 + $0x1c0] sm:$0xff] }
 0x77d   : > { %v11396_v24 = vunpack.i.h.bf16 %v11394_v9  ;;  %v11395_v52 = vunpack.i.l.bf16 %v11394_v9 }
 0x77e   : > { %v6256_v34 = vsel %vm124_vm5, %v18172_v32, %v11390_v57  ;;  %v6257_v25 = vsel %vm124_vm5, %v18175_v48, %v11391_v12  ;;  %7468 = vmatpush.bf16.msra.mxu1 %v10603_v47  ;;  %6729 = vmatpush.bf16.msra.mxu0 %v10545_v31  ;;  %v10600_v31 = vld [vmem:[%s18822_s4 + $0x238] sm:$0xff]  ;;  %v10579_v47 = vld [vmem:[%s18822_s4 + $0x190] sm:$0xff] }
 0x77f   : > { %v6089_v19 = vsel %vm124_vm5, %v18112_v17, %v11396_v24  ;;  %v6272_v14 = vpack.c.bf16 %v6257_v25, %v6256_v34  ;;  %v6265_v56 = vsel %vm124_vm5, %v18206_v15, %v11395_v52  ;;  %v6809_v57 = vpop.permute.xlu2 %6808  ;;  %7112 = vmatpush.bf16.msra.mxu2 %v10585_v41 }
 0x780   : > { %v6105_v46 = vpack.c.bf16 %v6090_v36, %v6089_v19  ;;  %v6276_v20 = vpack.c.bf16 %v6265_v56, %v6265_v56 }
 0x781   : > { %6463 = vmatmul.bf16.gmra.mxu0 %v6269_v6  ;;  %v10583_v6 = vld [vmem:[%s18822_s4 + $0x1b0] sm:$0xff] }
 0x782   : > { %6679 = vmatmul.bf16.gmra.mxu3 %v6102_v33  ;;  %7469 = vmatpush.bf16.msra.mxu1 %v10602_v26  ;;  %v11415_v33 = vunpack.i.l.bf16 %v11414_v55  ;;  %v10578_v55 = vld [vmem:[%s18822_s4 + $0x188] sm:$0xff] }
 0x783   : > { %v18159_v50 = vpop.permute.xlu0 %11403  ;;  %11508 = vrot.lane.b32.xlu2 %v11482_v7, %s11654_s6  ;;  %7078 = vmatpush.bf16.msra.mxu3 %v10583_v6  ;;  %v18271_v52 = vpop.f32.mrf.mxu2 }
 0x784   : > { %v11405_v42 = vunpack.i.l.bf16 %v18159_v50  ;;  %v11406_v23 = vunpack.i.h.bf16 %v18159_v50  ;;  %v11409_v13 = vpop.permute.xlu1 %11408  ;;  %v6091_v58 = vsel %vm124_vm5, %v18172_v32, %v11415_v33  ;;  %v10367_v50 = vld [vmem:[%s17824_s9 + $0x69] sm:$0xff] }
 0x785   : > { %v11512_v62 = vpack.i.bf16 %v10367_v50, %v18118_v0  ;;  %v11410_v12 = vunpack.i.l.bf16 %v11409_v13 }
 0x786   : > { %v6093_v1 = vsel %vm124_vm5, %v9875_v53, %v11405_v42  ;;  %v6258_v43 = vsel %vm124_vm5, %v18226_v51, %v11406_v23  ;;  %7470 = vmatpush.bf16.msra.mxu1 %v10601_v8  ;;  %v10595_v23 = vld [vmem:[%s18822_s4 + $0x210] sm:$0xff] }
 0x787   : > { %v6100_v4 = vpack.c.bf16 %v6093_v1, %v6092_v11  ;;  %7079 = vmatpush.bf16.msra.mxu3 %v10582_v40  ;;  %v6275_v42 = vpack.c.bf16 %v6258_v43, %v6258_v43  ;;  %v6108_v11 = vpack.c.bf16 %v6091_v58, %v6091_v58  ;;  %11513 = vrot.lane.b32.xlu0 %v11512_v62, %s11654_s6  ;;  %v10580_v1 = vld [vmem:[%s18822_s4 + $0x198] sm:$0xff]  ;;  %v10598_v58 = vld [vmem:[%s18822_s4 + $0x228] sm:$0xff]  ;;  %v10593_v62 = vld [vmem:[%s18822_s4 + $0x200] sm:$0xff] }
 0x788   : > { %v6851_v5 = vsel %vm124_vm5, %v18112_v17, %v11410_v12  ;;  %v10384_v8 = vld [vmem:[%s17824_s9 + $0x73] sm:$0xff] }
 0x789   : > { %6496 = vmatmul.bf16.gmra.mxu1 %v6273_v35  ;;  %6702 = vmatmul.bf16.vlgmr.msrb.gmra.mxu2 %v6100_v4  ;;  %v11411_v35 = vunpack.i.h.bf16 %v11409_v13  ;;  %v6854_v13 = vsel %vm124_vm5, %v18175_v48, %v6809_v57 }
 0x78a   : > { %7471 = vmatpush.bf16.msra.mxu1 %v10600_v31  ;;  %v10591_v31 = vld [vmem:[%s18822_s4 + $0x1f0] sm:$0xff] }
 0x78b   : > { %v18194_v27 = vpop.permute.xlu0 %11418  ;;  %7080 = vmatpush.bf16.msra.mxu3 %v10581_v44  ;;  %v6852_v0 = vsel %vm124_vm5, %v18115_v3, %v11411_v35  ;;  %v10383_v3 = vld [vmem:[%s17824_s9 + $0x6b] sm:$0xff]  ;;  %v18309_v33 = vpop.f32.mrf.mxu2 }
 0x78c   : > { %v11420_v22 = vunpack.i.l.bf16 %v18194_v27  ;;  %v11424_v38 = vpop.permute.xlu1 %11423  ;;  %v11517_v17 = vpack.i.bf16 %v10383_v3, %v18121_v18  ;;  %v6865_v25 = vpack.c.bf16 %v6852_v0, %v6851_v5  ;;  %v11421_v19 = vunpack.i.h.bf16 %v18194_v27  ;;  %v9891_v44 = vld [vmem:[%s17824_s9 + $0xc] sm:$0xff]  ;;  %v10608_v3 = vld [vmem:[%s18822_s4 + $0x278] sm:$0xff] }
 0x78d   : > { %v11425_v36 = vunpack.i.l.bf16 %v11424_v38 }
 0x78e   : > { %v6095_v49 = vsel %vm124_vm5, %v18203_v16, %v11420_v22  ;;  %11518 = vrot.lane.b32.xlu1 %v11517_v17, %s11654_s6  ;;  %v6259_v18 = vsel %vm124_vm5, %v18200_v60, %v11421_v19  ;;  %v10577_v60 = vld [vmem:[%s18822_s4 + $0x180] sm:$0xff]  ;;  %7472 = vmatpush.bf16.msra.mxu1 %v10599_v37  ;;  %v10616_v17 = vld [vmem:[%s18822_s4 + $0x2b8] sm:$0xff] }
 0x78f   : > { %v6103_v2 = vpack.c.bf16 %v6095_v49, %v6094_v39  ;;  %7081 = vmatpush.bf16.msra.mxu3 %v10580_v1  ;;  %v18283_v39 = vpop.permute.xlu2 %11438  ;;  %7622 = vrot.lane.b32.xlu0 %v10384_v8, %s11654_s6  ;;  %v6110_v1 = vpack.c.bf16 %v17997_v30, %v17997_v30  ;;  %v10624_v37 = vld [vmem:[%s18822_s4 + $0x2f8] sm:$0xff] }
 0x790   : > { %v11440_v6 = vunpack.i.l.bf16 %v18283_v39  ;;  %7829 = vmatpush.bf16.msrb.mxu2 %v10616_v17  ;;  %v10611_v17 = vld [vmem:[%s18822_s4 + $0x290] sm:$0xff] }
 0x791   : > { %6468 = vmatmul.bf16.gmra.mxu0 %v6272_v14 }
 0x792   : > { %6684 = vmatmul.bf16.gmra.mxu3 %v6105_v46  ;;  %v6260_v46 = vsel %vm124_vm5, %v18203_v16, %v11425_v36  ;;  %7473 = vmatpush.bf16.msra.mxu1 %v10598_v58  ;;  %v10590_v36 = vld [vmem:[%s18822_s4 + $0x1e8] sm:$0xff]  ;;  %v10627_v58 = vld [vmem:[%s18822_s4 + $0x310] sm:$0xff] }
 0x793   : > { %v11429_v53 = vpop.permute.xlu0 %11428  ;;  %7082 = vmatpush.bf16.msra.mxu3 %v10579_v47  ;;  %v6267_v56 = vpack.c.bf16 %v6260_v46, %v6259_v18  ;;  %v10597_v47 = vld [vmem:[%s18822_s4 + $0x220] sm:$0xff]  ;;  %v10368_v18 = vld [vmem:[%s17824_s9 + $0x71] sm:$0xff] }
 0x794   : > { %v11431_v9 = vunpack.i.h.bf16 %v11429_v53  ;;  %v11430_v7 = vunpack.i.l.bf16 %v11429_v53  ;;  %v9890_v53 = vld [vmem:[%s17824_s9 + $0x4] sm:$0xff]  ;;  %v9892_v46 = vld [vmem:[%s17824_s9 + $0x14] sm:$0xff]  ;;  %7594 = vrot.lane.b32.xlu2 %v10368_v18, %s11654_s6 }
 0x795   : > { %v6101_v12 = vpack.c.bf16 %v9891_v44, %v9890_v53 }
 0x796   : > { %v6096_v4 = vsel %vm124_vm5, %v18099_v28, %v11430_v7  ;;  %v6097_v24 = vsel %vm124_vm5, %v18102_v63, %v11431_v9  ;;  %v18328_v9 = vpop.f32.mrf.mxu2  ;;  %7474 = vmatpush.bf16.msra.mxu1 %v10597_v47  ;;  %v10620_v47 = vld [vmem:[%s18822_s4 + $0x2d8] sm:$0xff] }
 0x797   : > { %v6106_v34 = vpack.c.bf16 %v6097_v24, %v6096_v4  ;;  %7083 = vmatpush.bf16.msra.mxu3 %v10578_v55  ;;  %v10592_v4 = vld [vmem:[%s18822_s4 + $0x1f8] sm:$0xff]  ;;  %v10139_v24 = vld [vmem:[%s17824_s9 + $0x2c] sm:$0xff]  ;;  %v11454_v53 = vpop.permute.xlu2 %11453 }
 0x798   : > { %v10615_v55 = vld [vmem:[%s18822_s4 + $0x2b0] sm:$0xff] }
 0x799   : > { %6707 = vmatmul.bf16.gmra.mxu2 %v6103_v2  ;;  %6501 = vmatmul.bf16.gmra.mxu1 %v6276_v20  ;;  %v10596_v2 = vld [vmem:[%s18822_s4 + $0x218] sm:$0xff]  ;;  %v11426_v20 = vunpack.i.h.bf16 %v11424_v38 }
 0x79a   : > { %7830 = vmatpush.bf16.msrb.mxu2 %v10615_v55 }
 0x79b   : > { %v11444_v14 = vpop.permute.xlu0 %11443  ;;  %7084 = vmatpush.bf16.msra.mxu3 %v10577_v60  ;;  %v6853_v40 = vsel %vm124_vm5, %v18172_v32, %v11426_v20  ;;  %v10140_v20 = vld [vmem:[%s17824_s9 + $0x34] sm:$0xff] }
 0x79c   : > { %v11446_v27 = vunpack.i.h.bf16 %v11444_v14  ;;  %v11445_v22 = vunpack.i.l.bf16 %v11444_v14  ;;  %v6868_v43 = vpack.c.bf16 %v6854_v13, %v6853_v40  ;;  %v10628_v14 = vld [vmem:[%s18822_s4 + $0x318] sm:$0xff] }
 0x79e   : > { %v18290_v16 = vsel %vm124_vm5, %v18102_v63, %v11446_v27  ;;  %v18294_v49 = vsel %vm124_vm5, %v18099_v28, %v11445_v22  ;;  %v11434_v63 = vpop.permute.xlu1 %11433  ;;  %v6098_v28 = vsel %vm124_vm5, %v18138_v10, %v11440_v6  ;;  %v9893_v27 = vld [vmem:[%s17824_s9 + $0x1c] sm:$0xff]  ;;  %v11441_v6 = vunpack.i.h.bf16 %v18283_v39 }
 0x79f   : > { %v6866_v26 = vpack.c.bf16 %v18290_v16, %v18294_v49  ;;  %v6109_v21 = vpack.c.bf16 %v6098_v28, %v6098_v28  ;;  %v11436_v0 = vunpack.i.h.bf16 %v11434_v63  ;;  %v11435_v5 = vunpack.i.l.bf16 %v11434_v63  ;;  %v10589_v22 = vld [vmem:[%s18822_s4 + $0x1e0] sm:$0xff]  ;;  %v10607_v28 = vld [vmem:[%s18822_s4 + $0x270] sm:$0xff]  ;;  %v10622_v49 = vld [vmem:[%s18822_s4 + $0x2e8] sm:$0xff] }
 0x7a0   : > { %v6104_v60 = vpack.c.bf16 %v9893_v27, %v9892_v46  ;;  %v10141_v63 = vld [vmem:[%s17824_s9 + $0x3c] sm:$0xff] }
 0x7a1   : > { %6473 = vmatmul.bf16.gmra.mxu0 %v6275_v42  ;;  %v6855_v30 = vsel %vm124_vm5, %v18226_v51, %v11435_v5  ;;  %v18415_v16 = vpack.c.bf16 %v10141_v63, %v10140_v20  ;;  %v18445_v5 = vld [vmem:[%s17824_s9 + $0x4c] sm:$0xff]  ;;  %v10605_v46 = vld [vmem:[%s18822_s4 + $0x260] sm:$0xff] }
 0x7a2   : > { %6689 = vmatmul.bf16.gmra.mxu3 %v6108_v11 }
 0x7a3   : > { %v11459_v40 = vpop.permute.xlu0 %11458 }
 0x7a6   : > { %v11449_v50 = vpop.permute.xlu1 %11448 }
 0x7a7   : > { %v11451_v42 = vunpack.i.h.bf16 %v11449_v50  ;;  %v11450_v11 = vunpack.i.l.bf16 %v11449_v50 }
 0x7a9   : > { %6712 = vmatmul.bf16.gmra.mxu2 %v6106_v34  ;;  %7057 = vmatmul.bf16.vlgmr.msrb.gmra.mxu1 %v6865_v25  ;;  %v18332_v7 = vsel %vm124_vm5, %v18175_v48, %v11451_v42  ;;  %v18336_v35 = vsel %vm124_vm5, %v18172_v32, %v11450_v11  ;;  %v18346_v48 = vld [vmem:[%s17824_s9 + $0x48] sm:$0xff]  ;;  %v18368_v34 = vpop.f32.mrf.mxu2  ;;  %v11456_v42 = vunpack.i.h.bf16 %v11454_v53  ;;  %v11455_v11 = vunpack.i.l.bf16 %v11454_v53 }
 0x7aa   : > { %v7255_v57 = vpack.c.bf16 %v18332_v7, %v18336_v35  ;;  %v10138_v32 = vld [vmem:[%s17824_s9 + $0x24] sm:$0xff]  ;;  %v6856_v38 = vsel %vm124_vm5, %v18346_v48, %v11436_v0  ;;  %7889 = vmatpush.bf16.msrb.mxu1 %v10628_v14  ;;  %v10612_v7 = vld [vmem:[%s18822_s4 + $0x298] sm:$0xff]  ;;  %v11469_v14 = vpop.permute.xlu2 %11468 }
 0x7ab   : > { %v6871_v25 = vpack.c.bf16 %v6856_v38, %v6855_v30  ;;  %v6867_v19 = vpack.c.bf16 %v10139_v24, %v10138_v32  ;;  %v7248_v0 = vsel %vm124_vm5, %v18138_v10, %v11455_v11  ;;  %v10625_v11 = vld [vmem:[%s18822_s4 + $0x300] sm:$0xff] }
 0x7ae   : > { %7890 = vmatpush.bf16.msrb.mxu1 %v10627_v58  ;;  %v11464_v35 = vpop.permute.xlu1 %11463 }
 0x7af   : > { %v11466_v24 = vunpack.i.h.bf16 %v11464_v35 }
 0x7b1   : > { %6486 = vmatmul.bf16.vlgmr.msrb.gmra.mxu0 %v6267_v56  ;;  %v18387_v41 = vpop.f32.mrf.mxu2  ;;  %v10623_v56 = vld [vmem:[%s18822_s4 + $0x2f0] sm:$0xff] }
 0x7b2   : > { %10103 = vmatmul.msk.bf16.vlgmr.msrb.gmra.mxu3 %vm124_vm5, %v17981_v61  ;;  %7439 = vmatpush.bf16.msrb.mxu0 %v10596_v2  ;;  %v10594_v61 = vld [vmem:[%s18822_s4 + $0x208] sm:$0xff]  ;;  %v18398_v2 = vld [vmem:[%s17824_s9 + $0x50] sm:$0xff] }
 0x7b3   : > { %7499 = vmatpush.bf16.msrb.mxu3 %v10608_v3  ;;  %v6857_v13 = vsel %vm124_vm5, %v18398_v2, %v11441_v6  ;;  %v18459_v3 = vld [vmem:[%s17824_s9 + $0x4a] sm:$0xff] }
 0x7b4   : > { %v10610_v6 = vld [vmem:[%s18822_s4 + $0x288] sm:$0xff] }
 0x7b6   : > { %7440 = vmatpush.bf16.msrb.mxu0 %v10595_v23  ;;  %v10614_v23 = vld [vmem:[%s18822_s4 + $0x2a8] sm:$0xff] }
 0x7b7   : > { %7500 = vmatpush.bf16.msrb.mxu3 %v10607_v28  ;;  %7831 = vmatpush.bf16.msrb.mxu2 %v10614_v23  ;;  %v18492_v28 = vld [vmem:[%s17824_s9 + $0x54] sm:$0xff]  ;;  %v11479_v23 = vpop.permute.xlu1 %11478 }
 0x7b8   : > { %v11481_v58 = vunpack.i.h.bf16 %v11479_v23 }
 0x7b9   : > { %6717 = vmatmul.bf16.gmra.mxu2 %v6109_v21  ;;  %7062 = vmatmul.bf16.gmra.mxu1 %v6868_v43  ;;  %v18411_v39 = vpop.f32.mrf.mxu2  ;;  %v11461_v21 = vunpack.i.h.bf16 %v11459_v40  ;;  %v10613_v43 = vld [vmem:[%s18822_s4 + $0x2a0] sm:$0xff] }
 0x7ba   : > { %7441 = vmatpush.bf16.msrb.mxu0 %v10594_v61  ;;  %v11460_v61 = vunpack.i.l.bf16 %v11459_v40 }
 0x7bb   : > { %v6861_v50 = vsel %vm124_vm5, %v18141_v54, %v11461_v21  ;;  %7832 = vmatpush.bf16.msrb.mxu2 %v10613_v43  ;;  %v10609_v21 = vld [vmem:[%s18822_s4 + $0x280] sm:$0xff] }
 0x7bc   : > { %v6860_v8 = vsel %vm124_vm5, %v18138_v10, %v11460_v61  ;;  %v6873_v10 = vpack.c.bf16 %v18445_v5, %v18032_v29  ;;  %v10626_v29 = vld [vmem:[%s18822_s4 + $0x308] sm:$0xff] }
 0x7bd   : > { %7891 = vmatpush.bf16.msrb.mxu1 %v10626_v29 }
 0x7be   : > { %7442 = vmatpush.bf16.msrb.mxu0 %v10593_v62  ;;  %v6869_v62 = vpack.c.bf16 %v6861_v50, %v6860_v8  ;;  %v11480_v8 = vunpack.i.l.bf16 %v11479_v23  ;;  %v18504_v50 = vld [vmem:[%s17824_s9 + $0x52] sm:$0xff] }
 0x7bf   : > { %7833 = vmatpush.bf16.msrb.mxu2 %v10612_v7 }
 0x7c1   : > { %10101 = vmatmul.msk.bf16.vlgmr.msra.gmra.mxu0 %vm124_vm5, %v6101_v12  ;;  %v18432_v44 = vpop.f32.mrf.mxu2  ;;  %v10621_v12 = vld [vmem:[%s18822_s4 + $0x2e0] sm:$0xff]  ;;  %7892 = vmatpush.bf16.msrb.mxu1 %v10625_v11 }
 0x7c2   : > { %10104 = vmatmul.msk.bf16.gmra.mxu3 %vm124_vm5, %v6110_v1  ;;  %7443 = vmatpush.bf16.msrb.mxu0 %v10592_v4  ;;  %v7249_v1 = vsel %vm124_vm5, %v18141_v54, %v11456_v42  ;;  %v10606_v4 = vld [vmem:[%s18822_s4 + $0x268] sm:$0xff] }
 0x7c3   : > { %7501 = vmatpush.bf16.msrb.mxu3 %v10606_v4  ;;  %v7256_v54 = vpack.c.bf16 %v7249_v1, %v7248_v0  ;;  %7834 = vmatpush.bf16.msrb.mxu2 %v10611_v17  ;;  %v10618_v42 = vld [vmem:[%s18822_s4 + $0x2c8] sm:$0xff]  ;;  %v7245_v1 = vsel %vm124_vm5, %v18398_v2, %v11480_v8  ;;  %v18525_v17 = vld [vmem:[%s17824_s9 + $0x5a] sm:$0xff] }
 0x7c6   : > { %7444 = vmatpush.bf16.msrb.mxu0 %v10591_v31  ;;  %v11465_v31 = vunpack.i.l.bf16 %v11464_v35 }
 0x7c7   : > { %7502 = vmatpush.bf16.msrb.mxu3 %v10605_v46  ;;  %7835 = vmatpush.bf16.msrb.mxu2 %v10610_v6 }
 0x7c9   : > { %7067 = vmatmul.bf16.gmra.mxu1 %v6871_v25  ;;  %10225 = vmatmul.msk.bf16.vlgmr.msra.gmra.mxu2 %vm124_vm5, %v6867_v19  ;;  %v6532_v32 = vpop.f32.mrf.mxu2  ;;  %v7243_v25 = vsel %vm124_vm5, %v18226_v51, %v11465_v31  ;;  %v7244_v19 = vsel %vm124_vm5, %v18346_v48, %v11466_v24 }
 0x7ca   : > { %7445 = vmatpush.bf16.msrb.mxu0 %v10590_v36  ;;  %v7258_v18 = vpack.c.bf16 %v7244_v19, %v7243_v25 }
 0x7cb   : > { %7836 = vmatpush.bf16.msrb.mxu2 %v10609_v21 }
 0x7ce   : > { %7446 = vmatpush.bf16.msrb.mxu0 %v10589_v22 }
 0x7d1   : > { %10102 = vmatmul.msk.bf16.gmra.mxu0 %vm124_vm5, %v6104_v60  ;;  %v11470_v60 = vunpack.i.l.bf16 %v11469_v14 }
 0x7d2   : > { %7857 = vmatpush.bf16.msra.mxu0 %v10624_v37  ;;  %7085 = vmatmul.bf16.vlgmr.msra.gmra.mxu3 %v6866_v26  ;;  %v6874_v26 = vpack.c.bf16 %v6857_v13, %v6857_v13  ;;  %v11471_v37 = vunpack.i.h.bf16 %v11469_v14  ;;  %v11484_v13 = vpop.permute.xlu2 %11483  ;;  %v11489_v14 = vpop.permute.xlu1 %11488 }
 0x7d3   : > { %v7250_v20 = vsel %vm124_vm5, %v18206_v15, %v11470_v60  ;;  %v11486_v24 = vunpack.i.h.bf16 %v11484_v13  ;;  %v11485_v31 = vunpack.i.l.bf16 %v11484_v13 }
 0x7d4   : > { %v7251_v63 = vsel %vm124_vm5, %v18459_v3, %v11471_v37 }
 0x7d5   : > { %v7252_v25 = vsel %vm124_vm5, %v18504_v50, %v11485_v31  ;;  %v7253_v19 = vsel %vm124_vm5, %v18525_v17, %v11486_v24 }
 0x7d6   : > { %7858 = vmatpush.bf16.msra.mxu0 %v10623_v56  ;;  %v10619_v56 = vld [vmem:[%s18822_s4 + $0x2d0] sm:$0xff]  ;;  %v7262_v46 = vpack.c.bf16 %v7253_v19, %v7252_v25 }
 0x7d9   : > { %7072 = vmatmul.bf16.gmra.mxu1 %v6874_v26  ;;  %10226 = vmatmul.msk.bf16.gmra.mxu2 %vm124_vm5, %v18415_v16  ;;  %v6876_v26 = vpack.c.bf16 %v18492_v28, %v18492_v28 }
 0x7da   : > { %7859 = vmatpush.bf16.msra.mxu0 %v10622_v49  ;;  %v7259_v49 = vpack.c.bf16 %v7251_v63, %v7250_v20  ;;  %v11494_v4 = vpop.permute.xlu2 %11493  ;;  %v10236_v20 = vld [vmem:[%s17824_s9 + $0x60] sm:$0xff]  ;;  %v11504_v23 = vpop.permute.xlu1 %11503 }
 0x7db   : > { %v11505_v8 = vunpack.i.l.bf16 %v11504_v23 }
 0x7de   : > { %7860 = vmatpush.bf16.msra.mxu0 %v10621_v12 }
 0x7e1   : > { %7447 = vmatmul.bf16.vlgmr.msrb.gmra.mxu0 %v7255_v57  ;;  %v11474_v57 = vpop.permute.xlu0 %11473 }
 0x7e2   : > { %7090 = vmatmul.bf16.gmra.mxu3 %v6869_v62  ;;  %v11476_v30 = vunpack.i.h.bf16 %v11474_v57  ;;  %v11475_v38 = vunpack.i.l.bf16 %v11474_v57  ;;  %7861 = vmatpush.bf16.msra.mxu0 %v10620_v47  ;;  %v10235_v62 = vld [vmem:[%s17824_s9 + $0x58] sm:$0xff] }
 0x7e3   : > { %v7246_v0 = vsel %vm124_vm5, %v10235_v62, %v11481_v58  ;;  %v11506_v58 = vunpack.i.h.bf16 %v11504_v23 }
 0x7e4   : > { %v6862_v36 = vsel %vm124_vm5, %v18206_v15, %v11475_v38  ;;  %v6863_v55 = vsel %vm124_vm5, %v18459_v3, %v11476_v30  ;;  %v7261_v57 = vpack.c.bf16 %v7246_v0, %v7245_v1  ;;  %v11496_v30 = vunpack.i.h.bf16 %v11494_v4 }
 0x7e5   : > { %v6872_v22 = vpack.c.bf16 %v6863_v55, %v6862_v36  ;;  %v11495_v38 = vunpack.i.l.bf16 %v11494_v4  ;;  %v7633_v1 = vsel %vm124_vm5, %v18398_v2, %v11505_v8  ;;  %v10267_v8 = vld [vmem:[%s17824_s9 + $0x5c] sm:$0xff] }
 0x7e6   : > { %7862 = vmatpush.bf16.msra.mxu0 %v10619_v56  ;;  %v7632_v36 = vsel %vm124_vm5, %v18346_v48, %v11496_v30  ;;  %v11490_v56 = vunpack.i.l.bf16 %v11489_v14 }
 0x7e7   : > { %v7631_v55 = vsel %vm124_vm5, %v18226_v51, %v11495_v38  ;;  %v10264_v38 = vld [vmem:[%s17824_s9 + $0x44] sm:$0xff] }
 0x7e8   : > { %v7247_v63 = vsel %vm124_vm5, %v10236_v20, %v11490_v56  ;;  %v10359_v56 = vld [vmem:[%s17824_s9 + $0x68] sm:$0xff] }
 0x7e9   : > { %7475 = vmatmul.bf16.vlgmr.msra.gmra.mxu1 %v7256_v54  ;;  %10227 = vmatmul.msk.bf16.gmra.mxu2 %vm124_vm5, %v6873_v10  ;;  %v6843_v53 = vpop.permute.xlu0 %6842  ;;  %v10617_v54 = vld [vmem:[%s18822_s4 + $0x2c0] sm:$0xff]  ;;  %s18716_s4 = smov (%p5978_p4), 0  }
 0x7ea   : > { %v6864_v12 = vsel %vm124_vm5, %v18504_v50, %v6843_v53  ;;  %7863 = vmatpush.bf16.msra.mxu0 %v10618_v42  ;;  %v11491_v42 = vunpack.i.h.bf16 %v11489_v14 }
 0x7eb   : > { %v6875_v35 = vpack.c.bf16 %v6864_v12, %v6864_v12  ;;  %v18543_v12 = vld [vmem:[%s17824_s9 + $0x62] sm:$0xff] }
 0x7ee   : > { %v18479_v27 = vpop.f32.mrf.mxu0  ;;  %7864 = vmatpush.bf16.msra.mxu0 %v10617_v54 }
 0x7f1   : > { %7452 = vmatmul.bf16.gmra.mxu0 %v7258_v18  ;;  %v11499_v0 = vpop.permute.xlu0 %11498 }
 0x7f2   : > { %7095 = vmatmul.bf16.gmra.mxu3 %v6872_v22  ;;  %v7645_v22 = vpack.c.bf16 %v7632_v36, %v7631_v55  ;;  %v11501_v24 = vunpack.i.h.bf16 %v11499_v0  ;;  %v11500_v31 = vunpack.i.l.bf16 %v11499_v0  ;;  %v7263_v0 = vpack.c.bf16 %v10267_v8, %v18492_v28  ;;  %v10392_v8 = vld [vmem:[%s17824_s9 + $0x74] sm:$0xff] }
 0x7f4   : > { %v7639_v2 = vsel %vm124_vm5, %v18459_v3, %v11501_v24 }
 0x7f5   : > { %v18494_v40 = vpop.f32.mrf.mxu3 }
 0x7f6   : > { %v18501_v61 = vpop.f32.mrf.mxu0  ;;  %v6492_v43 = vpop.f32.mrf.mxu1 }
 0x7f9   : > { %7480 = vmatmul.bf16.gmra.mxu1 %v7259_v49  ;;  %10228 = vmatmul.msk.bf16.gmra.mxu2 %vm124_vm5, %v6876_v26  ;;  %v7264_v49 = vpack.c.bf16 %v7247_v63, %v7247_v63 }
 0x7fd   : > { %v18519_v7 = vpop.f32.mrf.mxu3 }
 0x7fe   : > { %v6464_v10 = vpop.f32.mrf.mxu0  ;;  %v6494_v32 = vpop.f32.mrf.mxu1 }
 0x7ff   : > { %v6493_v47 = vadd.f32 %v6492_v43, %v6464_v10 }
 0x801   : > { %7457 = vmatmul.bf16.gmra.mxu0 %v7261_v57  ;;  %v6521_v29 = vadd.f32 %v18328_v9, %v6493_v47  ;;  %v11514_v47 = vpop.permute.xlu0 %11513 }
 0x802   : > { %7100 = vmatmul.bf16.gmra.mxu3 %v6875_v35  ;;  %v7254_v35 = vsel %vm124_vm5, %v18543_v12, %v11491_v42  ;;  %v11515_v3 = vunpack.i.l.bf16 %v11514_v47 }
 0x803   : > { %v7265_v30 = vpack.c.bf16 %v7254_v35, %v7254_v35 }
 0x805   : > { %v6680_v18 = vpop.f32.mrf.mxu3 }
 0x806   : > { %v6681_v37 = vadd.f32 %v6680_v18, %v6521_v29  ;;  %v6466_v60 = vpop.f32.mrf.mxu0  ;;  %v6497_v9 = vpop.f32.mrf.mxu1 }
 0x807   : > { %v6495_v6 = vadd.f32 %v6494_v32, %v6466_v60  ;;  %v11516_v60 = vunpack.i.h.bf16 %v11514_v47  ;;  %v10375_v47 = vld [vmem:[%s17824_s9 + $0x6a] sm:$0xff] }
 0x809   : > { %7485 = vmatmul.bf16.gmra.mxu1 %v7262_v46  ;;  %7837 = vmatmul.bf16.vlgmr.msrb.gmra.mxu2 %v7645_v22  ;;  %v6523_v48 = vadd.f32 %v18368_v34, %v6495_v6  ;;  %v7634_v34 = vsel %vm124_vm5, %v10235_v62, %v11506_v58  ;;  %v7638_v62 = vsel %vm124_vm5, %v18206_v15, %v11500_v31  ;;  %v11509_v6 = vpop.permute.xlu2 %11508 }
 0x80a   : > { %v7648_v54 = vpack.c.bf16 %v7634_v34, %v7633_v1  ;;  %v7646_v19 = vpack.c.bf16 %v7639_v2, %v7638_v62  ;;  %v7260_v22 = vpack.c.bf16 %v18445_v5, %v10264_v38 }
 0x80c   : > { %v18539_v13 = vpop.f32.mrf.mxu2 }
 0x80d   : > { %v6682_v51 = vpop.f32.mrf.mxu3 }
 0x80e   : > { %v6683_v26 = vadd.f32 %v6682_v51, %v6523_v48  ;;  %v6469_v21 = vpop.f32.mrf.mxu0  ;;  %v6499_v43 = vpop.f32.mrf.mxu1 }
 0x80f   : > { %v6498_v53 = vadd.f32 %v6497_v9, %v6469_v21 }
 0x811   : > { %7462 = vmatmul.bf16.gmra.mxu0 %v7264_v49  ;;  %v6526_v11 = vadd.f32 %v18387_v41, %v6498_v53 }
 0x812   : > { %10349 = vmatmul.msk.bf16.vlgmr.msrb.gmra.mxu3 %vm124_vm5, %v18415_v16 }
 0x814   : > { %v18550_v4 = vpop.f32.mrf.mxu2 }
 0x815   : > { %v6685_v57 = vpop.f32.mrf.mxu3 }
 0x816   : > { %v6686_v41 = vadd.f32 %v6685_v57, %v6526_v11  ;;  %v6471_v10 = vpop.f32.mrf.mxu0  ;;  %v6502_v32 = vpop.f32.mrf.mxu1  ;;  %v10360_v57 = vld [vmem:[%s17824_s9 + $0x70] sm:$0xff] }
 0x817   : > { %v6500_v16 = vadd.f32 %v6499_v43, %v6471_v10  ;;  %v11511_v43 = vunpack.i.h.bf16 %v11509_v6 }
 0x819   : > { %7490 = vmatmul.bf16.gmra.mxu1 %v7265_v30  ;;  %7842 = vmatmul.bf16.gmra.mxu2 %v7648_v54  ;;  %v6528_v29 = vadd.f32 %v18411_v39, %v6500_v16  ;;  %v7636_v39 = vsel %vm124_vm5, %v10359_v56, %v11516_v60  ;;  %v7641_v58 = vsel %vm124_vm5, %v18525_v17, %v11511_v43  ;;  %v7595_v54 = vpop.permute.xlu2 %7594  ;;  %v11519_v17 = vpop.permute.xlu1 %11518 }
 0x81a   : > { %v11521_v2 = vunpack.i.h.bf16 %v11519_v17  ;;  %v11520_v62 = vunpack.i.l.bf16 %v11519_v17 }
 0x81c   : > { %v6708_v25 = vpop.f32.mrf.mxu2 }
 0x81d   : > { %v6687_v36 = vpop.f32.mrf.mxu3  ;;  %v18560_v55 = vadd.f32 %v6708_v25, %v6681_v37  ;;  %v7635_v37 = vsel %vm124_vm5, %v10236_v20, %v11515_v3  ;;  %v10268_v25 = vld [vmem:[%s17824_s9 + $0x64] sm:$0xff] }
 0x81e   : > { %v6688_v14 = vadd.f32 %v6687_v36, %v6528_v29  ;;  %v6474_v18 = vpop.f32.mrf.mxu0  ;;  %v6504_v46 = vpop.f32.mrf.mxu1  ;;  %v7651_v5 = vpack.c.bf16 %v7636_v39, %v7635_v37  ;;  %v7266_v3 = vpack.c.bf16 %v10268_v25, %v10268_v25 }
 0x81f   : > { %v6503_v9 = vadd.f32 %v6502_v32, %v6474_v18 }
 0x821   : > { %7865 = vmatmul.bf16.vlgmr.msra.gmra.mxu0 %v7646_v19  ;;  %v6531_v15 = vadd.f32 %v18432_v44, %v6503_v9  ;;  %v11510_v44 = vunpack.i.l.bf16 %v11509_v6 }
 0x822   : > { %10350 = vmatmul.msk.bf16.gmra.mxu3 %vm124_vm5, %v7260_v22 }
 0x823   : > { %v7640_v20 = vsel %vm124_vm5, %v18504_v50, %v11510_v44  ;;  %v7637_v50 = vsel %vm124_vm5, %v10360_v57, %v7595_v54 }
 0x824   : > { %v6710_v63 = vpop.f32.mrf.mxu2  ;;  %v7649_v11 = vpack.c.bf16 %v7641_v58, %v7640_v20 }
 0x825   : > { %v6690_v23 = vpop.f32.mrf.mxu3  ;;  %v18568_v48 = vadd.f32 %v6710_v63, %v6683_v26  ;;  %v10376_v63 = vld [vmem:[%s17824_s9 + $0x72] sm:$0xff] }
 0x826   : > { %v6691_v51 = vadd.f32 %v6690_v23, %v6531_v15  ;;  %v6476_v49 = vpop.f32.mrf.mxu0  ;;  %v18570_v21 = vpop.f32.mrf.mxu1 }
 0x827   : > { %v7623_v23 = vpop.permute.xlu0 %7622 }
 0x829   : > { %10473 = vmatmul.msk.bf16.vlgmr.msrb.gmra.mxu1 %vm124_vm5, %v7260_v22  ;;  %7847 = vmatmul.bf16.gmra.mxu2 %v7651_v5  ;;  %v7644_v5 = vsel %vm124_vm5, %v10376_v63, %v7623_v23 }
 0x82a   : > { %v7655_v43 = vpack.c.bf16 %v7644_v5, %v7644_v5 }
 0x82c   : > { %v6713_v26 = vpop.f32.mrf.mxu2 }
 0x82d   : > { %v6692_v53 = vpop.f32.mrf.mxu3  ;;  %v6714_v42 = vadd.f32 %v6713_v26, %v6686_v41 }
 0x82e   : > { %v6487_v34 = vpop.f32.mrf.mxu0  ;;  %v18578_v1 = vpop.f32.mrf.mxu1 }
 0x82f   : > { %v6488_v35 = vadd.f32 %v6487_v34, %v18479_v27  ;;  %v7654_v27 = vpack.c.bf16 %v7637_v50, %v7637_v50 }
 0x831   : > { %v6516_v10 = vadd.f32 %v18271_v52, %v6488_v35  ;;  %7870 = vmatmul.bf16.gmra.mxu0 %v7649_v11 }
 0x832   : > { %10351 = vmatmul.msk.bf16.gmra.mxu3 %vm124_vm5, %v7263_v0 }
 0x833   : > { %v6676_v41 = vadd.f32 %v18494_v40, %v6516_v10  ;;  %v7643_v40 = vsel %vm124_vm5, %v10375_v47, %v11521_v2 }
 0x834   : > { %v6715_v32 = vpop.f32.mrf.mxu2 }
 0x835   : > { %v6716_v24 = vadd.f32 %v6715_v32, %v6688_v14  ;;  %v6741_v31 = vpop.f32.mrf.mxu3  ;;  %v6704_v28 = vadd.f32 %v18539_v13, %v6676_v41  ;;  %v7642_v13 = vsel %vm124_vm5, %v18543_v12, %v11520_v62  ;;  %v10391_v12 = vld [vmem:[%s17824_s9 + $0x6c] sm:$0xff]  ;;  %s18645_s9 = scalar_lea.vmem [#allocation4], %s9864_s2 }
 0x836   : > { %v18588_v16 = vadd.f32 %v6741_v31, %v6714_v42  ;;  %v6489_v30 = vpop.f32.mrf.mxu0  ;;  %v18590_v52 = vpop.f32.mrf.mxu1  ;;  %v7652_v14 = vpack.c.bf16 %v7643_v40, %v7642_v13  ;;  %v7656_v42 = vpack.c.bf16 %v10392_v8, %v10392_v8 }
 0x837   : > { %v6490_v38 = vadd.f32 %v6489_v30, %v18501_v61 }
 0x839   : > { %v6518_v29 = vadd.f32 %v18309_v33, %v6490_v38  ;;  %10474 = vmatmul.msk.bf16.gmra.mxu1 %vm124_vm5, %v7263_v0  ;;  %7852 = vmatmul.bf16.gmra.mxu2 %v7654_v27 }
 0x83b   : > { %v6678_v19 = vadd.f32 %v18519_v7, %v6518_v29  ;;  %v7653_v7 = vpack.c.bf16 %v10391_v12, %v10268_v25 }
 0x83c   : > { %v6718_v36 = vpop.f32.mrf.mxu2 }
 0x83d   : > { %v6719_v18 = vadd.f32 %v6718_v36, %v6691_v51  ;;  %v6743_v46 = vpop.f32.mrf.mxu3  ;;  %v6706_v61 = vadd.f32 %v18550_v4, %v6678_v19 }
 0x83e   : > { %v18602_v33 = vadd.f32 %v6743_v46, %v6716_v24  ;;  %v6731_v22 = vpop.f32.mrf.mxu0  ;;  %v7065_v60 = vpop.f32.mrf.mxu1 }
 0x83f   : > { %v6732_v9 = vadd.f32 %v6731_v22, %v6704_v28 }
 0x841   : > { %7875 = vmatmul.bf16.gmra.mxu0 %v7652_v14 }
 0x842   : > { %10352 = vmatmul.msk.bf16.gmra.mxu3 %vm124_vm5, %v7266_v3 }
 0x844   : > { %v6720_v56 = vpop.f32.mrf.mxu2 }
 0x845   : > { %v6746_v15 = vpop.f32.mrf.mxu3 }
 0x846   : > { %v18606_v39 = vadd.f32 %v6746_v15, %v6719_v18  ;;  %v6733_v37 = vpop.f32.mrf.mxu0  ;;  %v7068_v6 = vpop.f32.mrf.mxu1 }
 0x847   : > { %v6734_v4 = vadd.f32 %v6733_v37, %v6706_v61 }
 0x849   : > { %10475 = vmatmul.msk.bf16.gmra.mxu1 %vm124_vm5, %v7653_v7 }
 0x84c   : > { %v7114_v51 = vpop.f32.mrf.mxu2 }
 0x84d   : > { %v6748_v49 = vpop.f32.mrf.mxu3 }
 0x84e   : > { %v6736_v44 = vpop.f32.mrf.mxu0  ;;  %v7070_v58 = vpop.f32.mrf.mxu1 }
 0x84f   : > { %v6737_v20 = vadd.f32 %v6736_v44, %v18560_v55 }
 0x851   : > { %7880 = vmatmul.bf16.gmra.mxu0 %v7655_v43 }
 0x854   : > { %v7116_v26 = vpop.f32.mrf.mxu2 }
 0x855   : > { %v7086_v53 = vpop.f32.mrf.mxu3 }
 0x856   : > { %v7087_v11 = vadd.f32 %v7086_v53, %v18570_v21  ;;  %v6738_v34 = vpop.f32.mrf.mxu0  ;;  %v7073_v0 = vpop.f32.mrf.mxu1 }
 0x857   : > { %v6739_v35 = vadd.f32 %v6738_v34, %v18568_v48 }
 0x858   : > { %v7115_v57 = vadd.f32 %v7114_v51, %v7087_v11 }
 0x859   : > { %10476 = vmatmul.msk.bf16.gmra.mxu1 %vm124_vm5, %v7656_v42 }
 0x85a   : > { %v7133_v54 = vadd.f32 %v7115_v57, %v6732_v9 }
 0x85c   : > { %v7119_v10 = vpop.f32.mrf.mxu2 }
 0x85d   : > { %v7088_v50 = vpop.f32.mrf.mxu3 }
 0x85e   : > { %v7089_v17 = vadd.f32 %v7088_v50, %v18578_v1  ;;  %v7075_v55 = vpop.f32.mrf.mxu1  ;;  %v7448_v41 = vpop.f32.mrf.mxu0 }
 0x860   : > { %v7117_v32 = vadd.f32 %v7116_v26, %v7089_v17 }
 0x862   : > { %v7134_v24 = vadd.f32 %v7117_v32, %v6734_v4 }
 0x864   : > { %v7121_v31 = vpop.f32.mrf.mxu2 }
 0x865   : > { %v7091_v28 = vpop.f32.mrf.mxu3 }
 0x866   : > { %v7092_v21 = vadd.f32 %v7091_v28, %v18590_v52  ;;  %v7450_v27 = vpop.f32.mrf.mxu0  ;;  %v7476_v30 = vpop.f32.mrf.mxu1 }
 0x867   : > { %v7477_v43 = vadd.f32 %v7476_v30, %v7448_v41  ;;  %v20023_v30 = vld [vmem:[#allocation135_spill] sm:$0xff] }
 0x868   : > { %v7120_v2 = vadd.f32 %v7119_v10, %v7092_v21  ;;  %v20021_v21 = vld [vmem:[#allocation134_spill] sm:$0xff]  ;;  %vm7971_vm13 = vcmp.lt.f32.partialorder %v20023_v30, 4.0 }
 0x869   : > { %vm7970_vm9 = vcmp.lt.f32.partialorder %v20021_v21, 4.0 }
 0x86a   : > { %v7135_v48 = vadd.f32 %v7120_v2, %v6737_v20  ;;  %v20024_v2 = vld [vmem:[#allocation151_spill] sm:$0xff] }
 0x86b   : > { %vm7978_vm15 = vcmp.lt.f32.partialorder %v20024_v2, 4.0 }
 0x86c   : > { %v7124_v62 = vpop.f32.mrf.mxu2  ;;  %vm7985_vm0 = vmand %vm7971_vm13, %vm7978_vm15 }
 0x86d   : > { %v7093_v38 = vpop.f32.mrf.mxu3 }
 0x86e   : > { %v7094_v47 = vadd.f32 %v7093_v38, %v7065_v60  ;;  %v7453_v29 = vpop.f32.mrf.mxu0  ;;  %v7478_v40 = vpop.f32.mrf.mxu1 }
 0x86f   : > { %v7479_v53 = vadd.f32 %v7478_v40, %v7450_v27 }
 0x870   : > { %v7122_v13 = vadd.f32 %v7121_v31, %v7094_v47 }
 0x872   : > { %v18618_v25 = vadd.f32 %v7122_v13, %v6739_v35 }
 0x874   : > { %v7126_v1 = vpop.f32.mrf.mxu2 }
 0x875   : > { %v7096_v19 = vpop.f32.mrf.mxu3 }
 0x876   : > { %v7097_v36 = vadd.f32 %v7096_v19, %v7068_v6  ;;  %v7455_v14 = vpop.f32.mrf.mxu0  ;;  %v7481_v18 = vpop.f32.mrf.mxu1 }
 0x877   : > { %v7482_v10 = vadd.f32 %v7481_v18, %v7453_v29 }
 0x878   : > { %v7125_v46 = vadd.f32 %v7124_v62, %v7097_v36 }
 0x87a   : > { %v18621_v52 = vadd.f32 %v7125_v46, %v18588_v16 }
 0x87c   : > { %v7129_v61 = vpop.f32.mrf.mxu2 }
 0x87d   : > { %v7098_v22 = vpop.f32.mrf.mxu3 }
 0x87e   : > { %v7099_v3 = vadd.f32 %v7098_v22, %v7070_v58  ;;  %v18623_v9 = vpop.f32.mrf.mxu0  ;;  %v7483_v60 = vpop.f32.mrf.mxu1  ;;  %v20026_v22 = vld [vmem:[#allocation152_spill] sm:$0xff] }
 0x87f   : > { %vm7979_vm14 = vcmp.lt.f32.partialorder %v20026_v22, 4.0 }
 0x880   : > { %v7127_v12 = vadd.f32 %v7126_v1, %v7099_v3 }
 0x882   : > { %v18626_v56 = vadd.f32 %v7127_v12, %v18602_v33 }
 0x884   : > { %v7131_v15 = vpop.f32.mrf.mxu2 }
 0x885   : > { %v7101_v7 = vpop.f32.mrf.mxu3 }
 0x886   : > { %v7102_v37 = vadd.f32 %v7101_v7, %v7073_v0  ;;  %v18628_v6 = vpop.f32.mrf.mxu0  ;;  %v7486_v4 = vpop.f32.mrf.mxu1 }
 0x887   : > { %v7487_v12 = vadd.f32 %v7486_v4, %v18623_v9  ;;  %v20028_v9 = vld [vmem:[#allocation153_spill] sm:$0xff] }
 0x888   : > { %v7130_v63 = vadd.f32 %v7129_v61, %v7102_v37  ;;  %v20025_v61 = vld [vmem:[#allocation136_spill] sm:$0xff]  ;;  %vm7980_vm7 = vcmp.lt.f32.partialorder %v20028_v9, 4.0 }
 0x889   : > { %vm7972_vm4 = vcmp.lt.f32.partialorder %v20025_v61, 4.0 }
 0x88a   : > { %v18631_v16 = vadd.f32 %v7130_v63, %v18606_v39  ;;  %vm7986_vm6 = vmand %vm7972_vm4, %vm7979_vm14 }
 0x88c   : > { %v7838_v23 = vpop.f32.mrf.mxu2 }
 0x88d   : > { %v7103_v5 = vpop.f32.mrf.mxu3 }
 0x88e   : > { %v18633_v51 = vpop.f32.mrf.mxu0  ;;  %v18635_v49 = vpop.f32.mrf.mxu1 }
 0x894   : > { %v7840_v44 = vpop.f32.mrf.mxu2 }
 0x895   : > { %v7504_v33 = vpop.f32.mrf.mxu3 }
 0x896   : > { %v7505_v58 = vadd.f32 %v7504_v33, %v7477_v43  ;;  %v7465_v20 = vpop.f32.mrf.mxu0  ;;  %v18637_v8 = vpop.f32.mrf.mxu1 }
 0x897   : > { %v7492_v21 = vadd.f32 %v18637_v8, %v18633_v51  ;;  %v20032_v51 = vld [vmem:[#allocation155_spill] sm:$0xff] }
 0x898   : > { %v7523_v26 = vadd.f32 %v7505_v58, %v7133_v54  ;;  %v20022_v54 = vld [vmem:[#allocation150_spill] sm:$0xff]  ;;  %vm7982_vm13 = vcmp.lt.f32.partialorder %v20032_v51, 4.0 }
 0x899   : > { %vm7977_vm12 = vcmp.lt.f32.partialorder %v20022_v54, 4.0 }
 0x89a   : > { %vm7984_vm11 = vmand %vm7970_vm9, %vm7977_vm12 }
 0x89c   : > { %v7843_v42 = vpop.f32.mrf.mxu2 }
 0x89d   : > { %v7506_v11 = vpop.f32.mrf.mxu3 }
 0x89e   : > { %v7507_v34 = vadd.f32 %v7506_v11, %v7479_v53  ;;  %v7493_v39 = vpop.f32.mrf.mxu1  ;;  %v7866_v0 = vpop.f32.mrf.mxu0  ;;  %v20027_v53 = vld [vmem:[#allocation137_spill] sm:$0xff] }
 0x89f   : > { %v7867_v57 = vadd.f32 %v7866_v0, %v7838_v23  ;;  %vm7973_vm1 = vcmp.lt.f32.partialorder %v20027_v53, 4.0 }
 0x8a0   : > { %v7524_v35 = vadd.f32 %v7507_v34, %v7134_v24  ;;  %v7484_v24 = vadd.f32 %v7483_v60, %v7455_v14  ;;  %vm7987_vm2 = vmand %vm7973_vm1, %vm7980_vm7 }
 0x8a4   : > { %v7845_v50 = vpop.f32.mrf.mxu2 }
 0x8a5   : > { %v7509_v17 = vpop.f32.mrf.mxu3 }
 0x8a6   : > { %v7510_v55 = vadd.f32 %v7509_v17, %v7482_v10  ;;  %v7868_v41 = vpop.f32.mrf.mxu0  ;;  %v7894_v32 = vpop.f32.mrf.mxu1 }
 0x8a7   : > { %v7895_v31 = vadd.f32 %v7894_v32, %v7867_v57  ;;  %v7869_v38 = vadd.f32 %v7868_v41, %v7840_v44 }
 0x8a8   : > { %v7525_v28 = vadd.f32 %v7510_v55, %v7135_v48  ;;  %v11655_v48 = vmov 0.0  }
 0x8a9   : > { %v7913_v27 = vadd.f32 %v7895_v31, %v7523_v26  ;;  %v18649_v29 = vsel %vm7984_vm11, 1.0, %v11655_v48  ;;  %v18653_v18 = vsel %vm7985_vm0, 1.0, %v11655_v48  ;;  %v18663_v20 = vsel %vm7986_vm6, 1.0, %v11655_v48 }
 0x8aa   : > { %v18673_v32 = vsel %vm7987_vm2, 1.0, %v11655_v48 }
 0x8ab   : > { %8039 = vst [vmem:[%s18645_s9] sm:$0xff] %v7913_v27  ;;  %v7998_v14 = vmul.f32 %v18649_v29, %v7913_v27 }
 0x8ac   : > { %v7848_v62 = vpop.f32.mrf.mxu2 }
 0x8ad   : > { %v7511_v47 = vpop.f32.mrf.mxu3  ;;  %v8018_v7 = vmul.f32 %v7998_v14, %v7913_v27 }
 0x8ae   : > { %v7512_v40 = vadd.f32 %v7511_v47, %v7484_v24  ;;  %v7871_v13 = vpop.f32.mrf.mxu0  ;;  %v7896_v1 = vpop.f32.mrf.mxu1 }
 0x8af   : > { %v7897_v19 = vadd.f32 %v7896_v1, %v7869_v38  ;;  %v7872_v3 = vadd.f32 %v7871_v13, %v7843_v42  ;;  %v7489_v42 = vadd.f32 %v18635_v49, %v18628_v6  ;;  %v20030_v6 = vld [vmem:[#allocation154_spill] sm:$0xff] }
 0x8b0   : > { %v7526_v36 = vadd.f32 %v7512_v40, %v18618_v25  ;;  %vm7981_vm10 = vcmp.lt.f32.partialorder %v20030_v6, 4.0 }
 0x8b1   : > { %v7914_v46 = vadd.f32 %v7897_v19, %v7524_v35  ;;  %v20031_v19 = vld [vmem:[#allocation139_spill] sm:$0xff] }
 0x8b2   : > { %vm7975_vm12 = vcmp.lt.f32.partialorder %v20031_v19, 4.0 }
 0x8b3   : > { %v7999_v60 = vmul.f32 %v18653_v18, %v7914_v46  ;;  %8040 = vst [vmem:[%s18645_s9 + $0x8] sm:$0xff] %v7914_v46  ;;  %vm7989_vm15 = vmand %vm7975_vm12, %vm7982_vm13 }
 0x8b4   : > { %v7850_v15 = vpop.f32.mrf.mxu2 }
 0x8b5   : > { %v8005_v25 = vadd.f32 %v7999_v60, %v7998_v14  ;;  %v8019_v37 = vmul.f32 %v7999_v60, %v7914_v46  ;;  %v7514_v63 = vpop.f32.mrf.mxu3 }
 0x8b6   : > { %v7515_v23 = vadd.f32 %v7514_v63, %v7487_v12  ;;  %v7873_v5 = vpop.f32.mrf.mxu0  ;;  %v7899_v43 = vpop.f32.mrf.mxu1  ;;  %v18690_v12 = vsel %vm7989_vm15, 1.0, %v11655_v48 }
 0x8b7   : > { %v8025_v44 = vadd.f32 %v8019_v37, %v8018_v7  ;;  %v7900_v33 = vadd.f32 %v7899_v43, %v7872_v3  ;;  %v7874_v34 = vadd.f32 %v7873_v5, %v7845_v50  ;;  %v20034_v37 = vld [vmem:[#allocation156_spill] sm:$0xff] }
 0x8b8   : > { %v7527_v58 = vadd.f32 %v7515_v23, %v18621_v52  ;;  %vm7983_vm0 = vcmp.lt.f32.partialorder %v20034_v37, 4.0 }
 0x8b9   : > { %v7915_v26 = vadd.f32 %v7900_v33, %v7525_v28  ;;  %v20029_v28 = vld [vmem:[#allocation138_spill] sm:$0xff] }
 0x8ba   : > { %vm7974_vm8 = vcmp.lt.f32.partialorder %v20029_v28, 4.0 }
 0x8bb   : > { %v8000_v4 = vmul.f32 %v18663_v20, %v7915_v26  ;;  %8041 = vst [vmem:[%s18645_s9 + $0x10] sm:$0xff] %v7915_v26  ;;  %vm7988_vm9 = vmand %vm7974_vm8, %vm7981_vm10 }
 0x8bc   : > { %v7853_v11 = vpop.f32.mrf.mxu2 }
 0x8bd   : > { %v8006_v39 = vadd.f32 %v8005_v25, %v8000_v4  ;;  %v8020_v0 = vmul.f32 %v8000_v4, %v7915_v26  ;;  %v7516_v52 = vpop.f32.mrf.mxu3  ;;  %v20033_v25 = vld [vmem:[#allocation140_spill] sm:$0xff] }
 0x8be   : > { %v7517_v35 = vadd.f32 %v7516_v52, %v7489_v42  ;;  %v7876_v57 = vpop.f32.mrf.mxu0  ;;  %v7901_v10 = vpop.f32.mrf.mxu1  ;;  %vm7976_vm11 = vcmp.lt.f32.partialorder %v20033_v25, 4.0 }
 0x8bf   : > { %v8026_v17 = vadd.f32 %v8025_v44, %v8020_v0  ;;  %v7902_v55 = vadd.f32 %v7901_v10, %v7874_v34  ;;  %v7877_v49 = vadd.f32 %v7876_v57, %v7848_v62  ;;  %v18683_v62 = vsel %vm7988_vm9, 1.0, %v11655_v48  ;;  %vm7990_vm4 = vmand %vm7976_vm11, %vm7983_vm0 }
 0x8c0   : > { %v7528_v41 = vadd.f32 %v7517_v35, %v18626_v56  ;;  %v18697_v26 = vsel %vm7990_vm4, 1.0, %v11655_v48 }
 0x8c1   : > { %v7916_v31 = vadd.f32 %v7902_v55, %v7526_v36 }
 0x8c3   : > { %v8001_v50 = vmul.f32 %v18673_v32, %v7916_v31  ;;  %8042 = vst [vmem:[%s18645_s9 + $0x18] sm:$0xff] %v7916_v31 }
 0x8c4   : > { %v7855_v54 = vpop.f32.mrf.mxu2 }
 0x8c5   : > { %v8007_v27 = vadd.f32 %v8006_v39, %v8001_v50  ;;  %v8021_v30 = vmul.f32 %v8001_v50, %v7916_v31  ;;  %v7519_v56 = vpop.f32.mrf.mxu3 }
 0x8c6   : > { %v7520_v2 = vadd.f32 %v7519_v56, %v7492_v21  ;;  %v7878_v24 = vpop.f32.mrf.mxu0  ;;  %v7904_v38 = vpop.f32.mrf.mxu1 }
 0x8c7   : > { %v8027_v47 = vadd.f32 %v8026_v17, %v8021_v30  ;;  %v7905_v40 = vadd.f32 %v7904_v38, %v7877_v49  ;;  %v7879_v36 = vadd.f32 %v7878_v24, %v7850_v15 }
 0x8c8   : > { %v7529_v13 = vadd.f32 %v7520_v2, %v18631_v16 }
 0x8c9   : > { %v7917_v1 = vadd.f32 %v7905_v40, %v7527_v58 }
 0x8cb   : > { %v8002_v8 = vmul.f32 %v18683_v62, %v7917_v1  ;;  %8043 = vst [vmem:[%s18645_s9 + $0x20] sm:$0xff] %v7917_v1 }
 0x8cd   : > { %v8008_v14 = vadd.f32 %v8007_v27, %v8002_v8  ;;  %v8022_v46 = vmul.f32 %v8002_v8, %v7917_v1  ;;  %v7521_v61 = vpop.f32.mrf.mxu3 }
 0x8ce   : > { %v7881_v22 = vpop.f32.mrf.mxu0  ;;  %v7906_v3 = vpop.f32.mrf.mxu1 }
 0x8cf   : > { %v8028_v16 = vadd.f32 %v8027_v47, %v8022_v46  ;;  %v7907_v60 = vadd.f32 %v7906_v3, %v7879_v36  ;;  %v7882_v63 = vadd.f32 %v7881_v22, %v7853_v11 }
 0x8d1   : > { %v7918_v7 = vadd.f32 %v7907_v60, %v7528_v41 }
 0x8d3   : > { %v8003_v15 = vmul.f32 %v18690_v12, %v7918_v7  ;;  %8044 = vst [vmem:[%s18645_s9 + $0x28] sm:$0xff] %v7918_v7 }
 0x8d5   : > { %v8009_v23 = vadd.f32 %v8008_v14, %v8003_v15  ;;  %v8023_v5 = vmul.f32 %v8003_v15, %v7918_v7 }
 0x8d6   : > { %v7883_v43 = vpop.f32.mrf.mxu0  ;;  %v7909_v44 = vpop.f32.mrf.mxu1 }
 0x8d7   : > { %v8029_v33 = vadd.f32 %v8028_v16, %v8023_v5  ;;  %v7910_v58 = vadd.f32 %v7909_v44, %v7882_v63 }
 0x8d9   : > { %v7919_v53 = vadd.f32 %v7910_v58, %v7529_v13 }
 0x8db   : > { %v8004_v9 = vmul.f32 %v18697_v26, %v7919_v53  ;;  %8045 = vst [vmem:[%s18645_s9 + $0x30] sm:$0xff] %v7919_v53 }
 0x8dd   : > { %v8010_v4 = vadd.f32 %v8009_v23, %v8004_v9  ;;  %v8024_v42 = vmul.f32 %v8004_v9, %v7919_v53 }
 0x8de   : > { %v7911_v11 = vpop.f32.mrf.mxu1 }
 0x8df   : > { %v8011_v34 = vrot.slane %v8010_v4, 4  ;;  %v8030_v39 = vadd.f32 %v8029_v33, %v8024_v42 }
 0x8e1   : > { %v8012_v0 = vadd.f32 %v8011_v34, %v8010_v4  ;;  %v8031_v52 = vrot.slane %v8030_v39, 4 }
 0x8e3   : > { %v8013_v35 = vrot.slane %v8012_v0, 2  ;;  %v8032_v57 = vadd.f32 %v8031_v52, %v8030_v39 }
 0x8e5   : > { %v8014_v10 = vadd.f32 %v8013_v35, %v8012_v0  ;;  %v8033_v17 = vrot.slane %v8032_v57, 2 }
 0x8e7   : > { %v8015_v55 = vrot.slane %v8014_v10, 1  ;;  %v8034_v41 = vadd.f32 %v8033_v17, %v8032_v57 }
 0x8e9   : > { %v8016_v31 = vadd.f32 %v8015_v55, %v8014_v10  ;;  %v8035_v48 = vrot.slane %v8034_v41, 1 }
 0x8eb   : > { %v8017_v28 = vadd.f32 %v11639_v59, %v8016_v31   ;;  %v8036_v6 = vadd.f32 %v8035_v48, %v8034_v41  ;;  %5980 = sbr.rel (!%p5978_p4) target bundleno = 1776 (0x6f0), region = 247 }
 0x8ed   : > { %v8037_v49 = vadd.f32 %v11635_v45, %v8036_v6   ;;  %v20036_v59 = vmov %v8017_v28  ;;  %v18710_v50 = vmul.f32 (%p5978_p4), 0.03125, %v8017_v28 }
 0x8ef   : > { %v20035_v45 = vmov %v8037_v49  ;;  %v8047_v21 = vmul.f32 (%p5978_p4), 0.03125, %v8037_v49  ;;  %v8048_v54 = vmul.f32 (%p5978_p4), %v18710_v50, %v18710_v50 }
 0x8f1   :  { %v8049_v59 = vsub.f32 %v8047_v21, %v8048_v54 }
 0x8f3   :  { %v8050_v27 = vadd.f32 1e-05, %v8049_v59 }
 0x8f5   :  { %11522 = vrsqrt.f32 %v8050_v27  ;;  %vm8057_vm14 = vweird.f32 %v8050_v27 }
 0x8fb   :  { %v11523_v30 = vpop.eup %11522 }
 0x8fc   :  { %v8052_v56 = vmul.f32 %v11523_v30, %v8050_v27  ;;  %vm8058_vm6 = vweird.f32 %v11523_v30 }
 0x8fd   :  { %vm8059_vm1 = vmor %vm8057_vm14, %vm8058_vm6 }
 0x8fe   :  { %v8053_v2 = vmul.f32 %v11523_v30, %v8052_v56 }
 0x900   :  { %v8054_v24 = vmul.f32 0.5, %v8053_v2 }
 0x902   :  { %v8055_v38 = vsub.f32 1.5, %v8054_v24 }
 0x904   :  { %v8056_v47 = vmul.f32 %v11523_v30, %v8055_v38 }
 0x906   :  { %v18714_v40 = vsel %vm8059_vm1, %v11523_v30, %v8056_v47 }
 0x907 LB: > { %s10477_s16 = sshll.u32 %s11647_s4, 8  ;;  %s8090_s2 = scalar_lea.vmem [#allocation7], %s11647_s4  ;;  %s11647_s4 = sphi %s18716_s4, %s8066_s4  }
 0x908   : > { %v11524_v45 = vld [vmem:[%s8090_s2] ss:$0 sm:$0xff]  ;;  %s8068_s28 = scalar_lea.vmem [#allocation4], %s10477_s16  ;;  %s8205_s7 = scalar_lea.vmem [#allocation8], %s11647_s4 }
 0x909   : > { %v8069_v13 = vld [vmem:[%s8068_s28] sm:$0xff]  ;;  %v8070_v1 = vld [vmem:[%s8068_s28 + $0x8] sm:$0xff]  ;;  %v8071_v19 = vld [vmem:[%s8068_s28 + $0x10] sm:$0xff]  ;;  %s8066_s4 = sadd.s32 1, %s11647_s4  }
 0x90a   : > { %v8072_v51 = vld [vmem:[%s8068_s28 + $0x18] sm:$0xff]  ;;  %v8073_v8 = vld [vmem:[%s8068_s28 + $0x20] sm:$0xff]  ;;  %v8074_v36 = vld [vmem:[%s8068_s28 + $0x28] sm:$0xff]  ;;  %v8076_v14 = vsub.f32 %v8069_v13, %v18710_v50  ;;  %v8077_v46 = vsub.f32 %v8070_v1, %v18710_v50  ;;  %v8078_v61 = vsub.f32 %v8071_v19, %v18710_v50  ;;  %p8063_p5 = scmp.ge.s32.totalorder %s8066_s4, 2  }
 0x90b   : > { %v8075_v22 = vld [vmem:[%s8068_s28 + $0x30] sm:$0xff]  ;;  %v8079_v3 = vsub.f32 %v8072_v51, %v18710_v50  ;;  %v8080_v16 = vsub.f32 %v8073_v8, %v18710_v50  ;;  %v8081_v60 = vsub.f32 %v8074_v36, %v18710_v50  ;;  %v8223_v13 = vld [vmem:[%s18828_s10 + $0x78] sm:$0xff] (%p8063_p5)  ;;  %v8221_v19 = vld [vmem:[%s18828_s10 + $0x68] sm:$0xff] (%p8063_p5)  ;;  %s11656_s26 = smov (%p8063_p5), [#allocation9]   ;;  %vm8280_vm5 = vcmask (%p8063_p5), 25600  }
 0x90c   : > { %v8082_v7 = vsub.f32 %v8075_v22, %v18710_v50  ;;  %v8083_v25 = vmul.f32 %v8076_v14, %v18714_v40  ;;  %v8084_v37 = vmul.f32 %v8077_v46, %v18714_v40  ;;  %v8085_v63 = vmul.f32 %v8078_v61, %v18714_v40  ;;  %v8222_v1 = vld [vmem:[%s18828_s10 + $0x70] sm:$0xff] (%p8063_p5)  ;;  %8228 = vmatpush.msra.mxu0 (%p8063_p5), %v8223_v13  ;;  %v8220_v51 = vld [vmem:[%s18828_s10 + $0x60] sm:$0xff] (%p8063_p5)  ;;  %v8213_v50 = vld [vmem:[%s18828_s10 + $0x28] sm:$0xff] (%p8063_p5)  ;;  %s8287_s27 = sshll.u32 (%p8063_p5), %s11656_s26, 4  ;;  %s8288_s27 = int_to_ptr.vmem [resolvable:$true] %s8287_s27 }
 0x90d   : > { %v8086_v15 = vmul.f32 %v8079_v3, %v18714_v40  ;;  %v8087_v23 = vmul.f32 %v8080_v16, %v18714_v40  ;;  %v8088_v5 = vmul.f32 %v8081_v60, %v18714_v40  ;;  %v8211_v8 = vld [vmem:[%s18828_s10 + $0x18] sm:$0xff] (%p8063_p5)  ;;  %v8210_v36 = vld [vmem:[%s18828_s10 + $0x10] sm:$0xff] (%p8063_p5)  ;;  %v8209_v14 = vld [vmem:[%s18828_s10 + $0x8] sm:$0xff] (%p8063_p5) }
 0x90e   : > { %v8089_v43 = vmul.f32 %v8082_v7, %v18714_v40  ;;  %v8093_v44 = vadd.f32 %v11524_v45, %v8083_v25  ;;  %v8094_v33 = vadd.f32 %v11524_v45, %v8084_v37  ;;  %v8095_v58 = vadd.f32 %v11524_v45, %v8085_v63  ;;  %8229 = vmatpush.msra.mxu0 (%p8063_p5), %v8222_v1  ;;  %v8212_v40 = vld [vmem:[%s18828_s10 + $0x20] sm:$0xff] (%p8063_p5)  ;;  %v8251_v22 = vld [vmem:[%s18830_s12 + $0x10] sm:$0xff] (%p8063_p5)  ;;  %v8250_v3 = vld [vmem:[%s18830_s12 + $0x8] sm:$0xff] (%p8063_p5) }
 0x90f   : > { %v8096_v53 = vadd.f32 %v11524_v45, %v8086_v15  ;;  %v8097_v9 = vadd.f32 %v11524_v45, %v8087_v23  ;;  %v8098_v4 = vadd.f32 %v11524_v45, %v8088_v5  ;;  %v8208_v46 = vld [vmem:[%s18828_s10] sm:$0xff] (%p8063_p5) }
 0x910   : > { %v8100_v42 = vmax.f32 %v8093_v44, 0.0  ;;  %v8101_v11 = vmax.f32 %v8094_v33, 0.0  ;;  %v8102_v34 = vmax.f32 %v8095_v58, 0.0  ;;  %v8099_v39 = vadd.f32 %v11524_v45, %v8089_v43  ;;  %8230 = vmatpush.msra.mxu0 (%p8063_p5), %v8221_v19  ;;  %v8249_v16 = vld [vmem:[%s18830_s12] sm:$0xff] (%p8063_p5) }
 0x911   : > { %v8103_v0 = vmax.f32 %v8096_v53, 0.0  ;;  %v8104_v52 = vmax.f32 %v8097_v9, 0.0  ;;  %v8105_v17 = vmax.f32 %v8098_v4, 0.0  ;;  %v11525_v60 = vld [vmem:[%s18829_s11] ss:$0 sm:$0xff] (%p8063_p5) }
 0x912   : > { %v8185_v35 = vmul.f32 %v8100_v42, %v18649_v29  ;;  %v8186_v57 = vmul.f32 %v8101_v11, %v18653_v18  ;;  %v8187_v10 = vmul.f32 %v8102_v34, %v18663_v20  ;;  %v8106_v31 = vmax.f32 %v8099_v39, 0.0  ;;  %v8252_v29 = vld [vmem:[%s18830_s12 + $0x18] sm:$0xff] (%p8063_p5)  ;;  %8231 = vmatpush.msra.mxu0 (%p8063_p5), %v8220_v51  ;;  %v8218_v20 = vld [vmem:[%s18828_s10 + $0x50] sm:$0xff] (%p8063_p5)  ;;  %v11526_v63 = vld [vmem:[%s18831_s13] ss:$0 sm:$0xff] (%p8063_p5)  ;;  %s8289_s12 = sshll.u32 (%p8063_p5), %s18832_s14, 4  ;;  %s8290_s12 = int_to_ptr.hbm [resolvable:$true] %s8289_s12 }
 0x913   : > { %v8188_v55 = vmul.f32 %v8103_v0, %v18673_v32  ;;  %v8189_v48 = vmul.f32 %v8104_v52, %v18683_v62  ;;  %v8190_v6 = vmul.f32 %v8105_v17, %v18690_v12  ;;  %v8219_v18 = vld [vmem:[%s18828_s10 + $0x58] sm:$0xff] (%p8063_p5)  ;;  %8272 = vmatpush.msra.mxu1 (%p8063_p5), %v8252_v29  ;;  %v8217_v32 = vld [vmem:[%s18828_s10 + $0x48] sm:$0xff] (%p8063_p5)  ;;  %v8216_v62 = vld [vmem:[%s18828_s10 + $0x40] sm:$0xff] (%p8063_p5) }
 0x914   : > { %v8192_v41 = vadd.f32 %v8186_v57, %v8185_v35  ;;  %v8191_v21 = vmul.f32 %v8106_v31, %v18697_v26  ;;  %8232 = vmatpush.msra.mxu0 (%p8063_p5), %v8219_v18  ;;  %v8215_v12 = vld [vmem:[%s18828_s10 + $0x38] sm:$0xff] (%p8063_p5)  ;;  %v8214_v26 = vld [vmem:[%s18828_s10 + $0x30] sm:$0xff] (%p8063_p5) }
 0x915   :  { %8273 = vmatpush.msra.mxu1 (%p8063_p5), %v8251_v22 }
 0x916   : > { %v8193_v28 = vadd.f32 %v8192_v41, %v8187_v10  ;;  %8233 = vmatpush.msra.mxu0 (%p8063_p5), %v8218_v20 }
 0x917   :  { %8274 = vmatpush.msra.mxu1 (%p8063_p5), %v8250_v3 }
 0x918   : > { %v8194_v49 = vadd.f32 %v8193_v28, %v8188_v55  ;;  %8234 = vmatpush.msra.mxu0 (%p8063_p5), %v8217_v32 }
 0x919   :  { %8275 = vmatpush.msra.mxu1 (%p8063_p5), %v8249_v16 }
 0x91a   : > { %v8195_v54 = vadd.f32 %v8194_v49, %v8189_v48  ;;  %8235 = vmatpush.msra.mxu0 (%p8063_p5), %v8216_v62 }
 0x91c   : > { %v8196_v59 = vadd.f32 %v8195_v54, %v8190_v6  ;;  %8236 = vmatpush.msra.mxu0 (%p8063_p5), %v8215_v12 }
 0x91e   : > { %v8197_v27 = vadd.f32 %v8196_v59, %v8191_v21  ;;  %8237 = vmatpush.msra.mxu0 (%p8063_p5), %v8214_v26 }
 0x920   : > { %v8198_v30 = vrot.slane %v8197_v27, 4  ;;  %8238 = vmatpush.msra.mxu0 (%p8063_p5), %v8213_v50 }
 0x922   : > { %v8199_v56 = vadd.f32 %v8198_v30, %v8197_v27  ;;  %8239 = vmatpush.msra.mxu0 (%p8063_p5), %v8212_v40 }
 0x924   : > { %v8200_v2 = vrot.slane %v8199_v56, 2  ;;  %8240 = vmatpush.msra.mxu0 (%p8063_p5), %v8211_v8 }
 0x926   : > { %v8201_v24 = vadd.f32 %v8200_v2, %v8199_v56  ;;  %8241 = vmatpush.msra.mxu0 (%p8063_p5), %v8210_v36 }
 0x928   : > { %v8202_v38 = vrot.slane %v8201_v24, 1  ;;  %8242 = vmatpush.msra.mxu0 (%p8063_p5), %v8209_v14 }
 0x92a   : > { %v8203_v47 = vadd.f32 %v8202_v38, %v8201_v24  ;;  %8065 = sbr.rel (!%p8063_p5) target bundleno = 2311 (0x907), region = 258  ;;  %8243 = vmatpush.msra.mxu0 (%p8063_p5), %v8208_v46 }
 0x92c   : > { %v8204_v45 = vmul.f32 0.0625, %v8203_v47 }
 0x92e   : > { %8206 = vst [vmem:[%s8205_s7] sm:$0x1] %v8204_v45 }
 0x935   :  { %v8207_v61 = vld [vmem:[#allocation8] sm:$0x3] }
 0x936   :  { %8244 = vmatmul.f32.vlgmr.msra.gmra.mxu0 %v8207_v61 }
 0x9b3   :  { %v8245_v7 = vpop.f32.mrf.mxu0 }
 0x9b4   :  { %v8246_v25 = vadd.f32 %v11525_v60, %v8245_v7 }
 0x9b6   :  { %v8248_v37 = vmax.f32 %v8246_v25, 0.0 }
 0x9b8   :  { %10478 = vmatmul.msk.f32.vlgmr.msra.gmra.mxu1 %vm88_vm3, %v8248_v37 }
 0xa35   :  { %v8277_v15 = vpop.f32.mrf.mxu1 }
 0xa36   :  { %v8278_v23 = vadd.f32 %v11526_v63, %v8277_v15 }
 0xa38   :  { %8281 = vst.msk [vmem:[#allocation9] sm:$0x3] %vm8280_vm5, %v8278_v23 }
 0xa39   :  { %8292 = dma.vmem_to_hbm [thread:$0]  %s8288_s27, 32, %s8290_s12, [#allocation10]  }
 0xa3a   :  { %11599 = dma.done.wait [#allocation10], 32  }
 0xa3b   :  { %11600 = vsyncadd [#allocation10], 4294967264 }
 0xa3c   :  { %8297 = vsyncpa [#allocation10], 1 }

</bundles_post_ra>
